<compile_context>
chip_gen: v7x
topology: tpu7x:2x2x1
jax: 0.10.0
libtpu: 0.0.40
codegen_flags: <defaults>
</compile_context>

<pallas_src>
import functools
import jax
import jax.numpy as jnp
from jax.experimental import pallas as pl
from jax.experimental.pallas import tpu as pltpu

# ----------------------------- model config (small, synthetic) --------------
B = 2                 # batch (must be even: .chunk(2, 0) in forward)
IMG = 32              # image resolution (config['image_res'], scaled down)
PATCH = 16            # patch size (as in the module)
D = 64                # embed dim (768 in the module, scaled down)
VIT_HEADS = 4
VIT_DEPTH = 2         # 12 in the module, scaled down for the synthetic test
BERT_HEADS = 4
BERT_DEPTH = 8        # >= 7 so output.hidden_states[6] exists
FUSION_LAYER = 6      # cross-attention layers start here (ALBEF-style)
MLP_HID = 4 * D
T_TEXT = 8            # text sequence length
VOCAB = 100
MAX_POS = 64

VIT_EPS = 1e-6
BERT_EPS = 1e-12

# ----------------------------- in-kernel helpers -----------------------------


def _dot(a, b):
    return jnp.dot(a, b, preferred_element_type=jnp.float32)


def _ln_inline(x, g, b, eps):
    mu = jnp.mean(x, axis=-1, keepdims=True)
    xc = x - mu
    var = jnp.mean(xc * xc, axis=-1, keepdims=True)
    return xc * jax.lax.rsqrt(var + eps) * g + b


def _gelu(h):
    # TODO(synk): PyTorch nn.GELU defaults to exact erf; tanh approximation used here.
    c = 0.7978845608028654  # sqrt(2/pi)
    return 0.5 * h * (1.0 + jnp.tanh(c * (h + 0.044715 * h * h * h)))


def _softmax_rows(s):
    s = s - jnp.max(s, axis=-1, keepdims=True)
    e = jnp.exp(s)
    return e * pl.reciprocal(jnp.sum(e, axis=-1, keepdims=True), approx=True)


def _attn_core(q, k, v, ow, n_heads, bias=None):
    """Multi-head attention for one batch element, fused output projection.

    q: (Tq, D), k/v: (Tk, D), ow: (D, D).  Heads are static lane slices; the
    head merge is folded into the output projection so nothing is concatenated.
    Output-projection bias is added by the caller.
    """
    Tq, Dd = q.shape
    Dh = Dd // n_heads
    scale = Dh ** -0.5
    out = jnp.zeros((Tq, ow.shape[-1]), jnp.float32)
    for h in range(n_heads):
        sl = slice(h * Dh, (h + 1) * Dh)
        s = jax.lax.dot_general(q[:, sl], k[:, sl], (((1,), (1,)), ((), ())),
                                preferred_element_type=jnp.float32) * scale
        if bias is not None:
            s = s + bias
        p = _softmax_rows(s)
        out = out + _dot(_dot(p, v[:, sl]), ow[sl, :])
    return out


# ----------------------------- fused layer kernels ---------------------------


def _vit_block_kernel(x_ref, ln1g, ln1b, qkvw, qkvb, projw, projb,
                      ln2g, ln2b, fc1w, fc1b, fc2w, fc2b, o_ref,
                      *, n_heads, eps):
    x = x_ref[0]                                   # (T, D)
    Dd = x.shape[-1]
    y = _ln_inline(x, ln1g[...], ln1b[...], eps)
    qkv = _dot(y, qkvw[...]) + qkvb[...]
    # ViT self-attention has no mask -> no bias input (zero-bias DMA removed).
    attn = _attn_core(qkv[:, :Dd], qkv[:, Dd:2 * Dd], qkv[:, 2 * Dd:],
                      projw[...], n_heads) + projb[...]
    x = x + attn
    y2 = _ln_inline(x, ln2g[...], ln2b[...], eps)
    mlp = _dot(_gelu(_dot(y2, fc1w[...]) + fc1b[...]), fc2w[...]) + fc2b[...]
    o_ref[0] = x + mlp


def _bert_self_layer_kernel(x_ref, bias_ref, sqkvw, sqkvb, sow, sob, slng, slnb,
                            f1w, f1b, f2w, f2b, flng, flnb, o_ref,
                            *, n_heads, eps):
    x = x_ref[0]                                   # (T, D)
    bias = bias_ref[0]                             # (1, T) text key mask
    Dd = x.shape[-1]
    qkv = _dot(x, sqkvw[...]) + sqkvb[...]
    attn = _attn_core(qkv[:, :Dd], qkv[:, Dd:2 * Dd], qkv[:, 2 * Dd:],
                      sow[...], n_heads, bias=bias) + sob[...]
    x = _ln_inline(x + attn, slng[...], slnb[...], eps)
    ff = _dot(_gelu(_dot(x, f1w[...]) + f1b[...]), f2w[...]) + f2b[...]
    o_ref[0] = _ln_inline(x + ff, flng[...], flnb[...], eps)


def _bert_cross_layer_kernel(x_ref, bias_ref, img_ref,
                             sqkvw, sqkvb, sow, sob, slng, slnb,
                             cqw, cqb, ckvw, ckvb, cow, cob, clng, clnb,
                             f1w, f1b, f2w, f2b, flng, flnb, o_ref,
                             *, n_heads, eps):
    x = x_ref[0]                                   # (T, D)
    bias = bias_ref[0]                             # (1, T)
    img = img_ref[0]                               # (Ti, D)
    Dd = x.shape[-1]
    # self-attention
    qkv = _dot(x, sqkvw[...]) + sqkvb[...]
    attn = _attn_core(qkv[:, :Dd], qkv[:, Dd:2 * Dd], qkv[:, 2 * Dd:],
                      sow[...], n_heads, bias=bias) + sob[...]
    x = _ln_inline(x + attn, slng[...], slnb[...], eps)
    # cross-attention on image tokens; image attention mask is all ones in the
    # reference forward, so the (zero) bias is omitted entirely.
    qc = _dot(x, cqw[...]) + cqb[...]
    kv = _dot(img, ckvw[...]) + ckvb[...]
    cross = _attn_core(qc, kv[:, :Dd], kv[:, Dd:], cow[...], n_heads) + cob[...]
    x = _ln_inline(x + cross, clng[...], clnb[...], eps)
    # FFN
    ff = _dot(_gelu(_dot(x, f1w[...]) + f1b[...]), f2w[...]) + f2b[...]
    o_ref[0] = _ln_inline(x + ff, flng[...], flnb[...], eps)


# ----------------------------- pallas_call builders ---------------------------


def _rep(shape):
    """Full-array weight block, replicated (same block) for every grid step."""
    nd = len(shape)
    return pl.BlockSpec(shape, lambda b, _n=nd: (0,) * _n)


_PARALLEL = pltpu.CompilerParams(dimension_semantics=("parallel",))


@functools.lru_cache(maxsize=None)
def _vit_block_call(B_, T_, Dd, n_heads, Hmlp):
    tok = pl.BlockSpec((1, T_, Dd), lambda b: (b, 0, 0))
    in_specs = [tok,
                _rep((1, Dd)), _rep((1, Dd)),
                _rep((Dd, 3 * Dd)), _rep((1, 3 * Dd)),
                _rep((Dd, Dd)), _rep((1, Dd)),
                _rep((1, Dd)), _rep((1, Dd)),
                _rep((Dd, Hmlp)), _rep((1, Hmlp)),
                _rep((Hmlp, Dd)), _rep((1, Dd))]
    return pl.pallas_call(
        functools.partial(_vit_block_kernel, n_heads=n_heads, eps=VIT_EPS),
        out_shape=jax.ShapeDtypeStruct((B_, T_, Dd), jnp.float32),
        grid=(B_,),
        in_specs=in_specs,
        out_specs=tok,
        compiler_params=_PARALLEL,
    )


@functools.lru_cache(maxsize=None)
def _bert_self_layer_call(B_, T_, Dd, n_heads, Hmlp):
    tok = pl.BlockSpec((1, T_, Dd), lambda b: (b, 0, 0))
    bias = pl.BlockSpec((1, 1, T_), lambda b: (b, 0, 0))
    in_specs = [tok, bias,
                _rep((Dd, 3 * Dd)), _rep((1, 3 * Dd)),
                _rep((Dd, Dd)), _rep((1, Dd)),
                _rep((1, Dd)), _rep((1, Dd)),
                _rep((Dd, Hmlp)), _rep((1, Hmlp)),
                _rep((Hmlp, Dd)), _rep((1, Dd)),
                _rep((1, Dd)), _rep((1, Dd))]
    return pl.pallas_call(
        functools.partial(_bert_self_layer_kernel, n_heads=n_heads, eps=BERT_EPS),
        out_shape=jax.ShapeDtypeStruct((B_, T_, Dd), jnp.float32),
        grid=(B_,),
        in_specs=in_specs,
        out_specs=tok,
        compiler_params=_PARALLEL,
    )


@functools.lru_cache(maxsize=None)
def _bert_cross_layer_call(B_, T_, Ti_, Dd, n_heads, Hmlp):
    tok = pl.BlockSpec((1, T_, Dd), lambda b: (b, 0, 0))
    bias = pl.BlockSpec((1, 1, T_), lambda b: (b, 0, 0))
    img = pl.BlockSpec((1, Ti_, Dd), lambda b: (b, 0, 0))
    in_specs = [tok, bias, img,
                _rep((Dd, 3 * Dd)), _rep((1, 3 * Dd)),
                _rep((Dd, Dd)), _rep((1, Dd)),
                _rep((1, Dd)), _rep((1, Dd)),
                _rep((Dd, Dd)), _rep((1, Dd)),
                _rep((Dd, 2 * Dd)), _rep((1, 2 * Dd)),
                _rep((Dd, Dd)), _rep((1, Dd)),
                _rep((1, Dd)), _rep((1, Dd)),
                _rep((Dd, Hmlp)), _rep((1, Hmlp)),
                _rep((Hmlp, Dd)), _rep((1, Dd)),
                _rep((1, Dd)), _rep((1, Dd))]
    return pl.pallas_call(
        functools.partial(_bert_cross_layer_kernel, n_heads=n_heads, eps=BERT_EPS),
        out_shape=jax.ShapeDtypeStruct((B_, T_, Dd), jnp.float32),
        grid=(B_,),
        in_specs=in_specs,
        out_specs=tok,
        compiler_params=_PARALLEL,
    )


def run_vit_block(x, blk):
    B_, T_, Dd = x.shape
    return _vit_block_call(B_, T_, Dd, VIT_HEADS, MLP_HID)(
        x, blk['ln1_g'], blk['ln1_b'], blk['qkv']['w'], blk['qkv']['b'],
        blk['proj']['w'], blk['proj']['b'], blk['ln2_g'], blk['ln2_b'],
        blk['fc1']['w'], blk['fc1']['b'], blk['fc2']['w'], blk['fc2']['b'])


def run_bert_self_layer(x, bias, lp):
    B_, T_, Dd = x.shape
    s, f = lp['self'], lp['ffn']
    return _bert_self_layer_call(B_, T_, Dd, BERT_HEADS, MLP_HID)(
        x, bias,
        s['qkv']['w'], s['qkv']['b'], s['o']['w'], s['o']['b'],
        s['ln_g'], s['ln_b'],
        f['fc1']['w'], f['fc1']['b'], f['fc2']['w'], f['fc2']['b'],
        f['ln_g'], f['ln_b'])


def run_bert_cross_layer(x, bias, img, lp):
    B_, T_, Dd = x.shape
    Ti_ = img.shape[1]
    s, c, f = lp['self'], lp['cross'], lp['ffn']
    return _bert_cross_layer_call(B_, T_, Ti_, Dd, BERT_HEADS, MLP_HID)(
        x, bias, img,
        s['qkv']['w'], s['qkv']['b'], s['o']['w'], s['o']['b'],
        s['ln_g'], s['ln_b'],
        c['q']['w'], c['q']['b'], c['kv']['w'], c['kv']['b'],
        c['o']['w'], c['o']['b'], c['ln_g'], c['ln_b'],
        f['fc1']['w'], f['fc1']['b'], f['fc2']['w'], f['fc2']['b'],
        f['ln_g'], f['ln_b'])


# ----------------------------- small standalone kernels ----------------------


def _linear_kernel(x_ref, w_ref, b_ref, o_ref):
    o_ref[...] = _dot(x_ref[...], w_ref[...]) + b_ref[...]


@functools.lru_cache(maxsize=None)
def _linear_call(M, K, N):
    return pl.pallas_call(
        _linear_kernel, out_shape=jax.ShapeDtypeStruct((M, N), jnp.float32))


def linear(x2d, w, b):          # b already stored as (1, N)
    M, K = x2d.shape
    return _linear_call(M, K, w.shape[1])(x2d, w, b)


def _ln_kernel(x_ref, g_ref, b_ref, o_ref, *, eps):
    o_ref[...] = _ln_inline(x_ref[...], g_ref[...], b_ref[...], eps)


@functools.lru_cache(maxsize=None)
def _ln_call(M, Dd, eps):
    return pl.pallas_call(
        functools.partial(_ln_kernel, eps=eps),
        out_shape=jax.ShapeDtypeStruct((M, Dd), jnp.float32))


def layernorm(x, g, b, eps):    # g, b stored as (1, D)
    shp = x.shape
    x2 = x.reshape(-1, shp[-1])
    return _ln_call(x2.shape[0], x2.shape[1], float(eps))(x2, g, b).reshape(shp)


# Fused: both cls heads (+softmax) and the KL consistency term, single launch.
def _heads_kl_kernel(last_ref, hi_ref, ht_ref, ti_ref, tt_ref,
                     hw1, hb1, hw2, hb2, tw1, tb1, tw2, tb2,
                     hl_ref, hs_ref, tl_ref, ts_ref, klh_ref, klt_ref):
    x = last_ref[...]

    def head(w1, b1, w2, b2, l_ref, s_ref):
        h = jnp.maximum(_dot(x, w1[...]) + b1[...], 0.0)
        l = _dot(h, w2[...]) + b2[...]
        l_ref[...] = l
        e = jnp.exp(l - jnp.max(l, axis=-1, keepdims=True))
        s_ref[...] = e * pl.reciprocal(jnp.sum(e, axis=-1, keepdims=True),
                                       approx=True)

    head(hw1, hb1, hw2, hb2, hl_ref, hs_ref)
    head(tw1, tb1, tw2, tb2, tl_ref, ts_ref)

    def log_softmax(z):
        m = jnp.max(z, axis=-1, keepdims=True)
        z = z - m
        return z - jnp.log(jnp.sum(jnp.exp(z), axis=-1, keepdims=True))

    def kl_sum(a, b):
        # F.kl_div(log_softmax(a), softmax(b), reduction='none').sum()
        la = log_softmax(a)
        lb = log_softmax(b)
        per = jnp.exp(lb) * (lb - la)
        return jnp.sum(jnp.sum(per, axis=-1, keepdims=True), axis=0,
                       keepdims=True)

    klh_ref[...] = 0.5 * (kl_sum(hi_ref[...], ht_ref[...]) +
                          kl_sum(ht_ref[...], hi_ref[...]))
    klt_ref[...] = 0.5 * (kl_sum(ti_ref[...], tt_ref[...]) +
                          kl_sum(tt_ref[...], ti_ref[...]))


@functools.lru_cache(maxsize=None)
def _heads_kl_call(Bt, Dd):
    return pl.pallas_call(
        _heads_kl_kernel,
        out_shape=(jax.ShapeDtypeStruct((Bt, 2), jnp.float32),
                   jax.ShapeDtypeStruct((Bt, 2), jnp.float32),
                   jax.ShapeDtypeStruct((Bt, 2), jnp.float32),
                   jax.ShapeDtypeStruct((Bt, 2), jnp.float32),
                   jax.ShapeDtypeStruct((1, 1), jnp.float32),
                   jax.ShapeDtypeStruct((1, 1), jnp.float32)))


def run_heads_kl(last_hidden, image_embed, text_embed, ph, pt):
    half = image_embed.shape[0] // 2
    h_i, t_i = image_embed[:half], image_embed[half:]
    h_t, t_t = text_embed[:half], text_embed[half:]
    return _heads_kl_call(last_hidden.shape[0], last_hidden.shape[1])(
        last_hidden, h_i, h_t, t_i, t_t,
        ph['fc1']['w'], ph['fc1']['b'], ph['fc2']['w'], ph['fc2']['b'],
        pt['fc1']['w'], pt['fc1']['b'], pt['fc2']['w'], pt['fc2']['b'])


# ----------------------------- parameter init --------------------------------


class KeyGen:
    def __init__(self, key):
        self.key = key

    def __call__(self):
        self.key, k = jax.random.split(self.key)
        return k


def dense(kg, fan_in, fan_out, std=0.02):
    # biases stored pre-shaped (1, N) so no per-call reshape/broadcast re-materialization
    return {'w': std * jax.random.normal(kg(), (fan_in, fan_out), jnp.float32),
            'b': jnp.zeros((1, fan_out), jnp.float32)}


def ln_params(dim):
    return jnp.ones((1, dim), jnp.float32), jnp.zeros((1, dim), jnp.float32)


def init_params(key):
    kg = KeyGen(key)
    n_patch = (IMG // PATCH) ** 2
    ng, nb = ln_params(D)
    vit = {
        'patch_w': 0.02 * jax.random.normal(kg(), (3 * PATCH * PATCH, D), jnp.float32),
        'patch_b': jnp.zeros((1, D), jnp.float32),
        'cls': 0.02 * jax.random.normal(kg(), (1, 1, D), jnp.float32),
        'pos': 0.02 * jax.random.normal(kg(), (1, n_patch + 1, D), jnp.float32),
        'blocks': [],
        'norm_g': ng, 'norm_b': nb,
    }
    for _ in range(VIT_DEPTH):
        l1g, l1b = ln_params(D)
        l2g, l2b = ln_params(D)
        vit['blocks'].append({
            'ln1_g': l1g, 'ln1_b': l1b,
            'qkv': dense(kg, D, 3 * D), 'proj': dense(kg, D, D),
            'ln2_g': l2g, 'ln2_b': l2b,
            'fc1': dense(kg, D, MLP_HID), 'fc2': dense(kg, MLP_HID, D),
        })

    eg, eb = ln_params(D)
    bert = {
        'word_emb': 0.02 * jax.random.normal(kg(), (VOCAB, D), jnp.float32),
        'pos_emb': 0.02 * jax.random.normal(kg(), (MAX_POS, D), jnp.float32),
        'type_emb': 0.02 * jax.random.normal(kg(), (2, D), jnp.float32),
        'emb_ln_g': eg, 'emb_ln_b': eb,
        'layers': [],
    }
    for li in range(BERT_DEPTH):
        sg, sb = ln_params(D)
        fg, fb = ln_params(D)
        layer = {
            # q/k/v packed into one (D, 3D) matmul (equivalent to 3 separate Linear layers)
            'self': {'qkv': dense(kg, D, 3 * D), 'o': dense(kg, D, D),
                     'ln_g': sg, 'ln_b': sb},
            'cross': None,
            'ffn': {'fc1': dense(kg, D, MLP_HID), 'fc2': dense(kg, MLP_HID, D),
                    'ln_g': fg, 'ln_b': fb},
        }
        if li >= FUSION_LAYER:
            cg, cb = ln_params(D)
            layer['cross'] = {'q': dense(kg, D, D), 'kv': dense(kg, D, 2 * D),
                              'o': dense(kg, D, D), 'ln_g': cg, 'ln_b': cb}
        bert['layers'].append(layer)

    def cls_head():
        std1 = (2.0 / D) ** 0.5   # kaiming_normal_ (relu gain, fan_in); synthetic init
        return {'fc1': dense(kg, D, D, std=std1),
                'fc2': dense(kg, D, 2, std=std1)}

    return {'vit': vit, 'bert': bert,
            'cls_hateful': cls_head(), 'cls_twitter': cls_head()}


# ----------------------------- model forward --------------------------------


def vit_forward(image, p):
    # image: NCHW; conv(stride=patch) expressed as patchify + Pallas matmul
    B_, C, Hh, Ww = image.shape
    ph, pw = Hh // PATCH, Ww // PATCH
    patches = image.reshape(B_, C, ph, PATCH, pw, PATCH)
    patches = jnp.transpose(patches, (0, 2, 4, 1, 3, 5)).reshape(
        B_ * ph * pw, C * PATCH * PATCH)
    x = linear(patches, p['patch_w'], p['patch_b']).reshape(B_, ph * pw, D)
    cls = jnp.broadcast_to(p['cls'], (B_, 1, D))
    x = jnp.concatenate([cls, x], axis=1) + p['pos']
    for blk in p['blocks']:
        x = run_vit_block(x, blk)
    return layernorm(x, p['norm_g'], p['norm_b'], VIT_EPS)


def bert_forward(input_ids, attention_mask, image_embeds, p):
    B_, T_ = input_ids.shape
    emb = (jnp.take(p['word_emb'], input_ids, axis=0)
           + p['pos_emb'][:T_][None]
           + p['type_emb'][0][None, None])
    x = layernorm(emb, p['emb_ln_g'], p['emb_ln_b'], BERT_EPS)

    # per-batch additive key mask, broadcast over heads inside the kernel
    text_bias = ((1.0 - attention_mask.astype(jnp.float32)) * -10000.0)[:, None, :]

    hidden_states = [x]
    for lp in p['layers']:
        if lp['cross'] is None:
            x = run_bert_self_layer(x, text_bias, lp)
        else:
            x = run_bert_cross_layer(x, text_bias, image_embeds, lp)
        hidden_states.append(x)
    return x, hidden_states


def albef_forward(params, image, input_ids, attention_mask, train=True):
    image_embeds = vit_forward(image, params['vit'])
    # image_atts is all-ones in the reference forward, so the cross-attention
    # kernels omit the (zero) image attention bias entirely.

    last_hidden_all, hidden_states = bert_forward(
        input_ids, attention_mask, image_embeds, params['bert'])

    image_embed = image_embeds[:, 0, :]
    text_embed = hidden_states[6][:, 0, :]
    last_hidden_state = last_hidden_all[:, 0, :]

    (head_hateful, head_hateful_softmax, head_twitter, head_twitter_softmax,
     kl_h, kl_t) = run_heads_kl(last_hidden_state, image_embed, text_embed,
                                params['cls_hateful'], params['cls_twitter'])

    if not train:
        return head_hateful

    kl_h = kl_h[0, 0]
    kl_t = kl_t[0, 0]
    # mirrors the numpy branching in ALBEF.kl (returns float array instead of int ones)
    res = jnp.where(jnp.abs(kl_h - kl_t) >= 0.2,
                    jnp.full((8,), jnp.minimum(kl_h, kl_t), jnp.float32),
                    jnp.ones((8,), jnp.float32))

    return {'last_hidden_state': last_hidden_state,
            'head_hateful': head_hateful,
            'head_hateful_softmax': head_hateful_softmax,
            'head_twitter': head_twitter,
            'head_twitter_softmax': head_twitter_softmax,
            'image_embed': image_embed,
            'text_embed': text_embed,
            'res': res}


# ----------------------------- main ------------------------------------------

if __name__ == "__main__":
    key = jax.random.PRNGKey(0)
    k_param, k_img, k_txt = jax.random.split(key, 3)

    params = init_params(k_param)
    image = jax.random.normal(k_img, (B, 3, IMG, IMG), jnp.float32)   # NCHW
    input_ids = jax.random.randint(k_txt, (B, T_TEXT), 0, VOCAB, jnp.int32)
    attention_mask = jnp.ones((B, T_TEXT), jnp.int32).at[1, -2:].set(0)
    targets = jnp.zeros((B,), jnp.int32)  # unused by forward (matches reference)

    fwd = jax.jit(lambda p, im, ids, m: albef_forward(p, im, ids, m, train=True))
    out = fwd(params, image, input_ids, attention_mask)
    out = jax.block_until_ready(out)

    assert out['head_hateful'].shape == (B, 2)
    assert out['head_hateful_softmax'].shape == (B, 2)
    assert out['head_twitter'].shape == (B, 2)
    assert out['head_twitter_softmax'].shape == (B, 2)
    assert out['last_hidden_state'].shape == (B, D)
    assert out['image_embed'].shape == (B, D)
    assert out['text_embed'].shape == (B, D)
    assert out['res'].shape == (8,)
    print("KERNEL_OK")
</pallas_src>

<mosaic_0001>
module attributes {stable_mosaic.version = 11 : i64} {
  func.func @_ln_kernel(%arg0: memref<16x64xf32, #tpu.memory_space<vmem>>, %arg1: memref<1x64xf32, #tpu.memory_space<vmem>>, %arg2: memref<1x64xf32, #tpu.memory_space<vmem>>, %arg3: memref<16x64xf32, #tpu.memory_space<vmem>>) attributes {dimension_semantics = [], scalar_prefetch = 0 : i64, scratch_operands = 0 : i64, tpu.core_type = #tpu.core_type<tc>} {
    %c0 = arith.constant 0 : index
    %c0_0 = arith.constant 0 : index
    %0 = vector.load %arg0[%c0, %c0_0] : memref<16x64xf32, #tpu.memory_space<vmem>>, vector<16x64xf32>
    %c0_1 = arith.constant 0 : index
    %c0_2 = arith.constant 0 : index
    %1 = vector.load %arg1[%c0_1, %c0_2] : memref<1x64xf32, #tpu.memory_space<vmem>>, vector<1x64xf32>
    %c0_3 = arith.constant 0 : index
    %c0_4 = arith.constant 0 : index
    %2 = vector.load %arg2[%c0_3, %c0_4] : memref<1x64xf32, #tpu.memory_space<vmem>>, vector<1x64xf32>
    %cst = arith.constant dense<0.000000e+00> : vector<16xf32>
    %3 = vector.multi_reduction <add>, %0, %cst [1] : vector<16x64xf32> to vector<16xf32>
    %4 = vector.shape_cast %3 : vector<16xf32> to vector<16x1xf32>
    %cst_5 = arith.constant 6.400000e+01 : f32
    %5 = vector.broadcast %cst_5 : f32 to vector<16x1xf32>
    %6 = arith.divf %4, %5 : vector<16x1xf32>
    %7 = vector.broadcast %6 : vector<16x1xf32> to vector<16x64xf32>
    %8 = arith.subf %0, %7 : vector<16x64xf32>
    %9 = arith.mulf %8, %8 : vector<16x64xf32>
    %cst_6 = arith.constant dense<0.000000e+00> : vector<16xf32>
    %10 = vector.multi_reduction <add>, %9, %cst_6 [1] : vector<16x64xf32> to vector<16xf32>
    %11 = vector.shape_cast %10 : vector<16xf32> to vector<16x1xf32>
    %cst_7 = arith.constant 6.400000e+01 : f32
    %12 = vector.broadcast %cst_7 : f32 to vector<16x1xf32>
    %13 = arith.divf %11, %12 : vector<16x1xf32>
    %cst_8 = arith.constant 9.99999996E-13 : f32
    %14 = vector.broadcast %cst_8 : f32 to vector<16x1xf32>
    %15 = arith.addf %13, %14 : vector<16x1xf32>
    %16 = math.rsqrt %15 : vector<16x1xf32>
    %17 = vector.broadcast %16 : vector<16x1xf32> to vector<16x64xf32>
    %18 = arith.mulf %8, %17 : vector<16x64xf32>
    %19 = vector.broadcast %1 : vector<1x64xf32> to vector<16x64xf32>
    %20 = arith.mulf %18, %19 : vector<16x64xf32>
    %21 = vector.broadcast %2 : vector<1x64xf32> to vector<16x64xf32>
    %22 = arith.addf %20, %21 : vector<16x64xf32>
    %c0_9 = arith.constant 0 : index
    %c0_10 = arith.constant 0 : index
    %23 = vector.load %arg3[%c0_9, %c0_10] : memref<16x64xf32, #tpu.memory_space<vmem>>, vector<16x64xf32>
    tpu.vector_store %arg3[%c0_9, %c0_10], %22 {strides = array<i32>} : memref<16x64xf32, #tpu.memory_space<vmem>>, vector<16x64xf32>,
    return
  }
}

module attributes {stable_mosaic.version = 11 : i64} {
  func.func @_bert_self_layer_kernel(%arg0: i32, %arg1: memref<1x8x64xf32, #tpu.memory_space<vmem>>, %arg2: memref<1x1x8xf32, #tpu.memory_space<vmem>>, %arg3: memref<64x192xf32, #tpu.memory_space<vmem>>, %arg4: memref<1x192xf32, #tpu.memory_space<vmem>>, %arg5: memref<64x64xf32, #tpu.memory_space<vmem>>, %arg6: memref<1x64xf32, #tpu.memory_space<vmem>>, %arg7: memref<1x64xf32, #tpu.memory_space<vmem>>, %arg8: memref<1x64xf32, #tpu.memory_space<vmem>>, %arg9: memref<64x256xf32, #tpu.memory_space<vmem>>, %arg10: memref<1x256xf32, #tpu.memory_space<vmem>>, %arg11: memref<256x64xf32, #tpu.memory_space<vmem>>, %arg12: memref<1x64xf32, #tpu.memory_space<vmem>>, %arg13: memref<1x64xf32, #tpu.memory_space<vmem>>, %arg14: memref<1x64xf32, #tpu.memory_space<vmem>>, %arg15: memref<1x8x64xf32, #tpu.memory_space<vmem>>) attributes {dimension_semantics = [#tpu.dimension_semantics<parallel>], iteration_bounds = array<i64: 2>, scalar_prefetch = 0 : i64, scratch_operands = 0 : i64, tpu.core_type = #tpu.core_type<tc>, window_params = [{transform_indices = @transform_0, window_bounds = array<i64: 1, 8, 64>}, {transform_indices = @transform_1, window_bounds = array<i64: 1, 1, 8>}, {pipeline_mode = #tpu.pipeline_mode<synchronous>, transform_indices = @transform_2, window_bounds = array<i64: 64, 192>}, {pipeline_mode = #tpu.pipeline_mode<synchronous>, transform_indices = @transform_3, window_bounds = array<i64: 1, 192>}, {pipeline_mode = #tpu.pipeline_mode<synchronous>, transform_indices = @transform_4, window_bounds = array<i64: 64, 64>}, {pipeline_mode = #tpu.pipeline_mode<synchronous>, transform_indices = @transform_5, window_bounds = array<i64: 1, 64>}, {pipeline_mode = #tpu.pipeline_mode<synchronous>, transform_indices = @transform_6, window_bounds = array<i64: 1, 64>}, {pipeline_mode = #tpu.pipeline_mode<synchronous>, transform_indices = @transform_7, window_bounds = array<i64: 1, 64>}, {pipeline_mode = #tpu.pipeline_mode<synchronous>, transform_indices = @transform_8, window_bounds = array<i64: 64, 256>}, {pipeline_mode = #tpu.pipeline_mode<synchronous>, transform_indices = @transform_9, window_bounds = array<i64: 1, 256>}, {pipeline_mode = #tpu.pipeline_mode<synchronous>, transform_indices = @transform_10, window_bounds = array<i64: 256, 64>}, {pipeline_mode = #tpu.pipeline_mode<synchronous>, transform_indices = @transform_11, window_bounds = array<i64: 1, 64>}, {pipeline_mode = #tpu.pipeline_mode<synchronous>, transform_indices = @transform_12, window_bounds = array<i64: 1, 64>}, {pipeline_mode = #tpu.pipeline_mode<synchronous>, transform_indices = @transform_13, window_bounds = array<i64: 1, 64>}, {transform_indices = @transform_14, window_bounds = array<i64: 1, 8, 64>}]} {
    %c0 = arith.constant 0 : index
    %c0_0 = arith.constant 0 : index
    %c0_1 = arith.constant 0 : index
    %0 = vector.load %arg1[%c0, %c0_0, %c0_1] : memref<1x8x64xf32, #tpu.memory_space<vmem>>, vector<1x8x64xf32>
    %1 = vector.shape_cast %0 : vector<1x8x64xf32> to vector<8x64xf32>
    %c0_2 = arith.constant 0 : index
    %c0_3 = arith.constant 0 : index
    %c0_4 = arith.constant 0 : index
    %2 = vector.load %arg2[%c0_2, %c0_3, %c0_4] : memref<1x1x8xf32, #tpu.memory_space<vmem>>, vector<1x1x8xf32>
    %3 = vector.shape_cast %2 : vector<1x1x8xf32> to vector<1x8xf32>
    %c0_5 = arith.constant 0 : index
    %c0_6 = arith.constant 0 : index
    %4 = vector.load %arg3[%c0_5, %c0_6] : memref<64x192xf32, #tpu.memory_space<vmem>>, vector<64x192xf32>
    %cst = arith.constant dense<0.000000e+00> : vector<8x192xf32>
    %5 = tpu.matmul %1, %4, %cst {dimension_numbers = #tpu.dot_dimension_numbers<[1], [0], [0], [1], [0, 0, 1, 1], [], []>} : vector<8x64xf32>, vector<64x192xf32>, vector<8x192xf32> -> vector<8x192xf32>
    %c0_7 = arith.constant 0 : index
    %c0_8 = arith.constant 0 : index
    %6 = vector.load %arg4[%c0_7, %c0_8] : memref<1x192xf32, #tpu.memory_space<vmem>>, vector<1x192xf32>
    %7 = vector.broadcast %6 : vector<1x192xf32> to vector<8x192xf32>
    %8 = arith.addf %5, %7 : vector<8x192xf32>
    %9 = vector.extract_strided_slice %8 {offsets = [0, 0], sizes = [8, 64], strides = [1, 1]} : vector<8x192xf32> to vector<8x64xf32>
    %10 = vector.extract_strided_slice %8 {offsets = [0, 64], sizes = [8, 64], strides = [1, 1]} : vector<8x192xf32> to vector<8x64xf32>
    %11 = vector.extract_strided_slice %8 {offsets = [0, 128], sizes = [8, 64], strides = [1, 1]} : vector<8x192xf32> to vector<8x64xf32>
    %c0_9 = arith.constant 0 : index
    %c0_10 = arith.constant 0 : index
    %12 = vector.load %arg5[%c0_9, %c0_10] : memref<64x64xf32, #tpu.memory_space<vmem>>, vector<64x64xf32>
    %cst_11 = arith.constant 0.000000e+00 : f32
    %13 = vector.broadcast %cst_11 : f32 to vector<8x64xf32>
    %14 = vector.extract_strided_slice %9 {offsets = [0, 0], sizes = [8, 16], strides = [1, 1]} : vector<8x64xf32> to vector<8x16xf32>
    %15 = vector.extract_strided_slice %10 {offsets = [0, 0], sizes = [8, 16], strides = [1, 1]} : vector<8x64xf32> to vector<8x16xf32>
    %cst_12 = arith.constant dense<0.000000e+00> : vector<8x8xf32>
    %16 = tpu.matmul %14, %15, %cst_12 {dimension_numbers = #tpu.dot_dimension_numbers<[1], [1], [0], [0], [0, 0, 1, 0], [], []>} : vector<8x16xf32>, vector<8x16xf32>, vector<8x8xf32> -> vector<8x8xf32>
    %cst_13 = arith.constant 2.500000e-01 : f32
    %17 = vector.broadcast %cst_13 : f32 to vector<8x8xf32>
    %18 = arith.mulf %16, %17 : vector<8x8xf32>
    %19 = vector.broadcast %3 : vector<1x8xf32> to vector<8x8xf32>
    %20 = arith.addf %18, %19 : vector<8x8xf32>
    %cst_14 = arith.constant dense<0xFF800000> : vector<8xf32>
    %21 = vector.multi_reduction <maximumf>, %20, %cst_14 [1] : vector<8x8xf32> to vector<8xf32>
    %22 = vector.shape_cast %21 : vector<8xf32> to vector<8x1xf32>
    %23 = vector.broadcast %22 : vector<8x1xf32> to vector<8x8xf32>
    %24 = arith.subf %20, %23 : vector<8x8xf32>
    %25 = math.exp %24 : vector<8x8xf32>
    %cst_15 = arith.constant dense<0.000000e+00> : vector<8xf32>
    %26 = vector.multi_reduction <add>, %25, %cst_15 [1] : vector<8x8xf32> to vector<8xf32>
    %27 = vector.shape_cast %26 : vector<8xf32> to vector<8x1xf32>
    %28 = tpu.reciprocal %27 {approx = true} : vector<8x1xf32> -> vector<8x1xf32>
    %29 = vector.broadcast %28 : vector<8x1xf32> to vector<8x8xf32>
    %30 = arith.mulf %25, %29 : vector<8x8xf32>
    %31 = vector.extract_strided_slice %11 {offsets = [0, 0], sizes = [8, 16], strides = [1, 1]} : vector<8x64xf32> to vector<8x16xf32>
    %cst_16 = arith.constant dense<0.000000e+00> : vector<8x16xf32>
    %32 = tpu.matmul %30, %31, %cst_16 {dimension_numbers = #tpu.dot_dimension_numbers<[1], [0], [0], [1], [0, 0, 1, 1], [], []>} : vector<8x8xf32>, vector<8x16xf32>, vector<8x16xf32> -> vector<8x16xf32>
    %33 = vector.extract_strided_slice %12 {offsets = [0, 0], sizes = [16, 64], strides = [1, 1]} : vector<64x64xf32> to vector<16x64xf32>
    %cst_17 = arith.constant dense<0.000000e+00> : vector<8x64xf32>
    %34 = tpu.matmul %32, %33, %cst_17 {dimension_numbers = #tpu.dot_dimension_numbers<[1], [0], [0], [1], [0, 0, 1, 1], [], []>} : vector<8x16xf32>, vector<16x64xf32>, vector<8x64xf32> -> vector<8x64xf32>
    %35 = arith.addf %13, %34 : vector<8x64xf32>
    %36 = vector.extract_strided_slice %9 {offsets = [0, 16], sizes = [8, 16], strides = [1, 1]} : vector<8x64xf32> to vector<8x16xf32>
    %37 = vector.extract_strided_slice %10 {offsets = [0, 16], sizes = [8, 16], strides = [1, 1]} : vector<8x64xf32> to vector<8x16xf32>
    %cst_18 = arith.constant dense<0.000000e+00> : vector<8x8xf32>
    %38 = tpu.matmul %36, %37, %cst_18 {dimension_numbers = #tpu.dot_dimension_numbers<[1], [1], [0], [0], [0, 0, 1, 0], [], []>} : vector<8x16xf32>, vector<8x16xf32>, vector<8x8xf32> -> vector<8x8xf32>
    %cst_19 = arith.constant 2.500000e-01 : f32
    %39 = vector.broadcast %cst_19 : f32 to vector<8x8xf32>
    %40 = arith.mulf %38, %39 : vector<8x8xf32>
    %41 = vector.broadcast %3 : vector<1x8xf32> to vector<8x8xf32>
    %42 = arith.addf %40, %41 : vector<8x8xf32>
    %cst_20 = arith.constant dense<0xFF800000> : vector<8xf32>
    %43 = vector.multi_reduction <maximumf>, %42, %cst_20 [1] : vector<8x8xf32> to vector<8xf32>
    %44 = vector.shape_cast %43 : vector<8xf32> to vector<8x1xf32>
    %45 = vector.broadcast %44 : vector<8x1xf32> to vector<8x8xf32>
    %46 = arith.subf %42, %45 : vector<8x8xf32>
    %47 = math.exp %46 : vector<8x8xf32>
    %cst_21 = arith.constant dense<0.000000e+00> : vector<8xf32>
    %48 = vector.multi_reduction <add>, %47, %cst_21 [1] : vector<8x8xf32> to vector<8xf32>
    %49 = vector.shape_cast %48 : vector<8xf32> to vector<8x1xf32>
    %50 = tpu.reciprocal %49 {approx = true} : vector<8x1xf32> -> vector<8x1xf32>
    %51 = vector.broadcast %50 : vector<8x1xf32> to vector<8x8xf32>
    %52 = arith.mulf %47, %51 : vector<8x8xf32>
    %53 = vector.extract_strided_slice %11 {offsets = [0, 16], sizes = [8, 16], strides = [1, 1]} : vector<8x64xf32> to vector<8x16xf32>
    %cst_22 = arith.constant dense<0.000000e+00> : vector<8x16xf32>
    %54 = tpu.matmul %52, %53, %cst_22 {dimension_numbers = #tpu.dot_dimension_numbers<[1], [0], [0], [1], [0, 0, 1, 1], [], []>} : vector<8x8xf32>, vector<8x16xf32>, vector<8x16xf32> -> vector<8x16xf32>
    %55 = vector.extract_strided_slice %12 {offsets = [16, 0], sizes = [16, 64], strides = [1, 1]} : vector<64x64xf32> to vector<16x64xf32>
    %cst_23 = arith.constant dense<0.000000e+00> : vector<8x64xf32>
    %56 = tpu.matmul %54, %55, %cst_23 {dimension_numbers = #tpu.dot_dimension_numbers<[1], [0], [0], [1], [0, 0, 1, 1], [], []>} : vector<8x16xf32>, vector<16x64xf32>, vector<8x64xf32> -> vector<8x64xf32>
    %57 = arith.addf %35, %56 : vector<8x64xf32>
    %58 = vector.extract_strided_slice %9 {offsets = [0, 32], sizes = [8, 16], strides = [1, 1]} : vector<8x64xf32> to vector<8x16xf32>
    %59 = vector.extract_strided_slice %10 {offsets = [0, 32], sizes = [8, 16], strides = [1, 1]} : vector<8x64xf32> to vector<8x16xf32>
    %cst_24 = arith.constant dense<0.000000e+00> : vector<8x8xf32>
    %60 = tpu.matmul %58, %59, %cst_24 {dimension_numbers = #tpu.dot_dimension_numbers<[1], [1], [0], [0], [0, 0, 1, 0], [], []>} : vector<8x16xf32>, vector<8x16xf32>, vector<8x8xf32> -> vector<8x8xf32>
    %cst_25 = arith.constant 2.500000e-01 : f32
    %61 = vector.broadcast %cst_25 : f32 to vector<8x8xf32>
    %62 = arith.mulf %60, %61 : vector<8x8xf32>
    %63 = vector.broadcast %3 : vector<1x8xf32> to vector<8x8xf32>
    %64 = arith.addf %62, %63 : vector<8x8xf32>
    %cst_26 = arith.constant dense<0xFF800000> : vector<8xf32>
    %65 = vector.multi_reduction <maximumf>, %64, %cst_26 [1] : vector<8x8xf32> to vector<8xf32>
    %66 = vector.shape_cast %65 : vector<8xf32> to vector<8x1xf32>
    %67 = vector.broadcast %66 : vector<8x1xf32> to vector<8x8xf32>
    %68 = arith.subf %64, %67 : vector<8x8xf32>
    %69 = math.exp %68 : vector<8x8xf32>
    %cst_27 = arith.constant dense<0.000000e+00> : vector<8xf32>
    %70 = vector.multi_reduction <add>, %69, %cst_27 [1] : vector<8x8xf32> to vector<8xf32>
    %71 = vector.shape_cast %70 : vector<8xf32> to vector<8x1xf32>
    %72 = tpu.reciprocal %71 {approx = true} : vector<8x1xf32> -> vector<8x1xf32>
    %73 = vector.broadcast %72 : vector<8x1xf32> to vector<8x8xf32>
    %74 = arith.mulf %69, %73 : vector<8x8xf32>
    %75 = vector.extract_strided_slice %11 {offsets = [0, 32], sizes = [8, 16], strides = [1, 1]} : vector<8x64xf32> to vector<8x16xf32>
    %cst_28 = arith.constant dense<0.000000e+00> : vector<8x16xf32>
    %76 = tpu.matmul %74, %75, %cst_28 {dimension_numbers = #tpu.dot_dimension_numbers<[1], [0], [0], [1], [0, 0, 1, 1], [], []>} : vector<8x8xf32>, vector<8x16xf32>, vector<8x16xf32> -> vector<8x16xf32>
    %77 = vector.extract_strided_slice %12 {offsets = [32, 0], sizes = [16, 64], strides = [1, 1]} : vector<64x64xf32> to vector<16x64xf32>
    %cst_29 = arith.constant dense<0.000000e+00> : vector<8x64xf32>
    %78 = tpu.matmul %76, %77, %cst_29 {dimension_numbers = #tpu.dot_dimension_numbers<[1], [0], [0], [1], [0, 0, 1, 1], [], []>} : vector<8x16xf32>, vector<16x64xf32>, vector<8x64xf32> -> vector<8x64xf32>
    %79 = arith.addf %57, %78 : vector<8x64xf32>
    %80 = vector.extract_strided_slice %9 {offsets = [0, 48], sizes = [8, 16], strides = [1, 1]} : vector<8x64xf32> to vector<8x16xf32>
    %81 = vector.extract_strided_slice %10 {offsets = [0, 48], sizes = [8, 16], strides = [1, 1]} : vector<8x64xf32> to vector<8x16xf32>
    %cst_30 = arith.constant dense<0.000000e+00> : vector<8x8xf32>
    %82 = tpu.matmul %80, %81, %cst_30 {dimension_numbers = #tpu.dot_dimension_numbers<[1], [1], [0], [0], [0, 0, 1, 0], [], []>} : vector<8x16xf32>, vector<8x16xf32>, vector<8x8xf32> -> vector<8x8xf32>
    %cst_31 = arith.constant 2.500000e-01 : f32
    %83 = vector.broadcast %cst_31 : f32 to vector<8x8xf32>
    %84 = arith.mulf %82, %83 : vector<8x8xf32>
    %85 = vector.broadcast %3 : vector<1x8xf32> to vector<8x8xf32>
    %86 = arith.addf %84, %85 : vector<8x8xf32>
    %cst_32 = arith.constant dense<0xFF800000> : vector<8xf32>
    %87 = vector.multi_reduction <maximumf>, %86, %cst_32 [1] : vector<8x8xf32> to vector<8xf32>
    %88 = vector.shape_cast %87 : vector<8xf32> to vector<8x1xf32>
    %89 = vector.broadcast %88 : vector<8x1xf32> to vector<8x8xf32>
    %90 = arith.subf %86, %89 : vector<8x8xf32>
    %91 = math.exp %90 : vector<8x8xf32>
    %cst_33 = arith.constant dense<0.000000e+00> : vector<8xf32>
    %92 = vector.multi_reduction <add>, %91, %cst_33 [1] : vector<8x8xf32> to vector<8xf32>
    %93 = vector.shape_cast %92 : vector<8xf32> to vector<8x1xf32>
    %94 = tpu.reciprocal %93 {approx = true} : vector<8x1xf32> -> vector<8x1xf32>
    %95 = vector.broadcast %94 : vector<8x1xf32> to vector<8x8xf32>
    %96 = arith.mulf %91, %95 : vector<8x8xf32>
    %97 = vector.extract_strided_slice %11 {offsets = [0, 48], sizes = [8, 16], strides = [1, 1]} : vector<8x64xf32> to vector<8x16xf32>
    %cst_34 = arith.constant dense<0.000000e+00> : vector<8x16xf32>
    %98 = tpu.matmul %96, %97, %cst_34 {dimension_numbers = #tpu.dot_dimension_numbers<[1], [0], [0], [1], [0, 0, 1, 1], [], []>} : vector<8x8xf32>, vector<8x16xf32>, vector<8x16xf32> -> vector<8x16xf32>
    %99 = vector.extract_strided_slice %12 {offsets = [48, 0], sizes = [16, 64], strides = [1, 1]} : vector<64x64xf32> to vector<16x64xf32>
    %cst_35 = arith.constant dense<0.000000e+00> : vector<8x64xf32>
    %100 = tpu.matmul %98, %99, %cst_35 {dimension_numbers = #tpu.dot_dimension_numbers<[1], [0], [0], [1], [0, 0, 1, 1], [], []>} : vector<8x16xf32>, vector<16x64xf32>, vector<8x64xf32> -> vector<8x64xf32>
    %101 = arith.addf %79, %100 : vector<8x64xf32>
    %c0_36 = arith.constant 0 : index
    %c0_37 = arith.constant 0 : index
    %102 = vector.load %arg6[%c0_36, %c0_37] : memref<1x64xf32, #tpu.memory_space<vmem>>, vector<1x64xf32>
    %103 = vector.broadcast %102 : vector<1x64xf32> to vector<8x64xf32>
    %104 = arith.addf %101, %103 : vector<8x64xf32>
    %105 = arith.addf %1, %104 : vector<8x64xf32>
    %c0_38 = arith.constant 0 : index
    %c0_39 = arith.constant 0 : index
    %106 = vector.load %arg7[%c0_38, %c0_39] : memref<1x64xf32, #tpu.memory_space<vmem>>, vector<1x64xf32>
    %c0_40 = arith.constant 0 : index
    %c0_41 = arith.constant 0 : index
    %107 = vector.load %arg8[%c0_40, %c0_41] : memref<1x64xf32, #tpu.memory_space<vmem>>, vector<1x64xf32>
    %cst_42 = arith.constant dense<0.000000e+00> : vector<8xf32>
    %108 = vector.multi_reduction <add>, %105, %cst_42 [1] : vector<8x64xf32> to vector<8xf32>
    %109 = vector.shape_cast %108 : vector<8xf32> to vector<8x1xf32>
    %cst_43 = arith.constant 6.400000e+01 : f32
    %110 = vector.broadcast %cst_43 : f32 to vector<8x1xf32>
    %111 = arith.divf %109, %110 : vector<8x1xf32>
    %112 = vector.broadcast %111 : vector<8x1xf32> to vector<8x64xf32>
    %113 = arith.subf %105, %112 : vector<8x64xf32>
    %114 = arith.mulf %113, %113 : vector<8x64xf32>
    %cst_44 = arith.constant dense<0.000000e+00> : vector<8xf32>
    %115 = vector.multi_reduction <add>, %114, %cst_44 [1] : vector<8x64xf32> to vector<8xf32>
    %116 = vector.shape_cast %115 : vector<8xf32> to vector<8x1xf32>
    %cst_45 = arith.constant 6.400000e+01 : f32
    %117 = vector.broadcast %cst_45 : f32 to vector<8x1xf32>
    %118 = arith.divf %116, %117 : vector<8x1xf32>
    %cst_46 = arith.constant 9.99999996E-13 : f32
    %119 = vector.broadcast %cst_46 : f32 to vector<8x1xf32>
    %120 = arith.addf %118, %119 : vector<8x1xf32>
    %121 = math.rsqrt %120 : vector<8x1xf32>
    %122 = vector.broadcast %121 : vector<8x1xf32> to vector<8x64xf32>
    %123 = arith.mulf %113, %122 : vector<8x64xf32>
    %124 = vector.broadcast %106 : vector<1x64xf32> to vector<8x64xf32>
    %125 = arith.mulf %123, %124 : vector<8x64xf32>
    %126 = vector.broadcast %107 : vector<1x64xf32> to vector<8x64xf32>
    %127 = arith.addf %125, %126 : vector<8x64xf32>
    %c0_47 = arith.constant 0 : index
    %c0_48 = arith.constant 0 : index
    %128 = vector.load %arg9[%c0_47, %c0_48] : memref<64x256xf32, #tpu.memory_space<vmem>>, vector<64x256xf32>
    %cst_49 = arith.constant dense<0.000000e+00> : vector<8x256xf32>
    %129 = tpu.matmul %127, %128, %cst_49 {dimension_numbers = #tpu.dot_dimension_numbers<[1], [0], [0], [1], [0, 0, 1, 1], [], []>} : vector<8x64xf32>, vector<64x256xf32>, vector<8x256xf32> -> vector<8x256xf32>
    %c0_50 = arith.constant 0 : index
    %c0_51 = arith.constant 0 : index
    %130 = vector.load %arg10[%c0_50, %c0_51] : memref<1x256xf32, #tpu.memory_space<vmem>>, vector<1x256xf32>
    %131 = vector.broadcast %130 : vector<1x256xf32> to vector<8x256xf32>
    %132 = arith.addf %129, %131 : vector<8x256xf32>
    %cst_52 = arith.constant 5.000000e-01 : f32
    %133 = vector.broadcast %cst_52 : f32 to vector<8x256xf32>
    %134 = arith.mulf %133, %132 : vector<8x256xf32>
    %cst_53 = arith.constant 4.471500e-02 : f32
    %135 = vector.broadcast %cst_53 : f32 to vector<8x256xf32>
    %136 = arith.mulf %135, %132 : vector<8x256xf32>
    %137 = arith.mulf %136, %132 : vector<8x256xf32>
    %138 = arith.mulf %137, %132 : vector<8x256xf32>
    %139 = arith.addf %132, %138 : vector<8x256xf32>
    %cst_54 = arith.constant 0.797884583 : f32
    %140 = vector.broadcast %cst_54 : f32 to vector<8x256xf32>
    %141 = arith.mulf %140, %139 : vector<8x256xf32>
    %142 = math.tanh %141 : vector<8x256xf32>
    %cst_55 = arith.constant 1.000000e+00 : f32
    %143 = vector.broadcast %cst_55 : f32 to vector<8x256xf32>
    %144 = arith.addf %143, %142 : vector<8x256xf32>
    %145 = arith.mulf %134, %144 : vector<8x256xf32>
    %c0_56 = arith.constant 0 : index
    %c0_57 = arith.constant 0 : index
    %146 = vector.load %arg11[%c0_56, %c0_57] : memref<256x64xf32, #tpu.memory_space<vmem>>, vector<256x64xf32>
    %cst_58 = arith.constant dense<0.000000e+00> : vector<8x64xf32>
    %147 = tpu.matmul %145, %146, %cst_58 {dimension_numbers = #tpu.dot_dimension_numbers<[1], [0], [0], [1], [0, 0, 1, 1], [], []>} : vector<8x256xf32>, vector<256x64xf32>, vector<8x64xf32> -> vector<8x64xf32>
    %c0_59 = arith.constant 0 : index
    %c0_60 = arith.constant 0 : index
    %148 = vector.load %arg12[%c0_59, %c0_60] : memref<1x64xf32, #tpu.memory_space<vmem>>, vector<1x64xf32>
    %149 = vector.broadcast %148 : vector<1x64xf32> to vector<8x64xf32>
    %150 = arith.addf %147, %149 : vector<8x64xf32>
    %151 = arith.addf %127, %150 : vector<8x64xf32>
    %c0_61 = arith.constant 0 : index
    %c0_62 = arith.constant 0 : index
    %152 = vector.load %arg13[%c0_61, %c0_62] : memref<1x64xf32, #tpu.memory_space<vmem>>, vector<1x64xf32>
    %c0_63 = arith.constant 0 : index
    %c0_64 = arith.constant 0 : index
    %153 = vector.load %arg14[%c0_63, %c0_64] : memref<1x64xf32, #tpu.memory_space<vmem>>, vector<1x64xf32>
    %cst_65 = arith.constant dense<0.000000e+00> : vector<8xf32>
    %154 = vector.multi_reduction <add>, %151, %cst_65 [1] : vector<8x64xf32> to vector<8xf32>
    %155 = vector.shape_cast %154 : vector<8xf32> to vector<8x1xf32>
    %cst_66 = arith.constant 6.400000e+01 : f32
    %156 = vector.broadcast %cst_66 : f32 to vector<8x1xf32>
    %157 = arith.divf %155, %156 : vector<8x1xf32>
    %158 = vector.broadcast %157 : vector<8x1xf32> to vector<8x64xf32>
    %159 = arith.subf %151, %158 : vector<8x64xf32>
    %160 = arith.mulf %159, %159 : vector<8x64xf32>
    %cst_67 = arith.constant dense<0.000000e+00> : vector<8xf32>
    %161 = vector.multi_reduction <add>, %160, %cst_67 [1] : vector<8x64xf32> to vector<8xf32>
    %162 = vector.shape_cast %161 : vector<8xf32> to vector<8x1xf32>
    %cst_68 = arith.constant 6.400000e+01 : f32
    %163 = vector.broadcast %cst_68 : f32 to vector<8x1xf32>
    %164 = arith.divf %162, %163 : vector<8x1xf32>
    %cst_69 = arith.constant 9.99999996E-13 : f32
    %165 = vector.broadcast %cst_69 : f32 to vector<8x1xf32>
    %166 = arith.addf %164, %165 : vector<8x1xf32>
    %167 = math.rsqrt %166 : vector<8x1xf32>
    %168 = vector.broadcast %167 : vector<8x1xf32> to vector<8x64xf32>
    %169 = arith.mulf %159, %168 : vector<8x64xf32>
    %170 = vector.broadcast %152 : vector<1x64xf32> to vector<8x64xf32>
    %171 = arith.mulf %169, %170 : vector<8x64xf32>
    %172 = vector.broadcast %153 : vector<1x64xf32> to vector<8x64xf32>
    %173 = arith.addf %171, %172 : vector<8x64xf32>
    %c0_70 = arith.constant 0 : index
    %c0_71 = arith.constant 0 : index
    %c0_72 = arith.constant 0 : index
    %174 = vector.load %arg15[%c0_70, %c0_71, %c0_72] : memref<1x8x64xf32, #tpu.memory_space<vmem>>, vector<1x8x64xf32>
    %175 = vector.shape_cast %174 : vector<1x8x64xf32> to vector<8x64xf32>
    %176 = vector.shape_cast %173 : vector<8x64xf32> to vector<1x8x64xf32>
    tpu.vector_store %arg15[%c0_70, %c0_71, %c0_72], %176 {strides = array<i32>} : memref<1x8x64xf32, #tpu.memory_space<vmem>>, vector<1x8x64xf32>,
    return
  }
  func.func @transform_0(%arg0: i32) -> (i32, i32, i32) {
    %c0_i32 = arith.constant 0 : i32
    %c0_i32_0 = arith.constant 0 : i32
    %c0_i32_1 = arith.constant 0 : i32
    return %arg0, %c0_i32, %c0_i32_0 : i32, i32, i32
  }
  func.func @transform_1(%arg0: i32) -> (i32, i32, i32) {
    %c0_i32 = arith.constant 0 : i32
    %c0_i32_0 = arith.constant 0 : i32
    %c0_i32_1 = arith.constant 0 : i32
    return %arg0, %c0_i32, %c0_i32_0 : i32, i32, i32
  }
  func.func @transform_2(%arg0: i32) -> (i32, i32) {
    %c0_i32 = arith.constant 0 : i32
    %c0_i32_0 = arith.constant 0 : i32
    %c0_i32_1 = arith.constant 0 : i32
    return %c0_i32, %c0_i32_0 : i32, i32
  }
  func.func @transform_3(%arg0: i32) -> (i32, i32) {
    %c0_i32 = arith.constant 0 : i32
    %c0_i32_0 = arith.constant 0 : i32
    %c0_i32_1 = arith.constant 0 : i32
    return %c0_i32, %c0_i32_0 : i32, i32
  }
  func.func @transform_4(%arg0: i32) -> (i32, i32) {
    %c0_i32 = arith.constant 0 : i32
    %c0_i32_0 = arith.constant 0 : i32
    %c0_i32_1 = arith.constant 0 : i32
    return %c0_i32, %c0_i32_0 : i32, i32
  }
  func.func @transform_5(%arg0: i32) -> (i32, i32) {
    %c0_i32 = arith.constant 0 : i32
    %c0_i32_0 = arith.constant 0 : i32
    %c0_i32_1 = arith.constant 0 : i32
    return %c0_i32, %c0_i32_0 : i32, i32
  }
  func.func @transform_6(%arg0: i32) -> (i32, i32) {
    %c0_i32 = arith.constant 0 : i32
    %c0_i32_0 = arith.constant 0 : i32
    %c0_i32_1 = arith.constant 0 : i32
    return %c0_i32, %c0_i32_0 : i32, i32
  }
  func.func @transform_7(%arg0: i32) -> (i32, i32) {
    %c0_i32 = arith.constant 0 : i32
    %c0_i32_0 = arith.constant 0 : i32
    %c0_i32_1 = arith.constant 0 : i32
    return %c0_i32, %c0_i32_0 : i32, i32
  }
  func.func @transform_8(%arg0: i32) -> (i32, i32) {
    %c0_i32 = arith.constant 0 : i32
    %c0_i32_0 = arith.constant 0 : i32
    %c0_i32_1 = arith.constant 0 : i32
    return %c0_i32, %c0_i32_0 : i32, i32
  }
  func.func @transform_9(%arg0: i32) -> (i32, i32) {
    %c0_i32 = arith.constant 0 : i32
    %c0_i32_0 = arith.constant 0 : i32
    %c0_i32_1 = arith.constant 0 : i32
    return %c0_i32, %c0_i32_0 : i32, i32
  }
  func.func @transform_10(%arg0: i32) -> (i32, i32) {
    %c0_i32 = arith.constant 0 : i32
    %c0_i32_0 = arith.constant 0 : i32
    %c0_i32_1 = arith.constant 0 : i32
    return %c0_i32, %c0_i32_0 : i32, i32
  }
  func.func @transform_11(%arg0: i32) -> (i32, i32) {
    %c0_i32 = arith.constant 0 : i32
    %c0_i32_0 = arith.constant 0 : i32
    %c0_i32_1 = arith.constant 0 : i32
    return %c0_i32, %c0_i32_0 : i32, i32
  }
  func.func @transform_12(%arg0: i32) -> (i32, i32) {
    %c0_i32 = arith.constant 0 : i32
    %c0_i32_0 = arith.constant 0 : i32
    %c0_i32_1 = arith.constant 0 : i32
    return %c0_i32, %c0_i32_0 : i32, i32
  }
  func.func @transform_13(%arg0: i32) -> (i32, i32) {
    %c0_i32 = arith.constant 0 : i32
    %c0_i32_0 = arith.constant 0 : i32
    %c0_i32_1 = arith.constant 0 : i32
    return %c0_i32, %c0_i32_0 : i32, i32
  }
  func.func @transform_14(%arg0: i32) -> (i32, i32, i32) {
    %c0_i32 = arith.constant 0 : i32
    %c0_i32_0 = arith.constant 0 : i32
    %c0_i32_1 = arith.constant 0 : i32
    return %arg0, %c0_i32, %c0_i32_0 : i32, i32, i32
  }
}

module attributes {stable_mosaic.version = 11 : i64} {
  func.func @_linear_kernel(%arg0: memref<8x768xf32, #tpu.memory_space<vmem>>, %arg1: memref<768x64xf32, #tpu.memory_space<vmem>>, %arg2: memref<1x64xf32, #tpu.memory_space<vmem>>, %arg3: memref<8x64xf32, #tpu.memory_space<vmem>>) attributes {dimension_semantics = [], scalar_prefetch = 0 : i64, scratch_operands = 0 : i64, tpu.core_type = #tpu.core_type<tc>} {
    %c0 = arith.constant 0 : index
    %c0_0 = arith.constant 0 : index
    %0 = vector.load %arg0[%c0, %c0_0] : memref<8x768xf32, #tpu.memory_space<vmem>>, vector<8x768xf32>
    %c0_1 = arith.constant 0 : index
    %c0_2 = arith.constant 0 : index
    %1 = vector.load %arg1[%c0_1, %c0_2] : memref<768x64xf32, #tpu.memory_space<vmem>>, vector<768x64xf32>
    %cst = arith.constant dense<0.000000e+00> : vector<8x64xf32>
    %2 = tpu.matmul %0, %1, %cst {dimension_numbers = #tpu.dot_dimension_numbers<[1], [0], [0], [1], [0, 0, 1, 1], [], []>} : vector<8x768xf32>, vector<768x64xf32>, vector<8x64xf32> -> vector<8x64xf32>
    %c0_3 = arith.constant 0 : index
    %c0_4 = arith.constant 0 : index
    %3 = vector.load %arg2[%c0_3, %c0_4] : memref<1x64xf32, #tpu.memory_space<vmem>>, vector<1x64xf32>
    %4 = vector.broadcast %3 : vector<1x64xf32> to vector<8x64xf32>
    %5 = arith.addf %2, %4 : vector<8x64xf32>
    %c0_5 = arith.constant 0 : index
    %c0_6 = arith.constant 0 : index
    %6 = vector.load %arg3[%c0_5, %c0_6] : memref<8x64xf32, #tpu.memory_space<vmem>>, vector<8x64xf32>
    tpu.vector_store %arg3[%c0_5, %c0_6], %5 {strides = array<i32>} : memref<8x64xf32, #tpu.memory_space<vmem>>, vector<8x64xf32>,
    return
  }
}

module attributes {stable_mosaic.version = 11 : i64} {
  func.func @_ln_kernel(%arg0: memref<10x64xf32, #tpu.memory_space<vmem>>, %arg1: memref<1x64xf32, #tpu.memory_space<vmem>>, %arg2: memref<1x64xf32, #tpu.memory_space<vmem>>, %arg3: memref<10x64xf32, #tpu.memory_space<vmem>>) attributes {dimension_semantics = [], scalar_prefetch = 0 : i64, scratch_operands = 0 : i64, tpu.core_type = #tpu.core_type<tc>} {
    %c0 = arith.constant 0 : index
    %c0_0 = arith.constant 0 : index
    %0 = vector.load %arg0[%c0, %c0_0] : memref<10x64xf32, #tpu.memory_space<vmem>>, vector<10x64xf32>
    %c0_1 = arith.constant 0 : index
    %c0_2 = arith.constant 0 : index
    %1 = vector.load %arg1[%c0_1, %c0_2] : memref<1x64xf32, #tpu.memory_space<vmem>>, vector<1x64xf32>
    %c0_3 = arith.constant 0 : index
    %c0_4 = arith.constant 0 : index
    %2 = vector.load %arg2[%c0_3, %c0_4] : memref<1x64xf32, #tpu.memory_space<vmem>>, vector<1x64xf32>
    %cst = arith.constant dense<0.000000e+00> : vector<10xf32>
    %3 = vector.multi_reduction <add>, %0, %cst [1] : vector<10x64xf32> to vector<10xf32>
    %4 = vector.shape_cast %3 : vector<10xf32> to vector<10x1xf32>
    %cst_5 = arith.constant 6.400000e+01 : f32
    %5 = vector.broadcast %cst_5 : f32 to vector<10x1xf32>
    %6 = arith.divf %4, %5 : vector<10x1xf32>
    %7 = vector.broadcast %6 : vector<10x1xf32> to vector<10x64xf32>
    %8 = arith.subf %0, %7 : vector<10x64xf32>
    %9 = arith.mulf %8, %8 : vector<10x64xf32>
    %cst_6 = arith.constant dense<0.000000e+00> : vector<10xf32>
    %10 = vector.multi_reduction <add>, %9, %cst_6 [1] : vector<10x64xf32> to vector<10xf32>
    %11 = vector.shape_cast %10 : vector<10xf32> to vector<10x1xf32>
    %cst_7 = arith.constant 6.400000e+01 : f32
    %12 = vector.broadcast %cst_7 : f32 to vector<10x1xf32>
    %13 = arith.divf %11, %12 : vector<10x1xf32>
    %cst_8 = arith.constant 9.99999997E-7 : f32
    %14 = vector.broadcast %cst_8 : f32 to vector<10x1xf32>
    %15 = arith.addf %13, %14 : vector<10x1xf32>
    %16 = math.rsqrt %15 : vector<10x1xf32>
    %17 = vector.broadcast %16 : vector<10x1xf32> to vector<10x64xf32>
    %18 = arith.mulf %8, %17 : vector<10x64xf32>
    %19 = vector.broadcast %1 : vector<1x64xf32> to vector<10x64xf32>
    %20 = arith.mulf %18, %19 : vector<10x64xf32>
    %21 = vector.broadcast %2 : vector<1x64xf32> to vector<10x64xf32>
    %22 = arith.addf %20, %21 : vector<10x64xf32>
    %c0_9 = arith.constant 0 : index
    %c0_10 = arith.constant 0 : index
    %23 = vector.load %arg3[%c0_9, %c0_10] : memref<10x64xf32, #tpu.memory_space<vmem>>, vector<10x64xf32>
    tpu.vector_store %arg3[%c0_9, %c0_10], %22 {strides = array<i32>} : memref<10x64xf32, #tpu.memory_space<vmem>>, vector<10x64xf32>,
    return
  }
}

module attributes {stable_mosaic.version = 11 : i64} {
  func.func @_vit_block_kernel(%arg0: i32, %arg1: memref<1x5x64xf32, #tpu.memory_space<vmem>>, %arg2: memref<1x64xf32, #tpu.memory_space<vmem>>, %arg3: memref<1x64xf32, #tpu.memory_space<vmem>>, %arg4: memref<64x192xf32, #tpu.memory_space<vmem>>, %arg5: memref<1x192xf32, #tpu.memory_space<vmem>>, %arg6: memref<64x64xf32, #tpu.memory_space<vmem>>, %arg7: memref<1x64xf32, #tpu.memory_space<vmem>>, %arg8: memref<1x64xf32, #tpu.memory_space<vmem>>, %arg9: memref<1x64xf32, #tpu.memory_space<vmem>>, %arg10: memref<64x256xf32, #tpu.memory_space<vmem>>, %arg11: memref<1x256xf32, #tpu.memory_space<vmem>>, %arg12: memref<256x64xf32, #tpu.memory_space<vmem>>, %arg13: memref<1x64xf32, #tpu.memory_space<vmem>>, %arg14: memref<1x5x64xf32, #tpu.memory_space<vmem>>) attributes {dimension_semantics = [#tpu.dimension_semantics<parallel>], iteration_bounds = array<i64: 2>, scalar_prefetch = 0 : i64, scratch_operands = 0 : i64, tpu.core_type = #tpu.core_type<tc>, window_params = [{transform_indices = @transform_0, window_bounds = array<i64: 1, 5, 64>}, {pipeline_mode = #tpu.pipeline_mode<synchronous>, transform_indices = @transform_1, window_bounds = array<i64: 1, 64>}, {pipeline_mode = #tpu.pipeline_mode<synchronous>, transform_indices = @transform_2, window_bounds = array<i64: 1, 64>}, {pipeline_mode = #tpu.pipeline_mode<synchronous>, transform_indices = @transform_3, window_bounds = array<i64: 64, 192>}, {pipeline_mode = #tpu.pipeline_mode<synchronous>, transform_indices = @transform_4, window_bounds = array<i64: 1, 192>}, {pipeline_mode = #tpu.pipeline_mode<synchronous>, transform_indices = @transform_5, window_bounds = array<i64: 64, 64>}, {pipeline_mode = #tpu.pipeline_mode<synchronous>, transform_indices = @transform_6, window_bounds = array<i64: 1, 64>}, {pipeline_mode = #tpu.pipeline_mode<synchronous>, transform_indices = @transform_7, window_bounds = array<i64: 1, 64>}, {pipeline_mode = #tpu.pipeline_mode<synchronous>, transform_indices = @transform_8, window_bounds = array<i64: 1, 64>}, {pipeline_mode = #tpu.pipeline_mode<synchronous>, transform_indices = @transform_9, window_bounds = array<i64: 64, 256>}, {pipeline_mode = #tpu.pipeline_mode<synchronous>, transform_indices = @transform_10, window_bounds = array<i64: 1, 256>}, {pipeline_mode = #tpu.pipeline_mode<synchronous>, transform_indices = @transform_11, window_bounds = array<i64: 256, 64>}, {pipeline_mode = #tpu.pipeline_mode<synchronous>, transform_indices = @transform_12, window_bounds = array<i64: 1, 64>}, {transform_indices = @transform_13, window_bounds = array<i64: 1, 5, 64>}]} {
    %c0 = arith.constant 0 : index
    %c0_0 = arith.constant 0 : index
    %c0_1 = arith.constant 0 : index
    %0 = vector.load %arg1[%c0, %c0_0, %c0_1] : memref<1x5x64xf32, #tpu.memory_space<vmem>>, vector<1x5x64xf32>
    %1 = vector.shape_cast %0 : vector<1x5x64xf32> to vector<5x64xf32>
    %c0_2 = arith.constant 0 : index
    %c0_3 = arith.constant 0 : index
    %2 = vector.load %arg2[%c0_2, %c0_3] : memref<1x64xf32, #tpu.memory_space<vmem>>, vector<1x64xf32>
    %c0_4 = arith.constant 0 : index
    %c0_5 = arith.constant 0 : index
    %3 = vector.load %arg3[%c0_4, %c0_5] : memref<1x64xf32, #tpu.memory_space<vmem>>, vector<1x64xf32>
    %cst = arith.constant dense<0.000000e+00> : vector<5xf32>
    %4 = vector.multi_reduction <add>, %1, %cst [1] : vector<5x64xf32> to vector<5xf32>
    %5 = vector.shape_cast %4 : vector<5xf32> to vector<5x1xf32>
    %cst_6 = arith.constant 6.400000e+01 : f32
    %6 = vector.broadcast %cst_6 : f32 to vector<5x1xf32>
    %7 = arith.divf %5, %6 : vector<5x1xf32>
    %8 = vector.broadcast %7 : vector<5x1xf32> to vector<5x64xf32>
    %9 = arith.subf %1, %8 : vector<5x64xf32>
    %10 = arith.mulf %9, %9 : vector<5x64xf32>
    %cst_7 = arith.constant dense<0.000000e+00> : vector<5xf32>
    %11 = vector.multi_reduction <add>, %10, %cst_7 [1] : vector<5x64xf32> to vector<5xf32>
    %12 = vector.shape_cast %11 : vector<5xf32> to vector<5x1xf32>
    %cst_8 = arith.constant 6.400000e+01 : f32
    %13 = vector.broadcast %cst_8 : f32 to vector<5x1xf32>
    %14 = arith.divf %12, %13 : vector<5x1xf32>
    %cst_9 = arith.constant 9.99999997E-7 : f32
    %15 = vector.broadcast %cst_9 : f32 to vector<5x1xf32>
    %16 = arith.addf %14, %15 : vector<5x1xf32>
    %17 = math.rsqrt %16 : vector<5x1xf32>
    %18 = vector.broadcast %17 : vector<5x1xf32> to vector<5x64xf32>
    %19 = arith.mulf %9, %18 : vector<5x64xf32>
    %20 = vector.broadcast %2 : vector<1x64xf32> to vector<5x64xf32>
    %21 = arith.mulf %19, %20 : vector<5x64xf32>
    %22 = vector.broadcast %3 : vector<1x64xf32> to vector<5x64xf32>
    %23 = arith.addf %21, %22 : vector<5x64xf32>
    %c0_10 = arith.constant 0 : index
    %c0_11 = arith.constant 0 : index
    %24 = vector.load %arg4[%c0_10, %c0_11] : memref<64x192xf32, #tpu.memory_space<vmem>>, vector<64x192xf32>
    %cst_12 = arith.constant dense<0.000000e+00> : vector<5x192xf32>
    %25 = tpu.matmul %23, %24, %cst_12 {dimension_numbers = #tpu.dot_dimension_numbers<[1], [0], [0], [1], [0, 0, 1, 1], [], []>} : vector<5x64xf32>, vector<64x192xf32>, vector<5x192xf32> -> vector<5x192xf32>
    %c0_13 = arith.constant 0 : index
    %c0_14 = arith.constant 0 : index
    %26 = vector.load %arg5[%c0_13, %c0_14] : memref<1x192xf32, #tpu.memory_space<vmem>>, vector<1x192xf32>
    %27 = vector.broadcast %26 : vector<1x192xf32> to vector<5x192xf32>
    %28 = arith.addf %25, %27 : vector<5x192xf32>
    %29 = vector.extract_strided_slice %28 {offsets = [0, 0], sizes = [5, 64], strides = [1, 1]} : vector<5x192xf32> to vector<5x64xf32>
    %30 = vector.extract_strided_slice %28 {offsets = [0, 64], sizes = [5, 64], strides = [1, 1]} : vector<5x192xf32> to vector<5x64xf32>
    %31 = vector.extract_strided_slice %28 {offsets = [0, 128], sizes = [5, 64], strides = [1, 1]} : vector<5x192xf32> to vector<5x64xf32>
    %c0_15 = arith.constant 0 : index
    %c0_16 = arith.constant 0 : index
    %32 = vector.load %arg6[%c0_15, %c0_16] : memref<64x64xf32, #tpu.memory_space<vmem>>, vector<64x64xf32>
    %cst_17 = arith.constant 0.000000e+00 : f32
    %33 = vector.broadcast %cst_17 : f32 to vector<5x64xf32>
    %34 = vector.extract_strided_slice %29 {offsets = [0, 0], sizes = [5, 16], strides = [1, 1]} : vector<5x64xf32> to vector<5x16xf32>
    %35 = vector.extract_strided_slice %30 {offsets = [0, 0], sizes = [5, 16], strides = [1, 1]} : vector<5x64xf32> to vector<5x16xf32>
    %cst_18 = arith.constant dense<0.000000e+00> : vector<5x5xf32>
    %36 = tpu.matmul %34, %35, %cst_18 {dimension_numbers = #tpu.dot_dimension_numbers<[1], [1], [0], [0], [0, 0, 1, 0], [], []>} : vector<5x16xf32>, vector<5x16xf32>, vector<5x5xf32> -> vector<5x5xf32>
    %cst_19 = arith.constant 2.500000e-01 : f32
    %37 = vector.broadcast %cst_19 : f32 to vector<5x5xf32>
    %38 = arith.mulf %36, %37 : vector<5x5xf32>
    %cst_20 = arith.constant dense<0xFF800000> : vector<5xf32>
    %39 = vector.multi_reduction <maximumf>, %38, %cst_20 [1] : vector<5x5xf32> to vector<5xf32>
    %40 = vector.shape_cast %39 : vector<5xf32> to vector<5x1xf32>
    %41 = vector.broadcast %40 : vector<5x1xf32> to vector<5x5xf32>
    %42 = arith.subf %38, %41 : vector<5x5xf32>
    %43 = math.exp %42 : vector<5x5xf32>
    %cst_21 = arith.constant dense<0.000000e+00> : vector<5xf32>
    %44 = vector.multi_reduction <add>, %43, %cst_21 [1] : vector<5x5xf32> to vector<5xf32>
    %45 = vector.shape_cast %44 : vector<5xf32> to vector<5x1xf32>
    %46 = tpu.reciprocal %45 {approx = true} : vector<5x1xf32> -> vector<5x1xf32>
    %47 = vector.broadcast %46 : vector<5x1xf32> to vector<5x5xf32>
    %48 = arith.mulf %43, %47 : vector<5x5xf32>
    %49 = vector.extract_strided_slice %31 {offsets = [0, 0], sizes = [5, 16], strides = [1, 1]} : vector<5x64xf32> to vector<5x16xf32>
    %cst_22 = arith.constant dense<0.000000e+00> : vector<5x16xf32>
    %50 = tpu.matmul %48, %49, %cst_22 {dimension_numbers = #tpu.dot_dimension_numbers<[1], [0], [0], [1], [0, 0, 1, 1], [], []>} : vector<5x5xf32>, vector<5x16xf32>, vector<5x16xf32> -> vector<5x16xf32>
    %51 = vector.extract_strided_slice %32 {offsets = [0, 0], sizes = [16, 64], strides = [1, 1]} : vector<64x64xf32> to vector<16x64xf32>
    %cst_23 = arith.constant dense<0.000000e+00> : vector<5x64xf32>
    %52 = tpu.matmul %50, %51, %cst_23 {dimension_numbers = #tpu.dot_dimension_numbers<[1], [0], [0], [1], [0, 0, 1, 1], [], []>} : vector<5x16xf32>, vector<16x64xf32>, vector<5x64xf32> -> vector<5x64xf32>
    %53 = arith.addf %33, %52 : vector<5x64xf32>
    %54 = vector.extract_strided_slice %29 {offsets = [0, 16], sizes = [5, 16], strides = [1, 1]} : vector<5x64xf32> to vector<5x16xf32>
    %55 = vector.extract_strided_slice %30 {offsets = [0, 16], sizes = [5, 16], strides = [1, 1]} : vector<5x64xf32> to vector<5x16xf32>
    %cst_24 = arith.constant dense<0.000000e+00> : vector<5x5xf32>
    %56 = tpu.matmul %54, %55, %cst_24 {dimension_numbers = #tpu.dot_dimension_numbers<[1], [1], [0], [0], [0, 0, 1, 0], [], []>} : vector<5x16xf32>, vector<5x16xf32>, vector<5x5xf32> -> vector<5x5xf32>
    %cst_25 = arith.constant 2.500000e-01 : f32
    %57 = vector.broadcast %cst_25 : f32 to vector<5x5xf32>
    %58 = arith.mulf %56, %57 : vector<5x5xf32>
    %cst_26 = arith.constant dense<0xFF800000> : vector<5xf32>
    %59 = vector.multi_reduction <maximumf>, %58, %cst_26 [1] : vector<5x5xf32> to vector<5xf32>
    %60 = vector.shape_cast %59 : vector<5xf32> to vector<5x1xf32>
    %61 = vector.broadcast %60 : vector<5x1xf32> to vector<5x5xf32>
    %62 = arith.subf %58, %61 : vector<5x5xf32>
    %63 = math.exp %62 : vector<5x5xf32>
    %cst_27 = arith.constant dense<0.000000e+00> : vector<5xf32>
    %64 = vector.multi_reduction <add>, %63, %cst_27 [1] : vector<5x5xf32> to vector<5xf32>
    %65 = vector.shape_cast %64 : vector<5xf32> to vector<5x1xf32>
    %66 = tpu.reciprocal %65 {approx = true} : vector<5x1xf32> -> vector<5x1xf32>
    %67 = vector.broadcast %66 : vector<5x1xf32> to vector<5x5xf32>
    %68 = arith.mulf %63, %67 : vector<5x5xf32>
    %69 = vector.extract_strided_slice %31 {offsets = [0, 16], sizes = [5, 16], strides = [1, 1]} : vector<5x64xf32> to vector<5x16xf32>
    %cst_28 = arith.constant dense<0.000000e+00> : vector<5x16xf32>
    %70 = tpu.matmul %68, %69, %cst_28 {dimension_numbers = #tpu.dot_dimension_numbers<[1], [0], [0], [1], [0, 0, 1, 1], [], []>} : vector<5x5xf32>, vector<5x16xf32>, vector<5x16xf32> -> vector<5x16xf32>
    %71 = vector.extract_strided_slice %32 {offsets = [16, 0], sizes = [16, 64], strides = [1, 1]} : vector<64x64xf32> to vector<16x64xf32>
    %cst_29 = arith.constant dense<0.000000e+00> : vector<5x64xf32>
    %72 = tpu.matmul %70, %71, %cst_29 {dimension_numbers = #tpu.dot_dimension_numbers<[1], [0], [0], [1], [0, 0, 1, 1], [], []>} : vector<5x16xf32>, vector<16x64xf32>, vector<5x64xf32> -> vector<5x64xf32>
    %73 = arith.addf %53, %72 : vector<5x64xf32>
    %74 = vector.extract_strided_slice %29 {offsets = [0, 32], sizes = [5, 16], strides = [1, 1]} : vector<5x64xf32> to vector<5x16xf32>
    %75 = vector.extract_strided_slice %30 {offsets = [0, 32], sizes = [5, 16], strides = [1, 1]} : vector<5x64xf32> to vector<5x16xf32>
    %cst_30 = arith.constant dense<0.000000e+00> : vector<5x5xf32>
    %76 = tpu.matmul %74, %75, %cst_30 {dimension_numbers = #tpu.dot_dimension_numbers<[1], [1], [0], [0], [0, 0, 1, 0], [], []>} : vector<5x16xf32>, vector<5x16xf32>, vector<5x5xf32> -> vector<5x5xf32>
    %cst_31 = arith.constant 2.500000e-01 : f32
    %77 = vector.broadcast %cst_31 : f32 to vector<5x5xf32>
    %78 = arith.mulf %76, %77 : vector<5x5xf32>
    %cst_32 = arith.constant dense<0xFF800000> : vector<5xf32>
    %79 = vector.multi_reduction <maximumf>, %78, %cst_32 [1] : vector<5x5xf32> to vector<5xf32>
    %80 = vector.shape_cast %79 : vector<5xf32> to vector<5x1xf32>
    %81 = vector.broadcast %80 : vector<5x1xf32> to vector<5x5xf32>
    %82 = arith.subf %78, %81 : vector<5x5xf32>
    %83 = math.exp %82 : vector<5x5xf32>
    %cst_33 = arith.constant dense<0.000000e+00> : vector<5xf32>
    %84 = vector.multi_reduction <add>, %83, %cst_33 [1] : vector<5x5xf32> to vector<5xf32>
    %85 = vector.shape_cast %84 : vector<5xf32> to vector<5x1xf32>
    %86 = tpu.reciprocal %85 {approx = true} : vector<5x1xf32> -> vector<5x1xf32>
    %87 = vector.broadcast %86 : vector<5x1xf32> to vector<5x5xf32>
    %88 = arith.mulf %83, %87 : vector<5x5xf32>
    %89 = vector.extract_strided_slice %31 {offsets = [0, 32], sizes = [5, 16], strides = [1, 1]} : vector<5x64xf32> to vector<5x16xf32>
    %cst_34 = arith.constant dense<0.000000e+00> : vector<5x16xf32>
    %90 = tpu.matmul %88, %89, %cst_34 {dimension_numbers = #tpu.dot_dimension_numbers<[1], [0], [0], [1], [0, 0, 1, 1], [], []>} : vector<5x5xf32>, vector<5x16xf32>, vector<5x16xf32> -> vector<5x16xf32>
    %91 = vector.extract_strided_slice %32 {offsets = [32, 0], sizes = [16, 64], strides = [1, 1]} : vector<64x64xf32> to vector<16x64xf32>
    %cst_35 = arith.constant dense<0.000000e+00> : vector<5x64xf32>
    %92 = tpu.matmul %90, %91, %cst_35 {dimension_numbers = #tpu.dot_dimension_numbers<[1], [0], [0], [1], [0, 0, 1, 1], [], []>} : vector<5x16xf32>, vector<16x64xf32>, vector<5x64xf32> -> vector<5x64xf32>
    %93 = arith.addf %73, %92 : vector<5x64xf32>
    %94 = vector.extract_strided_slice %29 {offsets = [0, 48], sizes = [5, 16], strides = [1, 1]} : vector<5x64xf32> to vector<5x16xf32>
    %95 = vector.extract_strided_slice %30 {offsets = [0, 48], sizes = [5, 16], strides = [1, 1]} : vector<5x64xf32> to vector<5x16xf32>
    %cst_36 = arith.constant dense<0.000000e+00> : vector<5x5xf32>
    %96 = tpu.matmul %94, %95, %cst_36 {dimension_numbers = #tpu.dot_dimension_numbers<[1], [1], [0], [0], [0, 0, 1, 0], [], []>} : vector<5x16xf32>, vector<5x16xf32>, vector<5x5xf32> -> vector<5x5xf32>
    %cst_37 = arith.constant 2.500000e-01 : f32
    %97 = vector.broadcast %cst_37 : f32 to vector<5x5xf32>
    %98 = arith.mulf %96, %97 : vector<5x5xf32>
    %cst_38 = arith.constant dense<0xFF800000> : vector<5xf32>
    %99 = vector.multi_reduction <maximumf>, %98, %cst_38 [1] : vector<5x5xf32> to vector<5xf32>
    %100 = vector.shape_cast %99 : vector<5xf32> to vector<5x1xf32>
    %101 = vector.broadcast %100 : vector<5x1xf32> to vector<5x5xf32>
    %102 = arith.subf %98, %101 : vector<5x5xf32>
    %103 = math.exp %102 : vector<5x5xf32>
    %cst_39 = arith.constant dense<0.000000e+00> : vector<5xf32>
    %104 = vector.multi_reduction <add>, %103, %cst_39 [1] : vector<5x5xf32> to vector<5xf32>
    %105 = vector.shape_cast %104 : vector<5xf32> to vector<5x1xf32>
    %106 = tpu.reciprocal %105 {approx = true} : vector<5x1xf32> -> vector<5x1xf32>
    %107 = vector.broadcast %106 : vector<5x1xf32> to vector<5x5xf32>
    %108 = arith.mulf %103, %107 : vector<5x5xf32>
    %109 = vector.extract_strided_slice %31 {offsets = [0, 48], sizes = [5, 16], strides = [1, 1]} : vector<5x64xf32> to vector<5x16xf32>
    %cst_40 = arith.constant dense<0.000000e+00> : vector<5x16xf32>
    %110 = tpu.matmul %108, %109, %cst_40 {dimension_numbers = #tpu.dot_dimension_numbers<[1], [0], [0], [1], [0, 0, 1, 1], [], []>} : vector<5x5xf32>, vector<5x16xf32>, vector<5x16xf32> -> vector<5x16xf32>
    %111 = vector.extract_strided_slice %32 {offsets = [48, 0], sizes = [16, 64], strides = [1, 1]} : vector<64x64xf32> to vector<16x64xf32>
    %cst_41 = arith.constant dense<0.000000e+00> : vector<5x64xf32>
    %112 = tpu.matmul %110, %111, %cst_41 {dimension_numbers = #tpu.dot_dimension_numbers<[1], [0], [0], [1], [0, 0, 1, 1], [], []>} : vector<5x16xf32>, vector<16x64xf32>, vector<5x64xf32> -> vector<5x64xf32>
    %113 = arith.addf %93, %112 : vector<5x64xf32>
    %c0_42 = arith.constant 0 : index
    %c0_43 = arith.constant 0 : index
    %114 = vector.load %arg7[%c0_42, %c0_43] : memref<1x64xf32, #tpu.memory_space<vmem>>, vector<1x64xf32>
    %115 = vector.broadcast %114 : vector<1x64xf32> to vector<5x64xf32>
    %116 = arith.addf %113, %115 : vector<5x64xf32>
    %117 = arith.addf %1, %116 : vector<5x64xf32>
    %c0_44 = arith.constant 0 : index
    %c0_45 = arith.constant 0 : index
    %118 = vector.load %arg8[%c0_44, %c0_45] : memref<1x64xf32, #tpu.memory_space<vmem>>, vector<1x64xf32>
    %c0_46 = arith.constant 0 : index
    %c0_47 = arith.constant 0 : index
    %119 = vector.load %arg9[%c0_46, %c0_47] : memref<1x64xf32, #tpu.memory_space<vmem>>, vector<1x64xf32>
    %cst_48 = arith.constant dense<0.000000e+00> : vector<5xf32>
    %120 = vector.multi_reduction <add>, %117, %cst_48 [1] : vector<5x64xf32> to vector<5xf32>
    %121 = vector.shape_cast %120 : vector<5xf32> to vector<5x1xf32>
    %cst_49 = arith.constant 6.400000e+01 : f32
    %122 = vector.broadcast %cst_49 : f32 to vector<5x1xf32>
    %123 = arith.divf %121, %122 : vector<5x1xf32>
    %124 = vector.broadcast %123 : vector<5x1xf32> to vector<5x64xf32>
    %125 = arith.subf %117, %124 : vector<5x64xf32>
    %126 = arith.mulf %125, %125 : vector<5x64xf32>
    %cst_50 = arith.constant dense<0.000000e+00> : vector<5xf32>
    %127 = vector.multi_reduction <add>, %126, %cst_50 [1] : vector<5x64xf32> to vector<5xf32>
    %128 = vector.shape_cast %127 : vector<5xf32> to vector<5x1xf32>
    %cst_51 = arith.constant 6.400000e+01 : f32
    %129 = vector.broadcast %cst_51 : f32 to vector<5x1xf32>
    %130 = arith.divf %128, %129 : vector<5x1xf32>
    %cst_52 = arith.constant 9.99999997E-7 : f32
    %131 = vector.broadcast %cst_52 : f32 to vector<5x1xf32>
    %132 = arith.addf %130, %131 : vector<5x1xf32>
    %133 = math.rsqrt %132 : vector<5x1xf32>
    %134 = vector.broadcast %133 : vector<5x1xf32> to vector<5x64xf32>
    %135 = arith.mulf %125, %134 : vector<5x64xf32>
    %136 = vector.broadcast %118 : vector<1x64xf32> to vector<5x64xf32>
    %137 = arith.mulf %135, %136 : vector<5x64xf32>
    %138 = vector.broadcast %119 : vector<1x64xf32> to vector<5x64xf32>
    %139 = arith.addf %137, %138 : vector<5x64xf32>
    %c0_53 = arith.constant 0 : index
    %c0_54 = arith.constant 0 : index
    %140 = vector.load %arg10[%c0_53, %c0_54] : memref<64x256xf32, #tpu.memory_space<vmem>>, vector<64x256xf32>
    %cst_55 = arith.constant dense<0.000000e+00> : vector<5x256xf32>
    %141 = tpu.matmul %139, %140, %cst_55 {dimension_numbers = #tpu.dot_dimension_numbers<[1], [0], [0], [1], [0, 0, 1, 1], [], []>} : vector<5x64xf32>, vector<64x256xf32>, vector<5x256xf32> -> vector<5x256xf32>
    %c0_56 = arith.constant 0 : index
    %c0_57 = arith.constant 0 : index
    %142 = vector.load %arg11[%c0_56, %c0_57] : memref<1x256xf32, #tpu.memory_space<vmem>>, vector<1x256xf32>
    %143 = vector.broadcast %142 : vector<1x256xf32> to vector<5x256xf32>
    %144 = arith.addf %141, %143 : vector<5x256xf32>
    %cst_58 = arith.constant 5.000000e-01 : f32
    %145 = vector.broadcast %cst_58 : f32 to vector<5x256xf32>
    %146 = arith.mulf %145, %144 : vector<5x256xf32>
    %cst_59 = arith.constant 4.471500e-02 : f32
    %147 = vector.broadcast %cst_59 : f32 to vector<5x256xf32>
    %148 = arith.mulf %147, %144 : vector<5x256xf32>
    %149 = arith.mulf %148, %144 : vector<5x256xf32>
    %150 = arith.mulf %149, %144 : vector<5x256xf32>
    %151 = arith.addf %144, %150 : vector<5x256xf32>
    %cst_60 = arith.constant 0.797884583 : f32
    %152 = vector.broadcast %cst_60 : f32 to vector<5x256xf32>
    %153 = arith.mulf %152, %151 : vector<5x256xf32>
    %154 = math.tanh %153 : vector<5x256xf32>
    %cst_61 = arith.constant 1.000000e+00 : f32
    %155 = vector.broadcast %cst_61 : f32 to vector<5x256xf32>
    %156 = arith.addf %155, %154 : vector<5x256xf32>
    %157 = arith.mulf %146, %156 : vector<5x256xf32>
    %c0_62 = arith.constant 0 : index
    %c0_63 = arith.constant 0 : index
    %158 = vector.load %arg12[%c0_62, %c0_63] : memref<256x64xf32, #tpu.memory_space<vmem>>, vector<256x64xf32>
    %cst_64 = arith.constant dense<0.000000e+00> : vector<5x64xf32>
    %159 = tpu.matmul %157, %158, %cst_64 {dimension_numbers = #tpu.dot_dimension_numbers<[1], [0], [0], [1], [0, 0, 1, 1], [], []>} : vector<5x256xf32>, vector<256x64xf32>, vector<5x64xf32> -> vector<5x64xf32>
    %c0_65 = arith.constant 0 : index
    %c0_66 = arith.constant 0 : index
    %160 = vector.load %arg13[%c0_65, %c0_66] : memref<1x64xf32, #tpu.memory_space<vmem>>, vector<1x64xf32>
    %161 = vector.broadcast %160 : vector<1x64xf32> to vector<5x64xf32>
    %162 = arith.addf %159, %161 : vector<5x64xf32>
    %163 = arith.addf %117, %162 : vector<5x64xf32>
    %c0_67 = arith.constant 0 : index
    %c0_68 = arith.constant 0 : index
    %c0_69 = arith.constant 0 : index
    %164 = vector.load %arg14[%c0_67, %c0_68, %c0_69] : memref<1x5x64xf32, #tpu.memory_space<vmem>>, vector<1x5x64xf32>
    %165 = vector.shape_cast %164 : vector<1x5x64xf32> to vector<5x64xf32>
    %166 = vector.shape_cast %163 : vector<5x64xf32> to vector<1x5x64xf32>
    tpu.vector_store %arg14[%c0_67, %c0_68, %c0_69], %166 {strides = array<i32>} : memref<1x5x64xf32, #tpu.memory_space<vmem>>, vector<1x5x64xf32>,
    return
  }
  func.func @transform_0(%arg0: i32) -> (i32, i32, i32) {
    %c0_i32 = arith.constant 0 : i32
    %c0_i32_0 = arith.constant 0 : i32
    %c0_i32_1 = arith.constant 0 : i32
    return %arg0, %c0_i32, %c0_i32_0 : i32, i32, i32
  }
  func.func @transform_1(%arg0: i32) -> (i32, i32) {
    %c0_i32 = arith.constant 0 : i32
    %c0_i32_0 = arith.constant 0 : i32
    %c0_i32_1 = arith.constant 0 : i32
    return %c0_i32, %c0_i32_0 : i32, i32
  }
  func.func @transform_2(%arg0: i32) -> (i32, i32) {
    %c0_i32 = arith.constant 0 : i32
    %c0_i32_0 = arith.constant 0 : i32
    %c0_i32_1 = arith.constant 0 : i32
    return %c0_i32, %c0_i32_0 : i32, i32
  }
  func.func @transform_3(%arg0: i32) -> (i32, i32) {
    %c0_i32 = arith.constant 0 : i32
    %c0_i32_0 = arith.constant 0 : i32
    %c0_i32_1 = arith.constant 0 : i32
    return %c0_i32, %c0_i32_0 : i32, i32
  }
  func.func @transform_4(%arg0: i32) -> (i32, i32) {
    %c0_i32 = arith.constant 0 : i32
    %c0_i32_0 = arith.constant 0 : i32
    %c0_i32_1 = arith.constant 0 : i32
    return %c0_i32, %c0_i32_0 : i32, i32
  }
  func.func @transform_5(%arg0: i32) -> (i32, i32) {
    %c0_i32 = arith.constant 0 : i32
    %c0_i32_0 = arith.constant 0 : i32
    %c0_i32_1 = arith.constant 0 : i32
    return %c0_i32, %c0_i32_0 : i32, i32
  }
  func.func @transform_6(%arg0: i32) -> (i32, i32) {
    %c0_i32 = arith.constant 0 : i32
    %c0_i32_0 = arith.constant 0 : i32
    %c0_i32_1 = arith.constant 0 : i32
    return %c0_i32, %c0_i32_0 : i32, i32
  }
  func.func @transform_7(%arg0: i32) -> (i32, i32) {
    %c0_i32 = arith.constant 0 : i32
    %c0_i32_0 = arith.constant 0 : i32
    %c0_i32_1 = arith.constant 0 : i32
    return %c0_i32, %c0_i32_0 : i32, i32
  }
  func.func @transform_8(%arg0: i32) -> (i32, i32) {
    %c0_i32 = arith.constant 0 : i32
    %c0_i32_0 = arith.constant 0 : i32
    %c0_i32_1 = arith.constant 0 : i32
    return %c0_i32, %c0_i32_0 : i32, i32
  }
  func.func @transform_9(%arg0: i32) -> (i32, i32) {
    %c0_i32 = arith.constant 0 : i32
    %c0_i32_0 = arith.constant 0 : i32
    %c0_i32_1 = arith.constant 0 : i32
    return %c0_i32, %c0_i32_0 : i32, i32
  }
  func.func @transform_10(%arg0: i32) -> (i32, i32) {
    %c0_i32 = arith.constant 0 : i32
    %c0_i32_0 = arith.constant 0 : i32
    %c0_i32_1 = arith.constant 0 : i32
    return %c0_i32, %c0_i32_0 : i32, i32
  }
  func.func @transform_11(%arg0: i32) -> (i32, i32) {
    %c0_i32 = arith.constant 0 : i32
    %c0_i32_0 = arith.constant 0 : i32
    %c0_i32_1 = arith.constant 0 : i32
    return %c0_i32, %c0_i32_0 : i32, i32
  }
  func.func @transform_12(%arg0: i32) -> (i32, i32) {
    %c0_i32 = arith.constant 0 : i32
    %c0_i32_0 = arith.constant 0 : i32
    %c0_i32_1 = arith.constant 0 : i32
    return %c0_i32, %c0_i32_0 : i32, i32
  }
  func.func @transform_13(%arg0: i32) -> (i32, i32, i32) {
    %c0_i32 = arith.constant 0 : i32
    %c0_i32_0 = arith.constant 0 : i32
    %c0_i32_1 = arith.constant 0 : i32
    return %arg0, %c0_i32, %c0_i32_0 : i32, i32, i32
  }
}

module attributes {stable_mosaic.version = 11 : i64} {
  func.func @_bert_cross_layer_kernel(%arg0: i32, %arg1: memref<1x8x64xf32, #tpu.memory_space<vmem>>, %arg2: memref<1x1x8xf32, #tpu.memory_space<vmem>>, %arg3: memref<1x5x64xf32, #tpu.memory_space<vmem>>, %arg4: memref<64x192xf32, #tpu.memory_space<vmem>>, %arg5: memref<1x192xf32, #tpu.memory_space<vmem>>, %arg6: memref<64x64xf32, #tpu.memory_space<vmem>>, %arg7: memref<1x64xf32, #tpu.memory_space<vmem>>, %arg8: memref<1x64xf32, #tpu.memory_space<vmem>>, %arg9: memref<1x64xf32, #tpu.memory_space<vmem>>, %arg10: memref<64x64xf32, #tpu.memory_space<vmem>>, %arg11: memref<1x64xf32, #tpu.memory_space<vmem>>, %arg12: memref<64x128xf32, #tpu.memory_space<vmem>>, %arg13: memref<1x128xf32, #tpu.memory_space<vmem>>, %arg14: memref<64x64xf32, #tpu.memory_space<vmem>>, %arg15: memref<1x64xf32, #tpu.memory_space<vmem>>, %arg16: memref<1x64xf32, #tpu.memory_space<vmem>>, %arg17: memref<1x64xf32, #tpu.memory_space<vmem>>, %arg18: memref<64x256xf32, #tpu.memory_space<vmem>>, %arg19: memref<1x256xf32, #tpu.memory_space<vmem>>, %arg20: memref<256x64xf32, #tpu.memory_space<vmem>>, %arg21: memref<1x64xf32, #tpu.memory_space<vmem>>, %arg22: memref<1x64xf32, #tpu.memory_space<vmem>>, %arg23: memref<1x64xf32, #tpu.memory_space<vmem>>, %arg24: memref<1x8x64xf32, #tpu.memory_space<vmem>>) attributes {dimension_semantics = [#tpu.dimension_semantics<parallel>], iteration_bounds = array<i64: 2>, scalar_prefetch = 0 : i64, scratch_operands = 0 : i64, tpu.core_type = #tpu.core_type<tc>, window_params = [{transform_indices = @transform_0, window_bounds = array<i64: 1, 8, 64>}, {transform_indices = @transform_1, window_bounds = array<i64: 1, 1, 8>}, {transform_indices = @transform_2, window_bounds = array<i64: 1, 5, 64>}, {pipeline_mode = #tpu.pipeline_mode<synchronous>, transform_indices = @transform_3, window_bounds = array<i64: 64, 192>}, {pipeline_mode = #tpu.pipeline_mode<synchronous>, transform_indices = @transform_4, window_bounds = array<i64: 1, 192>}, {pipeline_mode = #tpu.pipeline_mode<synchronous>, transform_indices = @transform_5, window_bounds = array<i64: 64, 64>}, {pipeline_mode = #tpu.pipeline_mode<synchronous>, transform_indices = @transform_6, window_bounds = array<i64: 1, 64>}, {pipeline_mode = #tpu.pipeline_mode<synchronous>, transform_indices = @transform_7, window_bounds = array<i64: 1, 64>}, {pipeline_mode = #tpu.pipeline_mode<synchronous>, transform_indices = @transform_8, window_bounds = array<i64: 1, 64>}, {pipeline_mode = #tpu.pipeline_mode<synchronous>, transform_indices = @transform_9, window_bounds = array<i64: 64, 64>}, {pipeline_mode = #tpu.pipeline_mode<synchronous>, transform_indices = @transform_10, window_bounds = array<i64: 1, 64>}, {pipeline_mode = #tpu.pipeline_mode<synchronous>, transform_indices = @transform_11, window_bounds = array<i64: 64, 128>}, {pipeline_mode = #tpu.pipeline_mode<synchronous>, transform_indices = @transform_12, window_bounds = array<i64: 1, 128>}, {pipeline_mode = #tpu.pipeline_mode<synchronous>, transform_indices = @transform_13, window_bounds = array<i64: 64, 64>}, {pipeline_mode = #tpu.pipeline_mode<synchronous>, transform_indices = @transform_14, window_bounds = array<i64: 1, 64>}, {pipeline_mode = #tpu.pipeline_mode<synchronous>, transform_indices = @transform_15, window_bounds = array<i64: 1, 64>}, {pipeline_mode = #tpu.pipeline_mode<synchronous>, transform_indices = @transform_16, window_bounds = array<i64: 1, 64>}, {pipeline_mode = #tpu.pipeline_mode<synchronous>, transform_indices = @transform_17, window_bounds = array<i64: 64, 256>}, {pipeline_mode = #tpu.pipeline_mode<synchronous>, transform_indices = @transform_18, window_bounds = array<i64: 1, 256>}, {pipeline_mode = #tpu.pipeline_mode<synchronous>, transform_indices = @transform_19, window_bounds = array<i64: 256, 64>}, {pipeline_mode = #tpu.pipeline_mode<synchronous>, transform_indices = @transform_20, window_bounds = array<i64: 1, 64>}, {pipeline_mode = #tpu.pipeline_mode<synchronous>, transform_indices = @transform_21, window_bounds = array<i64: 1, 64>}, {pipeline_mode = #tpu.pipeline_mode<synchronous>, transform_indices = @transform_22, window_bounds = array<i64: 1, 64>}, {transform_indices = @transform_23, window_bounds = array<i64: 1, 8, 64>}]} {
    %c0 = arith.constant 0 : index
    %c0_0 = arith.constant 0 : index
    %c0_1 = arith.constant 0 : index
    %0 = vector.load %arg1[%c0, %c0_0, %c0_1] : memref<1x8x64xf32, #tpu.memory_space<vmem>>, vector<1x8x64xf32>
    %1 = vector.shape_cast %0 : vector<1x8x64xf32> to vector<8x64xf32>
    %c0_2 = arith.constant 0 : index
    %c0_3 = arith.constant 0 : index
    %c0_4 = arith.constant 0 : index
    %2 = vector.load %arg2[%c0_2, %c0_3, %c0_4] : memref<1x1x8xf32, #tpu.memory_space<vmem>>, vector<1x1x8xf32>
    %3 = vector.shape_cast %2 : vector<1x1x8xf32> to vector<1x8xf32>
    %c0_5 = arith.constant 0 : index
    %c0_6 = arith.constant 0 : index
    %c0_7 = arith.constant 0 : index
    %4 = vector.load %arg3[%c0_5, %c0_6, %c0_7] : memref<1x5x64xf32, #tpu.memory_space<vmem>>, vector<1x5x64xf32>
    %5 = vector.shape_cast %4 : vector<1x5x64xf32> to vector<5x64xf32>
    %c0_8 = arith.constant 0 : index
    %c0_9 = arith.constant 0 : index
    %6 = vector.load %arg4[%c0_8, %c0_9] : memref<64x192xf32, #tpu.memory_space<vmem>>, vector<64x192xf32>
    %cst = arith.constant dense<0.000000e+00> : vector<8x192xf32>
    %7 = tpu.matmul %1, %6, %cst {dimension_numbers = #tpu.dot_dimension_numbers<[1], [0], [0], [1], [0, 0, 1, 1], [], []>} : vector<8x64xf32>, vector<64x192xf32>, vector<8x192xf32> -> vector<8x192xf32>
    %c0_10 = arith.constant 0 : index
    %c0_11 = arith.constant 0 : index
    %8 = vector.load %arg5[%c0_10, %c0_11] : memref<1x192xf32, #tpu.memory_space<vmem>>, vector<1x192xf32>
    %9 = vector.broadcast %8 : vector<1x192xf32> to vector<8x192xf32>
    %10 = arith.addf %7, %9 : vector<8x192xf32>
    %11 = vector.extract_strided_slice %10 {offsets = [0, 0], sizes = [8, 64], strides = [1, 1]} : vector<8x192xf32> to vector<8x64xf32>
    %12 = vector.extract_strided_slice %10 {offsets = [0, 64], sizes = [8, 64], strides = [1, 1]} : vector<8x192xf32> to vector<8x64xf32>
    %13 = vector.extract_strided_slice %10 {offsets = [0, 128], sizes = [8, 64], strides = [1, 1]} : vector<8x192xf32> to vector<8x64xf32>
    %c0_12 = arith.constant 0 : index
    %c0_13 = arith.constant 0 : index
    %14 = vector.load %arg6[%c0_12, %c0_13] : memref<64x64xf32, #tpu.memory_space<vmem>>, vector<64x64xf32>
    %cst_14 = arith.constant 0.000000e+00 : f32
    %15 = vector.broadcast %cst_14 : f32 to vector<8x64xf32>
    %16 = vector.extract_strided_slice %11 {offsets = [0, 0], sizes = [8, 16], strides = [1, 1]} : vector<8x64xf32> to vector<8x16xf32>
    %17 = vector.extract_strided_slice %12 {offsets = [0, 0], sizes = [8, 16], strides = [1, 1]} : vector<8x64xf32> to vector<8x16xf32>
    %cst_15 = arith.constant dense<0.000000e+00> : vector<8x8xf32>
    %18 = tpu.matmul %16, %17, %cst_15 {dimension_numbers = #tpu.dot_dimension_numbers<[1], [1], [0], [0], [0, 0, 1, 0], [], []>} : vector<8x16xf32>, vector<8x16xf32>, vector<8x8xf32> -> vector<8x8xf32>
    %cst_16 = arith.constant 2.500000e-01 : f32
    %19 = vector.broadcast %cst_16 : f32 to vector<8x8xf32>
    %20 = arith.mulf %18, %19 : vector<8x8xf32>
    %21 = vector.broadcast %3 : vector<1x8xf32> to vector<8x8xf32>
    %22 = arith.addf %20, %21 : vector<8x8xf32>
    %cst_17 = arith.constant dense<0xFF800000> : vector<8xf32>
    %23 = vector.multi_reduction <maximumf>, %22, %cst_17 [1] : vector<8x8xf32> to vector<8xf32>
    %24 = vector.shape_cast %23 : vector<8xf32> to vector<8x1xf32>
    %25 = vector.broadcast %24 : vector<8x1xf32> to vector<8x8xf32>
    %26 = arith.subf %22, %25 : vector<8x8xf32>
    %27 = math.exp %26 : vector<8x8xf32>
    %cst_18 = arith.constant dense<0.000000e+00> : vector<8xf32>
    %28 = vector.multi_reduction <add>, %27, %cst_18 [1] : vector<8x8xf32> to vector<8xf32>
    %29 = vector.shape_cast %28 : vector<8xf32> to vector<8x1xf32>
    %30 = tpu.reciprocal %29 {approx = true} : vector<8x1xf32> -> vector<8x1xf32>
    %31 = vector.broadcast %30 : vector<8x1xf32> to vector<8x8xf32>
    %32 = arith.mulf %27, %31 : vector<8x8xf32>
    %33 = vector.extract_strided_slice %13 {offsets = [0, 0], sizes = [8, 16], strides = [1, 1]} : vector<8x64xf32> to vector<8x16xf32>
    %cst_19 = arith.constant dense<0.000000e+00> : vector<8x16xf32>
    %34 = tpu.matmul %32, %33, %cst_19 {dimension_numbers = #tpu.dot_dimension_numbers<[1], [0], [0], [1], [0, 0, 1, 1], [], []>} : vector<8x8xf32>, vector<8x16xf32>, vector<8x16xf32> -> vector<8x16xf32>
    %35 = vector.extract_strided_slice %14 {offsets = [0, 0], sizes = [16, 64], strides = [1, 1]} : vector<64x64xf32> to vector<16x64xf32>
    %cst_20 = arith.constant dense<0.000000e+00> : vector<8x64xf32>
    %36 = tpu.matmul %34, %35, %cst_20 {dimension_numbers = #tpu.dot_dimension_numbers<[1], [0], [0], [1], [0, 0, 1, 1], [], []>} : vector<8x16xf32>, vector<16x64xf32>, vector<8x64xf32> -> vector<8x64xf32>
    %37 = arith.addf %15, %36 : vector<8x64xf32>
    %38 = vector.extract_strided_slice %11 {offsets = [0, 16], sizes = [8, 16], strides = [1, 1]} : vector<8x64xf32> to vector<8x16xf32>
    %39 = vector.extract_strided_slice %12 {offsets = [0, 16], sizes = [8, 16], strides = [1, 1]} : vector<8x64xf32> to vector<8x16xf32>
    %cst_21 = arith.constant dense<0.000000e+00> : vector<8x8xf32>
    %40 = tpu.matmul %38, %39, %cst_21 {dimension_numbers = #tpu.dot_dimension_numbers<[1], [1], [0], [0], [0, 0, 1, 0], [], []>} : vector<8x16xf32>, vector<8x16xf32>, vector<8x8xf32> -> vector<8x8xf32>
    %cst_22 = arith.constant 2.500000e-01 : f32
    %41 = vector.broadcast %cst_22 : f32 to vector<8x8xf32>
    %42 = arith.mulf %40, %41 : vector<8x8xf32>
    %43 = vector.broadcast %3 : vector<1x8xf32> to vector<8x8xf32>
    %44 = arith.addf %42, %43 : vector<8x8xf32>
    %cst_23 = arith.constant dense<0xFF800000> : vector<8xf32>
    %45 = vector.multi_reduction <maximumf>, %44, %cst_23 [1] : vector<8x8xf32> to vector<8xf32>
    %46 = vector.shape_cast %45 : vector<8xf32> to vector<8x1xf32>
    %47 = vector.broadcast %46 : vector<8x1xf32> to vector<8x8xf32>
    %48 = arith.subf %44, %47 : vector<8x8xf32>
    %49 = math.exp %48 : vector<8x8xf32>
    %cst_24 = arith.constant dense<0.000000e+00> : vector<8xf32>
    %50 = vector.multi_reduction <add>, %49, %cst_24 [1] : vector<8x8xf32> to vector<8xf32>
    %51 = vector.shape_cast %50 : vector<8xf32> to vector<8x1xf32>
    %52 = tpu.reciprocal %51 {approx = true} : vector<8x1xf32> -> vector<8x1xf32>
    %53 = vector.broadcast %52 : vector<8x1xf32> to vector<8x8xf32>
    %54 = arith.mulf %49, %53 : vector<8x8xf32>
    %55 = vector.extract_strided_slice %13 {offsets = [0, 16], sizes = [8, 16], strides = [1, 1]} : vector<8x64xf32> to vector<8x16xf32>
    %cst_25 = arith.constant dense<0.000000e+00> : vector<8x16xf32>
    %56 = tpu.matmul %54, %55, %cst_25 {dimension_numbers = #tpu.dot_dimension_numbers<[1], [0], [0], [1], [0, 0, 1, 1], [], []>} : vector<8x8xf32>, vector<8x16xf32>, vector<8x16xf32> -> vector<8x16xf32>
    %57 = vector.extract_strided_slice %14 {offsets = [16, 0], sizes = [16, 64], strides = [1, 1]} : vector<64x64xf32> to vector<16x64xf32>
    %cst_26 = arith.constant dense<0.000000e+00> : vector<8x64xf32>
    %58 = tpu.matmul %56, %57, %cst_26 {dimension_numbers = #tpu.dot_dimension_numbers<[1], [0], [0], [1], [0, 0, 1, 1], [], []>} : vector<8x16xf32>, vector<16x64xf32>, vector<8x64xf32> -> vector<8x64xf32>
    %59 = arith.addf %37, %58 : vector<8x64xf32>
    %60 = vector.extract_strided_slice %11 {offsets = [0, 32], sizes = [8, 16], strides = [1, 1]} : vector<8x64xf32> to vector<8x16xf32>
    %61 = vector.extract_strided_slice %12 {offsets = [0, 32], sizes = [8, 16], strides = [1, 1]} : vector<8x64xf32> to vector<8x16xf32>
    %cst_27 = arith.constant dense<0.000000e+00> : vector<8x8xf32>
    %62 = tpu.matmul %60, %61, %cst_27 {dimension_numbers = #tpu.dot_dimension_numbers<[1], [1], [0], [0], [0, 0, 1, 0], [], []>} : vector<8x16xf32>, vector<8x16xf32>, vector<8x8xf32> -> vector<8x8xf32>
    %cst_28 = arith.constant 2.500000e-01 : f32
    %63 = vector.broadcast %cst_28 : f32 to vector<8x8xf32>
    %64 = arith.mulf %62, %63 : vector<8x8xf32>
    %65 = vector.broadcast %3 : vector<1x8xf32> to vector<8x8xf32>
    %66 = arith.addf %64, %65 : vector<8x8xf32>
    %cst_29 = arith.constant dense<0xFF800000> : vector<8xf32>
    %67 = vector.multi_reduction <maximumf>, %66, %cst_29 [1] : vector<8x8xf32> to vector<8xf32>
    %68 = vector.shape_cast %67 : vector<8xf32> to vector<8x1xf32>
    %69 = vector.broadcast %68 : vector<8x1xf32> to vector<8x8xf32>
    %70 = arith.subf %66, %69 : vector<8x8xf32>
    %71 = math.exp %70 : vector<8x8xf32>
    %cst_30 = arith.constant dense<0.000000e+00> : vector<8xf32>
    %72 = vector.multi_reduction <add>, %71, %cst_30 [1] : vector<8x8xf32> to vector<8xf32>
    %73 = vector.shape_cast %72 : vector<8xf32> to vector<8x1xf32>
    %74 = tpu.reciprocal %73 {approx = true} : vector<8x1xf32> -> vector<8x1xf32>
    %75 = vector.broadcast %74 : vector<8x1xf32> to vector<8x8xf32>
    %76 = arith.mulf %71, %75 : vector<8x8xf32>
    %77 = vector.extract_strided_slice %13 {offsets = [0, 32], sizes = [8, 16], strides = [1, 1]} : vector<8x64xf32> to vector<8x16xf32>
    %cst_31 = arith.constant dense<0.000000e+00> : vector<8x16xf32>
    %78 = tpu.matmul %76, %77, %cst_31 {dimension_numbers = #tpu.dot_dimension_numbers<[1], [0], [0], [1], [0, 0, 1, 1], [], []>} : vector<8x8xf32>, vector<8x16xf32>, vector<8x16xf32> -> vector<8x16xf32>
    %79 = vector.extract_strided_slice %14 {offsets = [32, 0], sizes = [16, 64], strides = [1, 1]} : vector<64x64xf32> to vector<16x64xf32>
    %cst_32 = arith.constant dense<0.000000e+00> : vector<8x64xf32>
    %80 = tpu.matmul %78, %79, %cst_32 {dimension_numbers = #tpu.dot_dimension_numbers<[1], [0], [0], [1], [0, 0, 1, 1], [], []>} : vector<8x16xf32>, vector<16x64xf32>, vector<8x64xf32> -> vector<8x64xf32>
    %81 = arith.addf %59, %80 : vector<8x64xf32>
    %82 = vector.extract_strided_slice %11 {offsets = [0, 48], sizes = [8, 16], strides = [1, 1]} : vector<8x64xf32> to vector<8x16xf32>
    %83 = vector.extract_strided_slice %12 {offsets = [0, 48], sizes = [8, 16], strides = [1, 1]} : vector<8x64xf32> to vector<8x16xf32>
    %cst_33 = arith.constant dense<0.000000e+00> : vector<8x8xf32>
    %84 = tpu.matmul %82, %83, %cst_33 {dimension_numbers = #tpu.dot_dimension_numbers<[1], [1], [0], [0], [0, 0, 1, 0], [], []>} : vector<8x16xf32>, vector<8x16xf32>, vector<8x8xf32> -> vector<8x8xf32>
    %cst_34 = arith.constant 2.500000e-01 : f32
    %85 = vector.broadcast %cst_34 : f32 to vector<8x8xf32>
    %86 = arith.mulf %84, %85 : vector<8x8xf32>
    %87 = vector.broadcast %3 : vector<1x8xf32> to vector<8x8xf32>
    %88 = arith.addf %86, %87 : vector<8x8xf32>
    %cst_35 = arith.constant dense<0xFF800000> : vector<8xf32>
    %89 = vector.multi_reduction <maximumf>, %88, %cst_35 [1] : vector<8x8xf32> to vector<8xf32>
    %90 = vector.shape_cast %89 : vector<8xf32> to vector<8x1xf32>
    %91 = vector.broadcast %90 : vector<8x1xf32> to vector<8x8xf32>
    %92 = arith.subf %88, %91 : vector<8x8xf32>
    %93 = math.exp %92 : vector<8x8xf32>
    %cst_36 = arith.constant dense<0.000000e+00> : vector<8xf32>
    %94 = vector.multi_reduction <add>, %93, %cst_36 [1] : vector<8x8xf32> to vector<8xf32>
    %95 = vector.shape_cast %94 : vector<8xf32> to vector<8x1xf32>
    %96 = tpu.reciprocal %95 {approx = true} : vector<8x1xf32> -> vector<8x1xf32>
    %97 = vector.broadcast %96 : vector<8x1xf32> to vector<8x8xf32>
    %98 = arith.mulf %93, %97 : vector<8x8xf32>
    %99 = vector.extract_strided_slice %13 {offsets = [0, 48], sizes = [8, 16], strides = [1, 1]} : vector<8x64xf32> to vector<8x16xf32>
    %cst_37 = arith.constant dense<0.000000e+00> : vector<8x16xf32>
    %100 = tpu.matmul %98, %99, %cst_37 {dimension_numbers = #tpu.dot_dimension_numbers<[1], [0], [0], [1], [0, 0, 1, 1], [], []>} : vector<8x8xf32>, vector<8x16xf32>, vector<8x16xf32> -> vector<8x16xf32>
    %101 = vector.extract_strided_slice %14 {offsets = [48, 0], sizes = [16, 64], strides = [1, 1]} : vector<64x64xf32> to vector<16x64xf32>
    %cst_38 = arith.constant dense<0.000000e+00> : vector<8x64xf32>
    %102 = tpu.matmul %100, %101, %cst_38 {dimension_numbers = #tpu.dot_dimension_numbers<[1], [0], [0], [1], [0, 0, 1, 1], [], []>} : vector<8x16xf32>, vector<16x64xf32>, vector<8x64xf32> -> vector<8x64xf32>
    %103 = arith.addf %81, %102 : vector<8x64xf32>
    %c0_39 = arith.constant 0 : index
    %c0_40 = arith.constant 0 : index
    %104 = vector.load %arg7[%c0_39, %c0_40] : memref<1x64xf32, #tpu.memory_space<vmem>>, vector<1x64xf32>
    %105 = vector.broadcast %104 : vector<1x64xf32> to vector<8x64xf32>
    %106 = arith.addf %103, %105 : vector<8x64xf32>
    %107 = arith.addf %1, %106 : vector<8x64xf32>
    %c0_41 = arith.constant 0 : index
    %c0_42 = arith.constant 0 : index
    %108 = vector.load %arg8[%c0_41, %c0_42] : memref<1x64xf32, #tpu.memory_space<vmem>>, vector<1x64xf32>
    %c0_43 = arith.constant 0 : index
    %c0_44 = arith.constant 0 : index
    %109 = vector.load %arg9[%c0_43, %c0_44] : memref<1x64xf32, #tpu.memory_space<vmem>>, vector<1x64xf32>
    %cst_45 = arith.constant dense<0.000000e+00> : vector<8xf32>
    %110 = vector.multi_reduction <add>, %107, %cst_45 [1] : vector<8x64xf32> to vector<8xf32>
    %111 = vector.shape_cast %110 : vector<8xf32> to vector<8x1xf32>
    %cst_46 = arith.constant 6.400000e+01 : f32
    %112 = vector.broadcast %cst_46 : f32 to vector<8x1xf32>
    %113 = arith.divf %111, %112 : vector<8x1xf32>
    %114 = vector.broadcast %113 : vector<8x1xf32> to vector<8x64xf32>
    %115 = arith.subf %107, %114 : vector<8x64xf32>
    %116 = arith.mulf %115, %115 : vector<8x64xf32>
    %cst_47 = arith.constant dense<0.000000e+00> : vector<8xf32>
    %117 = vector.multi_reduction <add>, %116, %cst_47 [1] : vector<8x64xf32> to vector<8xf32>
    %118 = vector.shape_cast %117 : vector<8xf32> to vector<8x1xf32>
    %cst_48 = arith.constant 6.400000e+01 : f32
    %119 = vector.broadcast %cst_48 : f32 to vector<8x1xf32>
    %120 = arith.divf %118, %119 : vector<8x1xf32>
    %cst_49 = arith.constant 9.99999996E-13 : f32
    %121 = vector.broadcast %cst_49 : f32 to vector<8x1xf32>
    %122 = arith.addf %120, %121 : vector<8x1xf32>
    %123 = math.rsqrt %122 : vector<8x1xf32>
    %124 = vector.broadcast %123 : vector<8x1xf32> to vector<8x64xf32>
    %125 = arith.mulf %115, %124 : vector<8x64xf32>
    %126 = vector.broadcast %108 : vector<1x64xf32> to vector<8x64xf32>
    %127 = arith.mulf %125, %126 : vector<8x64xf32>
    %128 = vector.broadcast %109 : vector<1x64xf32> to vector<8x64xf32>
    %129 = arith.addf %127, %128 : vector<8x64xf32>
    %c0_50 = arith.constant 0 : index
    %c0_51 = arith.constant 0 : index
    %130 = vector.load %arg10[%c0_50, %c0_51] : memref<64x64xf32, #tpu.memory_space<vmem>>, vector<64x64xf32>
    %cst_52 = arith.constant dense<0.000000e+00> : vector<8x64xf32>
    %131 = tpu.matmul %129, %130, %cst_52 {dimension_numbers = #tpu.dot_dimension_numbers<[1], [0], [0], [1], [0, 0, 1, 1], [], []>} : vector<8x64xf32>, vector<64x64xf32>, vector<8x64xf32> -> vector<8x64xf32>
    %c0_53 = arith.constant 0 : index
    %c0_54 = arith.constant 0 : index
    %132 = vector.load %arg11[%c0_53, %c0_54] : memref<1x64xf32, #tpu.memory_space<vmem>>, vector<1x64xf32>
    %133 = vector.broadcast %132 : vector<1x64xf32> to vector<8x64xf32>
    %134 = arith.addf %131, %133 : vector<8x64xf32>
    %c0_55 = arith.constant 0 : index
    %c0_56 = arith.constant 0 : index
    %135 = vector.load %arg12[%c0_55, %c0_56] : memref<64x128xf32, #tpu.memory_space<vmem>>, vector<64x128xf32>
    %cst_57 = arith.constant dense<0.000000e+00> : vector<5x128xf32>
    %136 = tpu.matmul %5, %135, %cst_57 {dimension_numbers = #tpu.dot_dimension_numbers<[1], [0], [0], [1], [0, 0, 1, 1], [], []>} : vector<5x64xf32>, vector<64x128xf32>, vector<5x128xf32> -> vector<5x128xf32>
    %c0_58 = arith.constant 0 : index
    %c0_59 = arith.constant 0 : index
    %137 = vector.load %arg13[%c0_58, %c0_59] : memref<1x128xf32, #tpu.memory_space<vmem>>, vector<1x128xf32>
    %138 = vector.broadcast %137 : vector<1x128xf32> to vector<5x128xf32>
    %139 = arith.addf %136, %138 : vector<5x128xf32>
    %140 = vector.extract_strided_slice %139 {offsets = [0, 0], sizes = [5, 64], strides = [1, 1]} : vector<5x128xf32> to vector<5x64xf32>
    %141 = vector.extract_strided_slice %139 {offsets = [0, 64], sizes = [5, 64], strides = [1, 1]} : vector<5x128xf32> to vector<5x64xf32>
    %c0_60 = arith.constant 0 : index
    %c0_61 = arith.constant 0 : index
    %142 = vector.load %arg14[%c0_60, %c0_61] : memref<64x64xf32, #tpu.memory_space<vmem>>, vector<64x64xf32>
    %cst_62 = arith.constant 0.000000e+00 : f32
    %143 = vector.broadcast %cst_62 : f32 to vector<8x64xf32>
    %144 = vector.extract_strided_slice %134 {offsets = [0, 0], sizes = [8, 16], strides = [1, 1]} : vector<8x64xf32> to vector<8x16xf32>
    %145 = vector.extract_strided_slice %140 {offsets = [0, 0], sizes = [5, 16], strides = [1, 1]} : vector<5x64xf32> to vector<5x16xf32>
    %cst_63 = arith.constant dense<0.000000e+00> : vector<8x5xf32>
    %146 = tpu.matmul %144, %145, %cst_63 {dimension_numbers = #tpu.dot_dimension_numbers<[1], [1], [0], [0], [0, 0, 1, 0], [], []>} : vector<8x16xf32>, vector<5x16xf32>, vector<8x5xf32> -> vector<8x5xf32>
    %cst_64 = arith.constant 2.500000e-01 : f32
    %147 = vector.broadcast %cst_64 : f32 to vector<8x5xf32>
    %148 = arith.mulf %146, %147 : vector<8x5xf32>
    %cst_65 = arith.constant dense<0xFF800000> : vector<8xf32>
    %149 = vector.multi_reduction <maximumf>, %148, %cst_65 [1] : vector<8x5xf32> to vector<8xf32>
    %150 = vector.shape_cast %149 : vector<8xf32> to vector<8x1xf32>
    %151 = vector.broadcast %150 : vector<8x1xf32> to vector<8x5xf32>
    %152 = arith.subf %148, %151 : vector<8x5xf32>
    %153 = math.exp %152 : vector<8x5xf32>
    %cst_66 = arith.constant dense<0.000000e+00> : vector<8xf32>
    %154 = vector.multi_reduction <add>, %153, %cst_66 [1] : vector<8x5xf32> to vector<8xf32>
    %155 = vector.shape_cast %154 : vector<8xf32> to vector<8x1xf32>
    %156 = tpu.reciprocal %155 {approx = true} : vector<8x1xf32> -> vector<8x1xf32>
    %157 = vector.broadcast %156 : vector<8x1xf32> to vector<8x5xf32>
    %158 = arith.mulf %153, %157 : vector<8x5xf32>
    %159 = vector.extract_strided_slice %141 {offsets = [0, 0], sizes = [5, 16], strides = [1, 1]} : vector<5x64xf32> to vector<5x16xf32>
    %cst_67 = arith.constant dense<0.000000e+00> : vector<8x16xf32>
    %160 = tpu.matmul %158, %159, %cst_67 {dimension_numbers = #tpu.dot_dimension_numbers<[1], [0], [0], [1], [0, 0, 1, 1], [], []>} : vector<8x5xf32>, vector<5x16xf32>, vector<8x16xf32> -> vector<8x16xf32>
    %161 = vector.extract_strided_slice %142 {offsets = [0, 0], sizes = [16, 64], strides = [1, 1]} : vector<64x64xf32> to vector<16x64xf32>
    %cst_68 = arith.constant dense<0.000000e+00> : vector<8x64xf32>
    %162 = tpu.matmul %160, %161, %cst_68 {dimension_numbers = #tpu.dot_dimension_numbers<[1], [0], [0], [1], [0, 0, 1, 1], [], []>} : vector<8x16xf32>, vector<16x64xf32>, vector<8x64xf32> -> vector<8x64xf32>
    %163 = arith.addf %143, %162 : vector<8x64xf32>
    %164 = vector.extract_strided_slice %134 {offsets = [0, 16], sizes = [8, 16], strides = [1, 1]} : vector<8x64xf32> to vector<8x16xf32>
    %165 = vector.extract_strided_slice %140 {offsets = [0, 16], sizes = [5, 16], strides = [1, 1]} : vector<5x64xf32> to vector<5x16xf32>
    %cst_69 = arith.constant dense<0.000000e+00> : vector<8x5xf32>
    %166 = tpu.matmul %164, %165, %cst_69 {dimension_numbers = #tpu.dot_dimension_numbers<[1], [1], [0], [0], [0, 0, 1, 0], [], []>} : vector<8x16xf32>, vector<5x16xf32>, vector<8x5xf32> -> vector<8x5xf32>
    %cst_70 = arith.constant 2.500000e-01 : f32
    %167 = vector.broadcast %cst_70 : f32 to vector<8x5xf32>
    %168 = arith.mulf %166, %167 : vector<8x5xf32>
    %cst_71 = arith.constant dense<0xFF800000> : vector<8xf32>
    %169 = vector.multi_reduction <maximumf>, %168, %cst_71 [1] : vector<8x5xf32> to vector<8xf32>
    %170 = vector.shape_cast %169 : vector<8xf32> to vector<8x1xf32>
    %171 = vector.broadcast %170 : vector<8x1xf32> to vector<8x5xf32>
    %172 = arith.subf %168, %171 : vector<8x5xf32>
    %173 = math.exp %172 : vector<8x5xf32>
    %cst_72 = arith.constant dense<0.000000e+00> : vector<8xf32>
    %174 = vector.multi_reduction <add>, %173, %cst_72 [1] : vector<8x5xf32> to vector<8xf32>
    %175 = vector.shape_cast %174 : vector<8xf32> to vector<8x1xf32>
    %176 = tpu.reciprocal %175 {approx = true} : vector<8x1xf32> -> vector<8x1xf32>
    %177 = vector.broadcast %176 : vector<8x1xf32> to vector<8x5xf32>
    %178 = arith.mulf %173, %177 : vector<8x5xf32>
    %179 = vector.extract_strided_slice %141 {offsets = [0, 16], sizes = [5, 16], strides = [1, 1]} : vector<5x64xf32> to vector<5x16xf32>
    %cst_73 = arith.constant dense<0.000000e+00> : vector<8x16xf32>
    %180 = tpu.matmul %178, %179, %cst_73 {dimension_numbers = #tpu.dot_dimension_numbers<[1], [0], [0], [1], [0, 0, 1, 1], [], []>} : vector<8x5xf32>, vector<5x16xf32>, vector<8x16xf32> -> vector<8x16xf32>
    %181 = vector.extract_strided_slice %142 {offsets = [16, 0], sizes = [16, 64], strides = [1, 1]} : vector<64x64xf32> to vector<16x64xf32>
    %cst_74 = arith.constant dense<0.000000e+00> : vector<8x64xf32>
    %182 = tpu.matmul %180, %181, %cst_74 {dimension_numbers = #tpu.dot_dimension_numbers<[1], [0], [0], [1], [0, 0, 1, 1], [], []>} : vector<8x16xf32>, vector<16x64xf32>, vector<8x64xf32> -> vector<8x64xf32>
    %183 = arith.addf %163, %182 : vector<8x64xf32>
    %184 = vector.extract_strided_slice %134 {offsets = [0, 32], sizes = [8, 16], strides = [1, 1]} : vector<8x64xf32> to vector<8x16xf32>
    %185 = vector.extract_strided_slice %140 {offsets = [0, 32], sizes = [5, 16], strides = [1, 1]} : vector<5x64xf32> to vector<5x16xf32>
    %cst_75 = arith.constant dense<0.000000e+00> : vector<8x5xf32>
    %186 = tpu.matmul %184, %185, %cst_75 {dimension_numbers = #tpu.dot_dimension_numbers<[1], [1], [0], [0], [0, 0, 1, 0], [], []>} : vector<8x16xf32>, vector<5x16xf32>, vector<8x5xf32> -> vector<8x5xf32>
    %cst_76 = arith.constant 2.500000e-01 : f32
    %187 = vector.broadcast %cst_76 : f32 to vector<8x5xf32>
    %188 = arith.mulf %186, %187 : vector<8x5xf32>
    %cst_77 = arith.constant dense<0xFF800000> : vector<8xf32>
    %189 = vector.multi_reduction <maximumf>, %188, %cst_77 [1] : vector<8x5xf32> to vector<8xf32>
    %190 = vector.shape_cast %189 : vector<8xf32> to vector<8x1xf32>
    %191 = vector.broadcast %190 : vector<8x1xf32> to vector<8x5xf32>
    %192 = arith.subf %188, %191 : vector<8x5xf32>
    %193 = math.exp %192 : vector<8x5xf32>
    %cst_78 = arith.constant dense<0.000000e+00> : vector<8xf32>
    %194 = vector.multi_reduction <add>, %193, %cst_78 [1] : vector<8x5xf32> to vector<8xf32>
    %195 = vector.shape_cast %194 : vector<8xf32> to vector<8x1xf32>
    %196 = tpu.reciprocal %195 {approx = true} : vector<8x1xf32> -> vector<8x1xf32>
    %197 = vector.broadcast %196 : vector<8x1xf32> to vector<8x5xf32>
    %198 = arith.mulf %193, %197 : vector<8x5xf32>
    %199 = vector.extract_strided_slice %141 {offsets = [0, 32], sizes = [5, 16], strides = [1, 1]} : vector<5x64xf32> to vector<5x16xf32>
    %cst_79 = arith.constant dense<0.000000e+00> : vector<8x16xf32>
    %200 = tpu.matmul %198, %199, %cst_79 {dimension_numbers = #tpu.dot_dimension_numbers<[1], [0], [0], [1], [0, 0, 1, 1], [], []>} : vector<8x5xf32>, vector<5x16xf32>, vector<8x16xf32> -> vector<8x16xf32>
    %201 = vector.extract_strided_slice %142 {offsets = [32, 0], sizes = [16, 64], strides = [1, 1]} : vector<64x64xf32> to vector<16x64xf32>
    %cst_80 = arith.constant dense<0.000000e+00> : vector<8x64xf32>
    %202 = tpu.matmul %200, %201, %cst_80 {dimension_numbers = #tpu.dot_dimension_numbers<[1], [0], [0], [1], [0, 0, 1, 1], [], []>} : vector<8x16xf32>, vector<16x64xf32>, vector<8x64xf32> -> vector<8x64xf32>
    %203 = arith.addf %183, %202 : vector<8x64xf32>
    %204 = vector.extract_strided_slice %134 {offsets = [0, 48], sizes = [8, 16], strides = [1, 1]} : vector<8x64xf32> to vector<8x16xf32>
    %205 = vector.extract_strided_slice %140 {offsets = [0, 48], sizes = [5, 16], strides = [1, 1]} : vector<5x64xf32> to vector<5x16xf32>
    %cst_81 = arith.constant dense<0.000000e+00> : vector<8x5xf32>
    %206 = tpu.matmul %204, %205, %cst_81 {dimension_numbers = #tpu.dot_dimension_numbers<[1], [1], [0], [0], [0, 0, 1, 0], [], []>} : vector<8x16xf32>, vector<5x16xf32>, vector<8x5xf32> -> vector<8x5xf32>
    %cst_82 = arith.constant 2.500000e-01 : f32
    %207 = vector.broadcast %cst_82 : f32 to vector<8x5xf32>
    %208 = arith.mulf %206, %207 : vector<8x5xf32>
    %cst_83 = arith.constant dense<0xFF800000> : vector<8xf32>
    %209 = vector.multi_reduction <maximumf>, %208, %cst_83 [1] : vector<8x5xf32> to vector<8xf32>
    %210 = vector.shape_cast %209 : vector<8xf32> to vector<8x1xf32>
    %211 = vector.broadcast %210 : vector<8x1xf32> to vector<8x5xf32>
    %212 = arith.subf %208, %211 : vector<8x5xf32>
    %213 = math.exp %212 : vector<8x5xf32>
    %cst_84 = arith.constant dense<0.000000e+00> : vector<8xf32>
    %214 = vector.multi_reduction <add>, %213, %cst_84 [1] : vector<8x5xf32> to vector<8xf32>
    %215 = vector.shape_cast %214 : vector<8xf32> to vector<8x1xf32>
    %216 = tpu.reciprocal %215 {approx = true} : vector<8x1xf32> -> vector<8x1xf32>
    %217 = vector.broadcast %216 : vector<8x1xf32> to vector<8x5xf32>
    %218 = arith.mulf %213, %217 : vector<8x5xf32>
    %219 = vector.extract_strided_slice %141 {offsets = [0, 48], sizes = [5, 16], strides = [1, 1]} : vector<5x64xf32> to vector<5x16xf32>
    %cst_85 = arith.constant dense<0.000000e+00> : vector<8x16xf32>
    %220 = tpu.matmul %218, %219, %cst_85 {dimension_numbers = #tpu.dot_dimension_numbers<[1], [0], [0], [1], [0, 0, 1, 1], [], []>} : vector<8x5xf32>, vector<5x16xf32>, vector<8x16xf32> -> vector<8x16xf32>
    %221 = vector.extract_strided_slice %142 {offsets = [48, 0], sizes = [16, 64], strides = [1, 1]} : vector<64x64xf32> to vector<16x64xf32>
    %cst_86 = arith.constant dense<0.000000e+00> : vector<8x64xf32>
    %222 = tpu.matmul %220, %221, %cst_86 {dimension_numbers = #tpu.dot_dimension_numbers<[1], [0], [0], [1], [0, 0, 1, 1], [], []>} : vector<8x16xf32>, vector<16x64xf32>, vector<8x64xf32> -> vector<8x64xf32>
    %223 = arith.addf %203, %222 : vector<8x64xf32>
    %c0_87 = arith.constant 0 : index
    %c0_88 = arith.constant 0 : index
    %224 = vector.load %arg15[%c0_87, %c0_88] : memref<1x64xf32, #tpu.memory_space<vmem>>, vector<1x64xf32>
    %225 = vector.broadcast %224 : vector<1x64xf32> to vector<8x64xf32>
    %226 = arith.addf %223, %225 : vector<8x64xf32>
    %227 = arith.addf %129, %226 : vector<8x64xf32>
    %c0_89 = arith.constant 0 : index
    %c0_90 = arith.constant 0 : index
    %228 = vector.load %arg16[%c0_89, %c0_90] : memref<1x64xf32, #tpu.memory_space<vmem>>, vector<1x64xf32>
    %c0_91 = arith.constant 0 : index
    %c0_92 = arith.constant 0 : index
    %229 = vector.load %arg17[%c0_91, %c0_92] : memref<1x64xf32, #tpu.memory_space<vmem>>, vector<1x64xf32>
    %cst_93 = arith.constant dense<0.000000e+00> : vector<8xf32>
    %230 = vector.multi_reduction <add>, %227, %cst_93 [1] : vector<8x64xf32> to vector<8xf32>
    %231 = vector.shape_cast %230 : vector<8xf32> to vector<8x1xf32>
    %cst_94 = arith.constant 6.400000e+01 : f32
    %232 = vector.broadcast %cst_94 : f32 to vector<8x1xf32>
    %233 = arith.divf %231, %232 : vector<8x1xf32>
    %234 = vector.broadcast %233 : vector<8x1xf32> to vector<8x64xf32>
    %235 = arith.subf %227, %234 : vector<8x64xf32>
    %236 = arith.mulf %235, %235 : vector<8x64xf32>
    %cst_95 = arith.constant dense<0.000000e+00> : vector<8xf32>
    %237 = vector.multi_reduction <add>, %236, %cst_95 [1] : vector<8x64xf32> to vector<8xf32>
    %238 = vector.shape_cast %237 : vector<8xf32> to vector<8x1xf32>
    %cst_96 = arith.constant 6.400000e+01 : f32
    %239 = vector.broadcast %cst_96 : f32 to vector<8x1xf32>
    %240 = arith.divf %238, %239 : vector<8x1xf32>
    %cst_97 = arith.constant 9.99999996E-13 : f32
    %241 = vector.broadcast %cst_97 : f32 to vector<8x1xf32>
    %242 = arith.addf %240, %241 : vector<8x1xf32>
    %243 = math.rsqrt %242 : vector<8x1xf32>
    %244 = vector.broadcast %243 : vector<8x1xf32> to vector<8x64xf32>
    %245 = arith.mulf %235, %244 : vector<8x64xf32>
    %246 = vector.broadcast %228 : vector<1x64xf32> to vector<8x64xf32>
    %247 = arith.mulf %245, %246 : vector<8x64xf32>
    %248 = vector.broadcast %229 : vector<1x64xf32> to vector<8x64xf32>
    %249 = arith.addf %247, %248 : vector<8x64xf32>
    %c0_98 = arith.constant 0 : index
    %c0_99 = arith.constant 0 : index
    %250 = vector.load %arg18[%c0_98, %c0_99] : memref<64x256xf32, #tpu.memory_space<vmem>>, vector<64x256xf32>
    %cst_100 = arith.constant dense<0.000000e+00> : vector<8x256xf32>
    %251 = tpu.matmul %249, %250, %cst_100 {dimension_numbers = #tpu.dot_dimension_numbers<[1], [0], [0], [1], [0, 0, 1, 1], [], []>} : vector<8x64xf32>, vector<64x256xf32>, vector<8x256xf32> -> vector<8x256xf32>
    %c0_101 = arith.constant 0 : index
    %c0_102 = arith.constant 0 : index
    %252 = vector.load %arg19[%c0_101, %c0_102] : memref<1x256xf32, #tpu.memory_space<vmem>>, vector<1x256xf32>
    %253 = vector.broadcast %252 : vector<1x256xf32> to vector<8x256xf32>
    %254 = arith.addf %251, %253 : vector<8x256xf32>
    %cst_103 = arith.constant 5.000000e-01 : f32
    %255 = vector.broadcast %cst_103 : f32 to vector<8x256xf32>
    %256 = arith.mulf %255, %254 : vector<8x256xf32>
    %cst_104 = arith.constant 4.471500e-02 : f32
    %257 = vector.broadcast %cst_104 : f32 to vector<8x256xf32>
    %258 = arith.mulf %257, %254 : vector<8x256xf32>
    %259 = arith.mulf %258, %254 : vector<8x256xf32>
    %260 = arith.mulf %259, %254 : vector<8x256xf32>
    %261 = arith.addf %254, %260 : vector<8x256xf32>
    %cst_105 = arith.constant 0.797884583 : f32
    %262 = vector.broadcast %cst_105 : f32 to vector<8x256xf32>
    %263 = arith.mulf %262, %261 : vector<8x256xf32>
    %264 = math.tanh %263 : vector<8x256xf32>
    %cst_106 = arith.constant 1.000000e+00 : f32
    %265 = vector.broadcast %cst_106 : f32 to vector<8x256xf32>
    %266 = arith.addf %265, %264 : vector<8x256xf32>
    %267 = arith.mulf %256, %266 : vector<8x256xf32>
    %c0_107 = arith.constant 0 : index
    %c0_108 = arith.constant 0 : index
    %268 = vector.load %arg20[%c0_107, %c0_108] : memref<256x64xf32, #tpu.memory_space<vmem>>, vector<256x64xf32>
    %cst_109 = arith.constant dense<0.000000e+00> : vector<8x64xf32>
    %269 = tpu.matmul %267, %268, %cst_109 {dimension_numbers = #tpu.dot_dimension_numbers<[1], [0], [0], [1], [0, 0, 1, 1], [], []>} : vector<8x256xf32>, vector<256x64xf32>, vector<8x64xf32> -> vector<8x64xf32>
    %c0_110 = arith.constant 0 : index
    %c0_111 = arith.constant 0 : index
    %270 = vector.load %arg21[%c0_110, %c0_111] : memref<1x64xf32, #tpu.memory_space<vmem>>, vector<1x64xf32>
    %271 = vector.broadcast %270 : vector<1x64xf32> to vector<8x64xf32>
    %272 = arith.addf %269, %271 : vector<8x64xf32>
    %273 = arith.addf %249, %272 : vector<8x64xf32>
    %c0_112 = arith.constant 0 : index
    %c0_113 = arith.constant 0 : index
    %274 = vector.load %arg22[%c0_112, %c0_113] : memref<1x64xf32, #tpu.memory_space<vmem>>, vector<1x64xf32>
    %c0_114 = arith.constant 0 : index
    %c0_115 = arith.constant 0 : index
    %275 = vector.load %arg23[%c0_114, %c0_115] : memref<1x64xf32, #tpu.memory_space<vmem>>, vector<1x64xf32>
    %cst_116 = arith.constant dense<0.000000e+00> : vector<8xf32>
    %276 = vector.multi_reduction <add>, %273, %cst_116 [1] : vector<8x64xf32> to vector<8xf32>
    %277 = vector.shape_cast %276 : vector<8xf32> to vector<8x1xf32>
    %cst_117 = arith.constant 6.400000e+01 : f32
    %278 = vector.broadcast %cst_117 : f32 to vector<8x1xf32>
    %279 = arith.divf %277, %278 : vector<8x1xf32>
    %280 = vector.broadcast %279 : vector<8x1xf32> to vector<8x64xf32>
    %281 = arith.subf %273, %280 : vector<8x64xf32>
    %282 = arith.mulf %281, %281 : vector<8x64xf32>
    %cst_118 = arith.constant dense<0.000000e+00> : vector<8xf32>
    %283 = vector.multi_reduction <add>, %282, %cst_118 [1] : vector<8x64xf32> to vector<8xf32>
    %284 = vector.shape_cast %283 : vector<8xf32> to vector<8x1xf32>
    %cst_119 = arith.constant 6.400000e+01 : f32
    %285 = vector.broadcast %cst_119 : f32 to vector<8x1xf32>
    %286 = arith.divf %284, %285 : vector<8x1xf32>
    %cst_120 = arith.constant 9.99999996E-13 : f32
    %287 = vector.broadcast %cst_120 : f32 to vector<8x1xf32>
    %288 = arith.addf %286, %287 : vector<8x1xf32>
    %289 = math.rsqrt %288 : vector<8x1xf32>
    %290 = vector.broadcast %289 : vector<8x1xf32> to vector<8x64xf32>
    %291 = arith.mulf %281, %290 : vector<8x64xf32>
    %292 = vector.broadcast %274 : vector<1x64xf32> to vector<8x64xf32>
    %293 = arith.mulf %291, %292 : vector<8x64xf32>
    %294 = vector.broadcast %275 : vector<1x64xf32> to vector<8x64xf32>
    %295 = arith.addf %293, %294 : vector<8x64xf32>
    %c0_121 = arith.constant 0 : index
    %c0_122 = arith.constant 0 : index
    %c0_123 = arith.constant 0 : index
    %296 = vector.load %arg24[%c0_121, %c0_122, %c0_123] : memref<1x8x64xf32, #tpu.memory_space<vmem>>, vector<1x8x64xf32>
    %297 = vector.shape_cast %296 : vector<1x8x64xf32> to vector<8x64xf32>
    %298 = vector.shape_cast %295 : vector<8x64xf32> to vector<1x8x64xf32>
    tpu.vector_store %arg24[%c0_121, %c0_122, %c0_123], %298 {strides = array<i32>} : memref<1x8x64xf32, #tpu.memory_space<vmem>>, vector<1x8x64xf32>,
    return
  }
  func.func @transform_0(%arg0: i32) -> (i32, i32, i32) {
    %c0_i32 = arith.constant 0 : i32
    %c0_i32_0 = arith.constant 0 : i32
    %c0_i32_1 = arith.constant 0 : i32
    return %arg0, %c0_i32, %c0_i32_0 : i32, i32, i32
  }
  func.func @transform_1(%arg0: i32) -> (i32, i32, i32) {
    %c0_i32 = arith.constant 0 : i32
    %c0_i32_0 = arith.constant 0 : i32
    %c0_i32_1 = arith.constant 0 : i32
    return %arg0, %c0_i32, %c0_i32_0 : i32, i32, i32
  }
  func.func @transform_2(%arg0: i32) -> (i32, i32, i32) {
    %c0_i32 = arith.constant 0 : i32
    %c0_i32_0 = arith.constant 0 : i32
    %c0_i32_1 = arith.constant 0 : i32
    return %arg0, %c0_i32, %c0_i32_0 : i32, i32, i32
  }
  func.func @transform_3(%arg0: i32) -> (i32, i32) {
    %c0_i32 = arith.constant 0 : i32
    %c0_i32_0 = arith.constant 0 : i32
    %c0_i32_1 = arith.constant 0 : i32
    return %c0_i32, %c0_i32_0 : i32, i32
  }
  func.func @transform_4(%arg0: i32) -> (i32, i32) {
    %c0_i32 = arith.constant 0 : i32
    %c0_i32_0 = arith.constant 0 : i32
    %c0_i32_1 = arith.constant 0 : i32
    return %c0_i32, %c0_i32_0 : i32, i32
  }
  func.func @transform_5(%arg0: i32) -> (i32, i32) {
    %c0_i32 = arith.constant 0 : i32
    %c0_i32_0 = arith.constant 0 : i32
    %c0_i32_1 = arith.constant 0 : i32
    return %c0_i32, %c0_i32_0 : i32, i32
  }
  func.func @transform_6(%arg0: i32) -> (i32, i32) {
    %c0_i32 = arith.constant 0 : i32
    %c0_i32_0 = arith.constant 0 : i32
    %c0_i32_1 = arith.constant 0 : i32
    return %c0_i32, %c0_i32_0 : i32, i32
  }
  func.func @transform_7(%arg0: i32) -> (i32, i32) {
    %c0_i32 = arith.constant 0 : i32
    %c0_i32_0 = arith.constant 0 : i32
    %c0_i32_1 = arith.constant 0 : i32
    return %c0_i32, %c0_i32_0 : i32, i32
  }
  func.func @transform_8(%arg0: i32) -> (i32, i32) {
    %c0_i32 = arith.constant 0 : i32
    %c0_i32_0 = arith.constant 0 : i32
    %c0_i32_1 = arith.constant 0 : i32
    return %c0_i32, %c0_i32_0 : i32, i32
  }
  func.func @transform_9(%arg0: i32) -> (i32, i32) {
    %c0_i32 = arith.constant 0 : i32
    %c0_i32_0 = arith.constant 0 : i32
    %c0_i32_1 = arith.constant 0 : i32
    return %c0_i32, %c0_i32_0 : i32, i32
  }
  func.func @transform_10(%arg0: i32) -> (i32, i32) {
    %c0_i32 = arith.constant 0 : i32
    %c0_i32_0 = arith.constant 0 : i32
    %c0_i32_1 = arith.constant 0 : i32
    return %c0_i32, %c0_i32_0 : i32, i32
  }
  func.func @transform_11(%arg0: i32) -> (i32, i32) {
    %c0_i32 = arith.constant 0 : i32
    %c0_i32_0 = arith.constant 0 : i32
    %c0_i32_1 = arith.constant 0 : i32
    return %c0_i32, %c0_i32_0 : i32, i32
  }
  func.func @transform_12(%arg0: i32) -> (i32, i32) {
    %c0_i32 = arith.constant 0 : i32
    %c0_i32_0 = arith.constant 0 : i32
    %c0_i32_1 = arith.constant 0 : i32
    return %c0_i32, %c0_i32_0 : i32, i32
  }
  func.func @transform_13(%arg0: i32) -> (i32, i32) {
    %c0_i32 = arith.constant 0 : i32
    %c0_i32_0 = arith.constant 0 : i32
    %c0_i32_1 = arith.constant 0 : i32
    return %c0_i32, %c0_i32_0 : i32, i32
  }
  func.func @transform_14(%arg0: i32) -> (i32, i32) {
    %c0_i32 = arith.constant 0 : i32
    %c0_i32_0 = arith.constant 0 : i32
    %c0_i32_1 = arith.constant 0 : i32
    return %c0_i32, %c0_i32_0 : i32, i32
  }
  func.func @transform_15(%arg0: i32) -> (i32, i32) {
    %c0_i32 = arith.constant 0 : i32
    %c0_i32_0 = arith.constant 0 : i32
    %c0_i32_1 = arith.constant 0 : i32
    return %c0_i32, %c0_i32_0 : i32, i32
  }
  func.func @transform_16(%arg0: i32) -> (i32, i32) {
    %c0_i32 = arith.constant 0 : i32
    %c0_i32_0 = arith.constant 0 : i32
    %c0_i32_1 = arith.constant 0 : i32
    return %c0_i32, %c0_i32_0 : i32, i32
  }
  func.func @transform_17(%arg0: i32) -> (i32, i32) {
    %c0_i32 = arith.constant 0 : i32
    %c0_i32_0 = arith.constant 0 : i32
    %c0_i32_1 = arith.constant 0 : i32
    return %c0_i32, %c0_i32_0 : i32, i32
  }
  func.func @transform_18(%arg0: i32) -> (i32, i32) {
    %c0_i32 = arith.constant 0 : i32
    %c0_i32_0 = arith.constant 0 : i32
    %c0_i32_1 = arith.constant 0 : i32
    return %c0_i32, %c0_i32_0 : i32, i32
  }
  func.func @transform_19(%arg0: i32) -> (i32, i32) {
    %c0_i32 = arith.constant 0 : i32
    %c0_i32_0 = arith.constant 0 : i32
    %c0_i32_1 = arith.constant 0 : i32
    return %c0_i32, %c0_i32_0 : i32, i32
  }
  func.func @transform_20(%arg0: i32) -> (i32, i32) {
    %c0_i32 = arith.constant 0 : i32
    %c0_i32_0 = arith.constant 0 : i32
    %c0_i32_1 = arith.constant 0 : i32
    return %c0_i32, %c0_i32_0 : i32, i32
  }
  func.func @transform_21(%arg0: i32) -> (i32, i32) {
    %c0_i32 = arith.constant 0 : i32
    %c0_i32_0 = arith.constant 0 : i32
    %c0_i32_1 = arith.constant 0 : i32
    return %c0_i32, %c0_i32_0 : i32, i32
  }
  func.func @transform_22(%arg0: i32) -> (i32, i32) {
    %c0_i32 = arith.constant 0 : i32
    %c0_i32_0 = arith.constant 0 : i32
    %c0_i32_1 = arith.constant 0 : i32
    return %c0_i32, %c0_i32_0 : i32, i32
  }
  func.func @transform_23(%arg0: i32) -> (i32, i32, i32) {
    %c0_i32 = arith.constant 0 : i32
    %c0_i32_0 = arith.constant 0 : i32
    %c0_i32_1 = arith.constant 0 : i32
    return %arg0, %c0_i32, %c0_i32_0 : i32, i32, i32
  }
}

module attributes {stable_mosaic.version = 11 : i64} {
  func.func @_bert_cross_layer_kernel(%arg0: i32, %arg1: memref<1x8x64xf32, #tpu.memory_space<vmem>>, %arg2: memref<1x1x8xf32, #tpu.memory_space<vmem>>, %arg3: memref<1x5x64xf32, #tpu.memory_space<vmem>>, %arg4: memref<64x192xf32, #tpu.memory_space<vmem>>, %arg5: memref<1x192xf32, #tpu.memory_space<vmem>>, %arg6: memref<64x64xf32, #tpu.memory_space<vmem>>, %arg7: memref<1x64xf32, #tpu.memory_space<vmem>>, %arg8: memref<1x64xf32, #tpu.memory_space<vmem>>, %arg9: memref<1x64xf32, #tpu.memory_space<vmem>>, %arg10: memref<64x64xf32, #tpu.memory_space<vmem>>, %arg11: memref<1x64xf32, #tpu.memory_space<vmem>>, %arg12: memref<64x128xf32, #tpu.memory_space<vmem>>, %arg13: memref<1x128xf32, #tpu.memory_space<vmem>>, %arg14: memref<64x64xf32, #tpu.memory_space<vmem>>, %arg15: memref<1x64xf32, #tpu.memory_space<vmem>>, %arg16: memref<1x64xf32, #tpu.memory_space<vmem>>, %arg17: memref<1x64xf32, #tpu.memory_space<vmem>>, %arg18: memref<64x256xf32, #tpu.memory_space<vmem>>, %arg19: memref<1x256xf32, #tpu.memory_space<vmem>>, %arg20: memref<256x64xf32, #tpu.memory_space<vmem>>, %arg21: memref<1x64xf32, #tpu.memory_space<vmem>>, %arg22: memref<1x64xf32, #tpu.memory_space<vmem>>, %arg23: memref<1x64xf32, #tpu.memory_space<vmem>>, %arg24: memref<1x8x64xf32, #tpu.memory_space<vmem>>) attributes {dimension_semantics = [#tpu.dimension_semantics<parallel>], iteration_bounds = array<i64: 2>, scalar_prefetch = 0 : i64, scratch_operands = 0 : i64, tpu.core_type = #tpu.core_type<tc>, window_params = [{transform_indices = @transform_0, window_bounds = array<i64: 1, 8, 64>}, {transform_indices = @transform_1, window_bounds = array<i64: 1, 1, 8>}, {transform_indices = @transform_2, window_bounds = array<i64: 1, 5, 64>}, {pipeline_mode = #tpu.pipeline_mode<synchronous>, transform_indices = @transform_3, window_bounds = array<i64: 64, 192>}, {pipeline_mode = #tpu.pipeline_mode<synchronous>, transform_indices = @transform_4, window_bounds = array<i64: 1, 192>}, {pipeline_mode = #tpu.pipeline_mode<synchronous>, transform_indices = @transform_5, window_bounds = array<i64: 64, 64>}, {pipeline_mode = #tpu.pipeline_mode<synchronous>, transform_indices = @transform_6, window_bounds = array<i64: 1, 64>}, {pipeline_mode = #tpu.pipeline_mode<synchronous>, transform_indices = @transform_7, window_bounds = array<i64: 1, 64>}, {pipeline_mode = #tpu.pipeline_mode<synchronous>, transform_indices = @transform_8, window_bounds = array<i64: 1, 64>}, {pipeline_mode = #tpu.pipeline_mode<synchronous>, transform_indices = @transform_9, window_bounds = array<i64: 64, 64>}, {pipeline_mode = #tpu.pipeline_mode<synchronous>, transform_indices = @transform_10, window_bounds = array<i64: 1, 64>}, {pipeline_mode = #tpu.pipeline_mode<synchronous>, transform_indices = @transform_11, window_bounds = array<i64: 64, 128>}, {pipeline_mode = #tpu.pipeline_mode<synchronous>, transform_indices = @transform_12, window_bounds = array<i64: 1, 128>}, {pipeline_mode = #tpu.pipeline_mode<synchronous>, transform_indices = @transform_13, window_bounds = array<i64: 64, 64>}, {pipeline_mode = #tpu.pipeline_mode<synchronous>, transform_indices = @transform_14, window_bounds = array<i64: 1, 64>}, {pipeline_mode = #tpu.pipeline_mode<synchronous>, transform_indices = @transform_15, window_bounds = array<i64: 1, 64>}, {pipeline_mode = #tpu.pipeline_mode<synchronous>, transform_indices = @transform_16, window_bounds = array<i64: 1, 64>}, {pipeline_mode = #tpu.pipeline_mode<synchronous>, transform_indices = @transform_17, window_bounds = array<i64: 64, 256>}, {pipeline_mode = #tpu.pipeline_mode<synchronous>, transform_indices = @transform_18, window_bounds = array<i64: 1, 256>}, {pipeline_mode = #tpu.pipeline_mode<synchronous>, transform_indices = @transform_19, window_bounds = array<i64: 256, 64>}, {pipeline_mode = #tpu.pipeline_mode<synchronous>, transform_indices = @transform_20, window_bounds = array<i64: 1, 64>}, {pipeline_mode = #tpu.pipeline_mode<synchronous>, transform_indices = @transform_21, window_bounds = array<i64: 1, 64>}, {pipeline_mode = #tpu.pipeline_mode<synchronous>, transform_indices = @transform_22, window_bounds = array<i64: 1, 64>}, {transform_indices = @transform_23, window_bounds = array<i64: 1, 8, 64>}]} {
    %c0 = arith.constant 0 : index
    %c0_0 = arith.constant 0 : index
    %c0_1 = arith.constant 0 : index
    %0 = vector.load %arg1[%c0, %c0_0, %c0_1] : memref<1x8x64xf32, #tpu.memory_space<vmem>>, vector<1x8x64xf32>
    %1 = vector.shape_cast %0 : vector<1x8x64xf32> to vector<8x64xf32>
    %c0_2 = arith.constant 0 : index
    %c0_3 = arith.constant 0 : index
    %c0_4 = arith.constant 0 : index
    %2 = vector.load %arg2[%c0_2, %c0_3, %c0_4] : memref<1x1x8xf32, #tpu.memory_space<vmem>>, vector<1x1x8xf32>
    %3 = vector.shape_cast %2 : vector<1x1x8xf32> to vector<1x8xf32>
    %c0_5 = arith.constant 0 : index
    %c0_6 = arith.constant 0 : index
    %c0_7 = arith.constant 0 : index
    %4 = vector.load %arg3[%c0_5, %c0_6, %c0_7] : memref<1x5x64xf32, #tpu.memory_space<vmem>>, vector<1x5x64xf32>
    %5 = vector.shape_cast %4 : vector<1x5x64xf32> to vector<5x64xf32>
    %c0_8 = arith.constant 0 : index
    %c0_9 = arith.constant 0 : index
    %6 = vector.load %arg4[%c0_8, %c0_9] : memref<64x192xf32, #tpu.memory_space<vmem>>, vector<64x192xf32>
    %cst = arith.constant dense<0.000000e+00> : vector<8x192xf32>
    %7 = tpu.matmul %1, %6, %cst {dimension_numbers = #tpu.dot_dimension_numbers<[1], [0], [0], [1], [0, 0, 1, 1], [], []>} : vector<8x64xf32>, vector<64x192xf32>, vector<8x192xf32> -> vector<8x192xf32>
    %c0_10 = arith.constant 0 : index
    %c0_11 = arith.constant 0 : index
    %8 = vector.load %arg5[%c0_10, %c0_11] : memref<1x192xf32, #tpu.memory_space<vmem>>, vector<1x192xf32>
    %9 = vector.broadcast %8 : vector<1x192xf32> to vector<8x192xf32>
    %10 = arith.addf %7, %9 : vector<8x192xf32>
    %11 = vector.extract_strided_slice %10 {offsets = [0, 0], sizes = [8, 64], strides = [1, 1]} : vector<8x192xf32> to vector<8x64xf32>
    %12 = vector.extract_strided_slice %10 {offsets = [0, 64], sizes = [8, 64], strides = [1, 1]} : vector<8x192xf32> to vector<8x64xf32>
    %13 = vector.extract_strided_slice %10 {offsets = [0, 128], sizes = [8, 64], strides = [1, 1]} : vector<8x192xf32> to vector<8x64xf32>
    %c0_12 = arith.constant 0 : index
    %c0_13 = arith.constant 0 : index
    %14 = vector.load %arg6[%c0_12, %c0_13] : memref<64x64xf32, #tpu.memory_space<vmem>>, vector<64x64xf32>
    %cst_14 = arith.constant 0.000000e+00 : f32
    %15 = vector.broadcast %cst_14 : f32 to vector<8x64xf32>
    %16 = vector.extract_strided_slice %11 {offsets = [0, 0], sizes = [8, 16], strides = [1, 1]} : vector<8x64xf32> to vector<8x16xf32>
    %17 = vector.extract_strided_slice %12 {offsets = [0, 0], sizes = [8, 16], strides = [1, 1]} : vector<8x64xf32> to vector<8x16xf32>
    %cst_15 = arith.constant dense<0.000000e+00> : vector<8x8xf32>
    %18 = tpu.matmul %16, %17, %cst_15 {dimension_numbers = #tpu.dot_dimension_numbers<[1], [1], [0], [0], [0, 0, 1, 0], [], []>} : vector<8x16xf32>, vector<8x16xf32>, vector<8x8xf32> -> vector<8x8xf32>
    %cst_16 = arith.constant 2.500000e-01 : f32
    %19 = vector.broadcast %cst_16 : f32 to vector<8x8xf32>
    %20 = arith.mulf %18, %19 : vector<8x8xf32>
    %21 = vector.broadcast %3 : vector<1x8xf32> to vector<8x8xf32>
    %22 = arith.addf %20, %21 : vector<8x8xf32>
    %cst_17 = arith.constant dense<0xFF800000> : vector<8xf32>
    %23 = vector.multi_reduction <maximumf>, %22, %cst_17 [1] : vector<8x8xf32> to vector<8xf32>
    %24 = vector.shape_cast %23 : vector<8xf32> to vector<8x1xf32>
    %25 = vector.broadcast %24 : vector<8x1xf32> to vector<8x8xf32>
    %26 = arith.subf %22, %25 : vector<8x8xf32>
    %27 = math.exp %26 : vector<8x8xf32>
    %cst_18 = arith.constant dense<0.000000e+00> : vector<8xf32>
    %28 = vector.multi_reduction <add>, %27, %cst_18 [1] : vector<8x8xf32> to vector<8xf32>
    %29 = vector.shape_cast %28 : vector<8xf32> to vector<8x1xf32>
    %30 = tpu.reciprocal %29 {approx = true} : vector<8x1xf32> -> vector<8x1xf32>
    %31 = vector.broadcast %30 : vector<8x1xf32> to vector<8x8xf32>
    %32 = arith.mulf %27, %31 : vector<8x8xf32>
    %33 = vector.extract_strided_slice %13 {offsets = [0, 0], sizes = [8, 16], strides = [1, 1]} : vector<8x64xf32> to vector<8x16xf32>
    %cst_19 = arith.constant dense<0.000000e+00> : vector<8x16xf32>
    %34 = tpu.matmul %32, %33, %cst_19 {dimension_numbers = #tpu.dot_dimension_numbers<[1], [0], [0], [1], [0, 0, 1, 1], [], []>} : vector<8x8xf32>, vector<8x16xf32>, vector<8x16xf32> -> vector<8x16xf32>
    %35 = vector.extract_strided_slice %14 {offsets = [0, 0], sizes = [16, 64], strides = [1, 1]} : vector<64x64xf32> to vector<16x64xf32>
    %cst_20 = arith.constant dense<0.000000e+00> : vector<8x64xf32>
    %36 = tpu.matmul %34, %35, %cst_20 {dimension_numbers = #tpu.dot_dimension_numbers<[1], [0], [0], [1], [0, 0, 1, 1], [], []>} : vector<8x16xf32>, vector<16x64xf32>, vector<8x64xf32> -> vector<8x64xf32>
    %37 = arith.addf %15, %36 : vector<8x64xf32>
    %38 = vector.extract_strided_slice %11 {offsets = [0, 16], sizes = [8, 16], strides = [1, 1]} : vector<8x64xf32> to vector<8x16xf32>
    %39 = vector.extract_strided_slice %12 {offsets = [0, 16], sizes = [8, 16], strides = [1, 1]} : vector<8x64xf32> to vector<8x16xf32>
    %cst_21 = arith.constant dense<0.000000e+00> : vector<8x8xf32>
    %40 = tpu.matmul %38, %39, %cst_21 {dimension_numbers = #tpu.dot_dimension_numbers<[1], [1], [0], [0], [0, 0, 1, 0], [], []>} : vector<8x16xf32>, vector<8x16xf32>, vector<8x8xf32> -> vector<8x8xf32>
    %cst_22 = arith.constant 2.500000e-01 : f32
    %41 = vector.broadcast %cst_22 : f32 to vector<8x8xf32>
    %42 = arith.mulf %40, %41 : vector<8x8xf32>
    %43 = vector.broadcast %3 : vector<1x8xf32> to vector<8x8xf32>
    %44 = arith.addf %42, %43 : vector<8x8xf32>
    %cst_23 = arith.constant dense<0xFF800000> : vector<8xf32>
    %45 = vector.multi_reduction <maximumf>, %44, %cst_23 [1] : vector<8x8xf32> to vector<8xf32>
    %46 = vector.shape_cast %45 : vector<8xf32> to vector<8x1xf32>
    %47 = vector.broadcast %46 : vector<8x1xf32> to vector<8x8xf32>
    %48 = arith.subf %44, %47 : vector<8x8xf32>
    %49 = math.exp %48 : vector<8x8xf32>
    %cst_24 = arith.constant dense<0.000000e+00> : vector<8xf32>
    %50 = vector.multi_reduction <add>, %49, %cst_24 [1] : vector<8x8xf32> to vector<8xf32>
    %51 = vector.shape_cast %50 : vector<8xf32> to vector<8x1xf32>
    %52 = tpu.reciprocal %51 {approx = true} : vector<8x1xf32> -> vector<8x1xf32>
    %53 = vector.broadcast %52 : vector<8x1xf32> to vector<8x8xf32>
    %54 = arith.mulf %49, %53 : vector<8x8xf32>
    %55 = vector.extract_strided_slice %13 {offsets = [0, 16], sizes = [8, 16], strides = [1, 1]} : vector<8x64xf32> to vector<8x16xf32>
    %cst_25 = arith.constant dense<0.000000e+00> : vector<8x16xf32>
    %56 = tpu.matmul %54, %55, %cst_25 {dimension_numbers = #tpu.dot_dimension_numbers<[1], [0], [0], [1], [0, 0, 1, 1], [], []>} : vector<8x8xf32>, vector<8x16xf32>, vector<8x16xf32> -> vector<8x16xf32>
    %57 = vector.extract_strided_slice %14 {offsets = [16, 0], sizes = [16, 64], strides = [1, 1]} : vector<64x64xf32> to vector<16x64xf32>
    %cst_26 = arith.constant dense<0.000000e+00> : vector<8x64xf32>
    %58 = tpu.matmul %56, %57, %cst_26 {dimension_numbers = #tpu.dot_dimension_numbers<[1], [0], [0], [1], [0, 0, 1, 1], [], []>} : vector<8x16xf32>, vector<16x64xf32>, vector<8x64xf32> -> vector<8x64xf32>
    %59 = arith.addf %37, %58 : vector<8x64xf32>
    %60 = vector.extract_strided_slice %11 {offsets = [0, 32], sizes = [8, 16], strides = [1, 1]} : vector<8x64xf32> to vector<8x16xf32>
    %61 = vector.extract_strided_slice %12 {offsets = [0, 32], sizes = [8, 16], strides = [1, 1]} : vector<8x64xf32> to vector<8x16xf32>
    %cst_27 = arith.constant dense<0.000000e+00> : vector<8x8xf32>
    %62 = tpu.matmul %60, %61, %cst_27 {dimension_numbers = #tpu.dot_dimension_numbers<[1], [1], [0], [0], [0, 0, 1, 0], [], []>} : vector<8x16xf32>, vector<8x16xf32>, vector<8x8xf32> -> vector<8x8xf32>
    %cst_28 = arith.constant 2.500000e-01 : f32
    %63 = vector.broadcast %cst_28 : f32 to vector<8x8xf32>
    %64 = arith.mulf %62, %63 : vector<8x8xf32>
    %65 = vector.broadcast %3 : vector<1x8xf32> to vector<8x8xf32>
    %66 = arith.addf %64, %65 : vector<8x8xf32>
    %cst_29 = arith.constant dense<0xFF800000> : vector<8xf32>
    %67 = vector.multi_reduction <maximumf>, %66, %cst_29 [1] : vector<8x8xf32> to vector<8xf32>
    %68 = vector.shape_cast %67 : vector<8xf32> to vector<8x1xf32>
    %69 = vector.broadcast %68 : vector<8x1xf32> to vector<8x8xf32>
    %70 = arith.subf %66, %69 : vector<8x8xf32>
    %71 = math.exp %70 : vector<8x8xf32>
    %cst_30 = arith.constant dense<0.000000e+00> : vector<8xf32>
    %72 = vector.multi_reduction <add>, %71, %cst_30 [1] : vector<8x8xf32> to vector<8xf32>
    %73 = vector.shape_cast %72 : vector<8xf32> to vector<8x1xf32>
    %74 = tpu.reciprocal %73 {approx = true} : vector<8x1xf32> -> vector<8x1xf32>
    %75 = vector.broadcast %74 : vector<8x1xf32> to vector<8x8xf32>
    %76 = arith.mulf %71, %75 : vector<8x8xf32>
    %77 = vector.extract_strided_slice %13 {offsets = [0, 32], sizes = [8, 16], strides = [1, 1]} : vector<8x64xf32> to vector<8x16xf32>
    %cst_31 = arith.constant dense<0.000000e+00> : vector<8x16xf32>
    %78 = tpu.matmul %76, %77, %cst_31 {dimension_numbers = #tpu.dot_dimension_numbers<[1], [0], [0], [1], [0, 0, 1, 1], [], []>} : vector<8x8xf32>, vector<8x16xf32>, vector<8x16xf32> -> vector<8x16xf32>
    %79 = vector.extract_strided_slice %14 {offsets = [32, 0], sizes = [16, 64], strides = [1, 1]} : vector<64x64xf32> to vector<16x64xf32>
    %cst_32 = arith.constant dense<0.000000e+00> : vector<8x64xf32>
    %80 = tpu.matmul %78, %79, %cst_32 {dimension_numbers = #tpu.dot_dimension_numbers<[1], [0], [0], [1], [0, 0, 1, 1], [], []>} : vector<8x16xf32>, vector<16x64xf32>, vector<8x64xf32> -> vector<8x64xf32>
    %81 = arith.addf %59, %80 : vector<8x64xf32>
    %82 = vector.extract_strided_slice %11 {offsets = [0, 48], sizes = [8, 16], strides = [1, 1]} : vector<8x64xf32> to vector<8x16xf32>
    %83 = vector.extract_strided_slice %12 {offsets = [0, 48], sizes = [8, 16], strides = [1, 1]} : vector<8x64xf32> to vector<8x16xf32>
    %cst_33 = arith.constant dense<0.000000e+00> : vector<8x8xf32>
    %84 = tpu.matmul %82, %83, %cst_33 {dimension_numbers = #tpu.dot_dimension_numbers<[1], [1], [0], [0], [0, 0, 1, 0], [], []>} : vector<8x16xf32>, vector<8x16xf32>, vector<8x8xf32> -> vector<8x8xf32>
    %cst_34 = arith.constant 2.500000e-01 : f32
    %85 = vector.broadcast %cst_34 : f32 to vector<8x8xf32>
    %86 = arith.mulf %84, %85 : vector<8x8xf32>
    %87 = vector.broadcast %3 : vector<1x8xf32> to vector<8x8xf32>
    %88 = arith.addf %86, %87 : vector<8x8xf32>
    %cst_35 = arith.constant dense<0xFF800000> : vector<8xf32>
    %89 = vector.multi_reduction <maximumf>, %88, %cst_35 [1] : vector<8x8xf32> to vector<8xf32>
    %90 = vector.shape_cast %89 : vector<8xf32> to vector<8x1xf32>
    %91 = vector.broadcast %90 : vector<8x1xf32> to vector<8x8xf32>
    %92 = arith.subf %88, %91 : vector<8x8xf32>
    %93 = math.exp %92 : vector<8x8xf32>
    %cst_36 = arith.constant dense<0.000000e+00> : vector<8xf32>
    %94 = vector.multi_reduction <add>, %93, %cst_36 [1] : vector<8x8xf32> to vector<8xf32>
    %95 = vector.shape_cast %94 : vector<8xf32> to vector<8x1xf32>
    %96 = tpu.reciprocal %95 {approx = true} : vector<8x1xf32> -> vector<8x1xf32>
    %97 = vector.broadcast %96 : vector<8x1xf32> to vector<8x8xf32>
    %98 = arith.mulf %93, %97 : vector<8x8xf32>
    %99 = vector.extract_strided_slice %13 {offsets = [0, 48], sizes = [8, 16], strides = [1, 1]} : vector<8x64xf32> to vector<8x16xf32>
    %cst_37 = arith.constant dense<0.000000e+00> : vector<8x16xf32>
    %100 = tpu.matmul %98, %99, %cst_37 {dimension_numbers = #tpu.dot_dimension_numbers<[1], [0], [0], [1], [0, 0, 1, 1], [], []>} : vector<8x8xf32>, vector<8x16xf32>, vector<8x16xf32> -> vector<8x16xf32>
    %101 = vector.extract_strided_slice %14 {offsets = [48, 0], sizes = [16, 64], strides = [1, 1]} : vector<64x64xf32> to vector<16x64xf32>
    %cst_38 = arith.constant dense<0.000000e+00> : vector<8x64xf32>
    %102 = tpu.matmul %100, %101, %cst_38 {dimension_numbers = #tpu.dot_dimension_numbers<[1], [0], [0], [1], [0, 0, 1, 1], [], []>} : vector<8x16xf32>, vector<16x64xf32>, vector<8x64xf32> -> vector<8x64xf32>
    %103 = arith.addf %81, %102 : vector<8x64xf32>
    %c0_39 = arith.constant 0 : index
    %c0_40 = arith.constant 0 : index
    %104 = vector.load %arg7[%c0_39, %c0_40] : memref<1x64xf32, #tpu.memory_space<vmem>>, vector<1x64xf32>
    %105 = vector.broadcast %104 : vector<1x64xf32> to vector<8x64xf32>
    %106 = arith.addf %103, %105 : vector<8x64xf32>
    %107 = arith.addf %1, %106 : vector<8x64xf32>
    %c0_41 = arith.constant 0 : index
    %c0_42 = arith.constant 0 : index
    %108 = vector.load %arg8[%c0_41, %c0_42] : memref<1x64xf32, #tpu.memory_space<vmem>>, vector<1x64xf32>
    %c0_43 = arith.constant 0 : index
    %c0_44 = arith.constant 0 : index
    %109 = vector.load %arg9[%c0_43, %c0_44] : memref<1x64xf32, #tpu.memory_space<vmem>>, vector<1x64xf32>
    %cst_45 = arith.constant dense<0.000000e+00> : vector<8xf32>
    %110 = vector.multi_reduction <add>, %107, %cst_45 [1] : vector<8x64xf32> to vector<8xf32>
    %111 = vector.shape_cast %110 : vector<8xf32> to vector<8x1xf32>
    %cst_46 = arith.constant 6.400000e+01 : f32
    %112 = vector.broadcast %cst_46 : f32 to vector<8x1xf32>
    %113 = arith.divf %111, %112 : vector<8x1xf32>
    %114 = vector.broadcast %113 : vector<8x1xf32> to vector<8x64xf32>
    %115 = arith.subf %107, %114 : vector<8x64xf32>
    %116 = arith.mulf %115, %115 : vector<8x64xf32>
    %cst_47 = arith.constant dense<0.000000e+00> : vector<8xf32>
    %117 = vector.multi_reduction <add>, %116, %cst_47 [1] : vector<8x64xf32> to vector<8xf32>
    %118 = vector.shape_cast %117 : vector<8xf32> to vector<8x1xf32>
    %cst_48 = arith.constant 6.400000e+01 : f32
    %119 = vector.broadcast %cst_48 : f32 to vector<8x1xf32>
    %120 = arith.divf %118, %119 : vector<8x1xf32>
    %cst_49 = arith.constant 9.99999996E-13 : f32
    %121 = vector.broadcast %cst_49 : f32 to vector<8x1xf32>
    %122 = arith.addf %120, %121 : vector<8x1xf32>
    %123 = math.rsqrt %122 : vector<8x1xf32>
    %124 = vector.broadcast %123 : vector<8x1xf32> to vector<8x64xf32>
    %125 = arith.mulf %115, %124 : vector<8x64xf32>
    %126 = vector.broadcast %108 : vector<1x64xf32> to vector<8x64xf32>
    %127 = arith.mulf %125, %126 : vector<8x64xf32>
    %128 = vector.broadcast %109 : vector<1x64xf32> to vector<8x64xf32>
    %129 = arith.addf %127, %128 : vector<8x64xf32>
    %c0_50 = arith.constant 0 : index
    %c0_51 = arith.constant 0 : index
    %130 = vector.load %arg10[%c0_50, %c0_51] : memref<64x64xf32, #tpu.memory_space<vmem>>, vector<64x64xf32>
    %cst_52 = arith.constant dense<0.000000e+00> : vector<8x64xf32>
    %131 = tpu.matmul %129, %130, %cst_52 {dimension_numbers = #tpu.dot_dimension_numbers<[1], [0], [0], [1], [0, 0, 1, 1], [], []>} : vector<8x64xf32>, vector<64x64xf32>, vector<8x64xf32> -> vector<8x64xf32>
    %c0_53 = arith.constant 0 : index
    %c0_54 = arith.constant 0 : index
    %132 = vector.load %arg11[%c0_53, %c0_54] : memref<1x64xf32, #tpu.memory_space<vmem>>, vector<1x64xf32>
    %133 = vector.broadcast %132 : vector<1x64xf32> to vector<8x64xf32>
    %134 = arith.addf %131, %133 : vector<8x64xf32>
    %c0_55 = arith.constant 0 : index
    %c0_56 = arith.constant 0 : index
    %135 = vector.load %arg12[%c0_55, %c0_56] : memref<64x128xf32, #tpu.memory_space<vmem>>, vector<64x128xf32>
    %cst_57 = arith.constant dense<0.000000e+00> : vector<5x128xf32>
    %136 = tpu.matmul %5, %135, %cst_57 {dimension_numbers = #tpu.dot_dimension_numbers<[1], [0], [0], [1], [0, 0, 1, 1], [], []>} : vector<5x64xf32>, vector<64x128xf32>, vector<5x128xf32> -> vector<5x128xf32>
    %c0_58 = arith.constant 0 : index
    %c0_59 = arith.constant 0 : index
    %137 = vector.load %arg13[%c0_58, %c0_59] : memref<1x128xf32, #tpu.memory_space<vmem>>, vector<1x128xf32>
    %138 = vector.broadcast %137 : vector<1x128xf32> to vector<5x128xf32>
    %139 = arith.addf %136, %138 : vector<5x128xf32>
    %140 = vector.extract_strided_slice %139 {offsets = [0, 0], sizes = [5, 64], strides = [1, 1]} : vector<5x128xf32> to vector<5x64xf32>
    %141 = vector.extract_strided_slice %139 {offsets = [0, 64], sizes = [5, 64], strides = [1, 1]} : vector<5x128xf32> to vector<5x64xf32>
    %c0_60 = arith.constant 0 : index
    %c0_61 = arith.constant 0 : index
    %142 = vector.load %arg14[%c0_60, %c0_61] : memref<64x64xf32, #tpu.memory_space<vmem>>, vector<64x64xf32>
    %cst_62 = arith.constant 0.000000e+00 : f32
    %143 = vector.broadcast %cst_62 : f32 to vector<8x64xf32>
    %144 = vector.extract_strided_slice %134 {offsets = [0, 0], sizes = [8, 16], strides = [1, 1]} : vector<8x64xf32> to vector<8x16xf32>
    %145 = vector.extract_strided_slice %140 {offsets = [0, 0], sizes = [5, 16], strides = [1, 1]} : vector<5x64xf32> to vector<5x16xf32>
    %cst_63 = arith.constant dense<0.000000e+00> : vector<8x5xf32>
    %146 = tpu.matmul %144, %145, %cst_63 {dimension_numbers = #tpu.dot_dimension_numbers<[1], [1], [0], [0], [0, 0, 1, 0], [], []>} : vector<8x16xf32>, vector<5x16xf32>, vector<8x5xf32> -> vector<8x5xf32>
    %cst_64 = arith.constant 2.500000e-01 : f32
    %147 = vector.broadcast %cst_64 : f32 to vector<8x5xf32>
    %148 = arith.mulf %146, %147 : vector<8x5xf32>
    %cst_65 = arith.constant dense<0xFF800000> : vector<8xf32>
    %149 = vector.multi_reduction <maximumf>, %148, %cst_65 [1] : vector<8x5xf32> to vector<8xf32>
    %150 = vector.shape_cast %149 : vector<8xf32> to vector<8x1xf32>
    %151 = vector.broadcast %150 : vector<8x1xf32> to vector<8x5xf32>
    %152 = arith.subf %148, %151 : vector<8x5xf32>
    %153 = math.exp %152 : vector<8x5xf32>
    %cst_66 = arith.constant dense<0.000000e+00> : vector<8xf32>
    %154 = vector.multi_reduction <add>, %153, %cst_66 [1] : vector<8x5xf32> to vector<8xf32>
    %155 = vector.shape_cast %154 : vector<8xf32> to vector<8x1xf32>
    %156 = tpu.reciprocal %155 {approx = true} : vector<8x1xf32> -> vector<8x1xf32>
    %157 = vector.broadcast %156 : vector<8x1xf32> to vector<8x5xf32>
    %158 = arith.mulf %153, %157 : vector<8x5xf32>
    %159 = vector.extract_strided_slice %141 {offsets = [0, 0], sizes = [5, 16], strides = [1, 1]} : vector<5x64xf32> to vector<5x16xf32>
    %cst_67 = arith.constant dense<0.000000e+00> : vector<8x16xf32>
    %160 = tpu.matmul %158, %159, %cst_67 {dimension_numbers = #tpu.dot_dimension_numbers<[1], [0], [0], [1], [0, 0, 1, 1], [], []>} : vector<8x5xf32>, vector<5x16xf32>, vector<8x16xf32> -> vector<8x16xf32>
    %161 = vector.extract_strided_slice %142 {offsets = [0, 0], sizes = [16, 64], strides = [1, 1]} : vector<64x64xf32> to vector<16x64xf32>
    %cst_68 = arith.constant dense<0.000000e+00> : vector<8x64xf32>
    %162 = tpu.matmul %160, %161, %cst_68 {dimension_numbers = #tpu.dot_dimension_numbers<[1], [0], [0], [1], [0, 0, 1, 1], [], []>} : vector<8x16xf32>, vector<16x64xf32>, vector<8x64xf32> -> vector<8x64xf32>
    %163 = arith.addf %143, %162 : vector<8x64xf32>
    %164 = vector.extract_strided_slice %134 {offsets = [0, 16], sizes = [8, 16], strides = [1, 1]} : vector<8x64xf32> to vector<8x16xf32>
    %165 = vector.extract_strided_slice %140 {offsets = [0, 16], sizes = [5, 16], strides = [1, 1]} : vector<5x64xf32> to vector<5x16xf32>
    %cst_69 = arith.constant dense<0.000000e+00> : vector<8x5xf32>
    %166 = tpu.matmul %164, %165, %cst_69 {dimension_numbers = #tpu.dot_dimension_numbers<[1], [1], [0], [0], [0, 0, 1, 0], [], []>} : vector<8x16xf32>, vector<5x16xf32>, vector<8x5xf32> -> vector<8x5xf32>
    %cst_70 = arith.constant 2.500000e-01 : f32
    %167 = vector.broadcast %cst_70 : f32 to vector<8x5xf32>
    %168 = arith.mulf %166, %167 : vector<8x5xf32>
    %cst_71 = arith.constant dense<0xFF800000> : vector<8xf32>
    %169 = vector.multi_reduction <maximumf>, %168, %cst_71 [1] : vector<8x5xf32> to vector<8xf32>
    %170 = vector.shape_cast %169 : vector<8xf32> to vector<8x1xf32>
    %171 = vector.broadcast %170 : vector<8x1xf32> to vector<8x5xf32>
    %172 = arith.subf %168, %171 : vector<8x5xf32>
    %173 = math.exp %172 : vector<8x5xf32>
    %cst_72 = arith.constant dense<0.000000e+00> : vector<8xf32>
    %174 = vector.multi_reduction <add>, %173, %cst_72 [1] : vector<8x5xf32> to vector<8xf32>
    %175 = vector.shape_cast %174 : vector<8xf32> to vector<8x1xf32>
    %176 = tpu.reciprocal %175 {approx = true} : vector<8x1xf32> -> vector<8x1xf32>
    %177 = vector.broadcast %176 : vector<8x1xf32> to vector<8x5xf32>
    %178 = arith.mulf %173, %177 : vector<8x5xf32>
    %179 = vector.extract_strided_slice %141 {offsets = [0, 16], sizes = [5, 16], strides = [1, 1]} : vector<5x64xf32> to vector<5x16xf32>
    %cst_73 = arith.constant dense<0.000000e+00> : vector<8x16xf32>
    %180 = tpu.matmul %178, %179, %cst_73 {dimension_numbers = #tpu.dot_dimension_numbers<[1], [0], [0], [1], [0, 0, 1, 1], [], []>} : vector<8x5xf32>, vector<5x16xf32>, vector<8x16xf32> -> vector<8x16xf32>
    %181 = vector.extract_strided_slice %142 {offsets = [16, 0], sizes = [16, 64], strides = [1, 1]} : vector<64x64xf32> to vector<16x64xf32>
    %cst_74 = arith.constant dense<0.000000e+00> : vector<8x64xf32>
    %182 = tpu.matmul %180, %181, %cst_74 {dimension_numbers = #tpu.dot_dimension_numbers<[1], [0], [0], [1], [0, 0, 1, 1], [], []>} : vector<8x16xf32>, vector<16x64xf32>, vector<8x64xf32> -> vector<8x64xf32>
    %183 = arith.addf %163, %182 : vector<8x64xf32>
    %184 = vector.extract_strided_slice %134 {offsets = [0, 32], sizes = [8, 16], strides = [1, 1]} : vector<8x64xf32> to vector<8x16xf32>
    %185 = vector.extract_strided_slice %140 {offsets = [0, 32], sizes = [5, 16], strides = [1, 1]} : vector<5x64xf32> to vector<5x16xf32>
    %cst_75 = arith.constant dense<0.000000e+00> : vector<8x5xf32>
    %186 = tpu.matmul %184, %185, %cst_75 {dimension_numbers = #tpu.dot_dimension_numbers<[1], [1], [0], [0], [0, 0, 1, 0], [], []>} : vector<8x16xf32>, vector<5x16xf32>, vector<8x5xf32> -> vector<8x5xf32>
    %cst_76 = arith.constant 2.500000e-01 : f32
    %187 = vector.broadcast %cst_76 : f32 to vector<8x5xf32>
    %188 = arith.mulf %186, %187 : vector<8x5xf32>
    %cst_77 = arith.constant dense<0xFF800000> : vector<8xf32>
    %189 = vector.multi_reduction <maximumf>, %188, %cst_77 [1] : vector<8x5xf32> to vector<8xf32>
    %190 = vector.shape_cast %189 : vector<8xf32> to vector<8x1xf32>
    %191 = vector.broadcast %190 : vector<8x1xf32> to vector<8x5xf32>
    %192 = arith.subf %188, %191 : vector<8x5xf32>
    %193 = math.exp %192 : vector<8x5xf32>
    %cst_78 = arith.constant dense<0.000000e+00> : vector<8xf32>
    %194 = vector.multi_reduction <add>, %193, %cst_78 [1] : vector<8x5xf32> to vector<8xf32>
    %195 = vector.shape_cast %194 : vector<8xf32> to vector<8x1xf32>
    %196 = tpu.reciprocal %195 {approx = true} : vector<8x1xf32> -> vector<8x1xf32>
    %197 = vector.broadcast %196 : vector<8x1xf32> to vector<8x5xf32>
    %198 = arith.mulf %193, %197 : vector<8x5xf32>
    %199 = vector.extract_strided_slice %141 {offsets = [0, 32], sizes = [5, 16], strides = [1, 1]} : vector<5x64xf32> to vector<5x16xf32>
    %cst_79 = arith.constant dense<0.000000e+00> : vector<8x16xf32>
    %200 = tpu.matmul %198, %199, %cst_79 {dimension_numbers = #tpu.dot_dimension_numbers<[1], [0], [0], [1], [0, 0, 1, 1], [], []>} : vector<8x5xf32>, vector<5x16xf32>, vector<8x16xf32> -> vector<8x16xf32>
    %201 = vector.extract_strided_slice %142 {offsets = [32, 0], sizes = [16, 64], strides = [1, 1]} : vector<64x64xf32> to vector<16x64xf32>
    %cst_80 = arith.constant dense<0.000000e+00> : vector<8x64xf32>
    %202 = tpu.matmul %200, %201, %cst_80 {dimension_numbers = #tpu.dot_dimension_numbers<[1], [0], [0], [1], [0, 0, 1, 1], [], []>} : vector<8x16xf32>, vector<16x64xf32>, vector<8x64xf32> -> vector<8x64xf32>
    %203 = arith.addf %183, %202 : vector<8x64xf32>
    %204 = vector.extract_strided_slice %134 {offsets = [0, 48], sizes = [8, 16], strides = [1, 1]} : vector<8x64xf32> to vector<8x16xf32>
    %205 = vector.extract_strided_slice %140 {offsets = [0, 48], sizes = [5, 16], strides = [1, 1]} : vector<5x64xf32> to vector<5x16xf32>
    %cst_81 = arith.constant dense<0.000000e+00> : vector<8x5xf32>
    %206 = tpu.matmul %204, %205, %cst_81 {dimension_numbers = #tpu.dot_dimension_numbers<[1], [1], [0], [0], [0, 0, 1, 0], [], []>} : vector<8x16xf32>, vector<5x16xf32>, vector<8x5xf32> -> vector<8x5xf32>
    %cst_82 = arith.constant 2.500000e-01 : f32
    %207 = vector.broadcast %cst_82 : f32 to vector<8x5xf32>
    %208 = arith.mulf %206, %207 : vector<8x5xf32>
    %cst_83 = arith.constant dense<0xFF800000> : vector<8xf32>
    %209 = vector.multi_reduction <maximumf>, %208, %cst_83 [1] : vector<8x5xf32> to vector<8xf32>
    %210 = vector.shape_cast %209 : vector<8xf32> to vector<8x1xf32>
    %211 = vector.broadcast %210 : vector<8x1xf32> to vector<8x5xf32>
    %212 = arith.subf %208, %211 : vector<8x5xf32>
    %213 = math.exp %212 : vector<8x5xf32>
    %cst_84 = arith.constant dense<0.000000e+00> : vector<8xf32>
    %214 = vector.multi_reduction <add>, %213, %cst_84 [1] : vector<8x5xf32> to vector<8xf32>
    %215 = vector.shape_cast %214 : vector<8xf32> to vector<8x1xf32>
    %216 = tpu.reciprocal %215 {approx = true} : vector<8x1xf32> -> vector<8x1xf32>
    %217 = vector.broadcast %216 : vector<8x1xf32> to vector<8x5xf32>
    %218 = arith.mulf %213, %217 : vector<8x5xf32>
    %219 = vector.extract_strided_slice %141 {offsets = [0, 48], sizes = [5, 16], strides = [1, 1]} : vector<5x64xf32> to vector<5x16xf32>
    %cst_85 = arith.constant dense<0.000000e+00> : vector<8x16xf32>
    %220 = tpu.matmul %218, %219, %cst_85 {dimension_numbers = #tpu.dot_dimension_numbers<[1], [0], [0], [1], [0, 0, 1, 1], [], []>} : vector<8x5xf32>, vector<5x16xf32>, vector<8x16xf32> -> vector<8x16xf32>
    %221 = vector.extract_strided_slice %142 {offsets = [48, 0], sizes = [16, 64], strides = [1, 1]} : vector<64x64xf32> to vector<16x64xf32>
    %cst_86 = arith.constant dense<0.000000e+00> : vector<8x64xf32>
    %222 = tpu.matmul %220, %221, %cst_86 {dimension_numbers = #tpu.dot_dimension_numbers<[1], [0], [0], [1], [0, 0, 1, 1], [], []>} : vector<8x16xf32>, vector<16x64xf32>, vector<8x64xf32> -> vector<8x64xf32>
    %223 = arith.addf %203, %222 : vector<8x64xf32>
    %c0_87 = arith.constant 0 : index
    %c0_88 = arith.constant 0 : index
    %224 = vector.load %arg15[%c0_87, %c0_88] : memref<1x64xf32, #tpu.memory_space<vmem>>, vector<1x64xf32>
    %225 = vector.broadcast %224 : vector<1x64xf32> to vector<8x64xf32>
    %226 = arith.addf %223, %225 : vector<8x64xf32>
    %227 = arith.addf %129, %226 : vector<8x64xf32>
    %c0_89 = arith.constant 0 : index
    %c0_90 = arith.constant 0 : index
    %228 = vector.load %arg16[%c0_89, %c0_90] : memref<1x64xf32, #tpu.memory_space<vmem>>, vector<1x64xf32>
    %c0_91 = arith.constant 0 : index
    %c0_92 = arith.constant 0 : index
    %229 = vector.load %arg17[%c0_91, %c0_92] : memref<1x64xf32, #tpu.memory_space<vmem>>, vector<1x64xf32>
    %cst_93 = arith.constant dense<0.000000e+00> : vector<8xf32>
    %230 = vector.multi_reduction <add>, %227, %cst_93 [1] : vector<8x64xf32> to vector<8xf32>
    %231 = vector.shape_cast %230 : vector<8xf32> to vector<8x1xf32>
    %cst_94 = arith.constant 6.400000e+01 : f32
    %232 = vector.broadcast %cst_94 : f32 to vector<8x1xf32>
    %233 = arith.divf %231, %232 : vector<8x1xf32>
    %234 = vector.broadcast %233 : vector<8x1xf32> to vector<8x64xf32>
    %235 = arith.subf %227, %234 : vector<8x64xf32>
    %236 = arith.mulf %235, %235 : vector<8x64xf32>
    %cst_95 = arith.constant dense<0.000000e+00> : vector<8xf32>
    %237 = vector.multi_reduction <add>, %236, %cst_95 [1] : vector<8x64xf32> to vector<8xf32>
    %238 = vector.shape_cast %237 : vector<8xf32> to vector<8x1xf32>
    %cst_96 = arith.constant 6.400000e+01 : f32
    %239 = vector.broadcast %cst_96 : f32 to vector<8x1xf32>
    %240 = arith.divf %238, %239 : vector<8x1xf32>
    %cst_97 = arith.constant 9.99999996E-13 : f32
    %241 = vector.broadcast %cst_97 : f32 to vector<8x1xf32>
    %242 = arith.addf %240, %241 : vector<8x1xf32>
    %243 = math.rsqrt %242 : vector<8x1xf32>
    %244 = vector.broadcast %243 : vector<8x1xf32> to vector<8x64xf32>
    %245 = arith.mulf %235, %244 : vector<8x64xf32>
    %246 = vector.broadcast %228 : vector<1x64xf32> to vector<8x64xf32>
    %247 = arith.mulf %245, %246 : vector<8x64xf32>
    %248 = vector.broadcast %229 : vector<1x64xf32> to vector<8x64xf32>
    %249 = arith.addf %247, %248 : vector<8x64xf32>
    %c0_98 = arith.constant 0 : index
    %c0_99 = arith.constant 0 : index
    %250 = vector.load %arg18[%c0_98, %c0_99] : memref<64x256xf32, #tpu.memory_space<vmem>>, vector<64x256xf32>
    %cst_100 = arith.constant dense<0.000000e+00> : vector<8x256xf32>
    %251 = tpu.matmul %249, %250, %cst_100 {dimension_numbers = #tpu.dot_dimension_numbers<[1], [0], [0], [1], [0, 0, 1, 1], [], []>} : vector<8x64xf32>, vector<64x256xf32>, vector<8x256xf32> -> vector<8x256xf32>
    %c0_101 = arith.constant 0 : index
    %c0_102 = arith.constant 0 : index
    %252 = vector.load %arg19[%c0_101, %c0_102] : memref<1x256xf32, #tpu.memory_space<vmem>>, vector<1x256xf32>
    %253 = vector.broadcast %252 : vector<1x256xf32> to vector<8x256xf32>
    %254 = arith.addf %251, %253 : vector<8x256xf32>
    %cst_103 = arith.constant 5.000000e-01 : f32
    %255 = vector.broadcast %cst_103 : f32 to vector<8x256xf32>
    %256 = arith.mulf %255, %254 : vector<8x256xf32>
    %cst_104 = arith.constant 4.471500e-02 : f32
    %257 = vector.broadcast %cst_104 : f32 to vector<8x256xf32>
    %258 = arith.mulf %257, %254 : vector<8x256xf32>
    %259 = arith.mulf %258, %254 : vector<8x256xf32>
    %260 = arith.mulf %259, %254 : vector<8x256xf32>
    %261 = arith.addf %254, %260 : vector<8x256xf32>
    %cst_105 = arith.constant 0.797884583 : f32
    %262 = vector.broadcast %cst_105 : f32 to vector<8x256xf32>
    %263 = arith.mulf %262, %261 : vector<8x256xf32>
    %264 = math.tanh %263 : vector<8x256xf32>
    %cst_106 = arith.constant 1.000000e+00 : f32
    %265 = vector.broadcast %cst_106 : f32 to vector<8x256xf32>
    %266 = arith.addf %265, %264 : vector<8x256xf32>
    %267 = arith.mulf %256, %266 : vector<8x256xf32>
    %c0_107 = arith.constant 0 : index
    %c0_108 = arith.constant 0 : index
    %268 = vector.load %arg20[%c0_107, %c0_108] : memref<256x64xf32, #tpu.memory_space<vmem>>, vector<256x64xf32>
    %cst_109 = arith.constant dense<0.000000e+00> : vector<8x64xf32>
    %269 = tpu.matmul %267, %268, %cst_109 {dimension_numbers = #tpu.dot_dimension_numbers<[1], [0], [0], [1], [0, 0, 1, 1], [], []>} : vector<8x256xf32>, vector<256x64xf32>, vector<8x64xf32> -> vector<8x64xf32>
    %c0_110 = arith.constant 0 : index
    %c0_111 = arith.constant 0 : index
    %270 = vector.load %arg21[%c0_110, %c0_111] : memref<1x64xf32, #tpu.memory_space<vmem>>, vector<1x64xf32>
    %271 = vector.broadcast %270 : vector<1x64xf32> to vector<8x64xf32>
    %272 = arith.addf %269, %271 : vector<8x64xf32>
    %273 = arith.addf %249, %272 : vector<8x64xf32>
    %c0_112 = arith.constant 0 : index
    %c0_113 = arith.constant 0 : index
    %274 = vector.load %arg22[%c0_112, %c0_113] : memref<1x64xf32, #tpu.memory_space<vmem>>, vector<1x64xf32>
    %c0_114 = arith.constant 0 : index
    %c0_115 = arith.constant 0 : index
    %275 = vector.load %arg23[%c0_114, %c0_115] : memref<1x64xf32, #tpu.memory_space<vmem>>, vector<1x64xf32>
    %cst_116 = arith.constant dense<0.000000e+00> : vector<8xf32>
    %276 = vector.multi_reduction <add>, %273, %cst_116 [1] : vector<8x64xf32> to vector<8xf32>
    %277 = vector.shape_cast %276 : vector<8xf32> to vector<8x1xf32>
    %cst_117 = arith.constant 6.400000e+01 : f32
    %278 = vector.broadcast %cst_117 : f32 to vector<8x1xf32>
    %279 = arith.divf %277, %278 : vector<8x1xf32>
    %280 = vector.broadcast %279 : vector<8x1xf32> to vector<8x64xf32>
    %281 = arith.subf %273, %280 : vector<8x64xf32>
    %282 = arith.mulf %281, %281 : vector<8x64xf32>
    %cst_118 = arith.constant dense<0.000000e+00> : vector<8xf32>
    %283 = vector.multi_reduction <add>, %282, %cst_118 [1] : vector<8x64xf32> to vector<8xf32>
    %284 = vector.shape_cast %283 : vector<8xf32> to vector<8x1xf32>
    %cst_119 = arith.constant 6.400000e+01 : f32
    %285 = vector.broadcast %cst_119 : f32 to vector<8x1xf32>
    %286 = arith.divf %284, %285 : vector<8x1xf32>
    %cst_120 = arith.constant 9.99999996E-13 : f32
    %287 = vector.broadcast %cst_120 : f32 to vector<8x1xf32>
    %288 = arith.addf %286, %287 : vector<8x1xf32>
    %289 = math.rsqrt %288 : vector<8x1xf32>
    %290 = vector.broadcast %289 : vector<8x1xf32> to vector<8x64xf32>
    %291 = arith.mulf %281, %290 : vector<8x64xf32>
    %292 = vector.broadcast %274 : vector<1x64xf32> to vector<8x64xf32>
    %293 = arith.mulf %291, %292 : vector<8x64xf32>
    %294 = vector.broadcast %275 : vector<1x64xf32> to vector<8x64xf32>
    %295 = arith.addf %293, %294 : vector<8x64xf32>
    %c0_121 = arith.constant 0 : index
    %c0_122 = arith.constant 0 : index
    %c0_123 = arith.constant 0 : index
    %296 = vector.load %arg24[%c0_121, %c0_122, %c0_123] : memref<1x8x64xf32, #tpu.memory_space<vmem>>, vector<1x8x64xf32>
    %297 = vector.shape_cast %296 : vector<1x8x64xf32> to vector<8x64xf32>
    %298 = vector.shape_cast %295 : vector<8x64xf32> to vector<1x8x64xf32>
    tpu.vector_store %arg24[%c0_121, %c0_122, %c0_123], %298 {strides = array<i32>} : memref<1x8x64xf32, #tpu.memory_space<vmem>>, vector<1x8x64xf32>,
    return
  }
  func.func @transform_0(%arg0: i32) -> (i32, i32, i32) {
    %c0_i32 = arith.constant 0 : i32
    %c0_i32_0 = arith.constant 0 : i32
    %c0_i32_1 = arith.constant 0 : i32
    return %arg0, %c0_i32, %c0_i32_0 : i32, i32, i32
  }
  func.func @transform_1(%arg0: i32) -> (i32, i32, i32) {
    %c0_i32 = arith.constant 0 : i32
    %c0_i32_0 = arith.constant 0 : i32
    %c0_i32_1 = arith.constant 0 : i32
    return %arg0, %c0_i32, %c0_i32_0 : i32, i32, i32
  }
  func.func @transform_2(%arg0: i32) -> (i32, i32, i32) {
    %c0_i32 = arith.constant 0 : i32
    %c0_i32_0 = arith.constant 0 : i32
    %c0_i32_1 = arith.constant 0 : i32
    return %arg0, %c0_i32, %c0_i32_0 : i32, i32, i32
  }
  func.func @transform_3(%arg0: i32) -> (i32, i32) {
    %c0_i32 = arith.constant 0 : i32
    %c0_i32_0 = arith.constant 0 : i32
    %c0_i32_1 = arith.constant 0 : i32
    return %c0_i32, %c0_i32_0 : i32, i32
  }
  func.func @transform_4(%arg0: i32) -> (i32, i32) {
    %c0_i32 = arith.constant 0 : i32
    %c0_i32_0 = arith.constant 0 : i32
    %c0_i32_1 = arith.constant 0 : i32
    return %c0_i32, %c0_i32_0 : i32, i32
  }
  func.func @transform_5(%arg0: i32) -> (i32, i32) {
    %c0_i32 = arith.constant 0 : i32
    %c0_i32_0 = arith.constant 0 : i32
    %c0_i32_1 = arith.constant 0 : i32
    return %c0_i32, %c0_i32_0 : i32, i32
  }
  func.func @transform_6(%arg0: i32) -> (i32, i32) {
    %c0_i32 = arith.constant 0 : i32
    %c0_i32_0 = arith.constant 0 : i32
    %c0_i32_1 = arith.constant 0 : i32
    return %c0_i32, %c0_i32_0 : i32, i32
  }
  func.func @transform_7(%arg0: i32) -> (i32, i32) {
    %c0_i32 = arith.constant 0 : i32
    %c0_i32_0 = arith.constant 0 : i32
    %c0_i32_1 = arith.constant 0 : i32
    return %c0_i32, %c0_i32_0 : i32, i32
  }
  func.func @transform_8(%arg0: i32) -> (i32, i32) {
    %c0_i32 = arith.constant 0 : i32
    %c0_i32_0 = arith.constant 0 : i32
    %c0_i32_1 = arith.constant 0 : i32
    return %c0_i32, %c0_i32_0 : i32, i32
  }
  func.func @transform_9(%arg0: i32) -> (i32, i32) {
    %c0_i32 = arith.constant 0 : i32
    %c0_i32_0 = arith.constant 0 : i32
    %c0_i32_1 = arith.constant 0 : i32
    return %c0_i32, %c0_i32_0 : i32, i32
  }
  func.func @transform_10(%arg0: i32) -> (i32, i32) {
    %c0_i32 = arith.constant 0 : i32
    %c0_i32_0 = arith.constant 0 : i32
    %c0_i32_1 = arith.constant 0 : i32
    return %c0_i32, %c0_i32_0 : i32, i32
  }
  func.func @transform_11(%arg0: i32) -> (i32, i32) {
    %c0_i32 = arith.constant 0 : i32
    %c0_i32_0 = arith.constant 0 : i32
    %c0_i32_1 = arith.constant 0 : i32
    return %c0_i32, %c0_i32_0 : i32, i32
  }
  func.func @transform_12(%arg0: i32) -> (i32, i32) {
    %c0_i32 = arith.constant 0 : i32
    %c0_i32_0 = arith.constant 0 : i32
    %c0_i32_1 = arith.constant 0 : i32
    return %c0_i32, %c0_i32_0 : i32, i32
  }
  func.func @transform_13(%arg0: i32) -> (i32, i32) {
    %c0_i32 = arith.constant 0 : i32
    %c0_i32_0 = arith.constant 0 : i32
    %c0_i32_1 = arith.constant 0 : i32
    return %c0_i32, %c0_i32_0 : i32, i32
  }
  func.func @transform_14(%arg0: i32) -> (i32, i32) {
    %c0_i32 = arith.constant 0 : i32
    %c0_i32_0 = arith.constant 0 : i32
    %c0_i32_1 = arith.constant 0 : i32
    return %c0_i32, %c0_i32_0 : i32, i32
  }
  func.func @transform_15(%arg0: i32) -> (i32, i32) {
    %c0_i32 = arith.constant 0 : i32
    %c0_i32_0 = arith.constant 0 : i32
    %c0_i32_1 = arith.constant 0 : i32
    return %c0_i32, %c0_i32_0 : i32, i32
  }
  func.func @transform_16(%arg0: i32) -> (i32, i32) {
    %c0_i32 = arith.constant 0 : i32
    %c0_i32_0 = arith.constant 0 : i32
    %c0_i32_1 = arith.constant 0 : i32
    return %c0_i32, %c0_i32_0 : i32, i32
  }
  func.func @transform_17(%arg0: i32) -> (i32, i32) {
    %c0_i32 = arith.constant 0 : i32
    %c0_i32_0 = arith.constant 0 : i32
    %c0_i32_1 = arith.constant 0 : i32
    return %c0_i32, %c0_i32_0 : i32, i32
  }
  func.func @transform_18(%arg0: i32) -> (i32, i32) {
    %c0_i32 = arith.constant 0 : i32
    %c0_i32_0 = arith.constant 0 : i32
    %c0_i32_1 = arith.constant 0 : i32
    return %c0_i32, %c0_i32_0 : i32, i32
  }
  func.func @transform_19(%arg0: i32) -> (i32, i32) {
    %c0_i32 = arith.constant 0 : i32
    %c0_i32_0 = arith.constant 0 : i32
    %c0_i32_1 = arith.constant 0 : i32
    return %c0_i32, %c0_i32_0 : i32, i32
  }
  func.func @transform_20(%arg0: i32) -> (i32, i32) {
    %c0_i32 = arith.constant 0 : i32
    %c0_i32_0 = arith.constant 0 : i32
    %c0_i32_1 = arith.constant 0 : i32
    return %c0_i32, %c0_i32_0 : i32, i32
  }
  func.func @transform_21(%arg0: i32) -> (i32, i32) {
    %c0_i32 = arith.constant 0 : i32
    %c0_i32_0 = arith.constant 0 : i32
    %c0_i32_1 = arith.constant 0 : i32
    return %c0_i32, %c0_i32_0 : i32, i32
  }
  func.func @transform_22(%arg0: i32) -> (i32, i32) {
    %c0_i32 = arith.constant 0 : i32
    %c0_i32_0 = arith.constant 0 : i32
    %c0_i32_1 = arith.constant 0 : i32
    return %c0_i32, %c0_i32_0 : i32, i32
  }
  func.func @transform_23(%arg0: i32) -> (i32, i32, i32) {
    %c0_i32 = arith.constant 0 : i32
    %c0_i32_0 = arith.constant 0 : i32
    %c0_i32_1 = arith.constant 0 : i32
    return %arg0, %c0_i32, %c0_i32_0 : i32, i32, i32
  }
}

module attributes {stable_mosaic.version = 11 : i64} {
  func.func @_heads_kl_kernel(%arg0: memref<2x64xf32, #tpu.memory_space<vmem>>, %arg1: memref<1x64xf32, #tpu.memory_space<vmem>>, %arg2: memref<1x64xf32, #tpu.memory_space<vmem>>, %arg3: memref<1x64xf32, #tpu.memory_space<vmem>>, %arg4: memref<1x64xf32, #tpu.memory_space<vmem>>, %arg5: memref<64x64xf32, #tpu.memory_space<vmem>>, %arg6: memref<1x64xf32, #tpu.memory_space<vmem>>, %arg7: memref<64x2xf32, #tpu.memory_space<vmem>>, %arg8: memref<1x2xf32, #tpu.memory_space<vmem>>, %arg9: memref<64x64xf32, #tpu.memory_space<vmem>>, %arg10: memref<1x64xf32, #tpu.memory_space<vmem>>, %arg11: memref<64x2xf32, #tpu.memory_space<vmem>>, %arg12: memref<1x2xf32, #tpu.memory_space<vmem>>, %arg13: memref<2x2xf32, #tpu.memory_space<vmem>>, %arg14: memref<2x2xf32, #tpu.memory_space<vmem>>, %arg15: memref<2x2xf32, #tpu.memory_space<vmem>>, %arg16: memref<2x2xf32, #tpu.memory_space<vmem>>, %arg17: memref<1x1xf32, #tpu.memory_space<vmem>>, %arg18: memref<1x1xf32, #tpu.memory_space<vmem>>) attributes {dimension_semantics = [], scalar_prefetch = 0 : i64, scratch_operands = 0 : i64, tpu.core_type = #tpu.core_type<tc>} {
    %c0 = arith.constant 0 : index
    %c0_0 = arith.constant 0 : index
    %0 = vector.load %arg0[%c0, %c0_0] : memref<2x64xf32, #tpu.memory_space<vmem>>, vector<2x64xf32>
    %c0_1 = arith.constant 0 : index
    %c0_2 = arith.constant 0 : index
    %1 = vector.load %arg5[%c0_1, %c0_2] : memref<64x64xf32, #tpu.memory_space<vmem>>, vector<64x64xf32>
    %cst = arith.constant dense<0.000000e+00> : vector<2x64xf32>
    %2 = tpu.matmul %0, %1, %cst {dimension_numbers = #tpu.dot_dimension_numbers<[1], [0], [0], [1], [0, 0, 1, 1], [], []>} : vector<2x64xf32>, vector<64x64xf32>, vector<2x64xf32> -> vector<2x64xf32>
    %c0_3 = arith.constant 0 : index
    %c0_4 = arith.constant 0 : index
    %3 = vector.load %arg6[%c0_3, %c0_4] : memref<1x64xf32, #tpu.memory_space<vmem>>, vector<1x64xf32>
    %4 = vector.broadcast %3 : vector<1x64xf32> to vector<2x64xf32>
    %5 = arith.addf %2, %4 : vector<2x64xf32>
    %cst_5 = arith.constant 0.000000e+00 : f32
    %6 = vector.broadcast %cst_5 : f32 to vector<2x64xf32>
    %7 = arith.maximumf %5, %6 : vector<2x64xf32>
    %c0_6 = arith.constant 0 : index
    %c0_7 = arith.constant 0 : index
    %8 = vector.load %arg7[%c0_6, %c0_7] : memref<64x2xf32, #tpu.memory_space<vmem>>, vector<64x2xf32>
    %cst_8 = arith.constant dense<0.000000e+00> : vector<2x2xf32>
    %9 = tpu.matmul %7, %8, %cst_8 {dimension_numbers = #tpu.dot_dimension_numbers<[1], [0], [0], [1], [0, 0, 1, 1], [], []>} : vector<2x64xf32>, vector<64x2xf32>, vector<2x2xf32> -> vector<2x2xf32>
    %c0_9 = arith.constant 0 : index
    %c0_10 = arith.constant 0 : index
    %10 = vector.load %arg8[%c0_9, %c0_10] : memref<1x2xf32, #tpu.memory_space<vmem>>, vector<1x2xf32>
    %11 = vector.broadcast %10 : vector<1x2xf32> to vector<2x2xf32>
    %12 = arith.addf %9, %11 : vector<2x2xf32>
    %c0_11 = arith.constant 0 : index
    %c0_12 = arith.constant 0 : index
    %13 = vector.load %arg13[%c0_11, %c0_12] : memref<2x2xf32, #tpu.memory_space<vmem>>, vector<2x2xf32>
    tpu.vector_store %arg13[%c0_11, %c0_12], %12 {strides = array<i32>} : memref<2x2xf32, #tpu.memory_space<vmem>>, vector<2x2xf32>,
    %cst_13 = arith.constant dense<0xFF800000> : vector<2xf32>
    %14 = vector.multi_reduction <maximumf>, %12, %cst_13 [1] : vector<2x2xf32> to vector<2xf32>
    %15 = vector.shape_cast %14 : vector<2xf32> to vector<2x1xf32>
    %16 = vector.broadcast %15 : vector<2x1xf32> to vector<2x2xf32>
    %17 = arith.subf %12, %16 : vector<2x2xf32>
    %18 = math.exp %17 : vector<2x2xf32>
    %cst_14 = arith.constant dense<0.000000e+00> : vector<2xf32>
    %19 = vector.multi_reduction <add>, %18, %cst_14 [1] : vector<2x2xf32> to vector<2xf32>
    %20 = vector.shape_cast %19 : vector<2xf32> to vector<2x1xf32>
    %21 = tpu.reciprocal %20 {approx = true} : vector<2x1xf32> -> vector<2x1xf32>
    %22 = vector.broadcast %21 : vector<2x1xf32> to vector<2x2xf32>
    %23 = arith.mulf %18, %22 : vector<2x2xf32>
    %c0_15 = arith.constant 0 : index
    %c0_16 = arith.constant 0 : index
    %24 = vector.load %arg14[%c0_15, %c0_16] : memref<2x2xf32, #tpu.memory_space<vmem>>, vector<2x2xf32>
    tpu.vector_store %arg14[%c0_15, %c0_16], %23 {strides = array<i32>} : memref<2x2xf32, #tpu.memory_space<vmem>>, vector<2x2xf32>,
    %c0_17 = arith.constant 0 : index
    %c0_18 = arith.constant 0 : index
    %25 = vector.load %arg9[%c0_17, %c0_18] : memref<64x64xf32, #tpu.memory_space<vmem>>, vector<64x64xf32>
    %cst_19 = arith.constant dense<0.000000e+00> : vector<2x64xf32>
    %26 = tpu.matmul %0, %25, %cst_19 {dimension_numbers = #tpu.dot_dimension_numbers<[1], [0], [0], [1], [0, 0, 1, 1], [], []>} : vector<2x64xf32>, vector<64x64xf32>, vector<2x64xf32> -> vector<2x64xf32>
    %c0_20 = arith.constant 0 : index
    %c0_21 = arith.constant 0 : index
    %27 = vector.load %arg10[%c0_20, %c0_21] : memref<1x64xf32, #tpu.memory_space<vmem>>, vector<1x64xf32>
    %28 = vector.broadcast %27 : vector<1x64xf32> to vector<2x64xf32>
    %29 = arith.addf %26, %28 : vector<2x64xf32>
    %cst_22 = arith.constant 0.000000e+00 : f32
    %30 = vector.broadcast %cst_22 : f32 to vector<2x64xf32>
    %31 = arith.maximumf %29, %30 : vector<2x64xf32>
    %c0_23 = arith.constant 0 : index
    %c0_24 = arith.constant 0 : index
    %32 = vector.load %arg11[%c0_23, %c0_24] : memref<64x2xf32, #tpu.memory_space<vmem>>, vector<64x2xf32>
    %cst_25 = arith.constant dense<0.000000e+00> : vector<2x2xf32>
    %33 = tpu.matmul %31, %32, %cst_25 {dimension_numbers = #tpu.dot_dimension_numbers<[1], [0], [0], [1], [0, 0, 1, 1], [], []>} : vector<2x64xf32>, vector<64x2xf32>, vector<2x2xf32> -> vector<2x2xf32>
    %c0_26 = arith.constant 0 : index
    %c0_27 = arith.constant 0 : index
    %34 = vector.load %arg12[%c0_26, %c0_27] : memref<1x2xf32, #tpu.memory_space<vmem>>, vector<1x2xf32>
    %35 = vector.broadcast %34 : vector<1x2xf32> to vector<2x2xf32>
    %36 = arith.addf %33, %35 : vector<2x2xf32>
    %c0_28 = arith.constant 0 : index
    %c0_29 = arith.constant 0 : index
    %37 = vector.load %arg15[%c0_28, %c0_29] : memref<2x2xf32, #tpu.memory_space<vmem>>, vector<2x2xf32>
    tpu.vector_store %arg15[%c0_28, %c0_29], %36 {strides = array<i32>} : memref<2x2xf32, #tpu.memory_space<vmem>>, vector<2x2xf32>,
    %cst_30 = arith.constant dense<0xFF800000> : vector<2xf32>
    %38 = vector.multi_reduction <maximumf>, %36, %cst_30 [1] : vector<2x2xf32> to vector<2xf32>
    %39 = vector.shape_cast %38 : vector<2xf32> to vector<2x1xf32>
    %40 = vector.broadcast %39 : vector<2x1xf32> to vector<2x2xf32>
    %41 = arith.subf %36, %40 : vector<2x2xf32>
    %42 = math.exp %41 : vector<2x2xf32>
    %cst_31 = arith.constant dense<0.000000e+00> : vector<2xf32>
    %43 = vector.multi_reduction <add>, %42, %cst_31 [1] : vector<2x2xf32> to vector<2xf32>
    %44 = vector.shape_cast %43 : vector<2xf32> to vector<2x1xf32>
    %45 = tpu.reciprocal %44 {approx = true} : vector<2x1xf32> -> vector<2x1xf32>
    %46 = vector.broadcast %45 : vector<2x1xf32> to vector<2x2xf32>
    %47 = arith.mulf %42, %46 : vector<2x2xf32>
    %c0_32 = arith.constant 0 : index
    %c0_33 = arith.constant 0 : index
    %48 = vector.load %arg16[%c0_32, %c0_33] : memref<2x2xf32, #tpu.memory_space<vmem>>, vector<2x2xf32>
    tpu.vector_store %arg16[%c0_32, %c0_33], %47 {strides = array<i32>} : memref<2x2xf32, #tpu.memory_space<vmem>>, vector<2x2xf32>,
    %c0_34 = arith.constant 0 : index
    %c0_35 = arith.constant 0 : index
    %49 = vector.load %arg1[%c0_34, %c0_35] : memref<1x64xf32, #tpu.memory_space<vmem>>, vector<1x64xf32>
    %c0_36 = arith.constant 0 : index
    %c0_37 = arith.constant 0 : index
    %50 = vector.load %arg2[%c0_36, %c0_37] : memref<1x64xf32, #tpu.memory_space<vmem>>, vector<1x64xf32>
    %cst_38 = arith.constant dense<0xFF800000> : vector<1xf32>
    %51 = vector.multi_reduction <maximumf>, %49, %cst_38 [1] : vector<1x64xf32> to vector<1xf32>
    %52 = vector.shape_cast %51 : vector<1xf32> to vector<1x1xf32>
    %53 = vector.broadcast %52 : vector<1x1xf32> to vector<1x64xf32>
    %54 = arith.subf %49, %53 : vector<1x64xf32>
    %55 = math.exp %54 : vector<1x64xf32>
    %cst_39 = arith.constant dense<0.000000e+00> : vector<1xf32>
    %56 = vector.multi_reduction <add>, %55, %cst_39 [1] : vector<1x64xf32> to vector<1xf32>
    %57 = vector.shape_cast %56 : vector<1xf32> to vector<1x1xf32>
    %58 = math.log %57 : vector<1x1xf32>
    %59 = vector.broadcast %58 : vector<1x1xf32> to vector<1x64xf32>
    %60 = arith.subf %54, %59 : vector<1x64xf32>
    %cst_40 = arith.constant dense<0xFF800000> : vector<1xf32>
    %61 = vector.multi_reduction <maximumf>, %50, %cst_40 [1] : vector<1x64xf32> to vector<1xf32>
    %62 = vector.shape_cast %61 : vector<1xf32> to vector<1x1xf32>
    %63 = vector.broadcast %62 : vector<1x1xf32> to vector<1x64xf32>
    %64 = arith.subf %50, %63 : vector<1x64xf32>
    %65 = math.exp %64 : vector<1x64xf32>
    %cst_41 = arith.constant dense<0.000000e+00> : vector<1xf32>
    %66 = vector.multi_reduction <add>, %65, %cst_41 [1] : vector<1x64xf32> to vector<1xf32>
    %67 = vector.shape_cast %66 : vector<1xf32> to vector<1x1xf32>
    %68 = math.log %67 : vector<1x1xf32>
    %69 = vector.broadcast %68 : vector<1x1xf32> to vector<1x64xf32>
    %70 = arith.subf %64, %69 : vector<1x64xf32>
    %71 = math.exp %70 : vector<1x64xf32>
    %72 = arith.subf %70, %60 : vector<1x64xf32>
    %73 = arith.mulf %71, %72 : vector<1x64xf32>
    %cst_42 = arith.constant dense<0.000000e+00> : vector<1xf32>
    %74 = vector.multi_reduction <add>, %73, %cst_42 [1] : vector<1x64xf32> to vector<1xf32>
    %75 = vector.shape_cast %74 : vector<1xf32> to vector<1x1xf32>
    %cst_43 = arith.constant dense<0.000000e+00> : vector<1xf32>
    %76 = vector.multi_reduction <add>, %75, %cst_43 [0] : vector<1x1xf32> to vector<1xf32>
    %77 = vector.shape_cast %76 : vector<1xf32> to vector<1x1xf32>
    %c0_44 = arith.constant 0 : index
    %c0_45 = arith.constant 0 : index
    %78 = vector.load %arg2[%c0_44, %c0_45] : memref<1x64xf32, #tpu.memory_space<vmem>>, vector<1x64xf32>
    %c0_46 = arith.constant 0 : index
    %c0_47 = arith.constant 0 : index
    %79 = vector.load %arg1[%c0_46, %c0_47] : memref<1x64xf32, #tpu.memory_space<vmem>>, vector<1x64xf32>
    %cst_48 = arith.constant dense<0xFF800000> : vector<1xf32>
    %80 = vector.multi_reduction <maximumf>, %78, %cst_48 [1] : vector<1x64xf32> to vector<1xf32>
    %81 = vector.shape_cast %80 : vector<1xf32> to vector<1x1xf32>
    %82 = vector.broadcast %81 : vector<1x1xf32> to vector<1x64xf32>
    %83 = arith.subf %78, %82 : vector<1x64xf32>
    %84 = math.exp %83 : vector<1x64xf32>
    %cst_49 = arith.constant dense<0.000000e+00> : vector<1xf32>
    %85 = vector.multi_reduction <add>, %84, %cst_49 [1] : vector<1x64xf32> to vector<1xf32>
    %86 = vector.shape_cast %85 : vector<1xf32> to vector<1x1xf32>
    %87 = math.log %86 : vector<1x1xf32>
    %88 = vector.broadcast %87 : vector<1x1xf32> to vector<1x64xf32>
    %89 = arith.subf %83, %88 : vector<1x64xf32>
    %cst_50 = arith.constant dense<0xFF800000> : vector<1xf32>
    %90 = vector.multi_reduction <maximumf>, %79, %cst_50 [1] : vector<1x64xf32> to vector<1xf32>
    %91 = vector.shape_cast %90 : vector<1xf32> to vector<1x1xf32>
    %92 = vector.broadcast %91 : vector<1x1xf32> to vector<1x64xf32>
    %93 = arith.subf %79, %92 : vector<1x64xf32>
    %94 = math.exp %93 : vector<1x64xf32>
    %cst_51 = arith.constant dense<0.000000e+00> : vector<1xf32>
    %95 = vector.multi_reduction <add>, %94, %cst_51 [1] : vector<1x64xf32> to vector<1xf32>
    %96 = vector.shape_cast %95 : vector<1xf32> to vector<1x1xf32>
    %97 = math.log %96 : vector<1x1xf32>
    %98 = vector.broadcast %97 : vector<1x1xf32> to vector<1x64xf32>
    %99 = arith.subf %93, %98 : vector<1x64xf32>
    %100 = math.exp %99 : vector<1x64xf32>
    %101 = arith.subf %99, %89 : vector<1x64xf32>
    %102 = arith.mulf %100, %101 : vector<1x64xf32>
    %cst_52 = arith.constant dense<0.000000e+00> : vector<1xf32>
    %103 = vector.multi_reduction <add>, %102, %cst_52 [1] : vector<1x64xf32> to vector<1xf32>
    %104 = vector.shape_cast %103 : vector<1xf32> to vector<1x1xf32>
    %cst_53 = arith.constant dense<0.000000e+00> : vector<1xf32>
    %105 = vector.multi_reduction <add>, %104, %cst_53 [0] : vector<1x1xf32> to vector<1xf32>
    %106 = vector.shape_cast %105 : vector<1xf32> to vector<1x1xf32>
    %107 = arith.addf %77, %106 : vector<1x1xf32>
    %cst_54 = arith.constant 5.000000e-01 : f32
    %108 = vector.broadcast %cst_54 : f32 to vector<1x1xf32>
    %109 = arith.mulf %108, %107 : vector<1x1xf32>
    %c0_55 = arith.constant 0 : index
    %c0_56 = arith.constant 0 : index
    %110 = vector.load %arg17[%c0_55, %c0_56] : memref<1x1xf32, #tpu.memory_space<vmem>>, vector<1x1xf32>
    tpu.vector_store %arg17[%c0_55, %c0_56], %109 {strides = array<i32>} : memref<1x1xf32, #tpu.memory_space<vmem>>, vector<1x1xf32>,
    %c0_57 = arith.constant 0 : index
    %c0_58 = arith.constant 0 : index
    %111 = vector.load %arg3[%c0_57, %c0_58] : memref<1x64xf32, #tpu.memory_space<vmem>>, vector<1x64xf32>
    %c0_59 = arith.constant 0 : index
    %c0_60 = arith.constant 0 : index
    %112 = vector.load %arg4[%c0_59, %c0_60] : memref<1x64xf32, #tpu.memory_space<vmem>>, vector<1x64xf32>
    %cst_61 = arith.constant dense<0xFF800000> : vector<1xf32>
    %113 = vector.multi_reduction <maximumf>, %111, %cst_61 [1] : vector<1x64xf32> to vector<1xf32>
    %114 = vector.shape_cast %113 : vector<1xf32> to vector<1x1xf32>
    %115 = vector.broadcast %114 : vector<1x1xf32> to vector<1x64xf32>
    %116 = arith.subf %111, %115 : vector<1x64xf32>
    %117 = math.exp %116 : vector<1x64xf32>
    %cst_62 = arith.constant dense<0.000000e+00> : vector<1xf32>
    %118 = vector.multi_reduction <add>, %117, %cst_62 [1] : vector<1x64xf32> to vector<1xf32>
    %119 = vector.shape_cast %118 : vector<1xf32> to vector<1x1xf32>
    %120 = math.log %119 : vector<1x1xf32>
    %121 = vector.broadcast %120 : vector<1x1xf32> to vector<1x64xf32>
    %122 = arith.subf %116, %121 : vector<1x64xf32>
    %cst_63 = arith.constant dense<0xFF800000> : vector<1xf32>
    %123 = vector.multi_reduction <maximumf>, %112, %cst_63 [1] : vector<1x64xf32> to vector<1xf32>
    %124 = vector.shape_cast %123 : vector<1xf32> to vector<1x1xf32>
    %125 = vector.broadcast %124 : vector<1x1xf32> to vector<1x64xf32>
    %126 = arith.subf %112, %125 : vector<1x64xf32>
    %127 = math.exp %126 : vector<1x64xf32>
    %cst_64 = arith.constant dense<0.000000e+00> : vector<1xf32>
    %128 = vector.multi_reduction <add>, %127, %cst_64 [1] : vector<1x64xf32> to vector<1xf32>
    %129 = vector.shape_cast %128 : vector<1xf32> to vector<1x1xf32>
    %130 = math.log %129 : vector<1x1xf32>
    %131 = vector.broadcast %130 : vector<1x1xf32> to vector<1x64xf32>
    %132 = arith.subf %126, %131 : vector<1x64xf32>
    %133 = math.exp %132 : vector<1x64xf32>
    %134 = arith.subf %132, %122 : vector<1x64xf32>
    %135 = arith.mulf %133, %134 : vector<1x64xf32>
    %cst_65 = arith.constant dense<0.000000e+00> : vector<1xf32>
    %136 = vector.multi_reduction <add>, %135, %cst_65 [1] : vector<1x64xf32> to vector<1xf32>
    %137 = vector.shape_cast %136 : vector<1xf32> to vector<1x1xf32>
    %cst_66 = arith.constant dense<0.000000e+00> : vector<1xf32>
    %138 = vector.multi_reduction <add>, %137, %cst_66 [0] : vector<1x1xf32> to vector<1xf32>
    %139 = vector.shape_cast %138 : vector<1xf32> to vector<1x1xf32>
    %c0_67 = arith.constant 0 : index
    %c0_68 = arith.constant 0 : index
    %140 = vector.load %arg4[%c0_67, %c0_68] : memref<1x64xf32, #tpu.memory_space<vmem>>, vector<1x64xf32>
    %c0_69 = arith.constant 0 : index
    %c0_70 = arith.constant 0 : index
    %141 = vector.load %arg3[%c0_69, %c0_70] : memref<1x64xf32, #tpu.memory_space<vmem>>, vector<1x64xf32>
    %cst_71 = arith.constant dense<0xFF800000> : vector<1xf32>
    %142 = vector.multi_reduction <maximumf>, %140, %cst_71 [1] : vector<1x64xf32> to vector<1xf32>
    %143 = vector.shape_cast %142 : vector<1xf32> to vector<1x1xf32>
    %144 = vector.broadcast %143 : vector<1x1xf32> to vector<1x64xf32>
    %145 = arith.subf %140, %144 : vector<1x64xf32>
    %146 = math.exp %145 : vector<1x64xf32>
    %cst_72 = arith.constant dense<0.000000e+00> : vector<1xf32>
    %147 = vector.multi_reduction <add>, %146, %cst_72 [1] : vector<1x64xf32> to vector<1xf32>
    %148 = vector.shape_cast %147 : vector<1xf32> to vector<1x1xf32>
    %149 = math.log %148 : vector<1x1xf32>
    %150 = vector.broadcast %149 : vector<1x1xf32> to vector<1x64xf32>
    %151 = arith.subf %145, %150 : vector<1x64xf32>
    %cst_73 = arith.constant dense<0xFF800000> : vector<1xf32>
    %152 = vector.multi_reduction <maximumf>, %141, %cst_73 [1] : vector<1x64xf32> to vector<1xf32>
    %153 = vector.shape_cast %152 : vector<1xf32> to vector<1x1xf32>
    %154 = vector.broadcast %153 : vector<1x1xf32> to vector<1x64xf32>
    %155 = arith.subf %141, %154 : vector<1x64xf32>
    %156 = math.exp %155 : vector<1x64xf32>
    %cst_74 = arith.constant dense<0.000000e+00> : vector<1xf32>
    %157 = vector.multi_reduction <add>, %156, %cst_74 [1] : vector<1x64xf32> to vector<1xf32>
    %158 = vector.shape_cast %157 : vector<1xf32> to vector<1x1xf32>
    %159 = math.log %158 : vector<1x1xf32>
    %160 = vector.broadcast %159 : vector<1x1xf32> to vector<1x64xf32>
    %161 = arith.subf %155, %160 : vector<1x64xf32>
    %162 = math.exp %161 : vector<1x64xf32>
    %163 = arith.subf %161, %151 : vector<1x64xf32>
    %164 = arith.mulf %162, %163 : vector<1x64xf32>
    %cst_75 = arith.constant dense<0.000000e+00> : vector<1xf32>
    %165 = vector.multi_reduction <add>, %164, %cst_75 [1] : vector<1x64xf32> to vector<1xf32>
    %166 = vector.shape_cast %165 : vector<1xf32> to vector<1x1xf32>
    %cst_76 = arith.constant dense<0.000000e+00> : vector<1xf32>
    %167 = vector.multi_reduction <add>, %166, %cst_76 [0] : vector<1x1xf32> to vector<1xf32>
    %168 = vector.shape_cast %167 : vector<1xf32> to vector<1x1xf32>
    %169 = arith.addf %139, %168 : vector<1x1xf32>
    %cst_77 = arith.constant 5.000000e-01 : f32
    %170 = vector.broadcast %cst_77 : f32 to vector<1x1xf32>
    %171 = arith.mulf %170, %169 : vector<1x1xf32>
    %c0_78 = arith.constant 0 : index
    %c0_79 = arith.constant 0 : index
    %172 = vector.load %arg18[%c0_78, %c0_79] : memref<1x1xf32, #tpu.memory_space<vmem>>, vector<1x1xf32>
    tpu.vector_store %arg18[%c0_78, %c0_79], %171 {strides = array<i32>} : memref<1x1xf32, #tpu.memory_space<vmem>>, vector<1x1xf32>,
    return
  }
}

</mosaic_0001>

<bundles_post_ra>
// kernel: _lambda_.18
= control target key start
LH: loop header
LB: loop body
LE: loop exit
PB: predicated region body
PF: predicated region fallthrough
CT: control target
= control target key end

     0   :  { %vm18_vm0 = vcmask 523264   ;;  %s118_s0 = inlined_call_operand.vmem [shape: f32[16,64], index: 0, kind: input, shape index: {}]   ;;  %s119_s1 = inlined_call_operand.vmem [shape: f32[1,64], index: 1, kind: input, shape index: {}]   ;;  %s120_s2 = inlined_call_operand.vmem [shape: f32[1,64], index: 2, kind: input, shape index: {}]   ;;  %s121_s3 = inlined_call_operand.vmem [shape: f32[16,64], index: 3, kind: output, shape index: {}]  }
   0x1   :  { %v14_v0 = vld [vmem:[%s118_s0] sm:$0xff]  ;;  %v15_v1 = vld [vmem:[%s118_s0 + $0x8] sm:$0xff] }
   0x2   :  { %v19_v2 = vsel %vm18_vm0, %v14_v0, 0.0  ;;  %v22_v3 = vsel %vm18_vm0, %v15_v1, 0.0  ;;  %v68_v21 = vld [vmem:[%s119_s1] ss:$0 sm:$0xff] }
   0x3   :  { %20 = vadd.xlane.f32.xlu0 %v19_v2  ;;  %v69_v23 = vld [vmem:[%s120_s2] ss:$0 sm:$0xff] }
   0x7   :  { %23 = vadd.xlane.f32.xlu0 %v22_v3 }
  0x90   :  { %v21_v4 = vpop.xlane.xlu0 %20 }
  0x91   :  { %v26_v5 = vmul.f32 0.015625, %v21_v4 }
  0x93   :  { %v28_v6 = vsub.f32 %v14_v0, %v26_v5 }
  0x94   :  { %v24_v7 = vpop.xlane.xlu0 %23 }
  0x95   :  { %v27_v8 = vmul.f32 0.015625, %v24_v7  ;;  %v30_v9 = vmul.f32 %v28_v6, %v28_v6 }
  0x97   :  { %v29_v10 = vsub.f32 %v15_v1, %v27_v8  ;;  %v32_v11 = vsel %vm18_vm0, %v30_v9, 0.0 }
  0x98   :  { %33 = vadd.xlane.f32.xlu1 %v32_v11 }
  0x99   :  { %v31_v12 = vmul.f32 %v29_v10, %v29_v10 }
  0x9b   :  { %v35_v13 = vsel %vm18_vm0, %v31_v12, 0.0 }
  0x9c   :  { %36 = vadd.xlane.f32.xlu1 %v35_v13 }
 0x125   :  { %v34_v14 = vpop.xlane.xlu1 %33 }
 0x126   :  { %v38_v15 = vmul.f32 0.015625, %v34_v14 }
 0x128   :  { %v40_v16 = vadd.f32 1e-12, %v38_v15 }
 0x129   :  { %v37_v17 = vpop.xlane.xlu1 %36 }
 0x12a   :  { %70 = vrsqrt.f32 %v40_v16  ;;  %v39_v18 = vmul.f32 0.015625, %v37_v17 }
 0x12c   :  { %v41_v19 = vadd.f32 1e-12, %v39_v18 }
 0x12e   :  { %72 = vrsqrt.f32 %v41_v19 }
 0x134   :  { %v71_v20 = vpop.eup %70 }
 0x135   :  { %v44_v22 = vmul.f32 %v71_v20, %v28_v6 }
 0x137   :  { %v52_v24 = vmul.f32 %v68_v21, %v44_v22 }
 0x138   :  { %v73_v25 = vpop.eup %72 }
 0x139   :  { %v60_v26 = vadd.f32 %v69_v23, %v52_v24  ;;  %v45_v27 = vmul.f32 %v73_v25, %v29_v10 }
 0x13b   :  { %62 = vst.msk [vmem:[%s121_s3] sm:$0xff] %vm18_vm0, %v60_v26  ;;  %v53_v28 = vmul.f32 %v68_v21, %v45_v27 }
 0x13d   :  { %v61_v29 = vadd.f32 %v69_v23, %v53_v28 }
 0x13f   :  { %63 = vst.msk [vmem:[%s121_s3 + $0x8] sm:$0xff] %vm18_vm0, %v61_v29 }

// kernel: _lambda_.14
= control target key start
LH: loop header
LB: loop body
LE: loop exit
PB: predicated region body
PF: predicated region fallthrough
CT: control target
= control target key end

     0   :  { %vm333_vm0 = vcmask 523264   ;;  %s873_s1 = inlined_call_operand.vmem [shape: f32[768,64], index: 1, kind: input, shape index: {}]   ;;  %s874_s0 = inlined_call_operand.vmem [shape: f32[8,768], index: 0, kind: input, shape index: {}]   ;;  %s875_s2 = inlined_call_operand.vmem [shape: f32[1,64], index: 2, kind: input, shape index: {}]   ;;  %s876_s3 = inlined_call_operand.vmem [shape: f32[8,64], index: 3, kind: output, shape index: {}]  }
   0x1   :  { %v36_v0 = vld [vmem:[%s873_s1 + $0x80] sm:$0xff]  ;;  %v37_v1 = vld [vmem:[%s873_s1 + $0x88] sm:$0xff]  ;;  %v38_v11 = vld [vmem:[%s873_s1 + $0x90] sm:$0xff] }
   0x2   :  { %v20_v2 = vld [vmem:[%s873_s1] sm:$0xff]  ;;  %v445_v3 = vpack.c.bf16 %v37_v1, %v36_v0  ;;  %v21_v4 = vld [vmem:[%s873_s1 + $0x8] sm:$0xff]  ;;  %v39_v13 = vld [vmem:[%s873_s1 + $0x98] sm:$0xff] }
   0x3   :  { %v68_v5 = vld [vmem:[%s873_s1 + $0x180] sm:$0xff]  ;;  %v69_v6 = vld [vmem:[%s873_s1 + $0x188] sm:$0xff]  ;;  %v447_v7 = vpack.c.bf16 %v21_v4, %v20_v2  ;;  %v22_v14 = vld [vmem:[%s873_s1 + $0x10] sm:$0xff]  ;;  %v449_v16 = vpack.c.bf16 %v39_v13, %v38_v11 }
   0x4   :  { %v477_v8 = vpack.c.bf16 %v69_v6, %v68_v5  ;;  %v52_v9 = vld [vmem:[%s873_s1 + $0x100] sm:$0xff]  ;;  %v53_v10 = vld [vmem:[%s873_s1 + $0x108] sm:$0xff]  ;;  %446 = vmatprep.subr.bf16.mxu0 %v445_v3  ;;  %v23_v15 = vld [vmem:[%s873_s1 + $0x18] sm:$0xff] }
   0x5   :  { %v479_v12 = vpack.c.bf16 %v53_v10, %v52_v9  ;;  %448 = vmatpush3.bf16.msra.mxu0 %v447_v7  ;;  %v451_v17 = vpack.c.bf16 %v23_v15, %v22_v14  ;;  %v70_v18 = vld [vmem:[%s873_s1 + $0x190] sm:$0xff]  ;;  %v71_v19 = vld [vmem:[%s873_s1 + $0x198] sm:$0xff]  ;;  %v40_v23 = vld [vmem:[%s873_s1 + $0xa0] sm:$0xff] }
   0x6   :  { %478 = vmatprep.subr.bf16.mxu1 %v477_v8  ;;  %v54_v20 = vld [vmem:[%s873_s1 + $0x110] sm:$0xff]  ;;  %v481_v21 = vpack.c.bf16 %v71_v19, %v70_v18  ;;  %v55_v22 = vld [vmem:[%s873_s1 + $0x118] sm:$0xff]  ;;  %v41_v24 = vld [vmem:[%s873_s1 + $0xa8] sm:$0xff]  ;;  %450 = vmatprep.subr.bf16.mxu0 %v449_v16 }
   0x7   :  { %480 = vmatpush3.bf16.msra.mxu1 %v479_v12  ;;  %v483_v25 = vpack.c.bf16 %v55_v22, %v54_v20  ;;  %v453_v26 = vpack.c.bf16 %v41_v24, %v40_v23  ;;  %v24_v27 = vld [vmem:[%s873_s1 + $0x20] sm:$0xff]  ;;  %v25_v28 = vld [vmem:[%s873_s1 + $0x28] sm:$0xff]  ;;  %v42_v35 = vld [vmem:[%s873_s1 + $0xb0] sm:$0xff] }
   0x8   :  { %v72_v29 = vld [vmem:[%s873_s1 + $0x1a0] sm:$0xff]  ;;  %482 = vmatprep.subr.bf16.mxu1 %v481_v21  ;;  %v73_v30 = vld [vmem:[%s873_s1 + $0x1a8] sm:$0xff]  ;;  %v455_v33 = vpack.c.bf16 %v25_v28, %v24_v27  ;;  %v43_v36 = vld [vmem:[%s873_s1 + $0xb8] sm:$0xff] }
   0x9   :  { %v56_v31 = vld [vmem:[%s873_s1 + $0x120] sm:$0xff]  ;;  %v57_v32 = vld [vmem:[%s873_s1 + $0x128] sm:$0xff]  ;;  %452 = vmatpush3.bf16.msra.mxu0 %v451_v17  ;;  %v485_v34 = vpack.c.bf16 %v73_v30, %v72_v29  ;;  %v26_v37 = vld [vmem:[%s873_s1 + $0x30] sm:$0xff]  ;;  %v457_v39 = vpack.c.bf16 %v43_v36, %v42_v35 }
   0xa   :  { %454 = vmatprep.subr.bf16.mxu0 %v453_v26  ;;  %v487_v38 = vpack.c.bf16 %v57_v32, %v56_v31  ;;  %v27_v40 = vld [vmem:[%s873_s1 + $0x38] sm:$0xff]  ;;  %v74_v41 = vld [vmem:[%s873_s1 + $0x1b0] sm:$0xff]  ;;  %v44_v46 = vld [vmem:[%s873_s1 + $0xc0] sm:$0xff] }
   0xb   :  { %484 = vmatpush3.bf16.msra.mxu1 %v483_v25  ;;  %v75_v42 = vld [vmem:[%s873_s1 + $0x1b8] sm:$0xff]  ;;  %v58_v44 = vld [vmem:[%s873_s1 + $0x130] sm:$0xff]  ;;  %v45_v47 = vld [vmem:[%s873_s1 + $0xc8] sm:$0xff]  ;;  %v459_v48 = vpack.c.bf16 %v27_v40, %v26_v37 }
   0xc   :  { %486 = vmatprep.subr.bf16.mxu1 %v485_v34  ;;  %v489_v43 = vpack.c.bf16 %v75_v42, %v74_v41  ;;  %v59_v45 = vld [vmem:[%s873_s1 + $0x138] sm:$0xff]  ;;  %v76_v49 = vld [vmem:[%s873_s1 + $0x1c0] sm:$0xff]  ;;  %v77_v50 = vld [vmem:[%s873_s1 + $0x1c8] sm:$0xff]  ;;  %v461_v52 = vpack.c.bf16 %v45_v47, %v44_v46 }
   0xd   :  { %456 = vmatpush3.bf16.msra.mxu0 %v455_v33  ;;  %v491_v51 = vpack.c.bf16 %v59_v45, %v58_v44  ;;  %v28_v53 = vld [vmem:[%s873_s1 + $0x40] sm:$0xff]  ;;  %v29_v54 = vld [vmem:[%s873_s1 + $0x48] sm:$0xff]  ;;  %v493_v56 = vpack.c.bf16 %v77_v50, %v76_v49  ;;  %v46_v58 = vld [vmem:[%s873_s1 + $0xd0] sm:$0xff] }
   0xe   :  { %458 = vmatprep.subr.bf16.mxu0 %v457_v39  ;;  %v60_v55 = vld [vmem:[%s873_s1 + $0x140] sm:$0xff]  ;;  %v61_v57 = vld [vmem:[%s873_s1 + $0x148] sm:$0xff]  ;;  %v47_v59 = vld [vmem:[%s873_s1 + $0xd8] sm:$0xff]  ;;  %v463_v62 = vpack.c.bf16 %v29_v54, %v28_v53 }
   0xf   :  { %488 = vmatpush3.bf16.msra.mxu1 %v487_v38  ;;  %v78_v60 = vld [vmem:[%s873_s1 + $0x1d0] sm:$0xff]  ;;  %v79_v61 = vld [vmem:[%s873_s1 + $0x1d8] sm:$0xff]  ;;  %v495_v63 = vpack.c.bf16 %v61_v57, %v60_v55  ;;  %v465_v0 = vpack.c.bf16 %v47_v59, %v46_v58  ;;  %v48_v6 = vld [vmem:[%s873_s1 + $0xe0] sm:$0xff] }
  0x10   :  { %490 = vmatprep.subr.bf16.mxu1 %v489_v43  ;;  %v30_v1 = vld [vmem:[%s873_s1 + $0x50] sm:$0xff]  ;;  %v31_v2 = vld [vmem:[%s873_s1 + $0x58] sm:$0xff]  ;;  %v497_v4 = vpack.c.bf16 %v79_v61, %v78_v60  ;;  %v49_v7 = vld [vmem:[%s873_s1 + $0xe8] sm:$0xff] }
  0x11   :  { %460 = vmatpush3.bf16.msra.mxu0 %v459_v48  ;;  %v62_v3 = vld [vmem:[%s873_s1 + $0x150] sm:$0xff]  ;;  %v63_v5 = vld [vmem:[%s873_s1 + $0x158] sm:$0xff]  ;;  %v80_v8 = vld [vmem:[%s873_s1 + $0x1e0] sm:$0xff]  ;;  %v467_v10 = vpack.c.bf16 %v31_v2, %v30_v1  ;;  %v469_v14 = vpack.c.bf16 %v49_v7, %v48_v6 }
  0x12   :  { %462 = vmatprep.subr.bf16.mxu0 %v461_v52  ;;  %v81_v9 = vld [vmem:[%s873_s1 + $0x1e8] sm:$0xff]  ;;  %v32_v11 = vld [vmem:[%s873_s1 + $0x60] sm:$0xff]  ;;  %v499_v13 = vpack.c.bf16 %v63_v5, %v62_v3  ;;  %v50_v19 = vld [vmem:[%s873_s1 + $0xf0] sm:$0xff] }
  0x13   :  { %492 = vmatpush3.bf16.msra.mxu1 %v491_v51  ;;  %v15_v12 = vld [vmem:[%s874_s0 + $0x8] sm:$0xff]  ;;  %v64_v16 = vld [vmem:[%s873_s1 + $0x160] sm:$0xff]  ;;  %v501_v18 = vpack.c.bf16 %v81_v9, %v80_v8  ;;  %v51_v20 = vld [vmem:[%s873_s1 + $0xf8] sm:$0xff] }
  0x14   :  { %494 = vmatprep.subr.bf16.mxu1 %v493_v56  ;;  %v33_v15 = vld [vmem:[%s873_s1 + $0x68] sm:$0xff]  ;;  %187 = vmatprep.mubr.f32.mxu0 %v15_v12  ;;  %v17_v21 = vld [vmem:[%s874_s0 + $0x18] sm:$0xff]  ;;  %v82_v22 = vld [vmem:[%s873_s1 + $0x1f0] sm:$0xff]  ;;  %v473_v26 = vpack.c.bf16 %v51_v20, %v50_v19 }
  0x15   :  { %464 = vmatpush3.bf16.msra.mxu0 %v463_v62  ;;  %v65_v17 = vld [vmem:[%s873_s1 + $0x168] sm:$0xff]  ;;  %v83_v23 = vld [vmem:[%s873_s1 + $0x1f8] sm:$0xff]  ;;  %257 = vmatprep.mubr.f32.mxu1 %v17_v21  ;;  %v471_v24 = vpack.c.bf16 %v33_v15, %v32_v11  ;;  %v34_v27 = vld [vmem:[%s873_s1 + $0x70] sm:$0xff] }
  0x16   :  { %466 = vmatprep.subr.bf16.mxu0 %v465_v0  ;;  %v503_v25 = vpack.c.bf16 %v65_v17, %v64_v16  ;;  %v35_v28 = vld [vmem:[%s873_s1 + $0x78] sm:$0xff]  ;;  %v66_v29 = vld [vmem:[%s873_s1 + $0x170] sm:$0xff]  ;;  %v505_v30 = vpack.c.bf16 %v83_v23, %v82_v22  ;;  %v100_v32 = vld [vmem:[%s873_s1 + $0x280] sm:$0xff] }
  0x17   :  { %496 = vmatpush3.bf16.msra.mxu1 %v495_v63  ;;  %v67_v31 = vld [vmem:[%s873_s1 + $0x178] sm:$0xff]  ;;  %v101_v33 = vld [vmem:[%s873_s1 + $0x288] sm:$0xff]  ;;  %v475_v34 = vpack.c.bf16 %v35_v28, %v34_v27  ;;  %v84_v37 = vld [vmem:[%s873_s1 + $0x200] sm:$0xff] }
  0x18   :  { %498 = vmatprep.subr.bf16.mxu1 %v497_v4  ;;  %v507_v35 = vpack.c.bf16 %v67_v31, %v66_v29  ;;  %v509_v36 = vpack.c.bf16 %v101_v33, %v100_v32  ;;  %v85_v38 = vld [vmem:[%s873_s1 + $0x208] sm:$0xff]  ;;  %v102_v39 = vld [vmem:[%s873_s1 + $0x290] sm:$0xff]  ;;  %v103_v40 = vld [vmem:[%s873_s1 + $0x298] sm:$0xff] }
  0x19   :  { %468 = vmatpush3.bf16.msra.mxu0 %v467_v10  ;;  %v14_v41 = vld [vmem:[%s874_s0] sm:$0xff]  ;;  %v511_v42 = vpack.c.bf16 %v85_v38, %v84_v37  ;;  %v16_v43 = vld [vmem:[%s874_s0 + $0x10] sm:$0xff]  ;;  %v513_v44 = vpack.c.bf16 %v103_v40, %v102_v39  ;;  %v87_v46 = vld [vmem:[%s873_s1 + $0x218] sm:$0xff] }
  0x1a   :  { %470 = vmatprep.subr.bf16.mxu0 %v469_v14  ;;  %v86_v45 = vld [vmem:[%s873_s1 + $0x210] sm:$0xff]  ;;  %v104_v47 = vld [vmem:[%s873_s1 + $0x2a0] sm:$0xff]  ;;  %v105_v48 = vld [vmem:[%s873_s1 + $0x2a8] sm:$0xff] }
  0x1b   :  { %500 = vmatpush3.bf16.msra.mxu1 %v499_v13  ;;  %v19_v49 = vld [vmem:[%s874_s0 + $0x28] sm:$0xff]  ;;  %v515_v50 = vpack.c.bf16 %v87_v46, %v86_v45  ;;  %v517_v51 = vpack.c.bf16 %v105_v48, %v104_v47  ;;  %v88_v52 = vld [vmem:[%s873_s1 + $0x220] sm:$0xff]  ;;  %v106_v54 = vld [vmem:[%s873_s1 + $0x2b0] sm:$0xff] }
  0x1c   :  { %502 = vmatprep.subr.bf16.mxu1 %v501_v18  ;;  %v89_v53 = vld [vmem:[%s873_s1 + $0x228] sm:$0xff]  ;;  %v107_v55 = vld [vmem:[%s873_s1 + $0x2b8] sm:$0xff]  ;;  %v90_v58 = vld [vmem:[%s873_s1 + $0x230] sm:$0xff] }
  0x1d   :  { %472 = vmatpush3.bf16.msra.mxu0 %v471_v24  ;;  %v519_v56 = vpack.c.bf16 %v89_v53, %v88_v52  ;;  %v521_v57 = vpack.c.bf16 %v107_v55, %v106_v54  ;;  %v91_v59 = vld [vmem:[%s873_s1 + $0x238] sm:$0xff]  ;;  %v108_v60 = vld [vmem:[%s873_s1 + $0x2c0] sm:$0xff]  ;;  %v109_v61 = vld [vmem:[%s873_s1 + $0x2c8] sm:$0xff] }
  0x1e   :  { %474 = vmatprep.subr.bf16.mxu0 %v473_v26  ;;  %v523_v62 = vpack.c.bf16 %v91_v59, %v90_v58  ;;  %v525_v63 = vpack.c.bf16 %v109_v61, %v108_v60  ;;  %v92_v0 = vld [vmem:[%s873_s1 + $0x240] sm:$0xff]  ;;  %v93_v1 = vld [vmem:[%s873_s1 + $0x248] sm:$0xff]  ;;  %v110_v2 = vld [vmem:[%s873_s1 + $0x2d0] sm:$0xff] }
  0x1f   :  { %504 = vmatpush3.bf16.msra.mxu1 %v503_v25  ;;  %v111_v3 = vld [vmem:[%s873_s1 + $0x2d8] sm:$0xff]  ;;  %v527_v4 = vpack.c.bf16 %v93_v1, %v92_v0  ;;  %v94_v6 = vld [vmem:[%s873_s1 + $0x250] sm:$0xff]  ;;  %v112_v8 = vld [vmem:[%s873_s1 + $0x2e0] sm:$0xff] }
  0x20   :  { %506 = vmatprep.subr.bf16.mxu1 %v505_v30  ;;  %v529_v5 = vpack.c.bf16 %v111_v3, %v110_v2  ;;  %v95_v7 = vld [vmem:[%s873_s1 + $0x258] sm:$0xff]  ;;  %v113_v9 = vld [vmem:[%s873_s1 + $0x2e8] sm:$0xff]  ;;  %v96_v12 = vld [vmem:[%s873_s1 + $0x260] sm:$0xff] }
  0x21   :  { %476 = vmatpush3.bf16.msra.mxu0 %v475_v34  ;;  %v531_v10 = vpack.c.bf16 %v95_v7, %v94_v6  ;;  %v533_v11 = vpack.c.bf16 %v113_v9, %v112_v8  ;;  %v97_v13 = vld [vmem:[%s873_s1 + $0x268] sm:$0xff]  ;;  %v114_v14 = vld [vmem:[%s873_s1 + $0x2f0] sm:$0xff]  ;;  %v115_v15 = vld [vmem:[%s873_s1 + $0x2f8] sm:$0xff] }
  0x22   :  { %510 = vmatprep.subr.bf16.mxu0 %v509_v36  ;;  %v535_v16 = vpack.c.bf16 %v97_v13, %v96_v12  ;;  %v537_v17 = vpack.c.bf16 %v115_v15, %v114_v14  ;;  %v98_v18 = vld [vmem:[%s873_s1 + $0x270] sm:$0xff]  ;;  %v99_v19 = vld [vmem:[%s873_s1 + $0x278] sm:$0xff]  ;;  %v18_v21 = vld [vmem:[%s874_s0 + $0x20] sm:$0xff] }
  0x23   :  { %508 = vmatpush3.bf16.msra.mxu1 %v507_v35  ;;  %v539_v20 = vpack.c.bf16 %v99_v19, %v98_v18  ;;  %v339_v23 = vld [vmem:[%s875_s2] ss:$0 sm:$0xff] }
  0x24   :  { %188 = vmatmul.mubr.f32.vlgmr.msra.gmra.mrb[0].mxu0 %v14_v41 }
  0x25   :  { %512 = vmatpush3.bf16.msra.mxu0 %v511_v42  ;;  %327 = vmatprep.mubr.f32.mxu0 %v19_v49 }
  0x26   :  { %258 = vmatmul.mubr.f32.vlgmr.msra.gmra.mrb[0].mxu1 %v16_v43  ;;  %514 = vmatprep.subr.bf16.mxu0 %v513_v44 }
  0x29   :  { %516 = vmatpush3.bf16.msra.mxu0 %v515_v50 }
  0x2a   :  { %518 = vmatprep.subr.bf16.mxu0 %v517_v51 }
  0x2d   :  { %520 = vmatpush3.bf16.msra.mxu0 %v519_v56 }
  0x2e   :  { %522 = vmatprep.subr.bf16.mxu0 %v521_v57 }
  0x31   :  { %524 = vmatpush3.bf16.msra.mxu0 %v523_v62 }
  0x32   :  { %526 = vmatprep.subr.bf16.mxu0 %v525_v63 }
  0x35   :  { %528 = vmatpush3.bf16.msra.mxu0 %v527_v4 }
  0x36   :  { %530 = vmatprep.subr.bf16.mxu0 %v529_v5 }
  0x39   :  { %532 = vmatpush3.bf16.msra.mxu0 %v531_v10 }
  0x3a   :  { %534 = vmatprep.subr.bf16.mxu0 %v533_v11 }
  0x3d   :  { %536 = vmatpush3.bf16.msra.mxu0 %v535_v16 }
  0x3e   :  { %538 = vmatprep.subr.bf16.mxu0 %v537_v17 }
  0x41   :  { %540 = vmatpush3.bf16.msra.mxu0 %v539_v20 }
  0x44   :  { %328 = vmatmul.mubr.f32.vlgmr.msra.gmra.mrb[2].mxu0 %v18_v21 }
  0xf7   :  { %v372_v22 = vpop.f32.mrb[0].mxu0 }
  0xf8   :  { %v373_v24 = vpop.f32.mrb[1].mxu0 }
  0xf9   :  { %v407_v25 = vpop.f32.mrb[0].mxu1  ;;  %v374_v26 = vadd.f32 %v373_v24, %v372_v22 }
  0xfa   :  { %v408_v27 = vpop.f32.mrb[1].mxu1 }
  0xfb   :  { %v409_v28 = vadd.f32 %v408_v27, %v407_v25  ;;  %v190_v29 = vadd.f32 %v374_v26, %v339_v23 }
  0xfd   :  { %v260_v30 = vadd.f32 %v409_v28, %v190_v29 }
 0x117   :  { %v442_v31 = vpop.f32.mrb[2].mxu0 }
 0x118   :  { %v443_v32 = vpop.f32.mrb[3].mxu0 }
 0x119   :  { %v444_v33 = vadd.f32 %v443_v32, %v442_v31 }
 0x11b   :  { %v330_v34 = vadd.f32 %v444_v33, %v260_v30 }
 0x11d   :  { %334 = vst.msk [vmem:[%s876_s3] sm:$0xff] %vm333_vm0, %v330_v34 }

// kernel: _lambda_.19
= control target key start
LH: loop header
LB: loop body
LE: loop exit
PB: predicated region body
PF: predicated region fallthrough
CT: control target
= control target key end

     0   :  { %s2294_s29 = smov 0   ;;  %s2683_s0 = inlined_call_operand.vmem [shape: f32[2,8,64], index: 0, kind: input, shape index: {}]   ;;  %s2684_s1 = inlined_call_operand.vmem [shape: f32[2,1,8], index: 1, kind: input, shape index: {}]   ;;  %s2685_s2 = inlined_call_operand.vmem [shape: f32[64,192], index: 2, kind: input, shape index: {}]   ;;  %s2686_s3 = inlined_call_operand.vmem [shape: f32[1,192], index: 3, kind: input, shape index: {}]   ;;  %s2687_s4 = inlined_call_operand.vmem [shape: f32[64,64], index: 4, kind: input, shape index: {}]   ;;  %s2688_s5 = inlined_call_operand.vmem [shape: f32[1,64], index: 5, kind: input, shape index: {}]   ;;  %s2689_s6 = inlined_call_operand.vmem [shape: f32[1,64], index: 6, kind: input, shape index: {}]   ;;  %s2690_s7 = inlined_call_operand.vmem [shape: f32[1,64], index: 7, kind: input, shape index: {}]   ;;  %s2691_s8 = inlined_call_operand.vmem [shape: f32[64,256], index: 8, kind: input, shape index: {}]   ;;  %s2692_s9 = inlined_call_operand.vmem [shape: f32[1,256], index: 9, kind: input, shape index: {}]   ;;  %s2693_s10 = inlined_call_operand.vmem [shape: f32[256,64], index: 10, kind: input, shape index: {}]   ;;  %s2694_s11 = inlined_call_operand.vmem [shape: f32[1,64], index: 11, kind: input, shape index: {}]   ;;  %s2695_s12 = inlined_call_operand.vmem [shape: f32[1,64], index: 12, kind: input, shape index: {}]   ;;  %s2696_s13 = inlined_call_operand.vmem [shape: f32[1,64], index: 13, kind: input, shape index: {}]   ;;  %s2697_s14 = inlined_call_operand.vmem [shape: f32[2,8,64], index: 14, kind: output, shape index: {}]  }
   0x1 LB: > { %s1918_s30 = sadd.s32 4294967295, %s2207_s29   ;;  %p1922_p0 = scmp.ge.s32.totalorder %s2207_s29, 1  ;;  %s2207_s29 = sphi %s2294_s29, %s24_s29  }
   0x2   : > { %p419_p1 = scmp.lt.s32.totalorder %s2207_s29, 3 }
   0x4   : > { %p420_p2 = pnand %p1922_p0, %p419_p1 }
   0x5   : > { %v480_v0 = vld [vmem:[%s2685_s2 + $0x8] sm:$0xff] (!%p420_p2)  ;;  %v482_v1 = vld [vmem:[%s2685_s2 + $0x18] sm:$0xff] (!%p420_p2)  ;;  %v479_v2 = vld [vmem:[%s2685_s2] sm:$0xff] (!%p420_p2)  ;;  %v2209_v7 = vmov (!%p420_p2), 0.0   ;;  %p466_p3 = scmp.lt.s32.totalorder (!%p420_p2), %s1918_s30, 1  ;;  %vm507_vm0 = vcmask (!%p420_p2), 523264   ;;  %v497_v26 = vlaneseq (!%p420_p2) }
   0x6   : > { %423 = sbr.rel (%p420_p2) target bundleno = 3684 (0xe64), region = 76  ;;  %v2083_v3 = vpack.c.bf16 (!%p420_p2), %v482_v1, %v480_v0  ;;  %v481_v4 = vld [vmem:[%s2685_s2 + $0x10] sm:$0xff] (!%p420_p2)  ;;  %v484_v5 = vld [vmem:[%s2685_s2 + $0x28] sm:$0xff] (!%p420_p2)  ;;  %v486_v6 = vld [vmem:[%s2685_s2 + $0x38] sm:$0xff] (!%p420_p2)  ;;  %575 = vmatprep.mubr.f32.mxu0 (!%p420_p2), %v2209_v7  ;;  %2025 = vmatprep.subr.mxu1 (!%p420_p2), %v2209_v7  ;;  %vm2210_vm1 = vmmov (!%p420_p2), 0   ;;  %s2211_s25 = smov (!%p420_p2), 64  }
   0x7   : > { %v2085_v8 = vpack.c.bf16 (!%p420_p2), %v481_v4, %v479_v2  ;;  %v2087_v9 = vpack.c.bf16 (!%p420_p2), %v486_v6, %v484_v5  ;;  %v483_v10 = vld [vmem:[%s2685_s2 + $0x20] sm:$0xff] (!%p420_p2)  ;;  %v485_v11 = vld [vmem:[%s2685_s2 + $0x30] sm:$0xff] (!%p420_p2)  ;;  %v488_v12 = vld [vmem:[%s2685_s2 + $0x48] sm:$0xff] (!%p420_p2)  ;;  %v2369_v27 = vshrl.u32 (!%p420_p2), %v497_v26, 7  ;;  %2027 = vmatprep.mubr.msk.f32.mxu1 (!%p420_p2), %vm2210_vm1, %v2209_v7  ;;  %s2212_s26 = smov (!%p420_p2), 48   ;;  %s2213_s27 = smov (!%p420_p2), 112  }
   0x8   : > { %2084 = vmatprep.subr.bf16.mxu0 (!%p420_p2), %v2083_v3  ;;  %v490_v13 = vld [vmem:[%s2685_s2 + $0x58] sm:$0xff] (!%p420_p2)  ;;  %v2089_v14 = vpack.c.bf16 (!%p420_p2), %v485_v11, %v483_v10  ;;  %v487_v16 = vld [vmem:[%s2685_s2 + $0x40] sm:$0xff] (!%p420_p2)  ;;  %v489_v17 = vld [vmem:[%s2685_s2 + $0x50] sm:$0xff] (!%p420_p2)  ;;  %vm593_vm2 = vcmask (!%p420_p2), 130048   ;;  %vm676_vm3 = vcmask (!%p420_p2), 64512   ;;  %s2214_s17 = smov (!%p420_p2), 32  }
   0x9   : > { %2086 = vmatpush1.bf16.msra.mxu0 (!%p420_p2), %v2085_v8  ;;  %v2091_v15 = vpack.c.bf16 (!%p420_p2), %v490_v13, %v488_v12  ;;  %v492_v18 = vld [vmem:[%s2685_s2 + $0x68] sm:$0xff] (!%p420_p2)  ;;  %v494_v19 = vld [vmem:[%s2685_s2 + $0x78] sm:$0xff] (!%p420_p2)  ;;  %v2093_v20 = vpack.c.bf16 (!%p420_p2), %v489_v17, %v487_v16  ;;  %v491_v22 = vld [vmem:[%s2685_s2 + $0x60] sm:$0xff] (!%p420_p2)  ;;  %v499_v28 = vsub.s32 (!%p420_p2), 0, %v2369_v27  ;;  %v503_v34 = vsub.s32 (!%p420_p2), 1, %v2369_v27  ;;  %s2215_s18 = smov (!%p420_p2), 96  }
   0xa   : > { %2088 = vmatprep.subr.bf16.mxu0 (!%p420_p2), %v2087_v9  ;;  %v2095_v21 = vpack.c.bf16 (!%p420_p2), %v494_v19, %v492_v18  ;;  %v493_v23 = vld [vmem:[%s2685_s2 + $0x70] sm:$0xff] (!%p420_p2)  ;;  %v495_v29 = vld [vmem:[%s2686_s3] sm:$0x3] (!%p420_p2)  ;;  %v2216_v61 = vmov (!%p420_p2), 0.0|0.0   ;;  %v585_v4 = vld [vmem:[%s2687_s4 + $0x18] sm:$0xff] (!%p420_p2)  ;;  %s2217_s28 = smov (!%p420_p2), 80  }
   0xb   : > { %v2097_v24 = vpack.c.bf16 (!%p420_p2), %v493_v23, %v491_v22  ;;  %v500_v30 = vrot.slane (!%p420_p2), %v495_v29, %v499_v28  ;;  %v504_v35 = vrot.slane (!%p420_p2), %v495_v29, %v503_v34  ;;  %v584_v3 = vld [vmem:[%s2687_s4 + $0x10] sm:$0xff] (!%p420_p2)  ;;  %v582_v9 = vld [vmem:[%s2687_s4] sm:$0xff] (!%p420_p2)  ;;  %v583_v10 = vld [vmem:[%s2687_s4 + $0x8] sm:$0xff] (!%p420_p2)  ;;  %s2218_s15 = smov (!%p420_p2), 16  }
   0xc   : > { %v2100_v6 = vpack.c.bf16 (!%p420_p2), %v585_v4, %v584_v3  ;;  %v2103_v11 = vpack.c.bf16 (!%p420_p2), %v583_v10, %v582_v9 }
   0xd   : > { %s2699_s30 = smov (!%p466_p3, %s1918_s30), 1  ;;  %2090 = vmatpush1.bf16.msra.mxu0 %v2089_v14 }
   0xe   : > { %2092 = vmatprep.subr.bf16.mxu0 %v2091_v15  ;;  %s1923_s19 = sshll.u32 %s2699_s30, 3  ;;  %s472_s16 = scalar_lea.vmem %s2684_s1, %s2699_s30 }
   0xf   : > { %s469_s22 = scalar_lea.vmem %s2683_s0, %s1923_s19  ;;  %v2408_v43 = vld [vmem:[%s472_s16] ss:$0 sm:$0xff]  ;;  %s476_s20 = scalar_lea.vmem %s2697_s14, %s1923_s19 }
  0x10   : > { %v2364_v25 = vld [vmem:[%s469_s22] sm:$0xff] }
  0x11   : > { %2094 = vmatpush1.bf16.msra.mxu0 %v2093_v20 }
  0x12   : > { %2096 = vmatprep.subr.bf16.mxu0 %v2095_v21 }
  0x15   : > { %2098 = vmatpush1.bf16.msra.mxu0 %v2097_v24 }
  0x16   : > { %2015 = vmatprep.subr.mxu0 %v2209_v7 }
  0x18   : > { %1925 = vmatmul.mubr.msk.f32.vlgmr.msra.gmra.mrb[0].mxu0 %vm507_vm0, %v2364_v25 }
  0x19   : > { %2017 = vmatprep.mubr.msk.f32.mxu0 %vm2210_vm1, %v2209_v7 }
  0xeb   : > { %v577_v31 = vpop.f32.mrb[0].mxu0 }
  0xec   : > { %v2381_v32 = vadd.f32 %v577_v31, %v500_v30  ;;  %v579_v33 = vpop.f32.mrb[1].mxu0 }
  0xed   : > { %v2394_v38 = vadd.f32 %v579_v33, %v504_v35 }
  0xee   : > { %591 = vrot.lane.b32.xlu1 %v2381_v32, %s2211_s25  ;;  %763 = vrot.lane.b32.xlu0 %v2381_v32, %s2212_s26 }
  0xf2   : > { %761 = vrot.lane.b32.xlu0 %v2381_v32, %s2213_s27 }
 0x160   : > { %v592_v36 = vpop.permute.xlu1 %591  ;;  %v764_v37 = vpop.permute.xlu0 %763 }
 0x161   : > { %2016 = vmatpush3.xpose.msk.msra.mxu0 %vm593_vm2, %v592_v36  ;;  %2026 = vmatpush3.xpose.msk.msra.mxu1 %vm593_vm2, %v764_v37 }
 0x162   : > { %2020 = vmatprep.subr.mxu0 %v2209_v7  ;;  %2030 = vmatprep.subr.mxu1 %v2209_v7 }
 0x164   : > { %2018 = vmatmul.mubr.msk.f32.vlgmr.msra.gmra.mrb[2].mxu0 %vm593_vm2, %v2381_v32  ;;  %v762_v39 = vpop.permute.xlu0 %761 }
 0x165   : > { %2021 = vmatpush3.msra.mxu0 %v2394_v38  ;;  %2028 = vmatmul.mubr.msk.f32.vlgmr.msra.gmra.mrb[0].mxu1 %vm593_vm2, %v762_v39 }
 0x166   : > { %2032 = vmatprep.mubr.msk.f32.mxu1 %vm2210_vm1, %v2209_v7  ;;  %2022 = vmatprep.mubr.msk.f32.mxu0 %vm2210_vm1, %v2209_v7 }
 0x167   : > { %2099 = vmatprep.subr.bf16.mxu0 %v2216_v61 }
 0x237   : > { %v664_v40 = vpop.f32.mrb[2].mxu0 }
 0x238   : > { %v2019_v41 = vpop.f32.mrb[3].mxu0  ;;  %v835_v42 = vpop.f32.mrb[0].mxu1  ;;  %v668_v44 = vmul.f32 0.25, %v664_v40  ;;  %v586_v40 = vld [vmem:[%s2687_s4 + $0x20] sm:$0xff] }
 0x239   : > { %v839_v45 = vmul.f32 0.25, %v835_v42  ;;  %v2029_v46 = vpop.f32.mrb[1].mxu1  ;;  %v587_v41 = vld [vmem:[%s2687_s4 + $0x28] sm:$0xff] }
 0x23a   : > { %v675_v49 = vadd.f32 %v2408_v43, %v668_v44  ;;  %v2106_v42 = vpack.c.bf16 %v587_v41, %v586_v40  ;;  %v1609_v41 = vld [vmem:[%s2691_s8 + $0x68] sm:$0xff] }
 0x23b   : > { %v840_v47 = vadd.f32 %v2408_v43, %v839_v45 }
 0x23c   : > { %v677_v50 = vsel %vm676_vm3, %v675_v49, -inf }
 0x23d   : > { %v841_v48 = vsel %vm676_vm3, %v840_v47, -inf }
 0x23e   : > { %842 = vmax.xlane.f32.xlu1 %v841_v48 }
 0x242   : > { %678 = vmax.xlane.f32.xlu1 %v677_v50 }
 0x2cb   : > { %v843_v51 = vpop.xlane.xlu1 %842 }
 0x2cc   : > { %v844_v52 = vsub.f32 %v840_v47, %v843_v51 }
 0x2ce   : > { %v845_v53 = vmul.f32 1.442695, %v844_v52 }
 0x2cf   : > { %v679_v54 = vpop.xlane.xlu1 %678 }
 0x2d0   : > { %2177 = vpow2.f32 %v845_v53  ;;  %v680_v55 = vsub.f32 %v675_v49, %v679_v54 }
 0x2d2   : > { %v681_v56 = vmul.f32 1.442695, %v680_v55 }
 0x2d4   : > { %2179 = vpow2.f32 %v681_v56 }
 0x2da   : > { %v2178_v57 = vpop.eup %2177 }
 0x2db   : > { %v847_v58 = vsel %vm676_vm3, %v2178_v57, 0.0 }
 0x2dc   : > { %848 = vadd.xlane.f32.xlu0 %v847_v58 }
 0x2de   : > { %v2180_v59 = vpop.eup %2179 }
 0x2df   : > { %v683_v60 = vsel %vm676_vm3, %v2180_v59, 0.0 }
 0x2e0   : > { %684 = vadd.xlane.f32.xlu1 %v683_v60  ;;  %v588_v60 = vld [vmem:[%s2687_s4 + $0x30] sm:$0xff] }
 0x2f1   : > { %1077 = vrot.lane.b32.xlu1 %v2381_v32, %s2214_s17 }
 0x2f2   : > { %853 = vrot.lane.b32.xlu0 %v2394_v38, %s2213_s27 }
 0x2f6   : > { %1075 = vrot.lane.b32.xlu0 %v2381_v32, %s2215_s18 }
 0x369   : > { %v849_v62 = vpop.xlane.xlu0 %848 }
 0x36a   : > { %2181 = vrcp.f32 %v849_v62 }
 0x36d   : > { %v854_v63 = vpop.permute.xlu0 %853  ;;  %v685_v0 = vpop.xlane.xlu1 %684 }
 0x36e   : > { %2183 = vrcp.f32 %v685_v0  ;;  %2031 = vmatpush3.msra.mxu1 %v854_v63 }
 0x36f   : > { %2102 = vmatprep.subr.bf16.mxu1 %v2216_v61 }
 0x371   : > { %v1078_v13 = vpop.permute.xlu1 %1077  ;;  %v1076_v15 = vpop.permute.xlu0 %1075 }
 0x374   : > { %v2182_v1 = vpop.eup %2181 }
 0x375   : > { %v851_v2 = vmul.f32 %v2182_v1, %v2178_v57 }
 0x377   : > { %2033 = vmatmul.mubr.msk.f32.vlgmr.msra.gmra.mrb[2].mxu1 %vm676_vm3, %v851_v2 }
 0x378   : > { %v2184_v5 = vpop.eup %2183  ;;  %2046 = vmatprep.mubr.msk.f32.mxu1 %vm2210_vm1, %v2209_v7  ;;  %2104 = vmatpush3.bf16.msra.mxu1 %v2103_v11 }
 0x379   : > { %v687_v8 = vmul.f32 %v2184_v5, %v2180_v59  ;;  %2054 = vmatprep.subr.mxu1 %v2209_v7 }
 0x37b   : > { %2023 = vmatmul.mubr.msk.f32.vlgmr.msra.gmra.mrb[4].mxu0 %vm676_vm3, %v687_v8  ;;  %v1943_v8 = vld [vmem:[%s2688_s5] ss:$0 sm:$0xff] }
 0x37c   : > { %2101 = vmatpush3.bf16.msra.mxu0 %v2100_v6  ;;  %2039 = vmatprep.mubr.msk.f32.mxu0 %vm2210_vm1, %v2209_v7 }
 0x37d   : > { %2049 = vmatprep.subr.mxu0 %v2209_v7 }
 0x44a   : > { %v925_v12 = vpop.f32.mrb[2].mxu1 }
 0x44b   : > { %v2034_v14 = vpop.f32.mrb[3].mxu1  ;;  %2040 = vmatmul.mubr.msk.f32.vlgmr.msra.gmra.mrb[6].mxu0 %vm593_vm2, %v925_v12 }
 0x44c   : > { %2050 = vmatpush3.xpose.msk.msra.mxu0 %vm593_vm2, %v1078_v13  ;;  %2051 = vmatprep.mubr.msk.f32.mxu0 %vm2210_vm1, %v2209_v7 }
 0x44d   : > { %2105 = vmatprep.subr.bf16.mxu0 %v2216_v61 }
 0x44e   : > { %v757_v16 = vpop.f32.mrb[4].mxu0 }
 0x44f   : > { %v2024_v17 = vpop.f32.mrb[5].mxu0  ;;  %2047 = vmatmul.mubr.msk.f32.vlgmr.msra.gmra.mrb[4].mxu1 %vm593_vm2, %v757_v16  ;;  %2052 = vmatmul.mubr.msk.f32.vlgmr.msra.gmra.mrb[8].mxu0 %vm593_vm2, %v1076_v15 }
 0x450   : > { %2056 = vmatprep.mubr.msk.f32.mxu1 %vm2210_vm1, %v2209_v7  ;;  %2063 = vmatprep.mubr.msk.f32.mxu0 %vm2210_vm1, %v2209_v7 }
 0x451   : > { %2107 = vmatpush3.bf16.msra.mxu0 %v2106_v42  ;;  %v1611_v42 = vld [vmem:[%s2691_s8 + $0x78] sm:$0xff] }
 0x452   : > { %2071 = vmatprep.subr.mxu0 %v2209_v7 }
 0x51e   : > { %v998_v18 = vpop.f32.mrb[6].mxu0 }
 0x51f   : > { %v2041_v19 = vpop.f32.mrb[7].mxu0 }
 0x520   : > { %v1599_v19 = vld [vmem:[%s2691_s8 + $0x18] sm:$0xff] }
 0x522   : > { %v1071_v20 = vpop.f32.mrb[4].mxu1  ;;  %v1149_v21 = vpop.f32.mrb[8].mxu0 }
 0x523   : > { %v1072_v22 = vadd.f32 %v1071_v20, %v998_v18  ;;  %v1153_v23 = vmul.f32 0.25, %v1149_v21  ;;  %v2048_v24 = vpop.f32.mrb[5].mxu1  ;;  %v2053_v26 = vpop.f32.mrb[9].mxu0  ;;  %v1597_v18 = vld [vmem:[%s2691_s8 + $0x8] sm:$0xff]  ;;  %v1598_v21 = vld [vmem:[%s2691_s8 + $0x10] sm:$0xff] }
 0x524   : > { %v2111_v20 = vpack.c.bf16 %v1599_v19, %v1597_v18  ;;  %v1603_v24 = vld [vmem:[%s2691_s8 + $0x38] sm:$0xff]  ;;  %v1742_v19 = vld [vmem:[%s2693_s10 + $0xd0] sm:$0xff] }
 0x525   : > { %v1154_v29 = vadd.f32 %v2408_v43, %v1153_v23  ;;  %v1601_v23 = vld [vmem:[%s2691_s8 + $0x28] sm:$0xff] }
 0x526   : > { %v2115_v26 = vpack.c.bf16 %v1603_v24, %v1601_v23  ;;  %v1727_v23 = vld [vmem:[%s2693_s10 + $0x58] sm:$0xff]  ;;  %v1744_v24 = vld [vmem:[%s2693_s10 + $0xe0] sm:$0xff] }
 0x527   : > { %v1155_v30 = vsel %vm676_vm3, %v1154_v29, -inf }
 0x528   : > { %1156 = vmax.xlane.f32.xlu0 %v1155_v30  ;;  %v1602_v30 = vld [vmem:[%s2691_s8 + $0x30] sm:$0xff] }
 0x53e   : > { %1166 = vrot.lane.b32.xlu0 %v2394_v38, %s2215_s18 }
 0x542   : > { %1316 = vrot.lane.b32.xlu0 %v2381_v32, %s2217_s28 }
 0x5b5   : > { %v1157_v31 = vpop.xlane.xlu0 %1156 }
 0x5b6   : > { %v1158_v33 = vsub.f32 %v1154_v29, %v1157_v31  ;;  %v1600_v29 = vld [vmem:[%s2691_s8 + $0x20] sm:$0xff] }
 0x5b7   : > { %v2117_v31 = vpack.c.bf16 %v1602_v30, %v1600_v29 }
 0x5b8   : > { %v1159_v35 = vmul.f32 1.442695, %v1158_v33  ;;  %v1605_v33 = vld [vmem:[%s2691_s8 + $0x48] sm:$0xff] }
 0x5b9   : > { %v1167_v36 = vpop.permute.xlu0 %1166 }
 0x5ba   : > { %2185 = vpow2.f32 %v1159_v35  ;;  %2055 = vmatpush3.msra.mxu1 %v1167_v36  ;;  %v1607_v35 = vld [vmem:[%s2691_s8 + $0x58] sm:$0xff] }
 0x5bb   : > { %2066 = vmatprep.subr.mxu1 %v2209_v7  ;;  %v2119_v36 = vpack.c.bf16 %v1607_v35, %v1605_v33  ;;  %v1729_v33 = vld [vmem:[%s2693_s10 + $0x68] sm:$0xff]  ;;  %v1746_v35 = vld [vmem:[%s2693_s10 + $0xf0] sm:$0xff] }
 0x5c4   : > { %v2186_v37 = vpop.eup %2185 }
 0x5c5   : > { %v1161_v39 = vsel %vm676_vm3, %v2186_v37, 0.0 }
 0x5c6   : > { %1162 = vadd.xlane.f32.xlu1 %v1161_v39  ;;  %v1606_v39 = vld [vmem:[%s2691_s8 + $0x50] sm:$0xff] }
 0x5d7   : > { %1318 = vrot.lane.b32.xlu1 %v2381_v32, %s2218_s15  ;;  %v1317_v32 = vpop.permute.xlu0 %1316 }
 0x653   : > { %v1163_v44 = vpop.xlane.xlu1 %1162 }
 0x654   : > { %2187 = vrcp.f32 %v1163_v44  ;;  %v1608_v44 = vld [vmem:[%s2691_s8 + $0x60] sm:$0xff] }
 0x657   : > { %v1319_v47 = vpop.permute.xlu1 %1318 }
 0x65e   : > { %v2188_v45 = vpop.eup %2187 }
 0x65f   : > { %v1165_v46 = vmul.f32 %v2188_v45, %v2186_v37  ;;  %v1604_v37 = vld [vmem:[%s2691_s8 + $0x40] sm:$0xff]  ;;  %v2123_v45 = vpack.c.bf16 %v1611_v42, %v1609_v41  ;;  %v1731_v41 = vld [vmem:[%s2693_s10 + $0x78] sm:$0xff] }
 0x660   : > { %v2121_v40 = vpack.c.bf16 %v1606_v39, %v1604_v37 }
 0x661   : > { %2057 = vmatmul.mubr.msk.f32.vlgmr.msra.gmra.mrb[6].mxu1 %vm676_vm3, %v1165_v46  ;;  %v1610_v46 = vld [vmem:[%s2691_s8 + $0x70] sm:$0xff] }
 0x662   : > { %2067 = vmatpush3.xpose.msk.msra.mxu1 %vm593_vm2, %v1319_v47  ;;  %2068 = vmatprep.mubr.msk.f32.mxu1 %vm2210_vm1, %v2209_v7  ;;  %v2125_v47 = vpack.c.bf16 %v1610_v46, %v1608_v44  ;;  %v1612_v44 = vld [vmem:[%s2692_s9] sm:$0x3] }
 0x663   : > { %2108 = vmatprep.subr.bf16.mxu1 %v2216_v61  ;;  %v1621_v46 = vrot.slane %v1612_v44, %v503_v34 }
 0x665   : > { %2069 = vmatmul.mubr.msk.f32.vlgmr.msra.gmra.mrb[8].mxu1 %vm593_vm2, %v1317_v32  ;;  %v1732_v32 = vld [vmem:[%s2693_s10 + $0x80] sm:$0xff] }
 0x666   : > { %2080 = vmatprep.mubr.msk.f32.mxu1 %vm2210_vm1, %v2209_v7 }
 0x734   : > { %v1238_v48 = vpop.f32.mrb[6].mxu1 }
 0x735   : > { %v2058_v49 = vpop.f32.mrb[7].mxu1  ;;  %2064 = vmatmul.mubr.msk.f32.vlgmr.msra.gmra.mrb[10].mxu0 %vm593_vm2, %v1238_v48  ;;  %v1733_v48 = vld [vmem:[%s2693_s10 + $0x88] sm:$0xff] }
 0x736   : > { %2073 = vmatprep.mubr.msk.f32.mxu0 %vm2210_vm1, %v2209_v7  ;;  %v1716_v49 = vld [vmem:[%s2693_s10] sm:$0xff] }
 0x738   : > { %v1390_v50 = vpop.f32.mrb[8].mxu1 }
 0x739   : > { %v1394_v51 = vmul.f32 0.25, %v1390_v50  ;;  %v2070_v52 = vpop.f32.mrb[9].mxu1  ;;  %v2127_v50 = vpack.c.bf16 %v1733_v48, %v1732_v32 }
 0x73b   : > { %v1395_v53 = vadd.f32 %v2408_v43, %v1394_v51  ;;  %v589_v43 = vld [vmem:[%s2687_s4 + $0x38] sm:$0xff]  ;;  %v1717_v51 = vld [vmem:[%s2693_s10 + $0x8] sm:$0xff] }
 0x73c   : > { %v2109_v61 = vpack.c.bf16 %v589_v43, %v588_v60  ;;  %v2129_v52 = vpack.c.bf16 %v1717_v51, %v1716_v49 }
 0x73d   : > { %v1396_v54 = vsel %vm676_vm3, %v1395_v53, -inf }
 0x73e   : > { %1397 = vmax.xlane.f32.xlu1 %v1396_v54  ;;  %2110 = vmatpush3.bf16.msra.mxu1 %v2109_v61  ;;  %v1734_v61 = vld [vmem:[%s2693_s10 + $0x90] sm:$0xff] }
 0x73f   : > { %2128 = vmatprep.subr.bf16.mxu1 %v2127_v50 }
 0x7cb   : > { %v1398_v55 = vpop.xlane.xlu1 %1397 }
 0x7cc   : > { %v1399_v56 = vsub.f32 %v1395_v53, %v1398_v55 }
 0x7ce   : > { %v1400_v57 = vmul.f32 1.442695, %v1399_v56 }
 0x7d0   : > { %2189 = vpow2.f32 %v1400_v57  ;;  %v1944_v57 = vld [vmem:[%s2689_s6] ss:$0 sm:$0xff] }
 0x7da   : > { %v2190_v58 = vpop.eup %2189 }
 0x7db   : > { %v1402_v59 = vsel %vm676_vm3, %v2190_v58, 0.0 }
 0x7dc   : > { %1403 = vadd.xlane.f32.xlu0 %v1402_v59  ;;  %v1945_v59 = vld [vmem:[%s2690_s7] ss:$0 sm:$0xff] }
 0x7f2   : > { %1407 = vrot.lane.b32.xlu0 %v2394_v38, %s2217_s28 }
 0x808   : > { %v1311_v62 = vpop.f32.mrb[10].mxu0 }
 0x809   : > { %v1315_v63 = vadd.f32 %v1311_v62, %v1072_v22  ;;  %v2065_v0 = vpop.f32.mrb[11].mxu0  ;;  %v1735_v62 = vld [vmem:[%s2693_s10 + $0x98] sm:$0xff] }
 0x80a   : > { %v1718_v0 = vld [vmem:[%s2693_s10 + $0x10] sm:$0xff] }
 0x869   : > { %v1404_v1 = vpop.xlane.xlu0 %1403 }
 0x86a   : > { %2191 = vrcp.f32 %v1404_v1  ;;  %v1719_v1 = vld [vmem:[%s2693_s10 + $0x18] sm:$0xff] }
 0x86d   : > { %v1408_v2 = vpop.permute.xlu0 %1407 }
 0x86e   : > { %2072 = vmatpush3.msra.mxu0 %v1408_v2  ;;  %v2133_v2 = vpack.c.bf16 %v1719_v1, %v1718_v0 }
 0x86f   : > { %2112 = vmatprep.subr.bf16.mxu0 %v2111_v20  ;;  %v1743_v20 = vld [vmem:[%s2693_s10 + $0xd8] sm:$0xff] }
 0x874   : > { %v2192_v3 = vpop.eup %2191 }
 0x875   : > { %v1406_v4 = vmul.f32 %v2192_v3, %v2190_v58  ;;  %v1736_v3 = vld [vmem:[%s2693_s10 + $0xa0] sm:$0xff] }
 0x877   : > { %2074 = vmatmul.mubr.msk.f32.vlgmr.msra.gmra.mrb[12].mxu0 %vm676_vm3, %v1406_v4  ;;  %v1737_v4 = vld [vmem:[%s2693_s10 + $0xa8] sm:$0xff] }
 0x878   : > { %1691 = vmatprep.mubr.f32.mxu0 %v2209_v7 }
 0x94a   : > { %v1479_v38 = vpop.f32.mrb[12].mxu0 }
 0x94b   : > { %v2075_v5 = vpop.f32.mrb[13].mxu0  ;;  %2081 = vmatmul.mubr.msk.f32.vlgmr.msra.gmra.mrb[10].mxu1 %vm593_vm2, %v1479_v38  ;;  %v2135_v38 = vpack.c.bf16 %v1737_v4, %v1736_v3 }
 0x94c   : > { %2130 = vmatpush3.bf16.msra.mxu1 %v2129_v52  ;;  %v1720_v5 = vld [vmem:[%s2693_s10 + $0x20] sm:$0xff] }
 0xa1e   : > { %v1552_v6 = vpop.f32.mrb[10].mxu1 }
 0xa1f   : > { %v1556_v9 = vadd.f32 %v1552_v6, %v1315_v63  ;;  %v2082_v10 = vpop.f32.mrb[11].mxu1  ;;  %v2131_v63 = vpack.c.bf16 %v1735_v62, %v1734_v61  ;;  %v1721_v6 = vld [vmem:[%s2693_s10 + $0x28] sm:$0xff] }
 0xa20   : > { %v1739_v10 = vld [vmem:[%s2693_s10 + $0xb8] sm:$0xff] }
 0xa21   : > { %v1564_v11 = vadd.f32 %v1943_v8, %v1556_v9  ;;  %2132 = vmatprep.subr.bf16.mxu1 %v2131_v63  ;;  %v2137_v8 = vpack.c.bf16 %v1721_v6, %v1720_v5  ;;  %v1738_v9 = vld [vmem:[%s2693_s10 + $0xb0] sm:$0xff] }
 0xa22   : > { %2134 = vmatpush3.bf16.msra.mxu1 %v2133_v2  ;;  %v1947_v2 = vld [vmem:[%s2694_s11] ss:$0 sm:$0xff] }
 0xa23   : > { %v1565_v12 = vadd.f32 %v1564_v11, %v2364_v25  ;;  %v1596_v25 = vld [vmem:[%s2691_s8] sm:$0xff]  ;;  %2136 = vmatprep.subr.bf16.mxu1 %v2135_v38  ;;  %v2139_v11 = vpack.c.bf16 %v1739_v10, %v1738_v9 }
 0xa24   : > { %v2113_v22 = vpack.c.bf16 %v1598_v21, %v1596_v25  ;;  %v2147_v21 = vpack.c.bf16 %v1743_v20, %v1742_v19 }
 0xa25   : > { %v1568_v13 = vsel %vm507_vm0, %v1565_v12, 0.0 }
 0xa26   : > { %1569 = vadd.xlane.f32.xlu1 %v1568_v13  ;;  %2114 = vmatpush1.bf16.msra.mxu0 %v2113_v22  ;;  %v1723_v13 = vld [vmem:[%s2693_s10 + $0x38] sm:$0xff]  ;;  %v1726_v22 = vld [vmem:[%s2693_s10 + $0x50] sm:$0xff] }
 0xa27   : > { %2116 = vmatprep.subr.bf16.mxu0 %v2115_v26  ;;  %2138 = vmatpush3.bf16.msra.mxu1 %v2137_v8  ;;  %v1745_v26 = vld [vmem:[%s2693_s10 + $0xe8] sm:$0xff]  ;;  %v2149_v29 = vpack.c.bf16 %v1727_v23, %v1726_v22 }
 0xa28   : > { %2140 = vmatprep.subr.bf16.mxu1 %v2139_v11  ;;  %v2151_v30 = vpack.c.bf16 %v1745_v26, %v1744_v24 }
 0xa2a   : > { %2118 = vmatpush1.bf16.msra.mxu0 %v2117_v31  ;;  %v1728_v31 = vld [vmem:[%s2693_s10 + $0x60] sm:$0xff] }
 0xa2b   : > { %2120 = vmatprep.subr.bf16.mxu0 %v2119_v36  ;;  %v1747_v36 = vld [vmem:[%s2693_s10 + $0xf8] sm:$0xff]  ;;  %v2153_v37 = vpack.c.bf16 %v1729_v33, %v1728_v31 }
 0xa2c   : > { %v2155_v39 = vpack.c.bf16 %v1747_v36, %v1746_v35 }
 0xa2e   : > { %2122 = vmatpush1.bf16.msra.mxu0 %v2121_v40  ;;  %v1730_v40 = vld [vmem:[%s2693_s10 + $0x70] sm:$0xff] }
 0xa2f   : > { %2124 = vmatprep.subr.bf16.mxu0 %v2123_v45  ;;  %v2157_v42 = vpack.c.bf16 %v1731_v41, %v1730_v40  ;;  %v1617_v45 = vrot.slane %v1612_v44, %v499_v28 }
 0xa32   : > { %2126 = vmatpush1.bf16.msra.mxu0 %v2125_v47 }
 0xab3   : > { %v1570_v14 = vpop.xlane.xlu1 %1569 }
 0xab4   : > { %v1572_v15 = vmul.f32 0.015625, %v1570_v14  ;;  %v1740_v14 = vld [vmem:[%s2693_s10 + $0xc0] sm:$0xff] }
 0xab6   : > { %v1573_v7 = vsub.f32 %v1565_v12, %v1572_v15  ;;  %v1722_v12 = vld [vmem:[%s2693_s10 + $0x30] sm:$0xff] }
 0xab7   : > { %v2141_v15 = vpack.c.bf16 %v1723_v13, %v1722_v12 }
 0xab8   : > { %v1574_v16 = vmul.f32 %v1573_v7, %v1573_v7 }
 0xab9   : > { %2142 = vmatpush3.bf16.msra.mxu1 %v2141_v15 }
 0xaba   : > { %v1575_v17 = vsel %vm507_vm0, %v1574_v16, 0.0  ;;  %v1724_v16 = vld [vmem:[%s2693_s10 + $0x40] sm:$0xff] }
 0xabb   : > { %1576 = vadd.xlane.f32.xlu1 %v1575_v17  ;;  %v1725_v17 = vld [vmem:[%s2693_s10 + $0x48] sm:$0xff] }
 0xabc   : > { %v2145_v25 = vpack.c.bf16 %v1725_v17, %v1724_v16  ;;  %v1949_v17 = vld [vmem:[%s2696_s13] ss:$0 sm:$0xff] }
 0xb48   : > { %v1577_v53 = vpop.xlane.xlu1 %1576 }
 0xb49   : > { %v1578_v54 = vmul.f32 0.015625, %v1577_v53 }
 0xb4b   : > { %v1579_v55 = vadd.f32 1e-12, %v1578_v54 }
 0xb4d   : > { %2193 = vrsqrt.f32 %v1579_v55 }
 0xb57   : > { %v2194_v56 = vpop.eup %2193 }
 0xb58   : > { %v1581_v58 = vmul.f32 %v2194_v56, %v1573_v7  ;;  %v1741_v7 = vld [vmem:[%s2693_s10 + $0xc8] sm:$0xff] }
 0xb59   : > { %v2143_v18 = vpack.c.bf16 %v1741_v7, %v1740_v14 }
 0xb5a   : > { %v1588_v60 = vmul.f32 %v1944_v57, %v1581_v58 }
 0xb5b   : > { %2144 = vmatprep.subr.bf16.mxu1 %v2143_v18 }
 0xb5c   : > { %v2567_v43 = vadd.f32 %v1945_v59, %v1588_v60  ;;  %2146 = vmatpush3.bf16.msra.mxu1 %v2145_v25 }
 0xb5d   : > { %2148 = vmatprep.subr.bf16.mxu1 %v2147_v21 }
 0xb5e   : > { %1946 = vmatmul.mubr.msk.f32.vlgmr.msra.gmra.mrb[14].mxu0 %vm507_vm0, %v2567_v43 }
 0xb60   : > { %2150 = vmatpush3.bf16.msra.mxu1 %v2149_v29 }
 0xb61   : > { %2152 = vmatprep.subr.bf16.mxu1 %v2151_v30 }
 0xb64   : > { %2154 = vmatpush3.bf16.msra.mxu1 %v2153_v37 }
 0xb65   : > { %2156 = vmatprep.subr.bf16.mxu1 %v2155_v39 }
 0xb68   : > { %2158 = vmatpush3.bf16.msra.mxu1 %v2157_v42 }
 0xc31   : > { %v1693_v47 = vpop.f32.mrb[14].mxu0 }
 0xc32   : > { %v1694_v32 = vadd.f32 %v1693_v47, %v1617_v45  ;;  %v1695_v48 = vpop.f32.mrb[15].mxu0 }
 0xc33   : > { %v1696_v49 = vadd.f32 %v1695_v48, %v1621_v46 }
 0xc34   : > { %v1700_v50 = vmul.f32 0.044715, %v1694_v32  ;;  %v1698_v62 = vmul.f32 0.5, %v1694_v32 }
 0xc35   : > { %v1701_v51 = vmul.f32 0.044715, %v1696_v49  ;;  %v1699_v34 = vmul.f32 0.5, %v1696_v49 }
 0xc36   : > { %v1702_v52 = vmul.f32 %v1700_v50, %v1694_v32 }
 0xc37   : > { %v1703_v53 = vmul.f32 %v1701_v51, %v1696_v49 }
 0xc38   : > { %v1704_v54 = vmul.f32 %v1702_v52, %v1694_v32 }
 0xc39   : > { %v1705_v55 = vmul.f32 %v1703_v53, %v1696_v49 }
 0xc3a   : > { %v1706_v56 = vadd.f32 %v1704_v54, %v1694_v32 }
 0xc3b   : > { %v1707_v57 = vadd.f32 %v1705_v55, %v1696_v49 }
 0xc3c   : > { %v1708_v58 = vmul.f32 0.7978846, %v1706_v56 }
 0xc3d   : > { %v1709_v59 = vmul.f32 0.7978846, %v1707_v57 }
 0xc3e   : > { %2195 = vtanh.f32 %v1708_v58 }
 0xc3f   : > { %2197 = vtanh.f32 %v1709_v59 }
 0xc48   : > { %v2196_v28 = vpop.eup %2195 }
 0xc49   : > { %v2198_v60 = vpop.eup %2197  ;;  %v1712_v27 = vadd.f32 1.0, %v2196_v28 }
 0xc4a   : > { %v1713_v61 = vadd.f32 1.0, %v2198_v60 }
 0xc4b   : > { %v1714_v0 = vmul.f32 %v1712_v27, %v1698_v62 }
 0xc4c   : > { %v1715_v63 = vmul.f32 %v1713_v61, %v1699_v34 }
 0xc4e   : > { %1819 = vmatprep.mubr.f32.mxu1 %v1715_v63 }
 0xc4f   : > { %1820 = vmatmul.mubr.f32.vlgmr.msra.gmra.mrb[12].mxu1 %v1714_v0 }
 0xd22   : > { %v2012_v1 = vpop.f32.mrb[12].mxu1 }
 0xd23   : > { %v2013_v3 = vpop.f32.mrb[13].mxu1 }
 0xd24   : > { %v2014_v4 = vadd.f32 %v2013_v3, %v2012_v1 }
 0xd26   : > { %v1822_v38 = vadd.f32 %v2014_v4, %v1947_v2 }
 0xd28   : > { %v1825_v5 = vadd.f32 %v1822_v38, %v2567_v43  ;;  %v1948_v43 = vld [vmem:[%s2695_s12] ss:$0 sm:$0xff] }
 0xd2a   : > { %v1828_v6 = vsel %vm507_vm0, %v1825_v5, 0.0 }
 0xd2b   : > { %1829 = vadd.xlane.f32.xlu1 %v1828_v6 }
 0xdb8   : > { %v1830_v8 = vpop.xlane.xlu1 %1829 }
 0xdb9   : > { %v1831_v9 = vmul.f32 0.015625, %v1830_v8 }
 0xdbb   : > { %v1832_v10 = vsub.f32 %v1825_v5, %v1831_v9 }
 0xdbd   : > { %v1833_v11 = vmul.f32 %v1832_v10, %v1832_v10 }
 0xdbf   : > { %v1834_v12 = vsel %vm507_vm0, %v1833_v11, 0.0 }
 0xdc0   : > { %1835 = vadd.xlane.f32.xlu1 %v1834_v12 }
 0xe4d   : > { %v1836_v13 = vpop.xlane.xlu1 %1835 }
 0xe4e   : > { %v1837_v14 = vmul.f32 0.015625, %v1836_v13 }
 0xe50   : > { %v1838_v15 = vadd.f32 1e-12, %v1837_v14 }
 0xe52   : > { %2199 = vrsqrt.f32 %v1838_v15 }
 0xe5c   : > { %v2200_v7 = vpop.eup %2199 }
 0xe5d   : > { %v1840_v16 = vmul.f32 %v2200_v7, %v1832_v10 }
 0xe5f   : > { %v1847_v18 = vmul.f32 %v1948_v43, %v1840_v16 }
 0xe61   : > { %v1854_v19 = vadd.f32 %v1949_v17, %v1847_v18 }
 0xe63   : > { %1855 = vst.msk [vmem:[%s476_s20] sm:$0xff] %vm507_vm0, %v1854_v19 }
 0xe64 PF: > { %s24_s29 = sadd.s32 1, %s2207_s29  }
 0xe65   : > { %p21_p4 = scmp.ge.s32.totalorder %s24_s29, 4  }
 0xe67   :  { %23 = sbr.rel (!%p21_p4) target bundleno = 1 (0x1), region = 109 }

// kernel: _lambda_.17
= control target key start
LH: loop header
LB: loop body
LE: loop exit
PB: predicated region body
PF: predicated region fallthrough
CT: control target
= control target key end

     0   :  { %vm18_vm0 = vcmask 523264   ;;  %vm22_vm1 = vcmask 517120   ;;  %s119_s0 = inlined_call_operand.vmem [shape: f32[10,64], index: 0, kind: input, shape index: {}]   ;;  %s120_s1 = inlined_call_operand.vmem [shape: f32[1,64], index: 1, kind: input, shape index: {}]   ;;  %s121_s2 = inlined_call_operand.vmem [shape: f32[1,64], index: 2, kind: input, shape index: {}]   ;;  %s122_s3 = inlined_call_operand.vmem [shape: f32[10,64], index: 3, kind: output, shape index: {}]  }
   0x1   :  { %v14_v0 = vld [vmem:[%s119_s0] sm:$0xff]  ;;  %v15_v1 = vld [vmem:[%s119_s0 + $0x8] sm:$0x3] }
   0x2   :  { %v19_v2 = vsel %vm18_vm0, %v14_v0, 0.0  ;;  %v23_v3 = vsel %vm22_vm1, %v15_v1, 0.0  ;;  %v69_v21 = vld [vmem:[%s120_s1] ss:$0 sm:$0xff] }
   0x3   :  { %20 = vadd.xlane.f32.xlu0 %v19_v2  ;;  %v70_v23 = vld [vmem:[%s121_s2] ss:$0 sm:$0xff] }
   0x7   :  { %24 = vadd.xlane.f32.xlu0 %v23_v3 }
  0x90   :  { %v21_v4 = vpop.xlane.xlu0 %20 }
  0x91   :  { %v27_v5 = vmul.f32 0.015625, %v21_v4 }
  0x93   :  { %v29_v6 = vsub.f32 %v14_v0, %v27_v5 }
  0x94   :  { %v25_v7 = vpop.xlane.xlu0 %24 }
  0x95   :  { %v28_v8 = vmul.f32 0.015625, %v25_v7  ;;  %v31_v9 = vmul.f32 %v29_v6, %v29_v6 }
  0x97   :  { %v30_v10 = vsub.f32 %v15_v1, %v28_v8  ;;  %v33_v11 = vsel %vm18_vm0, %v31_v9, 0.0 }
  0x98   :  { %34 = vadd.xlane.f32.xlu1 %v33_v11 }
  0x99   :  { %v32_v12 = vmul.f32 %v30_v10, %v30_v10 }
  0x9b   :  { %v36_v13 = vsel %vm22_vm1, %v32_v12, 0.0 }
  0x9c   :  { %37 = vadd.xlane.f32.xlu1 %v36_v13 }
 0x125   :  { %v35_v14 = vpop.xlane.xlu1 %34 }
 0x126   :  { %v39_v15 = vmul.f32 0.015625, %v35_v14 }
 0x128   :  { %v41_v16 = vadd.f32 1e-06, %v39_v15 }
 0x129   :  { %v38_v17 = vpop.xlane.xlu1 %37 }
 0x12a   :  { %71 = vrsqrt.f32 %v41_v16  ;;  %v40_v18 = vmul.f32 0.015625, %v38_v17 }
 0x12c   :  { %v42_v19 = vadd.f32 1e-06, %v40_v18 }
 0x12e   :  { %73 = vrsqrt.f32 %v42_v19 }
 0x134   :  { %v72_v20 = vpop.eup %71 }
 0x135   :  { %v45_v22 = vmul.f32 %v72_v20, %v29_v6 }
 0x137   :  { %v53_v24 = vmul.f32 %v69_v21, %v45_v22 }
 0x138   :  { %v74_v25 = vpop.eup %73 }
 0x139   :  { %v61_v26 = vadd.f32 %v70_v23, %v53_v24  ;;  %v46_v27 = vmul.f32 %v74_v25, %v30_v10 }
 0x13b   :  { %63 = vst.msk [vmem:[%s122_s3] sm:$0xff] %vm18_vm0, %v61_v26  ;;  %v54_v28 = vmul.f32 %v69_v21, %v46_v27 }
 0x13d   :  { %v62_v29 = vadd.f32 %v70_v23, %v54_v28 }
 0x13f   :  { %64 = vst.msk [vmem:[%s122_s3 + $0x8] sm:$0x3] %vm22_vm1, %v62_v29 }

// kernel: _lambda_.15
= control target key start
LH: loop header
LB: loop body
LE: loop exit
PB: predicated region body
PF: predicated region fallthrough
CT: control target
= control target key end

     0   :  { %s2239_s25 = smov 0   ;;  %s2616_s0 = inlined_call_operand.vmem [shape: f32[2,5,64], index: 0, kind: input, shape index: {}]   ;;  %s2617_s1 = inlined_call_operand.vmem [shape: f32[1,64], index: 1, kind: input, shape index: {}]   ;;  %s2618_s2 = inlined_call_operand.vmem [shape: f32[1,64], index: 2, kind: input, shape index: {}]   ;;  %s2619_s3 = inlined_call_operand.vmem [shape: f32[64,192], index: 3, kind: input, shape index: {}]   ;;  %s2620_s4 = inlined_call_operand.vmem [shape: f32[1,192], index: 4, kind: input, shape index: {}]   ;;  %s2621_s5 = inlined_call_operand.vmem [shape: f32[64,64], index: 5, kind: input, shape index: {}]   ;;  %s2622_s6 = inlined_call_operand.vmem [shape: f32[1,64], index: 6, kind: input, shape index: {}]   ;;  %s2623_s7 = inlined_call_operand.vmem [shape: f32[1,64], index: 7, kind: input, shape index: {}]   ;;  %s2624_s8 = inlined_call_operand.vmem [shape: f32[1,64], index: 8, kind: input, shape index: {}]   ;;  %s2625_s9 = inlined_call_operand.vmem [shape: f32[64,256], index: 9, kind: input, shape index: {}]   ;;  %s2626_s10 = inlined_call_operand.vmem [shape: f32[1,256], index: 10, kind: input, shape index: {}]   ;;  %s2627_s11 = inlined_call_operand.vmem [shape: f32[256,64], index: 11, kind: input, shape index: {}]   ;;  %s2628_s12 = inlined_call_operand.vmem [shape: f32[1,64], index: 12, kind: input, shape index: {}]   ;;  %s2629_s13 = inlined_call_operand.vmem [shape: f32[2,5,64], index: 13, kind: output, shape index: {}]  }
   0x1 LB: > { %s1865_s26 = sadd.s32 4294967295, %s2157_s25   ;;  %p1869_p0 = scmp.ge.s32.totalorder %s2157_s25, 1  ;;  %s2157_s25 = sphi %s2239_s25, %s23_s25  }
   0x2   : > { %p386_p1 = scmp.lt.s32.totalorder %s2157_s25, 3 }
   0x4   : > { %p387_p2 = pnand %p1869_p0, %p386_p1 }
   0x5   : > { %p428_p3 = scmp.lt.s32.totalorder (!%p387_p2), %s1865_s26, 1  ;;  %vm439_vm0 = vcmask (!%p387_p2), 520192   ;;  %v469_v7 = vld [vmem:[%s2619_s3 + $0x8] sm:$0xff] (!%p387_p2)  ;;  %v471_v8 = vld [vmem:[%s2619_s3 + $0x18] sm:$0xff] (!%p387_p2)  ;;  %v468_v10 = vld [vmem:[%s2619_s3] sm:$0xff] (!%p387_p2)  ;;  %v2159_v20 = vmov (!%p387_p2), 0.0   ;;  %v486_v41 = vlaneseq (!%p387_p2) }
   0x6   : > { %390 = sbr.rel (%p387_p2) target bundleno = 3671 (0xe57), region = 72  ;;  %v2033_v9 = vpack.c.bf16 (!%p387_p2), %v471_v8, %v469_v7  ;;  %v470_v11 = vld [vmem:[%s2619_s3 + $0x10] sm:$0xff] (!%p387_p2)  ;;  %v473_v13 = vld [vmem:[%s2619_s3 + $0x28] sm:$0xff] (!%p387_p2)  ;;  %v475_v14 = vld [vmem:[%s2619_s3 + $0x38] sm:$0xff] (!%p387_p2)  ;;  %564 = vmatprep.mubr.f32.mxu0 (!%p387_p2), %v2159_v20  ;;  %1975 = vmatprep.subr.mxu1 (!%p387_p2), %v2159_v20  ;;  %vm496_vm1 = vcmask (!%p387_p2), 523264   ;;  %vm2160_vm2 = vmmov (!%p387_p2), 0  }
   0x7   : > { %v2035_v12 = vpack.c.bf16 (!%p387_p2), %v470_v11, %v468_v10  ;;  %v472_v15 = vld [vmem:[%s2619_s3 + $0x20] sm:$0xff] (!%p387_p2)  ;;  %v2037_v16 = vpack.c.bf16 (!%p387_p2), %v475_v14, %v473_v13  ;;  %v474_v17 = vld [vmem:[%s2619_s3 + $0x30] sm:$0xff] (!%p387_p2)  ;;  %v477_v18 = vld [vmem:[%s2619_s3 + $0x48] sm:$0xff] (!%p387_p2)  ;;  %v2319_v42 = vshrl.u32 (!%p387_p2), %v486_v41, 7  ;;  %1977 = vmatprep.mubr.msk.f32.mxu1 (!%p387_p2), %vm2160_vm2, %v2159_v20  ;;  %s2161_s24 = smov (!%p387_p2), 64   ;;  %s2162_s28 = smov (!%p387_p2), 48  }
   0x8   : > { %2034 = vmatprep.subr.bf16.mxu0 (!%p387_p2), %v2033_v9  ;;  %v479_v19 = vld [vmem:[%s2619_s3 + $0x58] sm:$0xff] (!%p387_p2)  ;;  %v2039_v21 = vpack.c.bf16 (!%p387_p2), %v474_v17, %v472_v15  ;;  %v476_v23 = vld [vmem:[%s2619_s3 + $0x40] sm:$0xff] (!%p387_p2)  ;;  %v478_v24 = vld [vmem:[%s2619_s3 + $0x50] sm:$0xff] (!%p387_p2)  ;;  %s2163_s29 = smov (!%p387_p2), 112   ;;  %vm582_vm3 = vcmask (!%p387_p2), 130048   ;;  %vm674_vm4 = vcmask (!%p387_p2), 1044480  }
   0x9   : > { %2036 = vmatpush1.bf16.msra.mxu0 (!%p387_p2), %v2035_v12  ;;  %v2041_v22 = vpack.c.bf16 (!%p387_p2), %v479_v19, %v477_v18  ;;  %v481_v25 = vld [vmem:[%s2619_s3 + $0x68] sm:$0xff] (!%p387_p2)  ;;  %v483_v26 = vld [vmem:[%s2619_s3 + $0x78] sm:$0xff] (!%p387_p2)  ;;  %v2043_v27 = vpack.c.bf16 (!%p387_p2), %v478_v24, %v476_v23  ;;  %v480_v29 = vld [vmem:[%s2619_s3 + $0x60] sm:$0xff] (!%p387_p2)  ;;  %v488_v43 = vsub.s32 (!%p387_p2), 0, %v2319_v42  ;;  %v492_v49 = vsub.s32 (!%p387_p2), 1, %v2319_v42  ;;  %s2165_s14 = smov (!%p387_p2), 96  }
   0xa   : > { %2038 = vmatprep.subr.bf16.mxu0 (!%p387_p2), %v2037_v16  ;;  %v2045_v28 = vpack.c.bf16 (!%p387_p2), %v483_v26, %v481_v25  ;;  %v482_v30 = vld [vmem:[%s2619_s3 + $0x70] sm:$0xff] (!%p387_p2)  ;;  %v1872_v36 = vld [vmem:[%s2617_s1] ss:$0 sm:$0xff] (!%p387_p2)  ;;  %vm658_vm5 = vcmask (!%p387_p2), 36864   ;;  %vm670_vm6 = vcmask (!%p387_p2), 39936   ;;  %v2166_v14 = vmov (!%p387_p2), 0.0|0.0  }
   0xb   : > { %v2047_v31 = vpack.c.bf16 (!%p387_p2), %v482_v30, %v480_v29  ;;  %v1873_v38 = vld [vmem:[%s2618_s2] ss:$0 sm:$0xff] (!%p387_p2)  ;;  %v572_v16 = vld [vmem:[%s2621_s5 + $0x8] sm:$0xff] (!%p387_p2)  ;;  %v573_v19 = vld [vmem:[%s2621_s5 + $0x10] sm:$0xff] (!%p387_p2)  ;;  %s2167_s23 = smov (!%p387_p2), 80  }
   0xc   : > { %v484_v44 = vld [vmem:[%s2620_s4] sm:$0x3] (!%p387_p2) }
   0xd   : > { %s2631_s26 = smov (!%p428_p3, %s1865_s26), 1  ;;  %2040 = vmatpush1.bf16.msra.mxu0 %v2039_v21  ;;  %v489_v45 = vrot.slane %v484_v44, %v488_v43  ;;  %v493_v50 = vrot.slane %v484_v44, %v492_v49  ;;  %v571_v15 = vld [vmem:[%s2621_s5] sm:$0xff]  ;;  %v574_v21 = vld [vmem:[%s2621_s5 + $0x18] sm:$0xff] }
   0xe   : > { %s1870_s27 = sshll.u32 %s2631_s26, 3  ;;  %2042 = vmatprep.subr.bf16.mxu0 %v2041_v22  ;;  %v2053_v17 = vpack.c.bf16 %v572_v16, %v571_v15  ;;  %v2050_v23 = vpack.c.bf16 %v574_v21, %v573_v19 }
   0xf   : > { %s431_s30 = scalar_lea.vmem %s2616_s0, %s1870_s27  ;;  %s435_s15 = scalar_lea.vmem %s2629_s13, %s1870_s27 }
  0x10   : > { %v2255_v0 = vld [vmem:[%s431_s30] sm:$0x1f]  ;;  %s2164_s30 = smov 32  }
  0x11   : > { %v440_v1 = vsel %vm439_vm0, %v2255_v0, 0.0  ;;  %2044 = vmatpush1.bf16.msra.mxu0 %v2043_v27 }
  0x12   : > { %441 = vadd.xlane.f32.xlu0 %v440_v1  ;;  %2046 = vmatprep.subr.bf16.mxu0 %v2045_v28 }
  0x15   : > { %2048 = vmatpush1.bf16.msra.mxu0 %v2047_v31 }
  0x16   : > { %1965 = vmatprep.subr.mxu0 %v2159_v20 }
  0x9f   : > { %v442_v2 = vpop.xlane.xlu0 %441 }
  0xa0   : > { %v444_v3 = vmul.f32 0.015625, %v442_v2 }
  0xa2   : > { %v445_v4 = vsub.f32 %v2255_v0, %v444_v3 }
  0xa4   : > { %v446_v5 = vmul.f32 %v445_v4, %v445_v4 }
  0xa6   : > { %v447_v6 = vsel %vm439_vm0, %v446_v5, 0.0 }
  0xa7   : > { %448 = vadd.xlane.f32.xlu0 %v447_v6 }
 0x134   : > { %v449_v32 = vpop.xlane.xlu0 %448 }
 0x135   : > { %v450_v33 = vmul.f32 0.015625, %v449_v32 }
 0x137   : > { %v451_v34 = vadd.f32 1e-06, %v450_v33 }
 0x139   : > { %2127 = vrsqrt.f32 %v451_v34 }
 0x143   : > { %v2128_v35 = vpop.eup %2127 }
 0x144   : > { %v453_v37 = vmul.f32 %v2128_v35, %v445_v4 }
 0x146   : > { %v460_v39 = vmul.f32 %v1872_v36, %v453_v37 }
 0x148   : > { %v467_v40 = vadd.f32 %v1873_v38, %v460_v39 }
 0x14a   : > { %1874 = vmatmul.mubr.msk.f32.vlgmr.msra.gmra.mrb[0].mxu0 %vm496_vm1, %v467_v40 }
 0x14b   : > { %1967 = vmatprep.mubr.msk.f32.mxu0 %vm2160_vm2, %v2159_v20 }
 0x21d   : > { %v566_v46 = vpop.f32.mrb[0].mxu0 }
 0x21e   : > { %v2331_v47 = vadd.f32 %v566_v46, %v489_v45  ;;  %v568_v48 = vpop.f32.mrb[1].mxu0 }
 0x21f   : > { %v2343_v53 = vadd.f32 %v568_v48, %v493_v50  ;;  %v575_v50 = vld [vmem:[%s2621_s5 + $0x20] sm:$0xff] }
 0x220   : > { %580 = vrot.lane.b32.xlu0 %v2331_v47, %s2161_s24  ;;  %750 = vrot.lane.b32.xlu1 %v2331_v47, %s2162_s28  ;;  %s2168_s24 = smov 16  }
 0x224   : > { %748 = vrot.lane.b32.xlu1 %v2331_v47, %s2163_s29 }
 0x292   : > { %v581_v51 = vpop.permute.xlu0 %580  ;;  %v751_v52 = vpop.permute.xlu1 %750 }
 0x293   : > { %1966 = vmatpush3.xpose.msk.msra.mxu0 %vm582_vm3, %v581_v51  ;;  %1976 = vmatpush3.xpose.msk.msra.mxu1 %vm582_vm3, %v751_v52  ;;  %v576_v51 = vld [vmem:[%s2621_s5 + $0x28] sm:$0xff] }
 0x294   : > { %1970 = vmatprep.subr.mxu0 %v2159_v20  ;;  %1980 = vmatprep.subr.mxu1 %v2159_v20  ;;  %v2056_v52 = vpack.c.bf16 %v576_v51, %v575_v50  ;;  %v1594_v50 = vld [vmem:[%s2625_s9 + $0x68] sm:$0xff]  ;;  %v1596_v51 = vld [vmem:[%s2625_s9 + $0x78] sm:$0xff] }
 0x296   : > { %1968 = vmatmul.mubr.msk.f32.vlgmr.msra.gmra.mrb[2].mxu0 %vm582_vm3, %v2331_v47  ;;  %v749_v54 = vpop.permute.xlu1 %748 }
 0x297   : > { %1971 = vmatpush3.msk.msra.mxu0 %vm674_vm4, %v2343_v53  ;;  %1978 = vmatmul.mubr.msk.f32.vlgmr.msra.gmra.mrb[0].mxu1 %vm582_vm3, %v749_v54 }
 0x298   : > { %1982 = vmatprep.mubr.msk.f32.mxu1 %vm2160_vm2, %v2159_v20  ;;  %1972 = vmatprep.mubr.msk.f32.mxu0 %vm2160_vm2, %v2159_v20 }
 0x299   : > { %2049 = vmatprep.subr.bf16.mxu0 %v2166_v14 }
 0x369   : > { %v653_v55 = vpop.f32.mrb[2].mxu0 }
 0x36a   : > { %v1969_v56 = vpop.f32.mrb[3].mxu0  ;;  %v822_v57 = vpop.f32.mrb[0].mxu1  ;;  %v657_v3 = vmul.f32 0.25, %v653_v55 }
 0x36b   : > { %v826_v58 = vmul.f32 0.25, %v822_v57  ;;  %v1979_v59 = vpop.f32.mrb[1].mxu1 }
 0x36c   : > { %v659_v5 = vsel %vm658_vm5, %v657_v3, -inf }
 0x36d   : > { %v827_v60 = vsel %vm658_vm5, %v826_v58, -inf }
 0x36e   : > { %828 = vmax.xlane.f32.xlu1 %v827_v60 }
 0x37f   : > { %838 = vrot.lane.b32.xlu1 %v2343_v53, %s2163_s29 }
 0x3fb   : > { %v829_v61 = vpop.xlane.xlu1 %828 }
 0x3fc   : > { %v830_v62 = vsub.f32 %v826_v58, %v829_v61 }
 0x3fe   : > { %v831_v63 = vmul.f32 1.442695, %v830_v62 }
 0x3ff   : > { %v839_v1 = vpop.permute.xlu1 %838 }
 0x400   : > { %2129 = vpow2.f32 %v831_v63  ;;  %1981 = vmatpush3.msk.msra.mxu1 %vm674_vm4, %v839_v1 }
 0x401   : > { %2052 = vmatprep.subr.bf16.mxu1 %v2166_v14 }
 0x40a   : > { %v2130_v2 = vpop.eup %2129 }
 0x40b   : > { %v833_v4 = vsel %vm658_vm5, %v2130_v2, 0.0 }
 0x40c   : > { %834 = vadd.xlane.f32.xlu0 %v833_v4 }
 0x410   : > { %660 = vmax.xlane.f32.xlu0 %v659_v5 }
 0x426   : > { %1063 = vrot.lane.b32.xlu0 %v2331_v47, %s2164_s30 }
 0x42a   : > { %1061 = vrot.lane.b32.xlu0 %v2331_v47, %s2165_s14 }
 0x499   : > { %v835_v6 = vpop.xlane.xlu0 %834 }
 0x49a   : > { %2131 = vrcp.f32 %v835_v6 }
 0x49d   : > { %v661_v7 = vpop.xlane.xlu0 %660 }
 0x49e   : > { %v662_v8 = vsub.f32 %v657_v3, %v661_v7  ;;  %v577_v7 = vld [vmem:[%s2621_s5 + $0x30] sm:$0xff] }
 0x4a0   : > { %v663_v9 = vmul.f32 1.442695, %v662_v8  ;;  %v578_v8 = vld [vmem:[%s2621_s5 + $0x38] sm:$0xff] }
 0x4a1   : > { %v1064_v25 = vpop.permute.xlu0 %1063 }
 0x4a2   : > { %2133 = vpow2.f32 %v663_v9 }
 0x4a4   : > { %v2132_v10 = vpop.eup %2131 }
 0x4a5   : > { %v837_v11 = vmul.f32 %v2132_v10, %v2130_v2  ;;  %v1062_v28 = vpop.permute.xlu0 %1061 }
 0x4a7   : > { %1983 = vmatmul.mubr.msk.f32.vlgmr.msra.gmra.mrb[2].mxu1 %vm670_vm6, %v837_v11 }
 0x4a8   : > { %1996 = vmatprep.mubr.msk.f32.mxu1 %vm2160_vm2, %v2159_v20  ;;  %2054 = vmatpush3.bf16.msra.mxu1 %v2053_v17 }
 0x4a9   : > { %2004 = vmatprep.subr.mxu1 %v2159_v20 }
 0x4ac   : > { %v2134_v12 = vpop.eup %2133 }
 0x4ad   : > { %v665_v13 = vsel %vm658_vm5, %v2134_v12, 0.0 }
 0x4ae   : > { %666 = vadd.xlane.f32.xlu1 %v665_v13 }
 0x4bf   : > { %1151 = vrot.lane.b32.xlu1 %v2343_v53, %s2165_s14 }
 0x53b   : > { %v667_v18 = vpop.xlane.xlu1 %666 }
 0x53c   : > { %2135 = vrcp.f32 %v667_v18  ;;  %v1895_v18 = vld [vmem:[%s2622_s6] ss:$0 sm:$0xff] }
 0x53f   : > { %v1152_v30 = vpop.permute.xlu1 %1151 }
 0x546   : > { %v2136_v22 = vpop.eup %2135 }
 0x547   : > { %v669_v24 = vmul.f32 %v2136_v22, %v2134_v12 }
 0x549   : > { %1973 = vmatmul.mubr.msk.f32.vlgmr.msra.gmra.mrb[4].mxu0 %vm670_vm6, %v669_v24 }
 0x54a   : > { %2051 = vmatpush3.bf16.msra.mxu0 %v2050_v23  ;;  %1989 = vmatprep.mubr.msk.f32.mxu0 %vm2160_vm2, %v2159_v20 }
 0x54b   : > { %1999 = vmatprep.subr.mxu0 %v2159_v20 }
 0x57a   : > { %v911_v26 = vpop.f32.mrb[2].mxu1 }
 0x57b   : > { %v1984_v27 = vpop.f32.mrb[3].mxu1  ;;  %1990 = vmatmul.mubr.msk.f32.vlgmr.msra.gmra.mrb[6].mxu0 %vm582_vm3, %v911_v26 }
 0x57c   : > { %2000 = vmatpush3.xpose.msk.msra.mxu0 %vm582_vm3, %v1064_v25  ;;  %2001 = vmatprep.mubr.msk.f32.mxu0 %vm2160_vm2, %v2159_v20 }
 0x57d   : > { %2055 = vmatprep.subr.bf16.mxu0 %v2166_v14 }
 0x57f   : > { %2002 = vmatmul.mubr.msk.f32.vlgmr.msra.gmra.mrb[8].mxu0 %vm582_vm3, %v1062_v28 }
 0x580   : > { %2013 = vmatprep.mubr.msk.f32.mxu0 %vm2160_vm2, %v2159_v20  ;;  %2057 = vmatpush3.bf16.msra.mxu0 %v2056_v52  ;;  %v2073_v52 = vpack.c.bf16 %v1596_v51, %v1594_v50  ;;  %v1715_v50 = vld [vmem:[%s2627_s11 + $0x70] sm:$0xff]  ;;  %v1716_v51 = vld [vmem:[%s2627_s11 + $0x78] sm:$0xff] }
 0x581   : > { %2021 = vmatprep.subr.mxu0 %v2159_v20 }
 0x61c   : > { %v744_v29 = vpop.f32.mrb[4].mxu0 }
 0x61d   : > { %v1974_v31 = vpop.f32.mrb[5].mxu0  ;;  %1997 = vmatmul.mubr.msk.f32.vlgmr.msra.gmra.mrb[4].mxu1 %vm582_vm3, %v744_v29  ;;  %v1582_v29 = vld [vmem:[%s2625_s9 + $0x8] sm:$0xff] }
 0x61e   : > { %2005 = vmatpush3.msk.msra.mxu1 %vm674_vm4, %v1152_v30  ;;  %2006 = vmatprep.mubr.msk.f32.mxu1 %vm2160_vm2, %v2159_v20  ;;  %v1581_v31 = vld [vmem:[%s2625_s9] sm:$0xff] }
 0x61f   : > { %2016 = vmatprep.subr.mxu1 %v2159_v20 }
 0x64e   : > { %v984_v32 = vpop.f32.mrb[6].mxu0 }
 0x64f   : > { %v1991_v33 = vpop.f32.mrb[7].mxu0 }
 0x652   : > { %v1135_v34 = vpop.f32.mrb[8].mxu0 }
 0x653   : > { %v1139_v35 = vmul.f32 0.25, %v1135_v34  ;;  %v2003_v36 = vpop.f32.mrb[9].mxu0  ;;  %v1586_v34 = vld [vmem:[%s2625_s9 + $0x28] sm:$0xff] }
 0x655   : > { %v1140_v37 = vsel %vm658_vm5, %v1139_v35, -inf }
 0x656   : > { %1141 = vmax.xlane.f32.xlu0 %v1140_v37  ;;  %v1585_v37 = vld [vmem:[%s2625_s9 + $0x20] sm:$0xff] }
 0x66c   : > { %1302 = vrot.lane.b32.xlu0 %v2331_v47, %s2167_s23 }
 0x6e3   : > { %v1142_v38 = vpop.xlane.xlu0 %1141 }
 0x6e4   : > { %v1143_v39 = vsub.f32 %v1139_v35, %v1142_v38  ;;  %v1588_v35 = vld [vmem:[%s2625_s9 + $0x38] sm:$0xff]  ;;  %v1587_v38 = vld [vmem:[%s2625_s9 + $0x30] sm:$0xff] }
 0x6e5   : > { %v2065_v36 = vpack.c.bf16 %v1588_v35, %v1586_v34  ;;  %v1711_v34 = vld [vmem:[%s2627_s11 + $0x50] sm:$0xff]  ;;  %v1712_v35 = vld [vmem:[%s2627_s11 + $0x58] sm:$0xff] }
 0x6e6   : > { %v1144_v40 = vmul.f32 1.442695, %v1143_v39  ;;  %v2067_v39 = vpack.c.bf16 %v1587_v38, %v1585_v37  ;;  %v1730_v37 = vld [vmem:[%s2627_s11 + $0xe8] sm:$0xff]  ;;  %v2099_v38 = vpack.c.bf16 %v1712_v35, %v1711_v34 }
 0x6e8   : > { %2137 = vpow2.f32 %v1144_v40  ;;  %v1590_v40 = vld [vmem:[%s2625_s9 + $0x48] sm:$0xff] }
 0x6f0   : > { %v1057_v41 = vpop.f32.mrb[4].mxu1 }
 0x6f1   : > { %v1058_v44 = vadd.f32 %v1057_v41, %v984_v32  ;;  %v1998_v45 = vpop.f32.mrb[5].mxu1  ;;  %v1583_v32 = vld [vmem:[%s2625_s9 + $0x10] sm:$0xff]  ;;  %v1592_v41 = vld [vmem:[%s2625_s9 + $0x58] sm:$0xff] }
 0x6f2   : > { %v2138_v46 = vpop.eup %2137  ;;  %v2063_v33 = vpack.c.bf16 %v1583_v32, %v1581_v31  ;;  %v1589_v45 = vld [vmem:[%s2625_s9 + $0x40] sm:$0xff]  ;;  %v1728_v31 = vld [vmem:[%s2627_s11 + $0xd8] sm:$0xff] }
 0x6f3   : > { %v1146_v48 = vsel %vm658_vm5, %v2138_v46, 0.0 }
 0x6f4   : > { %1147 = vadd.xlane.f32.xlu1 %v1146_v48 }
 0x705   : > { %1304 = vrot.lane.b32.xlu1 %v2331_v47, %s2168_s24  ;;  %v1303_v47 = vpop.permute.xlu0 %1302 }
 0x781   : > { %v1148_v54 = vpop.xlane.xlu1 %1147 }
 0x782   : > { %2139 = vrcp.f32 %v1148_v54  ;;  %v1593_v54 = vld [vmem:[%s2625_s9 + $0x60] sm:$0xff] }
 0x785   : > { %v1305_v57 = vpop.permute.xlu1 %1304 }
 0x78c   : > { %v2140_v55 = vpop.eup %2139 }
 0x78d   : > { %v1150_v56 = vmul.f32 %v2140_v55, %v2138_v46  ;;  %v1591_v46 = vld [vmem:[%s2625_s9 + $0x50] sm:$0xff] }
 0x78e   : > { %v2071_v48 = vpack.c.bf16 %v1591_v46, %v1589_v45  ;;  %v1595_v55 = vld [vmem:[%s2625_s9 + $0x70] sm:$0xff]  ;;  %v1732_v45 = vld [vmem:[%s2627_s11 + $0xf8] sm:$0xff] }
 0x78f   : > { %2007 = vmatmul.mubr.msk.f32.vlgmr.msra.gmra.mrb[6].mxu1 %vm670_vm6, %v1150_v56  ;;  %v2075_v56 = vpack.c.bf16 %v1595_v55, %v1593_v54  ;;  %v1597_v54 = vld [vmem:[%s2626_s10] sm:$0x3] }
 0x790   : > { %2017 = vmatpush3.xpose.msk.msra.mxu1 %vm582_vm3, %v1305_v57  ;;  %2018 = vmatprep.mubr.msk.f32.mxu1 %vm2160_vm2, %v2159_v20  ;;  %v1717_v57 = vld [vmem:[%s2627_s11 + $0x80] sm:$0xff]  ;;  %v1602_v55 = vrot.slane %v1597_v54, %v488_v43 }
 0x791   : > { %2058 = vmatprep.subr.bf16.mxu1 %v2166_v14 }
 0x793   : > { %2019 = vmatmul.mubr.msk.f32.vlgmr.msra.gmra.mrb[8].mxu1 %vm582_vm3, %v1303_v47  ;;  %v1718_v47 = vld [vmem:[%s2627_s11 + $0x88] sm:$0xff] }
 0x794   : > { %2030 = vmatprep.mubr.msk.f32.mxu1 %vm2160_vm2, %v2159_v20 }
 0x862   : > { %v1224_v58 = vpop.f32.mrb[6].mxu1 }
 0x863   : > { %v2008_v59 = vpop.f32.mrb[7].mxu1  ;;  %2014 = vmatmul.mubr.msk.f32.vlgmr.msra.gmra.mrb[10].mxu0 %vm582_vm3, %v1224_v58  ;;  %v1701_v58 = vld [vmem:[%s2627_s11] sm:$0xff] }
 0x864   : > { %2023 = vmatprep.mubr.msk.f32.mxu0 %vm2160_vm2, %v2159_v20  ;;  %v2077_v59 = vpack.c.bf16 %v1718_v47, %v1717_v57 }
 0x866   : > { %v1376_v60 = vpop.f32.mrb[8].mxu1 }
 0x867   : > { %v1380_v61 = vmul.f32 0.25, %v1376_v60  ;;  %v2020_v62 = vpop.f32.mrb[9].mxu1  ;;  %v1702_v60 = vld [vmem:[%s2627_s11 + $0x8] sm:$0xff] }
 0x869   : > { %v1381_v63 = vsel %vm658_vm5, %v1380_v61, -inf }
 0x86a   : > { %1382 = vmax.xlane.f32.xlu1 %v1381_v63 }
 0x87b   : > { %1392 = vrot.lane.b32.xlu1 %v2343_v53, %s2167_s23  ;;  %v2059_v53 = vpack.c.bf16 %v578_v8, %v577_v7  ;;  %v1719_v8 = vld [vmem:[%s2627_s11 + $0x90] sm:$0xff] }
 0x87d   : > { %2060 = vmatpush3.bf16.msra.mxu1 %v2059_v53  ;;  %v1720_v53 = vld [vmem:[%s2627_s11 + $0x98] sm:$0xff] }
 0x87e   : > { %2078 = vmatprep.subr.bf16.mxu1 %v2077_v59 }
 0x8f7   : > { %v1383_v1 = vpop.xlane.xlu1 %1382 }
 0x8f8   : > { %v1384_v2 = vsub.f32 %v1380_v61, %v1383_v1  ;;  %v2079_v61 = vpack.c.bf16 %v1702_v60, %v1701_v58 }
 0x8fa   : > { %v1385_v3 = vmul.f32 1.442695, %v1384_v2 }
 0x8fb   : > { %v1393_v4 = vpop.permute.xlu1 %1392 }
 0x8fc   : > { %2141 = vpow2.f32 %v1385_v3  ;;  %2022 = vmatpush3.msk.msra.mxu0 %vm674_vm4, %v1393_v4  ;;  %v1896_v3 = vld [vmem:[%s2623_s7] ss:$0 sm:$0xff] }
 0x906   : > { %v2142_v5 = vpop.eup %2141 }
 0x907   : > { %v1387_v6 = vsel %vm658_vm5, %v2142_v5, 0.0 }
 0x908   : > { %1388 = vadd.xlane.f32.xlu0 %v1387_v6 }
 0x936   : > { %v1297_v9 = vpop.f32.mrb[10].mxu0 }
 0x937   : > { %v1301_v10 = vadd.f32 %v1297_v9, %v1058_v44  ;;  %v2015_v11 = vpop.f32.mrb[11].mxu0  ;;  %v2069_v44 = vpack.c.bf16 %v1592_v41, %v1590_v40  ;;  %v2081_v9 = vpack.c.bf16 %v1720_v53, %v1719_v8  ;;  %v1713_v40 = vld [vmem:[%s2627_s11 + $0x60] sm:$0xff]  ;;  %v1714_v41 = vld [vmem:[%s2627_s11 + $0x68] sm:$0xff] }
 0x938   : > { %v1704_v11 = vld [vmem:[%s2627_s11 + $0x18] sm:$0xff]  ;;  %v2103_v46 = vpack.c.bf16 %v1714_v41, %v1713_v40 }
 0x995   : > { %v1389_v12 = vpop.xlane.xlu0 %1388 }
 0x996   : > { %2143 = vrcp.f32 %v1389_v12 }
 0x9a0   : > { %v2144_v13 = vpop.eup %2143 }
 0x9a1   : > { %v1391_v14 = vmul.f32 %v2144_v13, %v2142_v5  ;;  %v1897_v5 = vld [vmem:[%s2624_s8] ss:$0 sm:$0xff] }
 0x9a2   : > { %v1721_v13 = vld [vmem:[%s2627_s11 + $0xa0] sm:$0xff] }
 0x9a3   : > { %2024 = vmatmul.mubr.msk.f32.vlgmr.msra.gmra.mrb[12].mxu0 %vm670_vm6, %v1391_v14  ;;  %v1722_v14 = vld [vmem:[%s2627_s11 + $0xa8] sm:$0xff] }
 0x9a4   : > { %1676 = vmatprep.mubr.f32.mxu0 %v2159_v20 }
 0xa76   : > { %v1465_v15 = vpop.f32.mrb[12].mxu0 }
 0xa77   : > { %v2025_v16 = vpop.f32.mrb[13].mxu0  ;;  %2031 = vmatmul.mubr.msk.f32.vlgmr.msra.gmra.mrb[10].mxu1 %vm582_vm3, %v1465_v15  ;;  %v2085_v15 = vpack.c.bf16 %v1722_v14, %v1721_v13 }
 0xa78   : > { %2080 = vmatpush3.bf16.msra.mxu1 %v2079_v61  ;;  %v1705_v16 = vld [vmem:[%s2627_s11 + $0x20] sm:$0xff] }
 0xa79   : > { %2082 = vmatprep.subr.bf16.mxu1 %v2081_v9 }
 0xb4a   : > { %v1538_v17 = vpop.f32.mrb[10].mxu1 }
 0xb4b   : > { %v1542_v19 = vadd.f32 %v1538_v17, %v1301_v10  ;;  %v2032_v21 = vpop.f32.mrb[11].mxu1  ;;  %v1703_v10 = vld [vmem:[%s2627_s11 + $0x10] sm:$0xff]  ;;  %v1706_v17 = vld [vmem:[%s2627_s11 + $0x28] sm:$0xff] }
 0xb4c   : > { %v2083_v12 = vpack.c.bf16 %v1704_v11, %v1703_v10  ;;  %v1724_v21 = vld [vmem:[%s2627_s11 + $0xb8] sm:$0xff] }
 0xb4d   : > { %v1550_v22 = vadd.f32 %v1895_v18, %v1542_v19  ;;  %v2087_v18 = vpack.c.bf16 %v1706_v17, %v1705_v16  ;;  %v1723_v19 = vld [vmem:[%s2627_s11 + $0xb0] sm:$0xff] }
 0xb4e   : > { %2084 = vmatpush3.bf16.msra.mxu1 %v2083_v12  ;;  %v1899_v12 = vld [vmem:[%s2628_s12] ss:$0 sm:$0xff] }
 0xb4f   : > { %v2439_v23 = vadd.f32 %v1550_v22, %v2255_v0  ;;  %v1584_v0 = vld [vmem:[%s2625_s9 + $0x18] sm:$0xff]  ;;  %2086 = vmatprep.subr.bf16.mxu1 %v2085_v15  ;;  %v2089_v22 = vpack.c.bf16 %v1724_v21, %v1723_v19 }
 0xb50   : > { %v2061_v30 = vpack.c.bf16 %v1584_v0, %v1582_v29  ;;  %v1710_v29 = vld [vmem:[%s2627_s11 + $0x48] sm:$0xff] }
 0xb51   : > { %v1554_v24 = vsel %vm439_vm0, %v2439_v23, 0.0 }
 0xb52   : > { %1555 = vadd.xlane.f32.xlu0 %v1554_v24  ;;  %2062 = vmatprep.subr.bf16.mxu0 %v2061_v30  ;;  %v1707_v24 = vld [vmem:[%s2627_s11 + $0x30] sm:$0xff] }
 0xb53   : > { %2064 = vmatpush1.bf16.msra.mxu0 %v2063_v33  ;;  %2088 = vmatpush3.bf16.msra.mxu1 %v2087_v18  ;;  %v1727_v30 = vld [vmem:[%s2627_s11 + $0xd0] sm:$0xff] }
 0xb54   : > { %2066 = vmatprep.subr.bf16.mxu0 %v2065_v36  ;;  %2090 = vmatprep.subr.bf16.mxu1 %v2089_v22  ;;  %v2097_v33 = vpack.c.bf16 %v1728_v31, %v1727_v30  ;;  %v1729_v36 = vld [vmem:[%s2627_s11 + $0xe0] sm:$0xff] }
 0xb57   : > { %2068 = vmatpush1.bf16.msra.mxu0 %v2067_v39  ;;  %v2101_v39 = vpack.c.bf16 %v1730_v37, %v1729_v36 }
 0xb58   : > { %2070 = vmatprep.subr.bf16.mxu0 %v2069_v44  ;;  %v1731_v44 = vld [vmem:[%s2627_s11 + $0xf0] sm:$0xff] }
 0xb5b   : > { %2072 = vmatpush1.bf16.msra.mxu0 %v2071_v48  ;;  %v2105_v48 = vpack.c.bf16 %v1732_v45, %v1731_v44 }
 0xb5c   : > { %2074 = vmatprep.subr.bf16.mxu0 %v2073_v52  ;;  %v2107_v52 = vpack.c.bf16 %v1716_v51, %v1715_v50 }
 0xb5f   : > { %2076 = vmatpush1.bf16.msra.mxu0 %v2075_v56  ;;  %v1606_v56 = vrot.slane %v1597_v54, %v492_v49 }
 0xbdf   : > { %v1556_v20 = vpop.xlane.xlu0 %1555 }
 0xbe0   : > { %v1557_v25 = vmul.f32 0.015625, %v1556_v20  ;;  %v1708_v20 = vld [vmem:[%s2627_s11 + $0x38] sm:$0xff] }
 0xbe2   : > { %v1558_v26 = vsub.f32 %v2439_v23, %v1557_v25  ;;  %v1725_v25 = vld [vmem:[%s2627_s11 + $0xc0] sm:$0xff] }
 0xbe4   : > { %v1559_v27 = vmul.f32 %v1558_v26, %v1558_v26 }
 0xbe6   : > { %v1560_v28 = vsel %vm439_vm0, %v1559_v27, 0.0  ;;  %v1726_v27 = vld [vmem:[%s2627_s11 + $0xc8] sm:$0xff] }
 0xbe7   : > { %1561 = vadd.xlane.f32.xlu1 %v1560_v28  ;;  %v1709_v28 = vld [vmem:[%s2627_s11 + $0x40] sm:$0xff]  ;;  %v2093_v0 = vpack.c.bf16 %v1726_v27, %v1725_v25 }
 0xbe8   : > { %v2095_v32 = vpack.c.bf16 %v1710_v29, %v1709_v28 }
 0xc74   : > { %v1562_v62 = vpop.xlane.xlu1 %1561 }
 0xc75   : > { %v1563_v63 = vmul.f32 0.015625, %v1562_v62 }
 0xc77   : > { %v1564_v1 = vadd.f32 1e-06, %v1563_v63 }
 0xc79   : > { %2145 = vrsqrt.f32 %v1564_v1 }
 0xc83   : > { %v2146_v2 = vpop.eup %2145 }
 0xc84   : > { %v1566_v4 = vmul.f32 %v2146_v2, %v1558_v26  ;;  %v2091_v26 = vpack.c.bf16 %v1708_v20, %v1707_v24 }
 0xc86   : > { %v1573_v6 = vmul.f32 %v1896_v3, %v1566_v4  ;;  %2092 = vmatpush3.bf16.msra.mxu1 %v2091_v26 }
 0xc87   : > { %2094 = vmatprep.subr.bf16.mxu1 %v2093_v0 }
 0xc88   : > { %v1580_v7 = vadd.f32 %v1897_v5, %v1573_v6 }
 0xc8a   : > { %1898 = vmatmul.mubr.msk.f32.vlgmr.msra.gmra.mrb[14].mxu0 %vm496_vm1, %v1580_v7  ;;  %2096 = vmatpush3.bf16.msra.mxu1 %v2095_v32 }
 0xc8b   : > { %2098 = vmatprep.subr.bf16.mxu1 %v2097_v33 }
 0xc8e   : > { %2100 = vmatpush3.bf16.msra.mxu1 %v2099_v38 }
 0xc8f   : > { %2102 = vmatprep.subr.bf16.mxu1 %v2101_v39 }
 0xc92   : > { %2104 = vmatpush3.bf16.msra.mxu1 %v2103_v46 }
 0xc93   : > { %2106 = vmatprep.subr.bf16.mxu1 %v2105_v48 }
 0xc96   : > { %2108 = vmatpush3.bf16.msra.mxu1 %v2107_v52 }
 0xd5d   : > { %v1678_v57 = vpop.f32.mrb[14].mxu0 }
 0xd5e   : > { %v1679_v47 = vadd.f32 %v1678_v57, %v1602_v55  ;;  %v1680_v58 = vpop.f32.mrb[15].mxu0 }
 0xd5f   : > { %v1681_v59 = vadd.f32 %v1680_v58, %v1606_v56 }
 0xd60   : > { %v1685_v60 = vmul.f32 0.044715, %v1679_v47  ;;  %v1683_v53 = vmul.f32 0.5, %v1679_v47 }
 0xd61   : > { %v1686_v61 = vmul.f32 0.044715, %v1681_v59  ;;  %v1684_v7 = vmul.f32 0.5, %v1681_v59 }
 0xd62   : > { %v1687_v62 = vmul.f32 %v1685_v60, %v1679_v47 }
 0xd63   : > { %v1688_v63 = vmul.f32 %v1686_v61, %v1681_v59 }
 0xd64   : > { %v1689_v1 = vmul.f32 %v1687_v62, %v1679_v47 }
 0xd65   : > { %v1690_v2 = vmul.f32 %v1688_v63, %v1681_v59 }
 0xd66   : > { %v1691_v3 = vadd.f32 %v1689_v1, %v1679_v47 }
 0xd67   : > { %v1692_v4 = vadd.f32 %v1690_v2, %v1681_v59 }
 0xd68   : > { %v1693_v5 = vmul.f32 0.7978846, %v1691_v3 }
 0xd69   : > { %v1694_v6 = vmul.f32 0.7978846, %v1692_v4 }
 0xd6a   : > { %2147 = vtanh.f32 %v1693_v5 }
 0xd6b   : > { %2149 = vtanh.f32 %v1694_v6 }
 0xd74   : > { %v2148_v43 = vpop.eup %2147 }
 0xd75   : > { %v2150_v42 = vpop.eup %2149  ;;  %v1697_v49 = vadd.f32 1.0, %v2148_v43 }
 0xd76   : > { %v1698_v8 = vadd.f32 1.0, %v2150_v42 }
 0xd77   : > { %v1699_v10 = vmul.f32 %v1697_v49, %v1683_v53 }
 0xd78   : > { %v1700_v9 = vmul.f32 %v1698_v8, %v1684_v7 }
 0xd7a   : > { %1804 = vmatprep.mubr.f32.mxu1 %v1700_v9 }
 0xd7b   : > { %1805 = vmatmul.mubr.f32.vlgmr.msra.gmra.mrb[12].mxu1 %v1699_v10 }
 0xe4e   : > { %v1962_v11 = vpop.f32.mrb[12].mxu1 }
 0xe4f   : > { %v1963_v13 = vpop.f32.mrb[13].mxu1 }
 0xe50   : > { %v1964_v14 = vadd.f32 %v1963_v13, %v1962_v11 }
 0xe52   : > { %v1807_v15 = vadd.f32 %v1964_v14, %v1899_v12 }
 0xe54   : > { %v1810_v16 = vadd.f32 %v1807_v15, %v2439_v23 }
 0xe56   : > { %1811 = vst.msk [vmem:[%s435_s15] sm:$0x1f] %vm439_vm0, %v1810_v16 }
 0xe57 PF: > { %s23_s25 = sadd.s32 1, %s2157_s25  }
 0xe58   : > { %p20_p4 = scmp.ge.s32.totalorder %s23_s25, 4  }
 0xe5a   :  { %22 = sbr.rel (!%p20_p4) target bundleno = 1 (0x1), region = 102 }

// kernel: _lambda_.25
= control target key start
LH: loop header
LB: loop body
LE: loop exit
PB: predicated region body
PF: predicated region fallthrough
CT: control target
= control target key end

     0   :  { %s4627_s0 = inlined_call_operand.vmem [shape: f32[2,8,64], index: 0, kind: input, shape index: {}]   ;;  %s4628_s1 = inlined_call_operand.vmem [shape: f32[2,1,8], index: 1, kind: input, shape index: {}]   ;;  %s4629_s2 = inlined_call_operand.vmem [shape: f32[2,5,64], index: 2, kind: input, shape index: {}]   ;;  %s4630_s3 = inlined_call_operand.vmem [shape: f32[64,192], index: 3, kind: input, shape index: {}]   ;;  %s4631_s4 = inlined_call_operand.vmem [shape: f32[1,192], index: 4, kind: input, shape index: {}]   ;;  %s4632_s5 = inlined_call_operand.vmem [shape: f32[64,64], index: 5, kind: input, shape index: {}]   ;;  %s4633_s6 = inlined_call_operand.vmem [shape: f32[1,64], index: 6, kind: input, shape index: {}]   ;;  %s4634_s7 = inlined_call_operand.vmem [shape: f32[1,64], index: 7, kind: input, shape index: {}]   ;;  %s4635_s8 = inlined_call_operand.vmem [shape: f32[1,64], index: 8, kind: input, shape index: {}]   ;;  %s4636_s9 = inlined_call_operand.vmem [shape: f32[64,64], index: 9, kind: input, shape index: {}]   ;;  %s4637_s10 = inlined_call_operand.vmem [shape: f32[1,64], index: 10, kind: input, shape index: {}]   ;;  %s4638_s11 = inlined_call_operand.vmem [shape: f32[64,128], index: 11, kind: input, shape index: {}]   ;;  %s4639_s12 = inlined_call_operand.vmem [shape: f32[1,128], index: 12, kind: input, shape index: {}]   ;;  %s4640_s13 = inlined_call_operand.vmem [shape: f32[64,64], index: 13, kind: input, shape index: {}]   ;;  %s4641_s14 = inlined_call_operand.vmem [shape: f32[1,64], index: 14, kind: input, shape index: {}]   ;;  %s4642_s15 = inlined_call_operand.vmem [shape: f32[1,64], index: 15, kind: input, shape index: {}]   ;;  %s4643_s16 = inlined_call_operand.vmem [shape: f32[1,64], index: 16, kind: input, shape index: {}]   ;;  %s4644_s17 = inlined_call_operand.vmem [shape: f32[64,256], index: 17, kind: input, shape index: {}]   ;;  %s4645_s18 = inlined_call_operand.vmem [shape: f32[1,256], index: 18, kind: input, shape index: {}]   ;;  %s4646_s19 = inlined_call_operand.vmem [shape: f32[256,64], index: 19, kind: input, shape index: {}]   ;;  %s4647_s20 = inlined_call_operand.vmem [shape: f32[1,64], index: 20, kind: input, shape index: {}]   ;;  %s4648_s21 = inlined_call_operand.vmem [shape: f32[1,64], index: 21, kind: input, shape index: {}]   ;;  %s4649_s22 = inlined_call_operand.vmem [shape: f32[1,64], index: 22, kind: input, shape index: {}]   ;;  %s4650_s23 = inlined_call_operand.vmem [shape: f32[2,8,64], index: 23, kind: output, shape index: {}]  }
   0x1   :  { %4663 = sst [smem:[#allocation2_spill]] %s4627_s0 }
   0x2   :  { %4664 = sst [smem:[#allocation3_spill]] %s4628_s1 }
   0x3   :  { %4665 = sst [smem:[#allocation4_spill]] %s4629_s2 }
   0x4   :  { %4666 = sst [smem:[#allocation5_spill]] %s4630_s3 }
   0x5   :  { %4667 = sst [smem:[#allocation6_spill]] %s4631_s4  ;;  %s4030_s4 = smov 0  }
   0x6   :  { %4668 = sst [smem:[#allocation7_spill]] %s4632_s5 }
   0x7   :  { %4669 = sst [smem:[#allocation8_spill]] %s4633_s6 }
   0x8   :  { %4670 = sst [smem:[#allocation9_spill]] %s4634_s7 }
   0x9 LB: > { %s3375_s30 = sadd.s32 4294967295, %s3898_s4   ;;  %p3379_p0 = scmp.ge.s32.totalorder %s3898_s4, 1  ;;  %s3898_s4 = sphi %s4030_s4, %s33_s4  }
   0xa   : > { %p653_p1 = scmp.lt.s32.totalorder %s3898_s4, 3 }
   0xc   : > { %p654_p2 = pnand %p3379_p0, %p653_p1 }
   0xd   : > { %s4671_s5 = sld [smem:[#allocation5_spill]] (!%p654_p2)  ;;  %v3900_v7 = vmov (!%p654_p2), 0.0   ;;  %p722_p3 = scmp.lt.s32.totalorder (!%p654_p2), %s3375_s30, 1  ;;  %vm768_vm0 = vcmask (!%p654_p2), 523264   ;;  %v758_v26 = vlaneseq (!%p654_p2)  ;;  %vm3901_vm1 = vmmov (!%p654_p2), 0  }
   0xe   : > { %657 = sbr.rel (%p654_p2) target bundleno = 6574 (0x19ae), region = 112  ;;  %836 = vmatprep.mubr.f32.mxu0 (!%p654_p2), %v3900_v7  ;;  %3556 = vmatprep.subr.mxu1 (!%p654_p2), %v3900_v7  ;;  %s4672_s0 = sld [smem:[#allocation2_spill]] (!%p654_p2)  ;;  %vm854_vm2 = vcmask (!%p654_p2), 130048   ;;  %vm937_vm3 = vcmask (!%p654_p2), 64512   ;;  %v3907_v61 = vmov (!%p654_p2), 0.0|0.0   ;;  %vm2118_vm4 = vcmask (!%p654_p2), 39936  }
   0xf   : > { %v4106_v27 = vshrl.u32 (!%p654_p2), %v758_v26, 7  ;;  %3558 = vmatprep.mubr.msk.f32.mxu1 (!%p654_p2), %vm3901_vm1, %v3900_v7  ;;  %s4673_s26 = sld [smem:[#allocation6_spill]] (!%p654_p2)  ;;  %s4660_s2 = smov (!%p654_p2), 64   ;;  %vm2135_vm5 = vcmask (!%p654_p2), 1044480  }
  0x10   : > { %s4657_s6 = smov (!%p654_p2), 48   ;;  %s4661_s27 = smov (!%p654_p2), 112  }
  0x11   : > { %v760_v28 = vsub.s32 (!%p654_p2), 0, %v4106_v27  ;;  %v764_v34 = vsub.s32 (!%p654_p2), 1, %v4106_v27  ;;  %s4674_s3 = sld [smem:[#allocation3_spill]] (!%p654_p2)  ;;  %s4654_s7 = smov (!%p654_p2), 80  }
  0x12   : > { %s4653_s29 = smov (!%p654_p2), 16   ;;  %s4676_s25 = sld [smem:[#allocation8_spill]] (!%p654_p2) }
  0x13   : > { %v741_v0 = vld [vmem:[%s4671_s5 + $0x8] sm:$0xff] (!%p654_p2)  ;;  %v743_v1 = vld [vmem:[%s4671_s5 + $0x18] sm:$0xff] (!%p654_p2)  ;;  %v740_v2 = vld [vmem:[%s4671_s5] sm:$0xff] (!%p654_p2) }
  0x14   : > { %v3720_v3 = vpack.c.bf16 (!%p654_p2), %v743_v1, %v741_v0  ;;  %v742_v4 = vld [vmem:[%s4671_s5 + $0x10] sm:$0xff] (!%p654_p2)  ;;  %v745_v5 = vld [vmem:[%s4671_s5 + $0x28] sm:$0xff] (!%p654_p2)  ;;  %v747_v6 = vld [vmem:[%s4671_s5 + $0x38] sm:$0xff] (!%p654_p2) }
  0x15   : > { %v3722_v8 = vpack.c.bf16 %v742_v4, %v740_v2  ;;  %v3724_v9 = vpack.c.bf16 %v747_v6, %v745_v5  ;;  %v744_v10 = vld [vmem:[%s4671_s5 + $0x20] sm:$0xff]  ;;  %v746_v11 = vld [vmem:[%s4671_s5 + $0x30] sm:$0xff]  ;;  %v749_v12 = vld [vmem:[%s4671_s5 + $0x48] sm:$0xff]  ;;  %s4687_s30 = smov (!%p722_p3, %s3375_s30), 1 }
  0x16   : > { %3721 = vmatprep.subr.bf16.mxu0 %v3720_v3  ;;  %v751_v13 = vld [vmem:[%s4671_s5 + $0x58] sm:$0xff]  ;;  %v3726_v14 = vpack.c.bf16 %v746_v11, %v744_v10  ;;  %v748_v16 = vld [vmem:[%s4671_s5 + $0x40] sm:$0xff]  ;;  %v750_v17 = vld [vmem:[%s4671_s5 + $0x50] sm:$0xff]  ;;  %s4095_s28 = sshll.u32 %s4687_s30, 3 }
  0x17   : > { %3723 = vmatpush1.bf16.msra.mxu0 %v3722_v8  ;;  %v3728_v15 = vpack.c.bf16 %v751_v13, %v749_v12  ;;  %v753_v18 = vld [vmem:[%s4671_s5 + $0x68] sm:$0xff]  ;;  %v755_v19 = vld [vmem:[%s4671_s5 + $0x78] sm:$0xff]  ;;  %v3730_v20 = vpack.c.bf16 %v750_v17, %v748_v16  ;;  %v752_v22 = vld [vmem:[%s4671_s5 + $0x60] sm:$0xff]  ;;  %s725_s24 = scalar_lea.vmem %s4672_s0, %s4095_s28  ;;  %s728_s0 = scalar_lea.vmem %s4674_s3, %s4687_s30 }
  0x18   : > { %3725 = vmatprep.subr.bf16.mxu0 %v3724_v9  ;;  %v3732_v21 = vpack.c.bf16 %v755_v19, %v753_v18  ;;  %v754_v23 = vld [vmem:[%s4671_s5 + $0x70] sm:$0xff]  ;;  %v4101_v25 = vld [vmem:[%s725_s24] sm:$0xff]  ;;  %s4656_s30 = smov 32   ;;  %s4658_s24 = smov 96  }
  0x19   : > { %v3734_v24 = vpack.c.bf16 %v754_v23, %v752_v22  ;;  %v756_v29 = vld [vmem:[%s4673_s26] sm:$0x3]  ;;  %s4675_s26 = sld [smem:[#allocation7_spill]] }
  0x1a   : > { %v761_v30 = vrot.slane %v756_v29, %v760_v28  ;;  %v765_v35 = vrot.slane %v756_v29, %v764_v34  ;;  %v4147_v43 = vld [vmem:[%s728_s0] ss:$0 sm:$0xff] }
  0x1b   : > { %3727 = vmatpush1.bf16.msra.mxu0 %v3726_v14 }
  0x1c   : > { %3729 = vmatprep.subr.bf16.mxu0 %v3728_v15 }
  0x1f   : > { %3731 = vmatpush1.bf16.msra.mxu0 %v3730_v20  ;;  %v845_v3 = vld [vmem:[%s4675_s26 + $0x10] sm:$0xff]  ;;  %v846_v4 = vld [vmem:[%s4675_s26 + $0x18] sm:$0xff]  ;;  %v843_v9 = vld [vmem:[%s4675_s26] sm:$0xff] }
  0x20   : > { %3733 = vmatprep.subr.bf16.mxu0 %v3732_v21  ;;  %v3737_v6 = vpack.c.bf16 %v846_v4, %v845_v3  ;;  %v844_v10 = vld [vmem:[%s4675_s26 + $0x8] sm:$0xff] }
  0x21   : > { %v3740_v11 = vpack.c.bf16 %v844_v10, %v843_v9  ;;  %v3401_v9 = vld [vmem:[%s4676_s25] ss:$0 sm:$0xff]  ;;  %s4685_s25 = smov 16  }
  0x23   : > { %3735 = vmatpush1.bf16.msra.mxu0 %v3734_v24 }
  0x24   : > { %3546 = vmatprep.subr.mxu0 %v3900_v7 }
  0x26   : > { %3383 = vmatmul.mubr.msk.f32.vlgmr.msra.gmra.mrb[0].mxu0 %vm768_vm0, %v4101_v25 }
  0x27   : > { %3548 = vmatprep.mubr.msk.f32.mxu0 %vm3901_vm1, %v3900_v7 }
  0xf9   : > { %v838_v31 = vpop.f32.mrb[0].mxu0 }
  0xfa   : > { %v4118_v32 = vadd.f32 %v838_v31, %v761_v30  ;;  %v840_v33 = vpop.f32.mrb[1].mxu0 }
  0xfb   : > { %v4133_v38 = vadd.f32 %v840_v33, %v765_v35 }
  0xfc   : > { %852 = vrot.lane.b32.xlu1 %v4118_v32, %s4660_s2  ;;  %1024 = vrot.lane.b32.xlu0 %v4118_v32, %s4657_s6  ;;  %s4678_s2 = sld [smem:[#allocation9_spill]]  ;;  %s4680_s6 = smov 64  }
 0x100   : > { %1022 = vrot.lane.b32.xlu0 %v4118_v32, %s4661_s27 }
 0x16e   : > { %v853_v36 = vpop.permute.xlu1 %852  ;;  %v1025_v37 = vpop.permute.xlu0 %1024 }
 0x16f   : > { %3547 = vmatpush3.xpose.msk.msra.mxu0 %vm854_vm2, %v853_v36  ;;  %3557 = vmatpush3.xpose.msk.msra.mxu1 %vm854_vm2, %v1025_v37 }
 0x170   : > { %3551 = vmatprep.subr.mxu0 %v3900_v7  ;;  %3561 = vmatprep.subr.mxu1 %v3900_v7 }
 0x172   : > { %3549 = vmatmul.mubr.msk.f32.vlgmr.msra.gmra.mrb[2].mxu0 %vm854_vm2, %v4118_v32  ;;  %v1023_v39 = vpop.permute.xlu0 %1022 }
 0x173   : > { %3552 = vmatpush3.msra.mxu0 %v4133_v38  ;;  %3559 = vmatmul.mubr.msk.f32.vlgmr.msra.gmra.mrb[0].mxu1 %vm854_vm2, %v1023_v39 }
 0x174   : > { %3563 = vmatprep.mubr.msk.f32.mxu1 %vm3901_vm1, %v3900_v7  ;;  %3553 = vmatprep.mubr.msk.f32.mxu0 %vm3901_vm1, %v3900_v7 }
 0x175   : > { %3736 = vmatprep.subr.bf16.mxu0 %v3907_v61 }
 0x245   : > { %v925_v40 = vpop.f32.mrb[2].mxu0 }
 0x246   : > { %v3550_v41 = vpop.f32.mrb[3].mxu0  ;;  %v1096_v42 = vpop.f32.mrb[0].mxu1  ;;  %v929_v44 = vmul.f32 0.25, %v925_v40  ;;  %v847_v40 = vld [vmem:[%s4675_s26 + $0x20] sm:$0xff] }
 0x247   : > { %v1100_v45 = vmul.f32 0.25, %v1096_v42  ;;  %v3560_v46 = vpop.f32.mrb[1].mxu1  ;;  %v848_v41 = vld [vmem:[%s4675_s26 + $0x28] sm:$0xff] }
 0x248   : > { %v936_v49 = vadd.f32 %v4147_v43, %v929_v44  ;;  %v3743_v42 = vpack.c.bf16 %v848_v41, %v847_v40  ;;  %v1951_v40 = vld [vmem:[%s4638_s11 + $0x30] sm:$0xff]  ;;  %v1952_v41 = vld [vmem:[%s4638_s11 + $0x38] sm:$0xff] }
 0x249   : > { %v1101_v47 = vadd.f32 %v4147_v43, %v1100_v45 }
 0x24a   : > { %v938_v50 = vsel %vm937_vm3, %v936_v49, -inf }
 0x24b   : > { %v1102_v48 = vsel %vm937_vm3, %v1101_v47, -inf }
 0x24c   : > { %1103 = vmax.xlane.f32.xlu1 %v1102_v48 }
 0x250   : > { %939 = vmax.xlane.f32.xlu1 %v938_v50 }
 0x2d9   : > { %v1104_v51 = vpop.xlane.xlu1 %1103 }
 0x2da   : > { %v1105_v52 = vsub.f32 %v1101_v47, %v1104_v51 }
 0x2dc   : > { %v1106_v53 = vmul.f32 1.442695, %v1105_v52 }
 0x2dd   : > { %v940_v54 = vpop.xlane.xlu1 %939 }
 0x2de   : > { %3850 = vpow2.f32 %v1106_v53  ;;  %v941_v55 = vsub.f32 %v936_v49, %v940_v54 }
 0x2e0   : > { %v942_v56 = vmul.f32 1.442695, %v941_v55 }
 0x2e2   : > { %3852 = vpow2.f32 %v942_v56 }
 0x2e8   : > { %v3851_v57 = vpop.eup %3850 }
 0x2e9   : > { %v1108_v58 = vsel %vm937_vm3, %v3851_v57, 0.0 }
 0x2ea   : > { %1109 = vadd.xlane.f32.xlu0 %v1108_v58 }
 0x2ec   : > { %v3853_v59 = vpop.eup %3852 }
 0x2ed   : > { %v944_v60 = vsel %vm937_vm3, %v3853_v59, 0.0 }
 0x2ee   : > { %945 = vadd.xlane.f32.xlu1 %v944_v60  ;;  %v849_v60 = vld [vmem:[%s4675_s26 + $0x30] sm:$0xff] }
 0x2ff   : > { %1338 = vrot.lane.b32.xlu1 %v4118_v32, %s4656_s30  ;;  %s4682_s30 = smov 48  }
 0x300   : > { %1114 = vrot.lane.b32.xlu0 %v4133_v38, %s4661_s27  ;;  %s4681_s27 = smov 96  }
 0x304   : > { %1336 = vrot.lane.b32.xlu0 %v4118_v32, %s4658_s24 }
 0x377   : > { %v1110_v62 = vpop.xlane.xlu0 %1109 }
 0x378   : > { %3854 = vrcp.f32 %v1110_v62 }
 0x37b   : > { %v1115_v63 = vpop.permute.xlu0 %1114  ;;  %v946_v0 = vpop.xlane.xlu1 %945 }
 0x37c   : > { %3856 = vrcp.f32 %v946_v0  ;;  %3562 = vmatpush3.msra.mxu1 %v1115_v63 }
 0x37d   : > { %3739 = vmatprep.subr.bf16.mxu1 %v3907_v61 }
 0x37f   : > { %v1339_v13 = vpop.permute.xlu1 %1338  ;;  %v1337_v15 = vpop.permute.xlu0 %1336 }
 0x382   : > { %v3855_v1 = vpop.eup %3854 }
 0x383   : > { %v1112_v2 = vmul.f32 %v3855_v1, %v3851_v57 }
 0x385   : > { %3564 = vmatmul.mubr.msk.f32.vlgmr.msra.gmra.mrb[2].mxu1 %vm937_vm3, %v1112_v2 }
 0x386   : > { %v3857_v5 = vpop.eup %3856  ;;  %3577 = vmatprep.mubr.msk.f32.mxu1 %vm3901_vm1, %v3900_v7  ;;  %3741 = vmatpush3.bf16.msra.mxu1 %v3740_v11 }
 0x387   : > { %v948_v8 = vmul.f32 %v3857_v5, %v3853_v59  ;;  %3585 = vmatprep.subr.mxu1 %v3900_v7 }
 0x389   : > { %3554 = vmatmul.mubr.msk.f32.vlgmr.msra.gmra.mrb[4].mxu0 %vm937_vm3, %v948_v8 }
 0x38a   : > { %3738 = vmatpush3.bf16.msra.mxu0 %v3737_v6  ;;  %3570 = vmatprep.mubr.msk.f32.mxu0 %vm3901_vm1, %v3900_v7 }
 0x38b   : > { %3580 = vmatprep.subr.mxu0 %v3900_v7 }
 0x458   : > { %v1186_v12 = vpop.f32.mrb[2].mxu1 }
 0x459   : > { %v3565_v14 = vpop.f32.mrb[3].mxu1  ;;  %3571 = vmatmul.mubr.msk.f32.vlgmr.msra.gmra.mrb[6].mxu0 %vm854_vm2, %v1186_v12 }
 0x45a   : > { %3581 = vmatpush3.xpose.msk.msra.mxu0 %vm854_vm2, %v1339_v13  ;;  %3582 = vmatprep.mubr.msk.f32.mxu0 %vm3901_vm1, %v3900_v7 }
 0x45b   : > { %3742 = vmatprep.subr.bf16.mxu0 %v3907_v61 }
 0x45c   : > { %v1018_v16 = vpop.f32.mrb[4].mxu0 }
 0x45d   : > { %v3555_v17 = vpop.f32.mrb[5].mxu0  ;;  %3578 = vmatmul.mubr.msk.f32.vlgmr.msra.gmra.mrb[4].mxu1 %vm854_vm2, %v1018_v16  ;;  %3583 = vmatmul.mubr.msk.f32.vlgmr.msra.gmra.mrb[8].mxu0 %vm854_vm2, %v1337_v15 }
 0x45e   : > { %3587 = vmatprep.mubr.msk.f32.mxu1 %vm3901_vm1, %v3900_v7  ;;  %3594 = vmatprep.mubr.msk.f32.mxu0 %vm3901_vm1, %v3900_v7 }
 0x45f   : > { %3744 = vmatpush3.bf16.msra.mxu0 %v3743_v42  ;;  %v1861_v42 = vld [vmem:[%s4636_s9 + $0x20] sm:$0xff] }
 0x460   : > { %3602 = vmatprep.subr.mxu0 %v3900_v7 }
 0x52c   : > { %v1259_v18 = vpop.f32.mrb[6].mxu0 }
 0x52d   : > { %v3572_v19 = vpop.f32.mrb[7].mxu0 }
 0x530   : > { %v1332_v20 = vpop.f32.mrb[4].mxu1  ;;  %v1410_v21 = vpop.f32.mrb[8].mxu0 }
 0x531   : > { %v4194_v22 = vadd.f32 %v1332_v20, %v1259_v18  ;;  %v1414_v23 = vmul.f32 0.25, %v1410_v21  ;;  %v3579_v24 = vpop.f32.mrb[5].mxu1  ;;  %v3584_v26 = vpop.f32.mrb[9].mxu0  ;;  %v1945_v20 = vld [vmem:[%s4638_s11] sm:$0xff]  ;;  %v1946_v21 = vld [vmem:[%s4638_s11 + $0x8] sm:$0xff] }
 0x532   : > { %v1857_v24 = vld [vmem:[%s4636_s9] sm:$0xff] }
 0x533   : > { %v1415_v29 = vadd.f32 %v4147_v43, %v1414_v23  ;;  %v1948_v23 = vld [vmem:[%s4638_s11 + $0x18] sm:$0xff] }
 0x535   : > { %v1416_v30 = vsel %vm937_vm3, %v1415_v29, -inf }
 0x536   : > { %1417 = vmax.xlane.f32.xlu0 %v1416_v30 }
 0x54c   : > { %1427 = vrot.lane.b32.xlu0 %v4133_v38, %s4658_s24 }
 0x550   : > { %1577 = vrot.lane.b32.xlu0 %v4118_v32, %s4654_s7 }
 0x5c3   : > { %v1418_v31 = vpop.xlane.xlu0 %1417 }
 0x5c4   : > { %v1419_v33 = vsub.f32 %v1415_v29, %v1418_v31  ;;  %v1858_v29 = vld [vmem:[%s4636_s9 + $0x8] sm:$0xff]  ;;  %v1949_v31 = vld [vmem:[%s4638_s11 + $0x20] sm:$0xff] }
 0x5c5   : > { %v3749_v30 = vpack.c.bf16 %v1858_v29, %v1857_v24  ;;  %v2035_v29 = vld [vmem:[%s4640_s13 + $0x10] sm:$0xff] }
 0x5c6   : > { %v1420_v35 = vmul.f32 1.442695, %v1419_v33  ;;  %v1950_v33 = vld [vmem:[%s4638_s11 + $0x28] sm:$0xff] }
 0x5c7   : > { %v1428_v36 = vpop.permute.xlu0 %1427 }
 0x5c8   : > { %3858 = vpow2.f32 %v1420_v35  ;;  %3586 = vmatpush3.msra.mxu1 %v1428_v36  ;;  %v1859_v35 = vld [vmem:[%s4636_s9 + $0x10] sm:$0xff]  ;;  %v3767_v36 = vpack.c.bf16 %v1950_v33, %v1949_v31 }
 0x5c9   : > { %3597 = vmatprep.subr.mxu1 %v3900_v7 }
 0x5d2   : > { %v3859_v37 = vpop.eup %3858 }
 0x5d3   : > { %v1422_v39 = vsel %vm937_vm3, %v3859_v37, 0.0 }
 0x5d4   : > { %1423 = vadd.xlane.f32.xlu1 %v1422_v39 }
 0x5e5   : > { %1579 = vrot.lane.b32.xlu1 %v4118_v32, %s4653_s29  ;;  %v1578_v32 = vpop.permute.xlu0 %1577  ;;  %s4677_s29 = sld [smem:[#allocation4_spill]] }
 0x5eb   : > { %s732_s1 = scalar_lea.vmem %s4677_s29, %s4095_s28 }
 0x661   : > { %v1424_v44 = vpop.xlane.xlu1 %1423 }
 0x662   : > { %3860 = vrcp.f32 %v1424_v44  ;;  %v3770_v44 = vpack.c.bf16 %v1952_v41, %v1951_v40 }
 0x665   : > { %v1580_v47 = vpop.permute.xlu1 %1579 }
 0x66c   : > { %v3861_v45 = vpop.eup %3860 }
 0x66d   : > { %v1426_v46 = vmul.f32 %v3861_v45, %v3859_v37  ;;  %v1860_v37 = vld [vmem:[%s4636_s9 + $0x18] sm:$0xff]  ;;  %v1862_v45 = vld [vmem:[%s4636_s9 + $0x28] sm:$0xff] }
 0x66e   : > { %v3752_v39 = vpack.c.bf16 %v1860_v37, %v1859_v35  ;;  %v2034_v37 = vld [vmem:[%s4640_s13 + $0x8] sm:$0xff] }
 0x66f   : > { %3588 = vmatmul.mubr.msk.f32.vlgmr.msra.gmra.mrb[6].mxu1 %vm937_vm3, %v1426_v46  ;;  %v3755_v46 = vpack.c.bf16 %v1862_v45, %v1861_v42 }
 0x670   : > { %3598 = vmatpush3.xpose.msk.msra.mxu1 %vm854_vm2, %v1580_v47  ;;  %3599 = vmatprep.mubr.msk.f32.mxu1 %vm3901_vm1, %v3900_v7  ;;  %v1863_v47 = vld [vmem:[%s4636_s9 + $0x30] sm:$0xff] }
 0x671   : > { %3745 = vmatprep.subr.bf16.mxu1 %v3907_v61 }
 0x673   : > { %3600 = vmatmul.mubr.msk.f32.vlgmr.msra.gmra.mrb[8].mxu1 %vm854_vm2, %v1578_v32  ;;  %v1864_v32 = vld [vmem:[%s4636_s9 + $0x38] sm:$0xff] }
 0x674   : > { %3611 = vmatprep.mubr.msk.f32.mxu1 %vm3901_vm1, %v3900_v7 }
 0x742   : > { %v1499_v48 = vpop.f32.mrb[6].mxu1 }
 0x743   : > { %v3589_v49 = vpop.f32.mrb[7].mxu1  ;;  %3595 = vmatmul.mubr.msk.f32.vlgmr.msra.gmra.mrb[10].mxu0 %vm854_vm2, %v1499_v48  ;;  %v739_v48 = vld [vmem:[%s732_s1] sm:$0x1f]  ;;  %s4679_s1 = smov 112  }
 0x744   : > { %3604 = vmatprep.mubr.msk.f32.mxu0 %vm3901_vm1, %v3900_v7  ;;  %v3758_v49 = vpack.c.bf16 %v1864_v32, %v1863_v47 }
 0x746   : > { %v1651_v50 = vpop.f32.mrb[8].mxu1 }
 0x747   : > { %v1655_v51 = vmul.f32 0.25, %v1651_v50  ;;  %v3601_v52 = vpop.f32.mrb[9].mxu1 }
 0x749   : > { %v1656_v53 = vadd.f32 %v4147_v43, %v1655_v51  ;;  %v850_v43 = vld [vmem:[%s4675_s26 + $0x38] sm:$0xff] }
 0x74a   : > { %v3746_v62 = vpack.c.bf16 %v850_v43, %v849_v60 }
 0x74b   : > { %v1657_v54 = vsel %vm937_vm3, %v1656_v53, -inf }
 0x74c   : > { %1658 = vmax.xlane.f32.xlu1 %v1657_v54  ;;  %3747 = vmatpush3.bf16.msra.mxu1 %v3746_v62  ;;  %v3402_v54 = vld [vmem:[%s4678_s2] ss:$0 sm:$0xff] }
 0x74d   : > { %3760 = vmatprep.subr.bf16.mxu1 %v3907_v61 }
 0x7d9   : > { %v1659_v55 = vpop.xlane.xlu1 %1658 }
 0x7da   : > { %v1660_v56 = vsub.f32 %v1656_v53, %v1659_v55 }
 0x7dc   : > { %v1661_v57 = vmul.f32 1.442695, %v1660_v56  ;;  %v3403_v56 = vld [vmem:[%s4635_s8] ss:$0 sm:$0xff] }
 0x7de   : > { %3862 = vpow2.f32 %v1661_v57 }
 0x7e8   : > { %v3863_v58 = vpop.eup %3862 }
 0x7e9   : > { %v1663_v59 = vsel %vm937_vm3, %v3863_v58, 0.0 }
 0x7ea   : > { %1664 = vadd.xlane.f32.xlu0 %v1663_v59  ;;  %v3406_v59 = vld [vmem:[%s4639_s12] ss:$0 sm:$0xff] }
 0x800   : > { %1668 = vrot.lane.b32.xlu0 %v4133_v38, %s4654_s7 }
 0x816   : > { %v1572_v63 = vpop.f32.mrb[10].mxu0 }
 0x817   : > { %v1576_v0 = vadd.f32 %v1572_v63, %v4194_v22  ;;  %v3596_v1 = vpop.f32.mrb[11].mxu0  ;;  %v3761_v22 = vpack.c.bf16 %v1946_v21, %v1945_v20  ;;  %v3404_v63 = vld [vmem:[%s4637_s10] ss:$0 sm:$0xff] }
 0x877   : > { %v1665_v2 = vpop.xlane.xlu0 %1664 }
 0x878   : > { %3864 = vrcp.f32 %v1665_v2 }
 0x87b   : > { %v1669_v3 = vpop.permute.xlu0 %1668 }
 0x87c   : > { %3603 = vmatpush3.msra.mxu0 %v1669_v3 }
 0x87d   : > { %3748 = vmatprep.subr.bf16.mxu0 %v3907_v61 }
 0x882   : > { %v3865_v38 = vpop.eup %3864 }
 0x883   : > { %v1667_v4 = vmul.f32 %v3865_v38, %v3863_v58 }
 0x885   : > { %3605 = vmatmul.mubr.msk.f32.vlgmr.msra.gmra.mrb[12].mxu0 %vm937_vm3, %v1667_v4 }
 0x886   : > { %3630 = vmatprep.mubr.msk.f32.mxu0 %vm3901_vm1, %v3900_v7  ;;  %3750 = vmatpush3.bf16.msra.mxu0 %v3749_v30  ;;  %v2036_v30 = vld [vmem:[%s4640_s13 + $0x18] sm:$0xff] }
 0x887   : > { %3751 = vmatprep.subr.bf16.mxu0 %v3907_v61  ;;  %v3773_v31 = vpack.c.bf16 %v2036_v30, %v2035_v29 }
 0x88a   : > { %3753 = vmatpush3.bf16.msra.mxu0 %v3752_v39 }
 0x88b   : > { %3754 = vmatprep.subr.bf16.mxu0 %v3907_v61 }
 0x88e   : > { %3756 = vmatpush3.bf16.msra.mxu0 %v3755_v46 }
 0x88f   : > { %3757 = vmatprep.subr.bf16.mxu0 %v3907_v61 }
 0x892   : > { %3759 = vmatpush3.bf16.msra.mxu0 %v3758_v49 }
 0x893   : > { %3652 = vmatprep.subr.mxu0 %v3900_v7 }
 0x958   : > { %v1740_v5 = vpop.f32.mrb[12].mxu0 }
 0x959   : > { %v3606_v6 = vpop.f32.mrb[13].mxu0  ;;  %3612 = vmatmul.mubr.msk.f32.vlgmr.msra.gmra.mrb[10].mxu1 %vm854_vm2, %v1740_v5 }
 0x95a   : > { %3649 = vmatprep.mubr.msk.f32.mxu1 %vm3901_vm1, %v3900_v7  ;;  %3762 = vmatpush3.bf16.msra.mxu1 %v3761_v22 }
 0x95b   : > { %3763 = vmatprep.subr.bf16.mxu1 %v3907_v61 }
 0xa2c   : > { %v1813_v8 = vpop.f32.mrb[10].mxu1 }
 0xa2d   : > { %v1817_v10 = vadd.f32 %v1813_v8, %v1576_v0  ;;  %v3613_v11 = vpop.f32.mrb[11].mxu1 }
 0xa2f   : > { %v1825_v12 = vadd.f32 %v3401_v9, %v1817_v10 }
 0xa31   : > { %v1826_v13 = vadd.f32 %v1825_v12, %v4101_v25  ;;  %v1947_v25 = vld [vmem:[%s4638_s11 + $0x10] sm:$0xff] }
 0xa32   : > { %v3764_v26 = vpack.c.bf16 %v1948_v23, %v1947_v25 }
 0xa33   : > { %v1829_v14 = vsel %vm768_vm0, %v1826_v13, 0.0 }
 0xa34   : > { %1830 = vadd.xlane.f32.xlu1 %v1829_v14  ;;  %3765 = vmatpush3.bf16.msra.mxu1 %v3764_v26 }
 0xa35   : > { %3766 = vmatprep.subr.bf16.mxu1 %v3907_v61 }
 0xa38   : > { %3768 = vmatpush3.bf16.msra.mxu1 %v3767_v36  ;;  %v2033_v36 = vld [vmem:[%s4640_s13] sm:$0xff] }
 0xa39   : > { %3769 = vmatprep.subr.bf16.mxu1 %v3907_v61  ;;  %v3776_v40 = vpack.c.bf16 %v2034_v37, %v2033_v36 }
 0xa3c   : > { %3771 = vmatpush3.bf16.msra.mxu1 %v3770_v44 }
 0xa3d   : > { %3657 = vmatprep.subr.mxu1 %v3900_v7 }
 0xa3f   : > { %3650 = vmatmul.mubr.msk.f32.vlgmr.msra.gmra.mrb[12].mxu1 %vm768_vm0, %v739_v48 }
 0xa40   : > { %3659 = vmatprep.mubr.msk.f32.mxu1 %vm3901_vm1, %v3900_v7 }
 0xac1   : > { %v1831_v15 = vpop.xlane.xlu1 %1830 }
 0xac2   : > { %v1833_v16 = vmul.f32 0.015625, %v1831_v15 }
 0xac4   : > { %v1834_v17 = vsub.f32 %v1826_v13, %v1833_v16 }
 0xac6   : > { %v1835_v18 = vmul.f32 %v1834_v17, %v1834_v17 }
 0xac8   : > { %v1836_v19 = vsel %vm768_vm0, %v1835_v18, 0.0 }
 0xac9   : > { %1837 = vadd.xlane.f32.xlu1 %v1836_v19 }
 0xb12   : > { %v2029_v60 = vpop.f32.mrb[12].mxu1 }
 0xb13   : > { %v4328_v43 = vadd.f32 %v3406_v59, %v2029_v60  ;;  %v3651_v62 = vpop.f32.mrb[13].mxu1 }
 0xb15   : > { %2210 = vrot.lane.b32.xlu1 %v4328_v43, %s4679_s1 }
 0xb56   : > { %v1838_v50 = vpop.xlane.xlu1 %1837 }
 0xb57   : > { %v1839_v51 = vmul.f32 0.015625, %v1838_v50 }
 0xb59   : > { %v1840_v52 = vadd.f32 1e-12, %v1839_v51 }
 0xb5b   : > { %3866 = vrsqrt.f32 %v1840_v52 }
 0xb65   : > { %v3867_v53 = vpop.eup %3866 }
 0xb66   : > { %v1842_v55 = vmul.f32 %v3867_v53, %v1834_v17 }
 0xb68   : > { %v1849_v57 = vmul.f32 %v3402_v54, %v1842_v55 }
 0xb6a   : > { %v4319_v58 = vadd.f32 %v3403_v56, %v1849_v57 }
 0xb6c   : > { %3631 = vmatmul.mubr.msk.f32.vlgmr.msra.gmra.mrb[14].mxu0 %vm768_vm0, %v4319_v58 }
 0xb6d   : > { %3654 = vmatprep.mubr.msk.f32.mxu0 %vm3901_vm1, %v3900_v7  ;;  %3653 = vmatpush3.xpose.msk.msra.mxu0 %vm854_vm2, %v4328_v43 }
 0xb6e   : > { %3662 = vmatprep.subr.mxu0 %v3900_v7 }
 0xb87   : > { %v2211_v3 = vpop.permute.xlu1 %2210 }
 0xc3f   : > { %v1941_v0 = vpop.f32.mrb[14].mxu0 }
 0xc40   : > { %v4338_v1 = vadd.f32 %v3404_v63, %v1941_v0  ;;  %v3632_v2 = vpop.f32.mrb[15].mxu0 }
 0xc41   : > { %v2038_v2 = vld [vmem:[%s4640_s13 + $0x28] sm:$0xff] }
 0xc42   : > { %2208 = vrot.lane.b32.xlu0 %v4338_v1, %s4679_s1  ;;  %3655 = vmatmul.mubr.msk.f32.vlgmr.msra.gmra.mrb[16].mxu0 %vm854_vm2, %v4338_v1 }
 0xc43   : > { %3663 = vmatpush3.xpose.msk.msra.mxu0 %vm854_vm2, %v2211_v3  ;;  %3664 = vmatprep.mubr.msk.f32.mxu0 %vm3901_vm1, %v3900_v7 }
 0xc44   : > { %3772 = vmatprep.subr.bf16.mxu0 %v3907_v61 }
 0xcb4   : > { %v2209_v38 = vpop.permute.xlu0 %2208 }
 0xcb5   : > { %3665 = vmatmul.mubr.msk.f32.vlgmr.msra.gmra.mrb[18].mxu0 %vm854_vm2, %v2209_v38 }
 0xcb6   : > { %3676 = vmatprep.mubr.msk.f32.mxu0 %vm3901_vm1, %v3900_v7  ;;  %3774 = vmatpush3.bf16.msra.mxu0 %v3773_v31 }
 0xcb7   : > { %3686 = vmatprep.subr.mxu0 %v3900_v7 }
 0xd15   : > { %v2113_v4 = vpop.f32.mrb[16].mxu0 }
 0xd16   : > { %v2117_v5 = vmul.f32 0.25, %v2113_v4  ;;  %v3656_v6 = vpop.f32.mrb[17].mxu0 }
 0xd18   : > { %v2119_v8 = vsel %vm2118_vm4, %v2117_v5, -inf }
 0xd19   : > { %2120 = vmax.xlane.f32.xlu0 %v2119_v8 }
 0xd88   : > { %v2282_v9 = vpop.f32.mrb[18].mxu0 }
 0xd89   : > { %v2286_v10 = vmul.f32 0.25, %v2282_v9  ;;  %v3666_v11 = vpop.f32.mrb[19].mxu0 }
 0xd8b   : > { %v2287_v12 = vsel %vm2118_vm4, %v2286_v10, -inf }
 0xd8c   : > { %2288 = vmax.xlane.f32.xlu1 %v2287_v12 }
 0xd9d   : > { %2130 = vrot.lane.b32.xlu1 %v4328_v43, %s4680_s6  ;;  %s4683_s6 = smov 32  }
 0xda1   : > { %2523 = vrot.lane.b32.xlu1 %v4328_v43, %s4681_s27 }
 0xda5   : > { %2521 = vrot.lane.b32.xlu1 %v4338_v1, %s4681_s27  ;;  %s4684_s27 = smov 80  }
 0xda6   : > { %v2121_v13 = vpop.xlane.xlu0 %2120 }
 0xda7   : > { %v2122_v14 = vsub.f32 %v2117_v5, %v2121_v13 }
 0xda9   : > { %v2123_v15 = vmul.f32 1.442695, %v2122_v14 }
 0xdab   : > { %3868 = vpow2.f32 %v2123_v15 }
 0xdb5   : > { %v3869_v16 = vpop.eup %3868 }
 0xdb6   : > { %v2125_v17 = vsel %vm2118_vm4, %v3869_v16, 0.0 }
 0xdb7   : > { %2126 = vadd.xlane.f32.xlu0 %v2125_v17 }
 0xe19   : > { %v2289_v18 = vpop.xlane.xlu1 %2288 }
 0xe1a   : > { %v2290_v19 = vsub.f32 %v2286_v10, %v2289_v18 }
 0xe1c   : > { %v2291_v20 = vmul.f32 1.442695, %v2290_v19  ;;  %v2039_v19 = vld [vmem:[%s4640_s13 + $0x30] sm:$0xff] }
 0xe1d   : > { %v2131_v21 = vpop.permute.xlu1 %2130 }
 0xe1e   : > { %3870 = vpow2.f32 %v2291_v20  ;;  %3658 = vmatpush3.msk.msra.mxu1 %vm2135_vm5, %v2131_v21  ;;  %v2040_v20 = vld [vmem:[%s4640_s13 + $0x38] sm:$0xff] }
 0xe1f   : > { %3667 = vmatprep.subr.mxu1 %v3900_v7  ;;  %v3782_v21 = vpack.c.bf16 %v2040_v20, %v2039_v19 }
 0xe21   : > { %v2524_v45 = vpop.permute.xlu1 %2523 }
 0xe25   : > { %v2522_v32 = vpop.permute.xlu1 %2521 }
 0xe28   : > { %v3871_v22 = vpop.eup %3870 }
 0xe29   : > { %v2293_v25 = vsel %vm2118_vm4, %v3871_v22, 0.0 }
 0xe2a   : > { %2294 = vadd.xlane.f32.xlu0 %v2293_v25 }
 0xe40   : > { %2298 = vrot.lane.b32.xlu0 %v4328_v43, %s4682_s30  ;;  %s736_s30 = scalar_lea.vmem %s4650_s23, %s4095_s28 }
 0xe44   : > { %v2127_v23 = vpop.xlane.xlu0 %2126 }
 0xe45   : > { %3872 = vrcp.f32 %v2127_v23 }
 0xe4f   : > { %v3873_v24 = vpop.eup %3872 }
 0xe50   : > { %v2129_v26 = vmul.f32 %v3873_v24, %v3869_v16 }
 0xe52   : > { %3660 = vmatmul.mubr.msk.f32.vlgmr.msra.gmra.mrb[14].mxu1 %vm2118_vm4, %v2129_v26 }
 0xe53   : > { %3669 = vmatprep.mubr.msk.f32.mxu1 %vm3901_vm1, %v3900_v7 }
 0xeb7   : > { %v2295_v33 = vpop.xlane.xlu0 %2294 }
 0xeb8   : > { %3874 = vrcp.f32 %v2295_v33 }
 0xebb   : > { %v2299_v35 = vpop.permute.xlu0 %2298 }
 0xebc   : > { %3668 = vmatpush3.msk.msra.mxu1 %vm2135_vm5, %v2299_v35  ;;  %v3428_v35 = vld [vmem:[%s4641_s14] ss:$0 sm:$0xff] }
 0xebd   : > { %3775 = vmatprep.subr.bf16.mxu1 %v3907_v61 }
 0xec2   : > { %v3875_v39 = vpop.eup %3874 }
 0xec3   : > { %v2297_v41 = vmul.f32 %v3875_v39, %v3871_v22 }
 0xec5   : > { %3670 = vmatmul.mubr.msk.f32.vlgmr.msra.gmra.mrb[16].mxu1 %vm2118_vm4, %v2297_v41 }
 0xec6   : > { %3777 = vmatpush3.bf16.msra.mxu1 %v3776_v40  ;;  %3683 = vmatprep.mubr.msk.f32.mxu1 %vm3901_vm1, %v3900_v7 }
 0xec7   : > { %3691 = vmatprep.subr.mxu1 %v3900_v7 }
 0xf25   : > { %v2204_v42 = vpop.f32.mrb[14].mxu1 }
 0xf26   : > { %v3661_v44 = vpop.f32.mrb[15].mxu1  ;;  %3684 = vmatmul.mubr.msk.f32.vlgmr.msra.gmra.mrb[18].mxu1 %vm854_vm2, %v2204_v42 }
 0xf27   : > { %3693 = vmatprep.mubr.msk.f32.mxu1 %vm3901_vm1, %v3900_v7 }
 0xf98   : > { %v2371_v46 = vpop.f32.mrb[16].mxu1 }
 0xf99   : > { %v3671_v47 = vpop.f32.mrb[17].mxu1  ;;  %3677 = vmatmul.mubr.msk.f32.vlgmr.msra.gmra.mrb[20].mxu0 %vm854_vm2, %v2371_v46 }
 0xf9a   : > { %3687 = vmatpush3.xpose.msk.msra.mxu0 %vm854_vm2, %v2524_v45  ;;  %3688 = vmatprep.mubr.msk.f32.mxu0 %vm3901_vm1, %v3900_v7  ;;  %v3042_v47 = vld [vmem:[%s4644_s17 + $0x8] sm:$0xff] }
 0xf9b   : > { %3778 = vmatprep.subr.bf16.mxu0 %v3907_v61 }
 0xf9d   : > { %3689 = vmatmul.mubr.msk.f32.vlgmr.msra.gmra.mrb[22].mxu0 %vm854_vm2, %v2522_v32  ;;  %v3044_v32 = vld [vmem:[%s4644_s17 + $0x18] sm:$0xff] }
 0xf9e   : > { %3700 = vmatprep.mubr.msk.f32.mxu0 %vm3901_vm1, %v3900_v7 }
 0xff9   : > { %v2517_v48 = vpop.f32.mrb[18].mxu1 }
 0xffa   : > { %v3685_v49 = vpop.f32.mrb[19].mxu1 }
 0xffb   : > { %v3043_v49 = vld [vmem:[%s4644_s17 + $0x10] sm:$0xff] }
0x106c   : > { %v2444_v50 = vpop.f32.mrb[20].mxu0 }
0x106d   : > { %v2518_v51 = vadd.f32 %v2517_v48, %v2444_v50  ;;  %v3678_v52 = vpop.f32.mrb[21].mxu0  ;;  %v3784_v48 = vpack.c.bf16 %v3044_v32, %v3042_v47  ;;  %v3187_v32 = vld [vmem:[%s4646_s19 + $0xd0] sm:$0xff] }
0x106e   : > { %v3048_v52 = vld [vmem:[%s4644_s17 + $0x38] sm:$0xff] }
0x1070   : > { %v2595_v53 = vpop.f32.mrb[22].mxu0 }
0x1071   : > { %v2599_v54 = vmul.f32 0.25, %v2595_v53  ;;  %v3690_v55 = vpop.f32.mrb[23].mxu0 }
0x1072   : > { %v3047_v55 = vld [vmem:[%s4644_s17 + $0x30] sm:$0xff] }
0x1073   : > { %v2600_v56 = vsel %vm2118_vm4, %v2599_v54, -inf }
0x1074   : > { %2601 = vmax.xlane.f32.xlu0 %v2600_v56 }
0x108a   : > { %2611 = vrot.lane.b32.xlu0 %v4328_v43, %s4683_s6 }
0x108e   : > { %2762 = vrot.lane.b32.xlu0 %v4338_v1, %s4684_s27  ;;  %v2037_v1 = vld [vmem:[%s4640_s13 + $0x20] sm:$0xff] }
0x108f   : > { %v3779_v3 = vpack.c.bf16 %v2038_v2, %v2037_v1  ;;  %v3054_v1 = vld [vmem:[%s4644_s17 + $0x68] sm:$0xff]  ;;  %v3056_v2 = vld [vmem:[%s4644_s17 + $0x78] sm:$0xff] }
0x1091   : > { %3780 = vmatpush3.bf16.msra.mxu0 %v3779_v3  ;;  %v3053_v3 = vld [vmem:[%s4644_s17 + $0x60] sm:$0xff] }
0x1092   : > { %3708 = vmatprep.subr.mxu0 %v3900_v7 }
0x1101   : > { %v2602_v57 = vpop.xlane.xlu0 %2601 }
0x1102   : > { %v2603_v59 = vsub.f32 %v2599_v54, %v2602_v57  ;;  %v3045_v54 = vld [vmem:[%s4644_s17 + $0x20] sm:$0xff]  ;;  %v3050_v57 = vld [vmem:[%s4644_s17 + $0x48] sm:$0xff] }
0x1103   : > { %v3790_v56 = vpack.c.bf16 %v3047_v55, %v3045_v54 }
0x1104   : > { %v2604_v60 = vmul.f32 1.442695, %v2603_v59  ;;  %v3052_v59 = vld [vmem:[%s4644_s17 + $0x58] sm:$0xff] }
0x1105   : > { %v2612_v62 = vpop.permute.xlu0 %2611 }
0x1106   : > { %3876 = vpow2.f32 %v2604_v60  ;;  %3692 = vmatpush3.msk.msra.mxu1 %vm2135_vm5, %v2612_v62  ;;  %v3792_v60 = vpack.c.bf16 %v3052_v59, %v3050_v57  ;;  %v3049_v62 = vld [vmem:[%s4644_s17 + $0x40] sm:$0xff]  ;;  %v3174_v57 = vld [vmem:[%s4646_s19 + $0x68] sm:$0xff]  ;;  %v3191_v59 = vld [vmem:[%s4646_s19 + $0xf0] sm:$0xff] }
0x1107   : > { %3703 = vmatprep.subr.mxu1 %v3900_v7 }
0x1109   : > { %v2763_v8 = vpop.permute.xlu0 %2762 }
0x1110   : > { %v3877_v63 = vpop.eup %3876 }
0x1111   : > { %v2606_v0 = vsel %vm2118_vm4, %v3877_v63, 0.0 }
0x1112   : > { %2607 = vadd.xlane.f32.xlu1 %v2606_v0 }
0x1123   : > { %2764 = vrot.lane.b32.xlu1 %v4328_v43, %s4684_s27 }
0x119f   : > { %v2608_v38 = vpop.xlane.xlu1 %2607 }
0x11a0   : > { %3878 = vrcp.f32 %v2608_v38  ;;  %v3796_v38 = vpack.c.bf16 %v3056_v2, %v3054_v1  ;;  %v3176_v1 = vld [vmem:[%s4646_s19 + $0x78] sm:$0xff] }
0x11a3   : > { %v2765_v6 = vpop.permute.xlu1 %2764 }
0x11aa   : > { %v3879_v4 = vpop.eup %3878 }
0x11ab   : > { %v2610_v5 = vmul.f32 %v3879_v4, %v3877_v63  ;;  %v3051_v63 = vld [vmem:[%s4644_s17 + $0x50] sm:$0xff] }
0x11ac   : > { %v3794_v0 = vpack.c.bf16 %v3051_v63, %v3049_v62  ;;  %v3055_v4 = vld [vmem:[%s4644_s17 + $0x70] sm:$0xff] }
0x11ad   : > { %3694 = vmatmul.mubr.msk.f32.vlgmr.msra.gmra.mrb[20].mxu1 %vm2118_vm4, %v2610_v5  ;;  %v3798_v5 = vpack.c.bf16 %v3055_v4, %v3053_v3  ;;  %v3057_v3 = vld [vmem:[%s4645_s18] sm:$0x3] }
0x11ae   : > { %3704 = vmatpush3.xpose.msk.msra.mxu1 %vm854_vm2, %v2765_v6  ;;  %3705 = vmatprep.mubr.msk.f32.mxu1 %vm3901_vm1, %v3900_v7  ;;  %v3177_v6 = vld [vmem:[%s4646_s19 + $0x80] sm:$0xff]  ;;  %v3066_v4 = vrot.slane %v3057_v3, %v764_v34 }
0x11af   : > { %3781 = vmatprep.subr.bf16.mxu1 %v3907_v61 }
0x11b1   : > { %3706 = vmatmul.mubr.msk.f32.vlgmr.msra.gmra.mrb[22].mxu1 %vm854_vm2, %v2763_v8  ;;  %v3178_v8 = vld [vmem:[%s4646_s19 + $0x88] sm:$0xff] }
0x11b2   : > { %3717 = vmatprep.mubr.msk.f32.mxu1 %vm3901_vm1, %v3900_v7  ;;  %3783 = vmatpush3.bf16.msra.mxu1 %v3782_v21  ;;  %v3179_v21 = vld [vmem:[%s4646_s19 + $0x90] sm:$0xff] }
0x1280   : > { %v2684_v9 = vpop.f32.mrb[20].mxu1 }
0x1281   : > { %v3695_v10 = vpop.f32.mrb[21].mxu1  ;;  %3701 = vmatmul.mubr.msk.f32.vlgmr.msra.gmra.mrb[24].mxu0 %vm854_vm2, %v2684_v9  ;;  %v3161_v9 = vld [vmem:[%s4646_s19] sm:$0xff] }
0x1282   : > { %3710 = vmatprep.mubr.msk.f32.mxu0 %vm3901_vm1, %v3900_v7  ;;  %v3800_v10 = vpack.c.bf16 %v3178_v8, %v3177_v6 }
0x1284   : > { %v2836_v11 = vpop.f32.mrb[22].mxu1  ;;  %3801 = vmatprep.subr.bf16.mxu1 %v3800_v10 }
0x1285   : > { %v2840_v12 = vmul.f32 0.25, %v2836_v11  ;;  %v3707_v13 = vpop.f32.mrb[23].mxu1  ;;  %v3162_v11 = vld [vmem:[%s4646_s19 + $0x8] sm:$0xff] }
0x1287   : > { %v2841_v14 = vsel %vm2118_vm4, %v2840_v12, -inf }
0x1288   : > { %2842 = vmax.xlane.f32.xlu1 %v2841_v14 }
0x1315   : > { %v2843_v61 = vpop.xlane.xlu1 %2842 }
0x1316   : > { %v2844_v15 = vsub.f32 %v2840_v12, %v2843_v61  ;;  %v3802_v12 = vpack.c.bf16 %v3162_v11, %v3161_v9 }
0x1318   : > { %v2845_v16 = vmul.f32 1.442695, %v2844_v15 }
0x131a   : > { %3880 = vpow2.f32 %v2845_v16  ;;  %v3429_v16 = vld [vmem:[%s4642_s15] ss:$0 sm:$0xff] }
0x1324   : > { %v3881_v17 = vpop.eup %3880 }
0x1325   : > { %v2847_v18 = vsel %vm2118_vm4, %v3881_v17, 0.0 }
0x1326   : > { %2848 = vadd.xlane.f32.xlu0 %v2847_v18  ;;  %v3430_v18 = vld [vmem:[%s4643_s16] ss:$0 sm:$0xff] }
0x133c   : > { %2852 = vrot.lane.b32.xlu0 %v4328_v43, %s4685_s25 }
0x1354   : > { %v2757_v22 = vpop.f32.mrb[24].mxu0 }
0x1355   : > { %v2761_v25 = vadd.f32 %v2757_v22, %v2518_v51  ;;  %v3702_v23 = vpop.f32.mrb[25].mxu0  ;;  %v3046_v51 = vld [vmem:[%s4644_s17 + $0x28] sm:$0xff]  ;;  %v3180_v22 = vld [vmem:[%s4646_s19 + $0x98] sm:$0xff] }
0x1356   : > { %v3788_v53 = vpack.c.bf16 %v3048_v52, %v3046_v51  ;;  %v3163_v23 = vld [vmem:[%s4646_s19 + $0x10] sm:$0xff]  ;;  %v3172_v51 = vld [vmem:[%s4646_s19 + $0x58] sm:$0xff]  ;;  %v3189_v52 = vld [vmem:[%s4646_s19 + $0xe0] sm:$0xff] }
0x13b3   : > { %v2849_v24 = vpop.xlane.xlu0 %2848 }
0x13b4   : > { %3882 = vrcp.f32 %v2849_v24  ;;  %v3164_v24 = vld [vmem:[%s4646_s19 + $0x18] sm:$0xff] }
0x13b7   : > { %v2853_v26 = vpop.permute.xlu0 %2852 }
0x13b8   : > { %3709 = vmatpush3.msk.msra.mxu0 %vm2135_vm5, %v2853_v26  ;;  %v3806_v26 = vpack.c.bf16 %v3164_v24, %v3163_v23 }
0x13b9   : > { %3785 = vmatprep.subr.bf16.mxu0 %v3784_v48  ;;  %v3188_v48 = vld [vmem:[%s4646_s19 + $0xd8] sm:$0xff] }
0x13be   : > { %v3883_v29 = vpop.eup %3882 }
0x13bf   : > { %v2851_v43 = vmul.f32 %v3883_v29, %v3881_v17  ;;  %v3181_v29 = vld [vmem:[%s4646_s19 + $0xa0] sm:$0xff] }
0x13c1   : > { %3711 = vmatmul.mubr.msk.f32.vlgmr.msra.gmra.mrb[26].mxu0 %vm2118_vm4, %v2851_v43  ;;  %v3182_v43 = vld [vmem:[%s4646_s19 + $0xa8] sm:$0xff] }
0x13c2   : > { %3136 = vmatprep.mubr.f32.mxu0 %v3900_v7 }
0x1494   : > { %v2925_v30 = vpop.f32.mrb[26].mxu0 }
0x1495   : > { %v3712_v31 = vpop.f32.mrb[27].mxu0  ;;  %3718 = vmatmul.mubr.msk.f32.vlgmr.msra.gmra.mrb[24].mxu1 %vm854_vm2, %v2925_v30  ;;  %v3808_v30 = vpack.c.bf16 %v3182_v43, %v3181_v29 }
0x1496   : > { %3803 = vmatpush3.bf16.msra.mxu1 %v3802_v12  ;;  %v3165_v31 = vld [vmem:[%s4646_s19 + $0x20] sm:$0xff] }
0x1568   : > { %v2998_v33 = vpop.f32.mrb[24].mxu1 }
0x1569   : > { %v3002_v36 = vadd.f32 %v2998_v33, %v2761_v25  ;;  %v3719_v37 = vpop.f32.mrb[25].mxu1  ;;  %v3804_v25 = vpack.c.bf16 %v3180_v22, %v3179_v21  ;;  %v3166_v33 = vld [vmem:[%s4646_s19 + $0x28] sm:$0xff] }
0x156a   : > { %v3184_v37 = vld [vmem:[%s4646_s19 + $0xb8] sm:$0xff] }
0x156b   : > { %v3010_v39 = vadd.f32 %v3428_v35, %v3002_v36  ;;  %3805 = vmatprep.subr.bf16.mxu1 %v3804_v25  ;;  %v3810_v35 = vpack.c.bf16 %v3166_v33, %v3165_v31  ;;  %v3183_v36 = vld [vmem:[%s4646_s19 + $0xb0] sm:$0xff] }
0x156c   : > { %3807 = vmatpush3.bf16.msra.mxu1 %v3806_v26  ;;  %v3432_v26 = vld [vmem:[%s4647_s20] ss:$0 sm:$0xff] }
0x156d   : > { %v3011_v40 = vadd.f32 %v3010_v39, %v4319_v58  ;;  %v3041_v58 = vld [vmem:[%s4644_s17] sm:$0xff]  ;;  %3809 = vmatprep.subr.bf16.mxu1 %v3808_v30  ;;  %v3812_v39 = vpack.c.bf16 %v3184_v37, %v3183_v36 }
0x156e   : > { %v3786_v50 = vpack.c.bf16 %v3043_v49, %v3041_v58  ;;  %v3820_v49 = vpack.c.bf16 %v3188_v48, %v3187_v32 }
0x156f   : > { %v3014_v41 = vsel %vm768_vm0, %v3011_v40, 0.0 }
0x1570   : > { %3015 = vadd.xlane.f32.xlu1 %v3014_v41  ;;  %3787 = vmatpush1.bf16.msra.mxu0 %v3786_v50  ;;  %v3168_v41 = vld [vmem:[%s4646_s19 + $0x38] sm:$0xff]  ;;  %v3171_v50 = vld [vmem:[%s4646_s19 + $0x50] sm:$0xff] }
0x1571   : > { %3789 = vmatprep.subr.bf16.mxu0 %v3788_v53  ;;  %3811 = vmatpush3.bf16.msra.mxu1 %v3810_v35  ;;  %v3190_v53 = vld [vmem:[%s4646_s19 + $0xe8] sm:$0xff]  ;;  %v3822_v54 = vpack.c.bf16 %v3172_v51, %v3171_v50 }
0x1572   : > { %3813 = vmatprep.subr.bf16.mxu1 %v3812_v39  ;;  %v3824_v55 = vpack.c.bf16 %v3190_v53, %v3189_v52 }
0x1574   : > { %3791 = vmatpush1.bf16.msra.mxu0 %v3790_v56  ;;  %v3173_v56 = vld [vmem:[%s4646_s19 + $0x60] sm:$0xff] }
0x1575   : > { %3793 = vmatprep.subr.bf16.mxu0 %v3792_v60  ;;  %v3192_v60 = vld [vmem:[%s4646_s19 + $0xf8] sm:$0xff]  ;;  %v3826_v62 = vpack.c.bf16 %v3174_v57, %v3173_v56 }
0x1576   : > { %v3828_v63 = vpack.c.bf16 %v3192_v60, %v3191_v59 }
0x1578   : > { %3795 = vmatpush1.bf16.msra.mxu0 %v3794_v0  ;;  %v3175_v0 = vld [vmem:[%s4646_s19 + $0x70] sm:$0xff] }
0x1579   : > { %3797 = vmatprep.subr.bf16.mxu0 %v3796_v38  ;;  %v3830_v2 = vpack.c.bf16 %v3176_v1, %v3175_v0  ;;  %v3062_v38 = vrot.slane %v3057_v3, %v760_v28 }
0x157c   : > { %3799 = vmatpush1.bf16.msra.mxu0 %v3798_v5 }
0x15fd   : > { %v3016_v42 = vpop.xlane.xlu1 %3015 }
0x15fe   : > { %v3017_v44 = vmul.f32 0.015625, %v3016_v42  ;;  %v3185_v42 = vld [vmem:[%s4646_s19 + $0xc0] sm:$0xff] }
0x1600   : > { %v3018_v7 = vsub.f32 %v3011_v40, %v3017_v44  ;;  %v3167_v40 = vld [vmem:[%s4646_s19 + $0x30] sm:$0xff] }
0x1601   : > { %v3814_v44 = vpack.c.bf16 %v3168_v41, %v3167_v40 }
0x1602   : > { %v3019_v45 = vmul.f32 %v3018_v7, %v3018_v7 }
0x1603   : > { %3815 = vmatpush3.bf16.msra.mxu1 %v3814_v44 }
0x1604   : > { %v3020_v46 = vsel %vm768_vm0, %v3019_v45, 0.0  ;;  %v3169_v45 = vld [vmem:[%s4646_s19 + $0x40] sm:$0xff] }
0x1605   : > { %3021 = vadd.xlane.f32.xlu1 %v3020_v46  ;;  %v3170_v46 = vld [vmem:[%s4646_s19 + $0x48] sm:$0xff] }
0x1606   : > { %v3818_v58 = vpack.c.bf16 %v3170_v46, %v3169_v45  ;;  %v3434_v46 = vld [vmem:[%s4649_s22] ss:$0 sm:$0xff] }
0x1692   : > { %v3022_v13 = vpop.xlane.xlu1 %3021 }
0x1693   : > { %v3023_v14 = vmul.f32 0.015625, %v3022_v13 }
0x1695   : > { %v3024_v61 = vadd.f32 1e-12, %v3023_v14 }
0x1697   : > { %3884 = vrsqrt.f32 %v3024_v61 }
0x16a1   : > { %v3885_v15 = vpop.eup %3884 }
0x16a2   : > { %v3026_v17 = vmul.f32 %v3885_v15, %v3018_v7  ;;  %v3186_v7 = vld [vmem:[%s4646_s19 + $0xc8] sm:$0xff] }
0x16a3   : > { %v3816_v47 = vpack.c.bf16 %v3186_v7, %v3185_v42 }
0x16a4   : > { %v3033_v19 = vmul.f32 %v3429_v16, %v3026_v17 }
0x16a5   : > { %3817 = vmatprep.subr.bf16.mxu1 %v3816_v47 }
0x16a6   : > { %v4512_v20 = vadd.f32 %v3430_v18, %v3033_v19  ;;  %3819 = vmatpush3.bf16.msra.mxu1 %v3818_v58 }
0x16a7   : > { %3821 = vmatprep.subr.bf16.mxu1 %v3820_v49 }
0x16a8   : > { %3431 = vmatmul.mubr.msk.f32.vlgmr.msra.gmra.mrb[28].mxu0 %vm768_vm0, %v4512_v20 }
0x16aa   : > { %3823 = vmatpush3.bf16.msra.mxu1 %v3822_v54 }
0x16ab   : > { %3825 = vmatprep.subr.bf16.mxu1 %v3824_v55 }
0x16ae   : > { %3827 = vmatpush3.bf16.msra.mxu1 %v3826_v62 }
0x16af   : > { %3829 = vmatprep.subr.bf16.mxu1 %v3828_v63 }
0x16b2   : > { %3831 = vmatpush3.bf16.msra.mxu1 %v3830_v2 }
0x177b   : > { %v3138_v5 = vpop.f32.mrb[28].mxu0 }
0x177c   : > { %v3139_v6 = vadd.f32 %v3138_v5, %v3062_v38  ;;  %v3140_v8 = vpop.f32.mrb[29].mxu0 }
0x177d   : > { %v3141_v9 = vadd.f32 %v3140_v8, %v3066_v4 }
0x177e   : > { %v3145_v10 = vmul.f32 0.044715, %v3139_v6  ;;  %v3143_v22 = vmul.f32 0.5, %v3139_v6 }
0x177f   : > { %v3146_v11 = vmul.f32 0.044715, %v3141_v9  ;;  %v3144_v34 = vmul.f32 0.5, %v3141_v9 }
0x1780   : > { %v3147_v12 = vmul.f32 %v3145_v10, %v3139_v6 }
0x1781   : > { %v3148_v13 = vmul.f32 %v3146_v11, %v3141_v9 }
0x1782   : > { %v3149_v14 = vmul.f32 %v3147_v12, %v3139_v6 }
0x1783   : > { %v3150_v61 = vmul.f32 %v3148_v13, %v3141_v9 }
0x1784   : > { %v3151_v15 = vadd.f32 %v3149_v14, %v3139_v6 }
0x1785   : > { %v3152_v16 = vadd.f32 %v3150_v61, %v3141_v9 }
0x1786   : > { %v3153_v17 = vmul.f32 0.7978846, %v3151_v15 }
0x1787   : > { %v3154_v18 = vmul.f32 0.7978846, %v3152_v16 }
0x1788   : > { %3886 = vtanh.f32 %v3153_v17 }
0x1789   : > { %3888 = vtanh.f32 %v3154_v18 }
0x1792   : > { %v3887_v28 = vpop.eup %3886 }
0x1793   : > { %v3889_v19 = vpop.eup %3888  ;;  %v3157_v27 = vadd.f32 1.0, %v3887_v28 }
0x1794   : > { %v3158_v21 = vadd.f32 1.0, %v3889_v19 }
0x1795   : > { %v3159_v23 = vmul.f32 %v3157_v27, %v3143_v22 }
0x1796   : > { %v3160_v25 = vmul.f32 %v3158_v21, %v3144_v34 }
0x1798   : > { %3264 = vmatprep.mubr.f32.mxu1 %v3160_v25 }
0x1799   : > { %3265 = vmatmul.mubr.f32.vlgmr.msra.gmra.mrb[26].mxu1 %v3159_v23 }
0x186c   : > { %v3543_v24 = vpop.f32.mrb[26].mxu1 }
0x186d   : > { %v3544_v29 = vpop.f32.mrb[27].mxu1 }
0x186e   : > { %v3545_v43 = vadd.f32 %v3544_v29, %v3543_v24 }
0x1870   : > { %v3267_v30 = vadd.f32 %v3545_v43, %v3432_v26 }
0x1872   : > { %v3270_v31 = vadd.f32 %v3267_v30, %v4512_v20  ;;  %v3433_v20 = vld [vmem:[%s4648_s21] ss:$0 sm:$0xff] }
0x1874   : > { %v3273_v33 = vsel %vm768_vm0, %v3270_v31, 0.0 }
0x1875   : > { %3274 = vadd.xlane.f32.xlu1 %v3273_v33 }
0x1902   : > { %v3275_v35 = vpop.xlane.xlu1 %3274 }
0x1903   : > { %v3276_v36 = vmul.f32 0.015625, %v3275_v35 }
0x1905   : > { %v3277_v37 = vsub.f32 %v3270_v31, %v3276_v36 }
0x1907   : > { %v3278_v39 = vmul.f32 %v3277_v37, %v3277_v37 }
0x1909   : > { %v3279_v40 = vsel %vm768_vm0, %v3278_v39, 0.0 }
0x190a   : > { %3280 = vadd.xlane.f32.xlu1 %v3279_v40 }
0x1997   : > { %v3281_v41 = vpop.xlane.xlu1 %3280 }
0x1998   : > { %v3282_v42 = vmul.f32 0.015625, %v3281_v41 }
0x199a   : > { %v3283_v44 = vadd.f32 1e-12, %v3282_v42 }
0x199c   : > { %3890 = vrsqrt.f32 %v3283_v44 }
0x19a6   : > { %v3891_v7 = vpop.eup %3890 }
0x19a7   : > { %v3285_v45 = vmul.f32 %v3891_v7, %v3277_v37 }
0x19a9   : > { %v3292_v47 = vmul.f32 %v3433_v20, %v3285_v45 }
0x19ab   : > { %v3299_v32 = vadd.f32 %v3434_v46, %v3292_v47 }
0x19ad   : > { %3300 = vst.msk [vmem:[%s736_s30] sm:$0xff] %vm768_vm0, %v3299_v32 }
0x19ae PF: > { %s33_s4 = sadd.s32 1, %s3898_s4  }
0x19af   : > { %p30_p4 = scmp.ge.s32.totalorder %s33_s4, 4  }
0x19b1   :  { %32 = sbr.rel (!%p30_p4) target bundleno = 9 (0x9), region = 148 }

// kernel: _lambda_.27
= control target key start
LH: loop header
LB: loop body
LE: loop exit
PB: predicated region body
PF: predicated region fallthrough
CT: control target
= control target key end

     0   :  { %s1357_s0 = inlined_call_operand.vmem [shape: f32[2,64], index: 0, kind: input, shape index: {}]   ;;  %s1358_s1 = inlined_call_operand.vmem [shape: f32[1,64], index: 1, kind: input, shape index: {}]   ;;  %s1359_s2 = inlined_call_operand.vmem [shape: f32[1,64], index: 2, kind: input, shape index: {}]   ;;  %s1360_s3 = inlined_call_operand.vmem [shape: f32[1,64], index: 3, kind: input, shape index: {}]   ;;  %s1361_s4 = inlined_call_operand.vmem [shape: f32[1,64], index: 4, kind: input, shape index: {}]   ;;  %s1362_s5 = inlined_call_operand.vmem [shape: f32[64,64], index: 5, kind: input, shape index: {}]   ;;  %s1363_s6 = inlined_call_operand.vmem [shape: f32[1,64], index: 6, kind: input, shape index: {}]   ;;  %s1364_s7 = inlined_call_operand.vmem [shape: f32[64,2], index: 7, kind: input, shape index: {}]   ;;  %s1365_s8 = inlined_call_operand.vmem [shape: f32[1,2], index: 8, kind: input, shape index: {}]   ;;  %s1366_s9 = inlined_call_operand.vmem [shape: f32[64,64], index: 9, kind: input, shape index: {}]   ;;  %s1367_s10 = inlined_call_operand.vmem [shape: f32[1,64], index: 10, kind: input, shape index: {}]   ;;  %s1368_s11 = inlined_call_operand.vmem [shape: f32[64,2], index: 11, kind: input, shape index: {}]   ;;  %s1369_s12 = inlined_call_operand.vmem [shape: f32[1,2], index: 12, kind: input, shape index: {}]   ;;  %s1370_s13 = inlined_call_operand.hbm [shape: f32[2,2], index: 13, kind: output, shape index: {0}]   ;;  %s1371_s14 = inlined_call_operand.hbm [shape: f32[2,2], index: 14, kind: output, shape index: {1}]   ;;  %s1372_s15 = inlined_call_operand.hbm [shape: f32[2,2], index: 15, kind: output, shape index: {2}]   ;;  %s1373_s16 = inlined_call_operand.hbm [shape: f32[2,2], index: 16, kind: output, shape index: {3}]   ;;  %s1374_s17 = inlined_call_operand.hbm [shape: f32[1,1], index: 17, kind: output, shape index: {4}]   ;;  %s1375_s18 = inlined_call_operand.hbm [shape: f32[1,1], index: 18, kind: output, shape index: {5}]  }
   0x1   :  { %1376 = sst [smem:[#allocation16_spill]] %s1357_s0 }
   0x2   :  { %1377 = sst [smem:[#allocation17_spill]] %s1358_s1 }
   0x3   :  { %1378 = sst [smem:[#allocation18_spill]] %s1359_s2 }
   0x4   :  { %24 = vsyncpa [#allocation3], 0 }
   0x5   :  { %25 = vsyncpa [#allocation5], 0 }
   0x6   :  { %26 = vsyncpa [#allocation8], 0  ;;  %v55_v0 = vld [vmem:[%s1362_s5] sm:$0xff]  ;;  %v56_v1 = vld [vmem:[%s1362_s5 + $0x8] sm:$0xff]  ;;  %v957_v3 = vmov 0.0|0.0   ;;  %vm958_vm0 = vmmov 0  }
   0x7   :  { %v57_v2 = vld [vmem:[%s1362_s5 + $0x10] sm:$0xff]  ;;  %728 = vmatprep.subr.bf16.mxu0 %v957_v3  ;;  %v729_v4 = vpack.c.bf16 %v56_v1, %v55_v0  ;;  %v58_v5 = vld [vmem:[%s1362_s5 + $0x18] sm:$0xff]  ;;  %v959_v6 = vmov 0.0   ;;  %740 = vmatprep.subr.bf16.mxu1 %v957_v3  ;;  %vm436_vm1 = vcmask 516096   ;;  %v59_v8 = vld [vmem:[%s1362_s5 + $0x20] sm:$0xff]  ;;  %s1379_s26 = sld [smem:[#allocation17_spill]] }
   0x8   :  { %668 = vmatprep.mubr.msk.f32.mxu0 %vm958_vm0, %v959_v6  ;;  %687 = vmatprep.mubr.msk.f32.mxu1 %vm958_vm0, %v959_v6  ;;  %v732_v7 = vpack.c.bf16 %v58_v5, %v57_v2  ;;  %v60_v9 = vld [vmem:[%s1362_s5 + $0x28] sm:$0xff]  ;;  %v1096_v12 = vld [vmem:[%s1360_s3] sm:$0x1]  ;;  %s1380_s0 = sld [smem:[#allocation18_spill]]  ;;  %v147_v19 = vld [vmem:[%s1364_s7 + $0x10] sm:$0xff] }
   0x9   :  { %730 = vmatpush3.bf16.msra.mxu0 %v729_v4  ;;  %v145_v14 = vld [vmem:[%s1364_s7] sm:$0xff]  ;;  %v735_v15 = vpack.c.bf16 %v60_v9, %v59_v8  ;;  %v483_v16 = vsel %vm436_vm1, %v1096_v12, -inf  ;;  %v146_v18 = vld [vmem:[%s1364_s7 + $0x8] sm:$0xff]  ;;  %v61_v20 = vld [vmem:[%s1362_s5 + $0x30] sm:$0xff] }
   0xa   :  { %731 = vmatprep.subr.bf16.mxu0 %v957_v3  ;;  %v1111_v17 = vld [vmem:[%s1361_s4] sm:$0x1]  ;;  %v62_v21 = vld [vmem:[%s1362_s5 + $0x38] sm:$0xff]  ;;  %484 = vmax.xlane.f32.xlu1 %v483_v16  ;;  %v741_v23 = vpack.c.bf16 %v146_v18, %v145_v14 }
   0xb   :  { %v148_v24 = vld [vmem:[%s1364_s7 + $0x18] sm:$0xff]  ;;  %v495_v25 = vsel %vm436_vm1, %v1111_v17, -inf }
   0xd   :  { %v1089_v10 = vld [vmem:[%s1379_s26] sm:$0x1]  ;;  %733 = vmatpush3.bf16.msra.mxu0 %v732_v7 }
   0xe   :  { %v437_v11 = vsel %vm436_vm1, %v1089_v10, -inf  ;;  %v1101_v13 = vld [vmem:[%s1380_s0] sm:$0x1]  ;;  %734 = vmatprep.subr.bf16.mxu0 %v957_v3 }
   0xf   :  { %438 = vmax.xlane.f32.xlu0 %v437_v11  ;;  %v449_v22 = vsel %vm436_vm1, %v1101_v13, -inf }
  0x10   :  { %27 = vsyncpa [#allocation11], 0  ;;  %742 = vmatpush3.bf16.msra.mxu1 %v741_v23  ;;  %v744_v26 = vpack.c.bf16 %v148_v24, %v147_v19  ;;  %v738_v27 = vpack.c.bf16 %v62_v21, %v61_v20  ;;  %v149_v28 = vld [vmem:[%s1364_s7 + $0x20] sm:$0xff]  ;;  %v150_v29 = vld [vmem:[%s1364_s7 + $0x28] sm:$0xff]  ;;  %496 = vmax.xlane.f32.xlu1 %v495_v25  ;;  %s1381_s2 = sld [smem:[#allocation16_spill]]  ;;  %vm70_vm2 = vcmask 523264  }
  0x11   :  { %736 = vmatpush3.bf16.msra.mxu0 %v735_v15  ;;  %v247_v30 = vld [vmem:[%s1366_s9] sm:$0xff]  ;;  %v248_v31 = vld [vmem:[%s1366_s9 + $0x8] sm:$0xff]  ;;  %743 = vmatprep.subr.bf16.mxu1 %v957_v3  ;;  %v747_v32 = vpack.c.bf16 %v150_v29, %v149_v28  ;;  %v249_v35 = vld [vmem:[%s1366_s9 + $0x10] sm:$0xff]  ;;  %vm233_vm3 = vcmask 9216  }
  0x12   :  { %737 = vmatprep.subr.bf16.mxu0 %v957_v3  ;;  %v753_v34 = vpack.c.bf16 %v248_v31, %v247_v30  ;;  %v250_v36 = vld [vmem:[%s1366_s9 + $0x18] sm:$0xff]  ;;  %v251_v38 = vld [vmem:[%s1366_s9 + $0x20] sm:$0xff]  ;;  %v252_v39 = vld [vmem:[%s1366_s9 + $0x28] sm:$0xff] }
  0x13   :  { %450 = vmax.xlane.f32.xlu0 %v449_v22  ;;  %v756_v37 = vpack.c.bf16 %v250_v36, %v249_v35  ;;  %v759_v40 = vpack.c.bf16 %v252_v39, %v251_v38  ;;  %v253_v41 = vld [vmem:[%s1366_s9 + $0x30] sm:$0xff]  ;;  %v254_v42 = vld [vmem:[%s1366_s9 + $0x38] sm:$0xff]  ;;  %v608_v4 = vld [vmem:[%s1363_s6] ss:$0 sm:$0xff] }
  0x14   :  { %745 = vmatpush3.bf16.msra.mxu1 %v744_v26  ;;  %v762_v43 = vpack.c.bf16 %v254_v42, %v253_v41  ;;  %v151_v44 = vld [vmem:[%s1364_s7 + $0x30] sm:$0xff]  ;;  %v152_v45 = vld [vmem:[%s1364_s7 + $0x38] sm:$0xff]  ;;  %v333_v5 = vld [vmem:[%s1368_s11] sm:$0xff] }
  0x15   :  { %739 = vmatpush3.bf16.msra.mxu0 %v738_v27  ;;  %746 = vmatprep.subr.bf16.mxu1 %v957_v3  ;;  %v750_v46 = vpack.c.bf16 %v152_v45, %v151_v44  ;;  %v334_v7 = vld [vmem:[%s1368_s11 + $0x8] sm:$0xff]  ;;  %v336_v14 = vld [vmem:[%s1368_s11 + $0x18] sm:$0xff]  ;;  %v337_v16 = vld [vmem:[%s1368_s11 + $0x20] sm:$0xff] }
  0x16   :  { %v54_v33 = vld [vmem:[%s1381_s2] sm:$0x3]  ;;  %752 = vmatprep.subr.bf16.mxu0 %v957_v3  ;;  %v765_v11 = vpack.c.bf16 %v334_v7, %v333_v5  ;;  %v339_v19 = vld [vmem:[%s1368_s11 + $0x30] sm:$0xff] }
  0x17   :  { %v612_v20 = vld [vmem:[%s1367_s10] ss:$0 sm:$0xff] }
  0x18   :  { %669 = vmatmul.mubr.msk.f32.vlgmr.msra.gmra.mrb[0].mxu0 %vm70_vm2, %v54_v33  ;;  %748 = vmatpush3.bf16.msra.mxu1 %v747_v32  ;;  %v610_v26 = vld [vmem:[%s1365_s8] ss:$0 sm:$0xff]  ;;  %s960_s8 = smov [#allocation2]  }
  0x19   :  { %754 = vmatpush3.bf16.msra.mxu0 %v753_v34  ;;  %706 = vmatprep.mubr.msk.f32.mxu0 %vm958_vm0, %v959_v6 }
  0x1a   :  { %755 = vmatprep.subr.bf16.mxu0 %v957_v3  ;;  %749 = vmatprep.subr.bf16.mxu1 %v957_v3 }
  0x1c   :  { %751 = vmatpush3.bf16.msra.mxu1 %v750_v46 }
  0x1d   :  { %757 = vmatpush3.bf16.msra.mxu0 %v756_v37  ;;  %764 = vmatprep.subr.bf16.mxu1 %v957_v3 }
  0x1e   :  { %758 = vmatprep.subr.bf16.mxu0 %v957_v3 }
  0x21   :  { %760 = vmatpush3.bf16.msra.mxu0 %v759_v40 }
  0x22   :  { %761 = vmatprep.subr.bf16.mxu0 %v957_v3 }
  0x25   :  { %763 = vmatpush3.bf16.msra.mxu0 %v762_v43 }
  0x28   :  { %707 = vmatmul.mubr.msk.f32.vlgmr.msra.gmra.mrb[2].mxu0 %vm70_vm2, %v54_v33 }
  0x97   :  { %v485_v49 = vpop.xlane.xlu1 %484 }
  0x98   :  { %v1189_v50 = vsub.f32 %v1096_v12, %v485_v49 }
  0x9a   :  { %v487_v52 = vmul.f32 1.442695, %v1189_v50 }
  0x9c   :  { %v439_v47 = vpop.xlane.xlu0 %438 }
  0x9d   :  { %v1186_v48 = vsub.f32 %v1089_v10, %v439_v47  ;;  %v497_v55 = vpop.xlane.xlu1 %496 }
  0x9e   :  { %v1197_v56 = vsub.f32 %v1111_v17, %v497_v55  ;;  %v338_v17 = vld [vmem:[%s1368_s11 + $0x28] sm:$0xff] }
  0x9f   :  { %v441_v51 = vmul.f32 1.442695, %v1186_v48  ;;  %v771_v18 = vpack.c.bf16 %v338_v17, %v337_v16 }
  0xa0   :  { %v451_v53 = vpop.xlane.xlu0 %450  ;;  %v499_v58 = vmul.f32 1.442695, %v1197_v56 }
  0xa1   :  { %785 = vpow2.f32 %v441_v51  ;;  %v1194_v54 = vsub.f32 %v1101_v13, %v451_v53  ;;  %v335_v13 = vld [vmem:[%s1368_s11 + $0x10] sm:$0xff] }
  0xa2   :  { %787 = vpow2.f32 %v487_v52  ;;  %v768_v15 = vpack.c.bf16 %v336_v14, %v335_v13 }
  0xa3   :  { %v453_v57 = vmul.f32 1.442695, %v1194_v54 }
  0xa5   :  { %789 = vpow2.f32 %v453_v57 }
  0xa6   :  { %791 = vpow2.f32 %v499_v58 }
  0xab   :  { %v786_v59 = vpop.eup %785 }
  0xac   :  { %v788_v60 = vpop.eup %787  ;;  %v443_v61 = vsel %vm436_vm1, %v786_v59, 0.0 }
  0xad   :  { %444 = vadd.xlane.f32.xlu0 %v443_v61  ;;  %v489_v62 = vsel %vm436_vm1, %v788_v60, 0.0 }
  0xaf   :  { %v790_v63 = vpop.eup %789 }
  0xb0   :  { %v792_v0 = vpop.eup %791  ;;  %v455_v1 = vsel %vm436_vm1, %v790_v63, 0.0 }
  0xb1   :  { %456 = vadd.xlane.f32.xlu1 %v455_v1  ;;  %490 = vadd.xlane.f32.xlu0 %v489_v62  ;;  %v501_v2 = vsel %vm436_vm1, %v792_v0, 0.0 }
  0xb5   :  { %502 = vadd.xlane.f32.xlu1 %v501_v2 }
  0xeb   :  { %v140_v8 = vpop.f32.mrb[0].mxu0 }
  0xec   :  { %v141_v9 = vadd.f32 %v608_v4, %v140_v8  ;;  %v670_v10 = vpop.f32.mrb[1].mxu0 }
  0xee   :  { %v144_v12 = vmax.f32 %v141_v9, 0.0 }
  0xf0   :  { %688 = vmatmul.mubr.msk.f32.vlgmr.msra.gmra.mrb[0].mxu1 %vm70_vm2, %v144_v12 }
  0xf1   :  { %766 = vmatpush3.bf16.msra.mxu1 %v765_v11  ;;  %725 = vmatprep.mubr.msk.f32.mxu1 %vm958_vm0, %v959_v6  ;;  %v340_v6 = vld [vmem:[%s1368_s11 + $0x38] sm:$0xff] }
  0xf2   :  { %767 = vmatprep.subr.bf16.mxu1 %v957_v3  ;;  %v774_v21 = vpack.c.bf16 %v340_v6, %v339_v19 }
  0xf5   :  { %769 = vmatpush3.bf16.msra.mxu1 %v768_v15 }
  0xf6   :  { %770 = vmatprep.subr.bf16.mxu1 %v957_v3 }
  0xf9   :  { %772 = vmatpush3.bf16.msra.mxu1 %v771_v18 }
  0xfa   :  { %773 = vmatprep.subr.bf16.mxu1 %v957_v3  ;;  %v614_v3 = vld [vmem:[%s1369_s12] ss:$0 sm:$0xff]  ;;  %s532_s12 = sshll.u32 %s960_s8, 4  ;;  %s533_s12 = int_to_ptr.vmem [resolvable:$true] %s532_s12 }
  0xfb   :  { %v328_v22 = vpop.f32.mrb[2].mxu0  ;;  %s817_s9 = scalar_lea.vmem %s533_s12, 32  ;;  %p822_p1 = scmp.lt.s32.totalorder %s533_s12, %s533_s12 }
  0xfc   :  { %v329_v23 = vadd.f32 %v612_v20, %v328_v22  ;;  %v708_v24 = vpop.f32.mrb[3].mxu0  ;;  %p818_p0 = scmp.ne.s32.totalorder %s533_s12, %s817_s9  ;;  %p823_p2 = scmp.lt.s32.totalorder %s817_s9, %s817_s9 }
  0xfd   :  { %775 = vmatpush3.bf16.msra.mxu1 %v774_v21 }
  0xfe   :  { %v332_v25 = vmax.f32 %v329_v23, 0.0  ;;  %p824_p3 = por %p823_p2, %p822_p1 }
 0x100   :  { %726 = vmatmul.mubr.msk.f32.vlgmr.msra.gmra.mrb[2].mxu1 %vm70_vm2, %v332_v25  ;;  %p825_p4 = pnand %p824_p3, %p818_p0 }
 0x13a   :  { %v445_v38 = vpop.xlane.xlu0 %444 }
 0x13e   :  { %v457_v35 = vpop.xlane.xlu1 %456  ;;  %v491_v41 = vpop.xlane.xlu0 %490 }
 0x13f   :  { %793 = vlog2.f32 %v457_v35 }
 0x142   :  { %v503_v36 = vpop.xlane.xlu1 %502 }
 0x143   :  { %795 = vlog2.f32 %v503_v36 }
 0x144   :  { %797 = vlog2.f32 %v445_v38 }
 0x145   :  { %799 = vlog2.f32 %v491_v41 }
 0x149   :  { %v794_v37 = vpop.eup %793 }
 0x14a   :  { %v459_v39 = vmul.f32 0.6931472, %v794_v37 }
 0x14c   :  { %v460_v42 = vsub.f32 %v1194_v54, %v459_v39 }
 0x14d   :  { %v796_v40 = vpop.eup %795 }
 0x14e   :  { %v505_v43 = vmul.f32 0.6931472, %v796_v40  ;;  %v461_v44 = vmul.f32 1.442695, %v460_v42  ;;  %v798_v49 = vpop.eup %797 }
 0x14f   :  { %v447_v53 = vmul.f32 0.6931472, %v798_v49  ;;  %v800_v55 = vpop.eup %799 }
 0x150   :  { %v506_v45 = vsub.f32 %v1197_v56, %v505_v43  ;;  %801 = vpow2.f32 %v461_v44  ;;  %v493_v58 = vmul.f32 0.6931472, %v800_v55 }
 0x151   :  { %v448_v57 = vsub.f32 %v1186_v48, %v447_v53 }
 0x152   :  { %v507_v51 = vmul.f32 1.442695, %v506_v45  ;;  %v494_v60 = vsub.f32 %v1189_v50, %v493_v58 }
 0x153   :  { %v463_v59 = vsub.f32 %v460_v42, %v448_v57  ;;  %v469_v62 = vmul.f32 1.442695, %v448_v57  ;;  %v471_v9 = vsub.f32 %v448_v57, %v460_v42 }
 0x154   :  { %v509_v1 = vsub.f32 %v506_v45, %v494_v60  ;;  %v515_v5 = vmul.f32 1.442695, %v494_v60  ;;  %v517_v14 = vsub.f32 %v494_v60, %v506_v45 }
 0x15a   :  { %v802_v54 = vpop.eup %801 }
 0x15b   :  { %v464_v0 = vmul.f32 %v802_v54, %v463_v59 }
 0x15d   :  { %v465_v48 = vsel %vm436_vm1, %v464_v0, 0.0 }
 0x1c3   :  { %v229_v27 = vpop.f32.mrb[0].mxu1 }
 0x1c4   :  { %v230_v28 = vadd.f32 %v610_v26, %v229_v27  ;;  %v689_v29 = vpop.f32.mrb[1].mxu1 }
 0x1c6   :  { %v235_v30 = vsel %vm233_vm3, %v230_v28, -inf  ;;  %234 = vst.msk [vmem:[#allocation2] sm:$0x3] %vm233_vm3, %v230_v28 }
 0x1c7   :  { %236 = vmax.xlane.f32.xlu0 %v235_v30 }
 0x1d3   :  { %v417_v31 = vpop.f32.mrb[2].mxu1 }
 0x1d4   :  { %v418_v32 = vadd.f32 %v614_v3, %v417_v31  ;;  %v727_v33 = vpop.f32.mrb[3].mxu1 }
 0x1d6   :  { %421 = vst.msk [vmem:[#allocation6] sm:$0x3] %vm233_vm3, %v418_v32  ;;  %v422_v34 = vsel %vm233_vm3, %v418_v32, -inf }
 0x1d7   :  { %423 = vmax.xlane.f32.xlu1 %v422_v34 }
 0x254   :  { %v237_v46 = vpop.xlane.xlu0 %236 }
 0x255   :  { %v238_v47 = vsub.f32 %v230_v28, %v237_v46 }
 0x257   :  { %v239_v52 = vmul.f32 1.442695, %v238_v47 }
 0x259   :  { %803 = vpow2.f32 %v239_v52 }
 0x25a   :  { %805 = vpow2.f32 %v507_v51 }
 0x25b   :  { %807 = vpow2.f32 %v469_v62 }
 0x263   :  { %v804_v61 = vpop.eup %803 }
 0x264   :  { %v424_v56 = vpop.xlane.xlu1 %423  ;;  %v241_v63 = vsel %vm233_vm3, %v804_v61, 0.0  ;;  %v806_v2 = vpop.eup %805 }
 0x265   :  { %v425_v4 = vsub.f32 %v418_v32, %v424_v56  ;;  %242 = vadd.xlane.f32.xlu0 %v241_v63  ;;  %v510_v8 = vmul.f32 %v806_v2, %v509_v1  ;;  %v808_v10 = vpop.eup %807 }
 0x266   :  { %v472_v13 = vmul.f32 %v808_v10, %v471_v9 }
 0x267   :  { %v426_v7 = vmul.f32 1.442695, %v425_v4  ;;  %v511_v50 = vsel %vm436_vm1, %v510_v8, 0.0 }
 0x268   :  { %v473_v16 = vsel %vm436_vm1, %v472_v13, 0.0 }
 0x269   :  { %809 = vpow2.f32 %v426_v7  ;;  %466 = vadd.xlane.f32.xlu0 %v465_v48 }
 0x26a   :  { %811 = vpow2.f32 %v515_v5 }
 0x26d   :  { %512 = vadd.xlane.f32.xlu0 %v511_v50 }
 0x273   :  { %v1259_v11 = vpop.eup %809 }
 0x274   :  { %v428_v12 = vsel %vm233_vm3, %v1259_v11, 0.0  ;;  %v812_v15 = vpop.eup %811 }
 0x275   :  { %429 = vadd.xlane.f32.xlu1 %v428_v12  ;;  %v518_v17 = vmul.f32 %v812_v15, %v517_v14 }
 0x277   :  { %v519_v18 = vsel %vm436_vm1, %v518_v17, 0.0 }
 0x279   :  { %474 = vadd.xlane.f32.xlu1 %v473_v16 }
 0x27d   :  { %520 = vadd.xlane.f32.xlu1 %v519_v18 }
 0x27e   :  { %828 = shalt.err (!%p825_p4)
}
 0x27f   :  { %s829_s23 = scalar_lea.hbm %s1370_s13, 32 }
 0x280   :  { %p830_p5 = scmp.ne.s32.totalorder %s1370_s13, %s829_s23  ;;  %p833_p6 = scmp.lt.u32.totalorder %s829_s23, %s1370_s13 }
 0x282   :  { %p835_p7 = pnand %p833_p6, %p830_p5 }
 0x284   :  { %838 = shalt.err (!%p835_p7)
}
 0x285   :  { %535 = dma.vmem_to_hbm [thread:$0]  %s533_s12, 32, %s1370_s13, [#allocation3]  }
 0x286   :  { %s961_s28 = smov [#allocation4]   ;;  %s962_s5 = smov [#allocation6]  }
 0x287   :  { %s542_s29 = sshll.u32 %s961_s28, 4  ;;  %s552_s30 = sshll.u32 %s962_s5, 4  ;;  %s543_s29 = int_to_ptr.vmem [resolvable:$true] %s542_s29  ;;  %s553_s30 = int_to_ptr.vmem [resolvable:$true] %s552_s30 }
 0x288   :  { %s839_s0 = scalar_lea.vmem %s543_s29, 32  ;;  %p844_p9 = scmp.lt.s32.totalorder %s543_s29, %s543_s29 }
 0x289   :  { %p840_p8 = scmp.ne.s32.totalorder %s543_s29, %s839_s0  ;;  %p845_p10 = scmp.lt.s32.totalorder %s839_s0, %s839_s0 }
 0x28b   :  { %p846_p11 = por %p845_p10, %p844_p9 }
 0x28d   :  { %p847_p12 = pnand %p846_p11, %p840_p8 }
 0x2f2   :  { %v243_v19 = vpop.xlane.xlu0 %242 }
 0x2f3   :  { %813 = vrcp.f32 %v243_v19 }
 0x2fd   :  { %v814_v6 = vpop.eup %813 }
 0x2fe   :  { %v245_v20 = vmul.f32 %v814_v6, %v804_v61 }
 0x300   :  { %246 = vst.msk [vmem:[#allocation4] sm:$0x3] %vm233_vm3, %v245_v20 }
 0x301   :  { %850 = shalt.err (!%p847_p12)
}
 0x302   :  { %s851_s1 = scalar_lea.hbm %s1371_s14, 32 }
 0x303   :  { %p852_p13 = scmp.ne.s32.totalorder %s1371_s14, %s851_s1  ;;  %p855_p0 = scmp.lt.u32.totalorder %s851_s1, %s1371_s14 }
 0x305   :  { %p857_p1 = pnand %p855_p0, %p852_p13 }
 0x307   :  { %860 = shalt.err (!%p857_p1)
}
 0x308   :  { %545 = dma.vmem_to_hbm [thread:$0]  %s543_s29, 32, %s1371_s14, [#allocation5]   ;;  %v430_v21 = vpop.xlane.xlu1 %429 }
 0x309   :  { %s861_s8 = scalar_lea.vmem %s553_s30, 32  ;;  %p866_p3 = scmp.lt.s32.totalorder %s553_s30, %s553_s30 }
 0x30a   :  { %p862_p2 = scmp.ne.s32.totalorder %s553_s30, %s861_s8  ;;  %p867_p4 = scmp.lt.s32.totalorder %s861_s8, %s861_s8 }
 0x30c   :  { %p868_p5 = por %p867_p4, %p866_p3 }
 0x30e   :  { %p869_p6 = pnand %p868_p5, %p862_p2 }
 0x310   :  { %872 = shalt.err (!%p869_p6)
}
 0x311   :  { %s873_s22 = scalar_lea.hbm %s1372_s15, 32 }
 0x312   :  { %p874_p7 = scmp.ne.s32.totalorder %s1372_s15, %s873_s22  ;;  %p877_p8 = scmp.lt.u32.totalorder %s873_s22, %s1372_s15 }
 0x314   :  { %p879_p9 = pnand %p877_p8, %p874_p7 }
 0x316   :  { %882 = shalt.err (!%p879_p9)
}
 0x317   :  { %555 = dma.vmem_to_hbm [thread:$0]  %s553_s30, 32, %s1372_s15, [#allocation5]   ;;  %815 = vrcp.f32 %v430_v21  ;;  %v467_v22 = vpop.xlane.xlu0 %466  ;;  %v475_v23 = vpop.xlane.xlu1 %474  ;;  %vm479_vm4 = vcmask 0  }
 0x318   :  { %v477_v24 = vadd.f32 %v475_v23, %v467_v22  ;;  %s963_s27 = smov [#allocation10]   ;;  %s964_s6 = smov [#allocation7]  }
 0x319   :  { %s582_s4 = sshll.u32 %s963_s27, 4  ;;  %s562_s28 = sshll.u32 %s964_s6, 4  ;;  %s583_s4 = int_to_ptr.vmem [resolvable:$true] %s582_s4  ;;  %s1304_s28 = int_to_ptr.vmem [resolvable:$true] %s562_s28 }
 0x31a   :  { %v478_v25 = vmul.f32 0.5, %v477_v24  ;;  %s965_s29 = smov [#allocation9]   ;;  %s883_s15 = scalar_lea.vmem %s583_s4, 16 }
 0x31b   :  { %v513_v26 = vpop.xlane.xlu0 %512  ;;  %v521_v27 = vpop.xlane.xlu1 %520  ;;  %s572_s5 = sshll.u32 %s965_s29, 4  ;;  %p884_p10 = scmp.ne.s32.totalorder %s583_s4, %s883_s15  ;;  %s1306_s5 = int_to_ptr.vmem [resolvable:$true] %s572_s5 }
 0x31c   :  { %v523_v28 = vadd.f32 %v521_v27, %v513_v26  ;;  %480 = vst.msk [vmem:[#allocation9] sm:$0x1] %vm479_vm4, %v478_v25  ;;  %s887_s30 = scalar_lea.vmem %s583_s4, 32  ;;  %p888_p11 = scmp.lt.s32.totalorder %s583_s4, %s583_s4 }
 0x31d   :  { %p889_p12 = scmp.lt.s32.totalorder %s887_s30, %s883_s15 }
 0x31e   :  { %v524_v30 = vmul.f32 0.5, %v523_v28 }
 0x31f   :  { %p890_p13 = por %p889_p12, %p888_p11 }
 0x320   :  { %525 = vst.msk [vmem:[#allocation10] sm:$0x1] %vm479_vm4, %v524_v30 }
 0x321   :  { %v816_v29 = vpop.eup %815  ;;  %p891_p0 = pnand %p890_p13, %p884_p10 }
 0x322   :  { %v432_v3 = vmul.f32 %v816_v29, %v1259_v11 }
 0x324   :  { %433 = vst.msk [vmem:[#allocation7] sm:$0x3] %vm233_vm3, %v432_v3 }
 0x325   :  { %894 = shalt.err (!%p891_p0)
}
 0x326   :  { %s895_s19 = scalar_lea.hbm %s1375_s18, 16 }
 0x327   :  { %p896_p1 = scmp.ne.s32.totalorder %s1375_s18, %s895_s19  ;;  %p899_p2 = scmp.lt.u32.totalorder %s895_s19, %s1375_s18 }
 0x329   :  { %p901_p3 = pnand %p899_p2, %p896_p1 }
 0x32b   :  { %904 = shalt.err (!%p901_p3)
}
 0x32c   :  { %585 = dma.vmem_to_hbm [thread:$0]  %s583_s4, 16, %s1375_s18, [#allocation11]  }
 0x32d   :  { %s905_s11 = scalar_lea.vmem %s1304_s28, 32  ;;  %p910_p5 = scmp.lt.s32.totalorder %s1304_s28, %s1304_s28 }
 0x32e   :  { %p906_p4 = scmp.ne.s32.totalorder %s1304_s28, %s905_s11  ;;  %p911_p6 = scmp.lt.s32.totalorder %s905_s11, %s905_s11 }
 0x330   :  { %p912_p7 = por %p911_p6, %p910_p5 }
 0x332   :  { %p913_p8 = pnand %p912_p7, %p906_p4 }
 0x334   :  { %916 = shalt.err (!%p913_p8)
}
 0x335   :  { %s917_s9 = scalar_lea.hbm %s1373_s16, 32 }
 0x336   :  { %p918_p9 = scmp.ne.s32.totalorder %s1373_s16, %s917_s9  ;;  %p921_p10 = scmp.lt.u32.totalorder %s917_s9, %s1373_s16 }
 0x338   :  { %p923_p11 = pnand %p921_p10, %p918_p9 }
 0x33a   :  { %926 = shalt.err (!%p923_p11)
}
 0x33b   :  { %565 = dma.vmem_to_hbm [thread:$0]  %s1304_s28, 32, %s1373_s16, [#allocation8]  }
 0x33c   :  { %s927_s14 = scalar_lea.vmem %s1306_s5, 16  ;;  %s931_s26 = scalar_lea.vmem %s1306_s5, 32 }
 0x33d   :  { %p928_p12 = scmp.ne.s32.totalorder %s1306_s5, %s927_s14  ;;  %p932_p13 = scmp.lt.s32.totalorder %s1306_s5, %s1306_s5 }
 0x33e   :  { %p933_p0 = scmp.lt.s32.totalorder %s931_s26, %s927_s14 }
 0x340   :  { %p934_p1 = por %p933_p0, %p932_p13 }
 0x342   :  { %p935_p2 = pnand %p934_p1, %p928_p12 }
 0x344   :  { %938 = shalt.err (!%p935_p2)
}
 0x345   :  { %s939_s6 = scalar_lea.hbm %s1374_s17, 16 }
 0x346   :  { %p940_p3 = scmp.ne.s32.totalorder %s1374_s17, %s939_s6  ;;  %p943_p4 = scmp.lt.u32.totalorder %s939_s6, %s1374_s17 }
 0x348   :  { %p945_p5 = pnand %p943_p4, %p940_p3 }
 0x34a   :  { %948 = shalt.err (!%p945_p5)
}
 0x34b   :  { %575 = dma.vmem_to_hbm [thread:$0]  %s1306_s5, 16, %s1374_s17, [#allocation8]  }
 0x34c   :  { %949 = dma.done.wait [#allocation3], 32  }
 0x34d   :  { %950 = vsyncadd [#allocation3], 4294967264 }
 0x34e   :  { %951 = dma.done.wait [#allocation5], 64  }
 0x34f   :  { %952 = vsyncadd [#allocation5], 4294967232 }
 0x350   :  { %953 = dma.done.wait [#allocation8], 48  }
 0x351   :  { %954 = vsyncadd [#allocation8], 4294967248 }
 0x352   :  { %955 = dma.done.wait [#allocation11], 16  }
 0x353   :  { %956 = vsyncadd [#allocation11], 4294967280 }
 0x354   :  { %604 = vsyncpa [#allocation3], 1 }
 0x355   :  { %605 = vsyncpa [#allocation5], 1 }
 0x356   :  { %606 = vsyncpa [#allocation8], 1 }
 0x357   :  { %607 = vsyncpa [#allocation11], 1 }

// kernel: _lambda_.26
= control target key start
LH: loop header
LB: loop body
LE: loop exit
PB: predicated region body
PF: predicated region fallthrough
CT: control target
= control target key end

     0   :  { %s4730_s0 = inlined_call_operand.vmem [shape: f32[2,8,64], index: 0, kind: input, shape index: {}]   ;;  %s4731_s1 = inlined_call_operand.vmem [shape: f32[2,1,8], index: 1, kind: input, shape index: {}]   ;;  %s4732_s2 = inlined_call_operand.vmem [shape: f32[2,5,64], index: 2, kind: input, shape index: {}]   ;;  %s4733_s3 = inlined_call_operand.vmem [shape: f32[64,192], index: 3, kind: input, shape index: {}]   ;;  %s4734_s4 = inlined_call_operand.vmem [shape: f32[1,192], index: 4, kind: input, shape index: {}]   ;;  %s4735_s5 = inlined_call_operand.vmem [shape: f32[64,64], index: 5, kind: input, shape index: {}]   ;;  %s4736_s6 = inlined_call_operand.vmem [shape: f32[1,64], index: 6, kind: input, shape index: {}]   ;;  %s4737_s7 = inlined_call_operand.vmem [shape: f32[1,64], index: 7, kind: input, shape index: {}]   ;;  %s4738_s8 = inlined_call_operand.vmem [shape: f32[1,64], index: 8, kind: input, shape index: {}]   ;;  %s4739_s9 = inlined_call_operand.vmem [shape: f32[64,64], index: 9, kind: input, shape index: {}]   ;;  %s4740_s10 = inlined_call_operand.vmem [shape: f32[1,64], index: 10, kind: input, shape index: {}]   ;;  %s4741_s11 = inlined_call_operand.vmem [shape: f32[64,128], index: 11, kind: input, shape index: {}]   ;;  %s4742_s12 = inlined_call_operand.vmem [shape: f32[1,128], index: 12, kind: input, shape index: {}]   ;;  %s4743_s13 = inlined_call_operand.vmem [shape: f32[64,64], index: 13, kind: input, shape index: {}]   ;;  %s4744_s14 = inlined_call_operand.vmem [shape: f32[1,64], index: 14, kind: input, shape index: {}]   ;;  %s4745_s15 = inlined_call_operand.vmem [shape: f32[1,64], index: 15, kind: input, shape index: {}]   ;;  %s4746_s16 = inlined_call_operand.vmem [shape: f32[1,64], index: 16, kind: input, shape index: {}]   ;;  %s4747_s17 = inlined_call_operand.vmem [shape: f32[64,256], index: 17, kind: input, shape index: {}]   ;;  %s4748_s18 = inlined_call_operand.vmem [shape: f32[1,256], index: 18, kind: input, shape index: {}]   ;;  %s4749_s19 = inlined_call_operand.vmem [shape: f32[256,64], index: 19, kind: input, shape index: {}]   ;;  %s4750_s20 = inlined_call_operand.vmem [shape: f32[1,64], index: 20, kind: input, shape index: {}]   ;;  %s4751_s21 = inlined_call_operand.vmem [shape: f32[1,64], index: 21, kind: input, shape index: {}]   ;;  %s4752_s22 = inlined_call_operand.hbm [shape: f32[1,64], index: 22, kind: input, shape index: {}]   ;;  %s4753_s23 = inlined_call_operand.vmem [shape: f32[2,8,64], index: 23, kind: output, shape index: {}]  }
   0x1   :  { %4768 = sst [smem:[#allocation5_spill]] %s4730_s0 }
   0x2   :  { %4769 = sst [smem:[#allocation6_spill]] %s4731_s1 }
   0x3   :  { %4770 = sst [smem:[#allocation7_spill]] %s4732_s2 }
   0x4   :  { %4771 = sst [smem:[#allocation8_spill]] %s4733_s3 }
   0x5   :  { %4772 = sst [smem:[#allocation9_spill]] %s4734_s4 }
   0x6   :  { %4773 = sst [smem:[#allocation10_spill]] %s4735_s5 }
   0x7   :  { %4774 = sst [smem:[#allocation11_spill]] %s4736_s6 }
   0x8   :  { %4775 = sst [smem:[#allocation12_spill]] %s4737_s7 }
   0x9   :  { %28 = vsyncpa [#allocation3], 0  ;;  %s4101_s4 = smov 0  }
   0xa LB: > { %s4107_s30 = sadd.s32 4294967295, %s3968_s4   ;;  %p3402_p0 = scmp.ge.s32.totalorder %s3968_s4, 1  ;;  %s3968_s4 = sphi %s4101_s4, %s34_s4  }
   0xb   : > { %p563_p1 = scmp.lt.s32.totalorder %s3968_s4, 3  ;;  %p4756_p3 = scmp.eq.s32.totalorder %s4107_s30, 0 }
   0xc   : > { %s3970_s25 = smov [#allocation2]   ;;  %s3930_s6 = scalar_lea.hbm %s4752_s22, 16 }
   0xd   : > { %p4111_p2 = pnand %p3402_p0, %p563_p1  ;;  %s633_s5 = sshll.u32 %s3970_s25, 4  ;;  %s634_s5 = int_to_ptr.vmem [resolvable:$true] %s633_s5 }
   0xe   : > { %p3931_p6 = scmp.ne.s32.totalorder %s4752_s22, %s3930_s6  ;;  %p3937_p10 = scmp.lt.u32.totalorder %s3930_s6, %s4752_s22 }
   0xf   : > { %s4776_s24 = scalar_select %p4111_p2, 1, 0 }
  0x10   : > { %p3863_p4 = pneg %p4111_p2 }
  0x12   : > { %p4120_p5 = pnand %p4756_p3, %p3863_p4 }
  0x14   : > { %p3932_p7 = pneg %p4120_p5 }
  0x16   : > { %p3933_p8 = pnand %p3932_p7, %p3931_p6 }
  0x18   : > { %p3934_p9 = pneg %p3933_p8 }
  0x1a   : > { %p3939_p11 = pnand %p3937_p10, %p3934_p9 }
  0x1c   : > { %3942 = shalt.err (!%p3939_p11)
}
  0x1d   : > { %s3943_s3 = scalar_lea.vmem %s634_s5, 16  ;;  %s3950_s0 = scalar_lea.vmem %s634_s5, 32 }
  0x1e   : > { %p3944_p12 = scmp.ne.s32.totalorder %s634_s5, %s3943_s3  ;;  %p3951_p1 = scmp.lt.s32.totalorder %s634_s5, %s634_s5 }
  0x1f   : > { %p3952_p4 = scmp.lt.s32.totalorder %s3950_s0, %s3943_s3 }
  0x20   : > { %p3946_p13 = pnand %p3944_p12, %p3932_p7 }
  0x21   : > { %p3953_p3 = por %p3952_p4, %p3951_p1 }
  0x22   : > { %p3947_p0 = pneg %p3946_p13 }
  0x24   : > { %p3954_p2 = pnand %p3953_p3, %p3947_p0 }
  0x26   : > { %3957 = shalt.err (!%p3954_p2)
}
  0x27   : > { %3866 = dma.hbm_to_vmem [thread:$0]  (!%p4120_p5), %s4752_s22, 16, %s634_s5, [#allocation3]  }
  0x28   : > { %p4778_p6 = scmp.ne.s32.totalorder %s4776_s24, 0 }
  0x29   : > { %p4779_p8 = scmp.eq.s32.totalorder (!%p4778_p6), %s4107_s30, 0 }
  0x2a   : > { %666 = sbr.rel (%p4778_p6) target bundleno = 6611 (0x19d3), region = 112 }
  0x31   : > { %3963 = dma.done.wait (%p4779_p8), [#allocation3], 16   ;;  %p4780_p7 = pmov %p4779_p8 }
  0x32   : > { %v3971_v0 = vmov 0.0   ;;  %s4781_s6 = sld [smem:[#allocation8_spill]]  ;;  %p735_p2 = scmp.lt.s32.totalorder %s4107_s30, 1  ;;  %vm781_vm0 = vcmask 523264   ;;  %v771_v26 = vlaneseq  ;;  %vm3972_vm1 = vmmov 0  }
  0x33   : > { %3965 = vsyncadd (%p4780_p7), [#allocation3], 4294967280  ;;  %849 = vmatprep.mubr.f32.mxu0 %v3971_v0  ;;  %3583 = vmatprep.subr.mxu1 %v3971_v0  ;;  %s4782_s26 = sld [smem:[#allocation5_spill]]  ;;  %s4783_s27 = sld [smem:[#allocation9_spill]]  ;;  %vm867_vm2 = vcmask 130048   ;;  %vm950_vm3 = vcmask 64512  }
  0x34   : > { %s4797_s30 = smov (!%p735_p2, %s4107_s30), 1  ;;  %v4212_v27 = vshrl.u32 %v771_v26, 7  ;;  %3585 = vmatprep.mubr.msk.f32.mxu1 %vm3972_vm1, %v3971_v0  ;;  %s4765_s24 = smov 64   ;;  %v3978_v61 = vmov 0.0|0.0   ;;  %vm2131_vm4 = vcmask 39936   ;;  %vm2148_vm5 = vcmask 1044480  }
  0x35   : > { %s4201_s3 = sshll.u32 %s4797_s30, 3  ;;  %s4762_s7 = smov 48  }
  0x36   : > { %v773_v28 = vsub.s32 0, %v4212_v27  ;;  %s4766_s28 = smov 112   ;;  %v777_v34 = vsub.s32 1, %v4212_v27  ;;  %s4784_s25 = sld [smem:[#allocation6_spill]] }
  0x37   : > { %s4759_s29 = smov 80   ;;  %s4758_s0 = smov 16  }
  0x38   : > { %v754_v1 = vld [vmem:[%s4781_s6 + $0x8] sm:$0xff]  ;;  %v756_v2 = vld [vmem:[%s4781_s6 + $0x18] sm:$0xff]  ;;  %v753_v3 = vld [vmem:[%s4781_s6] sm:$0xff]  ;;  %s4786_s2 = sld [smem:[#allocation11_spill]] }
  0x39   : > { %v3747_v4 = vpack.c.bf16 %v756_v2, %v754_v1  ;;  %v755_v5 = vld [vmem:[%s4781_s6 + $0x10] sm:$0xff]  ;;  %v758_v6 = vld [vmem:[%s4781_s6 + $0x28] sm:$0xff]  ;;  %v760_v7 = vld [vmem:[%s4781_s6 + $0x38] sm:$0xff]  ;;  %s738_s1 = scalar_lea.vmem %s4782_s26, %s4201_s3 }
  0x3a   : > { %v3749_v8 = vpack.c.bf16 %v755_v5, %v753_v3  ;;  %v3751_v9 = vpack.c.bf16 %v760_v7, %v758_v6  ;;  %v757_v10 = vld [vmem:[%s4781_s6 + $0x20] sm:$0xff]  ;;  %v759_v11 = vld [vmem:[%s4781_s6 + $0x30] sm:$0xff]  ;;  %v762_v12 = vld [vmem:[%s4781_s6 + $0x48] sm:$0xff] }
  0x3b   : > { %3748 = vmatprep.subr.bf16.mxu0 %v3747_v4  ;;  %v764_v13 = vld [vmem:[%s4781_s6 + $0x58] sm:$0xff]  ;;  %v3753_v14 = vpack.c.bf16 %v759_v11, %v757_v10  ;;  %v761_v16 = vld [vmem:[%s4781_s6 + $0x40] sm:$0xff]  ;;  %v763_v17 = vld [vmem:[%s4781_s6 + $0x50] sm:$0xff] }
  0x3c   : > { %3750 = vmatpush1.bf16.msra.mxu0 %v3749_v8  ;;  %v3755_v15 = vpack.c.bf16 %v764_v13, %v762_v12  ;;  %v766_v18 = vld [vmem:[%s4781_s6 + $0x68] sm:$0xff]  ;;  %v768_v19 = vld [vmem:[%s4781_s6 + $0x78] sm:$0xff]  ;;  %v3757_v20 = vpack.c.bf16 %v763_v17, %v761_v16  ;;  %v765_v22 = vld [vmem:[%s4781_s6 + $0x60] sm:$0xff]  ;;  %s741_s26 = scalar_lea.vmem %s4784_s25, %s4797_s30  ;;  %s4761_s30 = smov 32  }
  0x3d   : > { %3752 = vmatprep.subr.bf16.mxu0 %v3751_v9  ;;  %v3759_v21 = vpack.c.bf16 %v768_v19, %v766_v18  ;;  %v767_v23 = vld [vmem:[%s4781_s6 + $0x70] sm:$0xff]  ;;  %v4207_v25 = vld [vmem:[%s738_s1] sm:$0xff]  ;;  %s4763_s1 = smov 96  }
  0x3e   : > { %v3761_v24 = vpack.c.bf16 %v767_v23, %v765_v22  ;;  %v769_v29 = vld [vmem:[%s4783_s27] sm:$0x3]  ;;  %s4785_s27 = sld [smem:[#allocation10_spill]] }
  0x3f   : > { %v774_v30 = vrot.slane %v769_v29, %v773_v28  ;;  %v778_v35 = vrot.slane %v769_v29, %v777_v34  ;;  %v4253_v43 = vld [vmem:[%s741_s26] ss:$0 sm:$0xff] }
  0x40   : > { %3754 = vmatpush1.bf16.msra.mxu0 %v3753_v14 }
  0x41   : > { %3756 = vmatprep.subr.bf16.mxu0 %v3755_v15 }
  0x44   : > { %3758 = vmatpush1.bf16.msra.mxu0 %v3757_v20  ;;  %v858_v4 = vld [vmem:[%s4785_s27 + $0x10] sm:$0xff]  ;;  %v859_v5 = vld [vmem:[%s4785_s27 + $0x18] sm:$0xff]  ;;  %v856_v9 = vld [vmem:[%s4785_s27] sm:$0xff] }
  0x45   : > { %3760 = vmatprep.subr.bf16.mxu0 %v3759_v21  ;;  %v3764_v7 = vpack.c.bf16 %v859_v5, %v858_v4  ;;  %v857_v10 = vld [vmem:[%s4785_s27 + $0x8] sm:$0xff] }
  0x46   : > { %v3767_v11 = vpack.c.bf16 %v857_v10, %v856_v9  ;;  %v3428_v9 = vld [vmem:[%s4786_s2] ss:$0 sm:$0xff]  ;;  %s4795_s2 = smov 16  }
  0x48   : > { %3762 = vmatpush1.bf16.msra.mxu0 %v3761_v24 }
  0x49   : > { %3573 = vmatprep.subr.mxu0 %v3971_v0 }
  0x4b   : > { %3410 = vmatmul.mubr.msk.f32.vlgmr.msra.gmra.mrb[0].mxu0 %vm781_vm0, %v4207_v25 }
  0x4c   : > { %3575 = vmatprep.mubr.msk.f32.mxu0 %vm3972_vm1, %v3971_v0 }
 0x11e   : > { %v851_v31 = vpop.f32.mrb[0].mxu0 }
 0x11f   : > { %v4224_v32 = vadd.f32 %v851_v31, %v774_v30  ;;  %v853_v33 = vpop.f32.mrb[1].mxu0 }
 0x120   : > { %v4239_v38 = vadd.f32 %v853_v33, %v778_v35 }
 0x121   : > { %865 = vrot.lane.b32.xlu1 %v4224_v32, %s4765_s24  ;;  %1037 = vrot.lane.b32.xlu0 %v4224_v32, %s4762_s7  ;;  %s4788_s24 = sld [smem:[#allocation12_spill]]  ;;  %s4790_s7 = smov 64  }
 0x125   : > { %1035 = vrot.lane.b32.xlu0 %v4224_v32, %s4766_s28 }
 0x193   : > { %v866_v36 = vpop.permute.xlu1 %865  ;;  %v1038_v37 = vpop.permute.xlu0 %1037 }
 0x194   : > { %3574 = vmatpush3.xpose.msk.msra.mxu0 %vm867_vm2, %v866_v36  ;;  %3584 = vmatpush3.xpose.msk.msra.mxu1 %vm867_vm2, %v1038_v37 }
 0x195   : > { %3578 = vmatprep.subr.mxu0 %v3971_v0  ;;  %3588 = vmatprep.subr.mxu1 %v3971_v0 }
 0x197   : > { %3576 = vmatmul.mubr.msk.f32.vlgmr.msra.gmra.mrb[2].mxu0 %vm867_vm2, %v4224_v32  ;;  %v1036_v39 = vpop.permute.xlu0 %1035 }
 0x198   : > { %3579 = vmatpush3.msra.mxu0 %v4239_v38  ;;  %3586 = vmatmul.mubr.msk.f32.vlgmr.msra.gmra.mrb[0].mxu1 %vm867_vm2, %v1036_v39 }
 0x199   : > { %3590 = vmatprep.mubr.msk.f32.mxu1 %vm3972_vm1, %v3971_v0  ;;  %3580 = vmatprep.mubr.msk.f32.mxu0 %vm3972_vm1, %v3971_v0 }
 0x19a   : > { %3763 = vmatprep.subr.bf16.mxu0 %v3978_v61 }
 0x26a   : > { %v938_v40 = vpop.f32.mrb[2].mxu0 }
 0x26b   : > { %v3577_v41 = vpop.f32.mrb[3].mxu0  ;;  %v1109_v42 = vpop.f32.mrb[0].mxu1  ;;  %v942_v44 = vmul.f32 0.25, %v938_v40  ;;  %v860_v40 = vld [vmem:[%s4785_s27 + $0x20] sm:$0xff] }
 0x26c   : > { %v1113_v45 = vmul.f32 0.25, %v1109_v42  ;;  %v3587_v46 = vpop.f32.mrb[1].mxu1  ;;  %v861_v41 = vld [vmem:[%s4785_s27 + $0x28] sm:$0xff] }
 0x26d   : > { %v949_v49 = vadd.f32 %v4253_v43, %v942_v44  ;;  %v3770_v42 = vpack.c.bf16 %v861_v41, %v860_v40  ;;  %v1964_v40 = vld [vmem:[%s4741_s11 + $0x30] sm:$0xff]  ;;  %v1965_v41 = vld [vmem:[%s4741_s11 + $0x38] sm:$0xff] }
 0x26e   : > { %v1114_v47 = vadd.f32 %v4253_v43, %v1113_v45 }
 0x26f   : > { %v951_v50 = vsel %vm950_vm3, %v949_v49, -inf }
 0x270   : > { %v1115_v48 = vsel %vm950_vm3, %v1114_v47, -inf }
 0x271   : > { %1116 = vmax.xlane.f32.xlu1 %v1115_v48 }
 0x275   : > { %952 = vmax.xlane.f32.xlu1 %v951_v50 }
 0x2fe   : > { %v1117_v51 = vpop.xlane.xlu1 %1116 }
 0x2ff   : > { %v1118_v52 = vsub.f32 %v1114_v47, %v1117_v51 }
 0x301   : > { %v1119_v53 = vmul.f32 1.442695, %v1118_v52 }
 0x302   : > { %v953_v54 = vpop.xlane.xlu1 %952 }
 0x303   : > { %3888 = vpow2.f32 %v1119_v53  ;;  %v954_v55 = vsub.f32 %v949_v49, %v953_v54 }
 0x305   : > { %v955_v56 = vmul.f32 1.442695, %v954_v55 }
 0x307   : > { %3890 = vpow2.f32 %v955_v56 }
 0x30d   : > { %v3889_v57 = vpop.eup %3888 }
 0x30e   : > { %v1121_v58 = vsel %vm950_vm3, %v3889_v57, 0.0 }
 0x30f   : > { %1122 = vadd.xlane.f32.xlu0 %v1121_v58 }
 0x311   : > { %v3891_v59 = vpop.eup %3890 }
 0x312   : > { %v957_v60 = vsel %vm950_vm3, %v3891_v59, 0.0 }
 0x313   : > { %958 = vadd.xlane.f32.xlu1 %v957_v60  ;;  %v862_v60 = vld [vmem:[%s4785_s27 + $0x30] sm:$0xff] }
 0x324   : > { %1351 = vrot.lane.b32.xlu1 %v4224_v32, %s4761_s30  ;;  %s4792_s30 = smov 48  }
 0x325   : > { %1127 = vrot.lane.b32.xlu0 %v4239_v38, %s4766_s28  ;;  %s4791_s28 = smov 96  }
 0x329   : > { %1349 = vrot.lane.b32.xlu0 %v4224_v32, %s4763_s1 }
 0x39c   : > { %v1123_v62 = vpop.xlane.xlu0 %1122 }
 0x39d   : > { %3892 = vrcp.f32 %v1123_v62 }
 0x3a0   : > { %v1128_v63 = vpop.permute.xlu0 %1127  ;;  %v959_v1 = vpop.xlane.xlu1 %958 }
 0x3a1   : > { %3894 = vrcp.f32 %v959_v1  ;;  %3589 = vmatpush3.msra.mxu1 %v1128_v63 }
 0x3a2   : > { %3766 = vmatprep.subr.bf16.mxu1 %v3978_v61 }
 0x3a4   : > { %v1352_v13 = vpop.permute.xlu1 %1351  ;;  %v1350_v15 = vpop.permute.xlu0 %1349 }
 0x3a7   : > { %v3893_v2 = vpop.eup %3892 }
 0x3a8   : > { %v1125_v3 = vmul.f32 %v3893_v2, %v3889_v57 }
 0x3aa   : > { %3591 = vmatmul.mubr.msk.f32.vlgmr.msra.gmra.mrb[2].mxu1 %vm950_vm3, %v1125_v3 }
 0x3ab   : > { %v3895_v6 = vpop.eup %3894  ;;  %3604 = vmatprep.mubr.msk.f32.mxu1 %vm3972_vm1, %v3971_v0  ;;  %3768 = vmatpush3.bf16.msra.mxu1 %v3767_v11 }
 0x3ac   : > { %v961_v8 = vmul.f32 %v3895_v6, %v3891_v59  ;;  %3612 = vmatprep.subr.mxu1 %v3971_v0 }
 0x3ae   : > { %3581 = vmatmul.mubr.msk.f32.vlgmr.msra.gmra.mrb[4].mxu0 %vm950_vm3, %v961_v8 }
 0x3af   : > { %3765 = vmatpush3.bf16.msra.mxu0 %v3764_v7  ;;  %3597 = vmatprep.mubr.msk.f32.mxu0 %vm3972_vm1, %v3971_v0 }
 0x3b0   : > { %3607 = vmatprep.subr.mxu0 %v3971_v0 }
 0x47d   : > { %v1199_v12 = vpop.f32.mrb[2].mxu1 }
 0x47e   : > { %v3592_v14 = vpop.f32.mrb[3].mxu1  ;;  %3598 = vmatmul.mubr.msk.f32.vlgmr.msra.gmra.mrb[6].mxu0 %vm867_vm2, %v1199_v12 }
 0x47f   : > { %3608 = vmatpush3.xpose.msk.msra.mxu0 %vm867_vm2, %v1352_v13  ;;  %3609 = vmatprep.mubr.msk.f32.mxu0 %vm3972_vm1, %v3971_v0 }
 0x480   : > { %3769 = vmatprep.subr.bf16.mxu0 %v3978_v61 }
 0x481   : > { %v1031_v16 = vpop.f32.mrb[4].mxu0 }
 0x482   : > { %v3582_v17 = vpop.f32.mrb[5].mxu0  ;;  %3605 = vmatmul.mubr.msk.f32.vlgmr.msra.gmra.mrb[4].mxu1 %vm867_vm2, %v1031_v16  ;;  %3610 = vmatmul.mubr.msk.f32.vlgmr.msra.gmra.mrb[8].mxu0 %vm867_vm2, %v1350_v15 }
 0x483   : > { %3614 = vmatprep.mubr.msk.f32.mxu1 %vm3972_vm1, %v3971_v0  ;;  %3621 = vmatprep.mubr.msk.f32.mxu0 %vm3972_vm1, %v3971_v0 }
 0x484   : > { %3771 = vmatpush3.bf16.msra.mxu0 %v3770_v42  ;;  %v1874_v42 = vld [vmem:[%s4739_s9 + $0x20] sm:$0xff] }
 0x485   : > { %3629 = vmatprep.subr.mxu0 %v3971_v0 }
 0x551   : > { %v1272_v18 = vpop.f32.mrb[6].mxu0 }
 0x552   : > { %v3599_v19 = vpop.f32.mrb[7].mxu0 }
 0x555   : > { %v1345_v20 = vpop.f32.mrb[4].mxu1  ;;  %v1423_v21 = vpop.f32.mrb[8].mxu0 }
 0x556   : > { %v4300_v22 = vadd.f32 %v1345_v20, %v1272_v18  ;;  %v1427_v23 = vmul.f32 0.25, %v1423_v21  ;;  %v3606_v24 = vpop.f32.mrb[5].mxu1  ;;  %v3611_v26 = vpop.f32.mrb[9].mxu0  ;;  %v1958_v20 = vld [vmem:[%s4741_s11] sm:$0xff]  ;;  %v1959_v21 = vld [vmem:[%s4741_s11 + $0x8] sm:$0xff] }
 0x557   : > { %v1870_v24 = vld [vmem:[%s4739_s9] sm:$0xff] }
 0x558   : > { %v1428_v29 = vadd.f32 %v4253_v43, %v1427_v23  ;;  %v1961_v23 = vld [vmem:[%s4741_s11 + $0x18] sm:$0xff] }
 0x55a   : > { %v1429_v30 = vsel %vm950_vm3, %v1428_v29, -inf }
 0x55b   : > { %1430 = vmax.xlane.f32.xlu0 %v1429_v30 }
 0x571   : > { %1440 = vrot.lane.b32.xlu0 %v4239_v38, %s4763_s1 }
 0x575   : > { %1590 = vrot.lane.b32.xlu0 %v4224_v32, %s4759_s29 }
 0x5e8   : > { %v1431_v31 = vpop.xlane.xlu0 %1430 }
 0x5e9   : > { %v1432_v33 = vsub.f32 %v1428_v29, %v1431_v31  ;;  %v1871_v29 = vld [vmem:[%s4739_s9 + $0x8] sm:$0xff]  ;;  %v1962_v31 = vld [vmem:[%s4741_s11 + $0x20] sm:$0xff] }
 0x5ea   : > { %v3776_v30 = vpack.c.bf16 %v1871_v29, %v1870_v24  ;;  %v2048_v29 = vld [vmem:[%s4743_s13 + $0x10] sm:$0xff] }
 0x5eb   : > { %v1433_v35 = vmul.f32 1.442695, %v1432_v33  ;;  %v1963_v33 = vld [vmem:[%s4741_s11 + $0x28] sm:$0xff] }
 0x5ec   : > { %v1441_v36 = vpop.permute.xlu0 %1440 }
 0x5ed   : > { %3896 = vpow2.f32 %v1433_v35  ;;  %3613 = vmatpush3.msra.mxu1 %v1441_v36  ;;  %v1872_v35 = vld [vmem:[%s4739_s9 + $0x10] sm:$0xff]  ;;  %v3794_v36 = vpack.c.bf16 %v1963_v33, %v1962_v31 }
 0x5ee   : > { %3624 = vmatprep.subr.mxu1 %v3971_v0 }
 0x5f7   : > { %v3897_v37 = vpop.eup %3896 }
 0x5f8   : > { %v1435_v39 = vsel %vm950_vm3, %v3897_v37, 0.0 }
 0x5f9   : > { %1436 = vadd.xlane.f32.xlu1 %v1435_v39 }
 0x60a   : > { %1592 = vrot.lane.b32.xlu1 %v4224_v32, %s4758_s0  ;;  %v1591_v32 = vpop.permute.xlu0 %1590  ;;  %s4787_s0 = sld [smem:[#allocation7_spill]] }
 0x610   : > { %s745_s5 = scalar_lea.vmem %s4787_s0, %s4201_s3 }
 0x686   : > { %v1437_v44 = vpop.xlane.xlu1 %1436 }
 0x687   : > { %3898 = vrcp.f32 %v1437_v44  ;;  %v3797_v44 = vpack.c.bf16 %v1965_v41, %v1964_v40 }
 0x68a   : > { %v1593_v47 = vpop.permute.xlu1 %1592 }
 0x691   : > { %v3899_v45 = vpop.eup %3898 }
 0x692   : > { %v1439_v46 = vmul.f32 %v3899_v45, %v3897_v37  ;;  %v1873_v37 = vld [vmem:[%s4739_s9 + $0x18] sm:$0xff]  ;;  %v1875_v45 = vld [vmem:[%s4739_s9 + $0x28] sm:$0xff] }
 0x693   : > { %v3779_v39 = vpack.c.bf16 %v1873_v37, %v1872_v35  ;;  %v2047_v37 = vld [vmem:[%s4743_s13 + $0x8] sm:$0xff] }
 0x694   : > { %3615 = vmatmul.mubr.msk.f32.vlgmr.msra.gmra.mrb[6].mxu1 %vm950_vm3, %v1439_v46  ;;  %v3782_v46 = vpack.c.bf16 %v1875_v45, %v1874_v42 }
 0x695   : > { %3625 = vmatpush3.xpose.msk.msra.mxu1 %vm867_vm2, %v1593_v47  ;;  %3626 = vmatprep.mubr.msk.f32.mxu1 %vm3972_vm1, %v3971_v0  ;;  %v1876_v47 = vld [vmem:[%s4739_s9 + $0x30] sm:$0xff] }
 0x696   : > { %3772 = vmatprep.subr.bf16.mxu1 %v3978_v61 }
 0x698   : > { %3627 = vmatmul.mubr.msk.f32.vlgmr.msra.gmra.mrb[8].mxu1 %vm867_vm2, %v1591_v32  ;;  %v1877_v32 = vld [vmem:[%s4739_s9 + $0x38] sm:$0xff] }
 0x699   : > { %3638 = vmatprep.mubr.msk.f32.mxu1 %vm3972_vm1, %v3971_v0 }
 0x767   : > { %v1512_v48 = vpop.f32.mrb[6].mxu1 }
 0x768   : > { %v3616_v49 = vpop.f32.mrb[7].mxu1  ;;  %3622 = vmatmul.mubr.msk.f32.vlgmr.msra.gmra.mrb[10].mxu0 %vm867_vm2, %v1512_v48  ;;  %v752_v48 = vld [vmem:[%s745_s5] sm:$0x1f]  ;;  %s4789_s5 = smov 112  }
 0x769   : > { %3631 = vmatprep.mubr.msk.f32.mxu0 %vm3972_vm1, %v3971_v0  ;;  %v3785_v49 = vpack.c.bf16 %v1877_v32, %v1876_v47 }
 0x76b   : > { %v1664_v50 = vpop.f32.mrb[8].mxu1 }
 0x76c   : > { %v1668_v51 = vmul.f32 0.25, %v1664_v50  ;;  %v3628_v52 = vpop.f32.mrb[9].mxu1 }
 0x76e   : > { %v1669_v53 = vadd.f32 %v4253_v43, %v1668_v51  ;;  %v863_v43 = vld [vmem:[%s4785_s27 + $0x38] sm:$0xff] }
 0x76f   : > { %v3773_v62 = vpack.c.bf16 %v863_v43, %v862_v60 }
 0x770   : > { %v1670_v54 = vsel %vm950_vm3, %v1669_v53, -inf }
 0x771   : > { %1671 = vmax.xlane.f32.xlu1 %v1670_v54  ;;  %3774 = vmatpush3.bf16.msra.mxu1 %v3773_v62  ;;  %v3429_v54 = vld [vmem:[%s4788_s24] ss:$0 sm:$0xff] }
 0x772   : > { %3787 = vmatprep.subr.bf16.mxu1 %v3978_v61 }
 0x7fe   : > { %v1672_v55 = vpop.xlane.xlu1 %1671 }
 0x7ff   : > { %v1673_v56 = vsub.f32 %v1669_v53, %v1672_v55 }
 0x801   : > { %v1674_v57 = vmul.f32 1.442695, %v1673_v56  ;;  %v3430_v56 = vld [vmem:[%s4738_s8] ss:$0 sm:$0xff] }
 0x803   : > { %3900 = vpow2.f32 %v1674_v57 }
 0x80d   : > { %v3901_v58 = vpop.eup %3900 }
 0x80e   : > { %v1676_v59 = vsel %vm950_vm3, %v3901_v58, 0.0 }
 0x80f   : > { %1677 = vadd.xlane.f32.xlu0 %v1676_v59  ;;  %v3433_v59 = vld [vmem:[%s4742_s12] ss:$0 sm:$0xff] }
 0x825   : > { %1681 = vrot.lane.b32.xlu0 %v4239_v38, %s4759_s29 }
 0x83b   : > { %v1585_v63 = vpop.f32.mrb[10].mxu0 }
 0x83c   : > { %v1589_v1 = vadd.f32 %v1585_v63, %v4300_v22  ;;  %v3623_v2 = vpop.f32.mrb[11].mxu0  ;;  %v3788_v22 = vpack.c.bf16 %v1959_v21, %v1958_v20  ;;  %v3431_v63 = vld [vmem:[%s4740_s10] ss:$0 sm:$0xff] }
 0x89c   : > { %v1678_v3 = vpop.xlane.xlu0 %1677 }
 0x89d   : > { %3902 = vrcp.f32 %v1678_v3 }
 0x8a0   : > { %v1682_v4 = vpop.permute.xlu0 %1681 }
 0x8a1   : > { %3630 = vmatpush3.msra.mxu0 %v1682_v4 }
 0x8a2   : > { %3775 = vmatprep.subr.bf16.mxu0 %v3978_v61 }
 0x8a7   : > { %v3903_v38 = vpop.eup %3902 }
 0x8a8   : > { %v1680_v5 = vmul.f32 %v3903_v38, %v3901_v58 }
 0x8aa   : > { %3632 = vmatmul.mubr.msk.f32.vlgmr.msra.gmra.mrb[12].mxu0 %vm950_vm3, %v1680_v5 }
 0x8ab   : > { %3657 = vmatprep.mubr.msk.f32.mxu0 %vm3972_vm1, %v3971_v0  ;;  %3777 = vmatpush3.bf16.msra.mxu0 %v3776_v30  ;;  %v2049_v30 = vld [vmem:[%s4743_s13 + $0x18] sm:$0xff] }
 0x8ac   : > { %3778 = vmatprep.subr.bf16.mxu0 %v3978_v61  ;;  %v3800_v31 = vpack.c.bf16 %v2049_v30, %v2048_v29 }
 0x8af   : > { %3780 = vmatpush3.bf16.msra.mxu0 %v3779_v39 }
 0x8b0   : > { %3781 = vmatprep.subr.bf16.mxu0 %v3978_v61 }
 0x8b3   : > { %3783 = vmatpush3.bf16.msra.mxu0 %v3782_v46 }
 0x8b4   : > { %3784 = vmatprep.subr.bf16.mxu0 %v3978_v61 }
 0x8b7   : > { %3786 = vmatpush3.bf16.msra.mxu0 %v3785_v49 }
 0x8b8   : > { %3679 = vmatprep.subr.mxu0 %v3971_v0 }
 0x97d   : > { %v1753_v6 = vpop.f32.mrb[12].mxu0 }
 0x97e   : > { %v3633_v7 = vpop.f32.mrb[13].mxu0  ;;  %3639 = vmatmul.mubr.msk.f32.vlgmr.msra.gmra.mrb[10].mxu1 %vm867_vm2, %v1753_v6 }
 0x97f   : > { %3676 = vmatprep.mubr.msk.f32.mxu1 %vm3972_vm1, %v3971_v0  ;;  %3789 = vmatpush3.bf16.msra.mxu1 %v3788_v22 }
 0x980   : > { %3790 = vmatprep.subr.bf16.mxu1 %v3978_v61 }
 0xa51   : > { %v1826_v8 = vpop.f32.mrb[10].mxu1 }
 0xa52   : > { %v1830_v10 = vadd.f32 %v1826_v8, %v1589_v1  ;;  %v3640_v11 = vpop.f32.mrb[11].mxu1 }
 0xa54   : > { %v1838_v12 = vadd.f32 %v3428_v9, %v1830_v10 }
 0xa56   : > { %v1839_v13 = vadd.f32 %v1838_v12, %v4207_v25  ;;  %v1960_v25 = vld [vmem:[%s4741_s11 + $0x10] sm:$0xff] }
 0xa57   : > { %v3791_v26 = vpack.c.bf16 %v1961_v23, %v1960_v25 }
 0xa58   : > { %v1842_v14 = vsel %vm781_vm0, %v1839_v13, 0.0 }
 0xa59   : > { %1843 = vadd.xlane.f32.xlu1 %v1842_v14  ;;  %3792 = vmatpush3.bf16.msra.mxu1 %v3791_v26 }
 0xa5a   : > { %3793 = vmatprep.subr.bf16.mxu1 %v3978_v61 }
 0xa5d   : > { %3795 = vmatpush3.bf16.msra.mxu1 %v3794_v36  ;;  %v2046_v36 = vld [vmem:[%s4743_s13] sm:$0xff] }
 0xa5e   : > { %3796 = vmatprep.subr.bf16.mxu1 %v3978_v61  ;;  %v3803_v40 = vpack.c.bf16 %v2047_v37, %v2046_v36 }
 0xa61   : > { %3798 = vmatpush3.bf16.msra.mxu1 %v3797_v44 }
 0xa62   : > { %3684 = vmatprep.subr.mxu1 %v3971_v0 }
 0xa64   : > { %3677 = vmatmul.mubr.msk.f32.vlgmr.msra.gmra.mrb[12].mxu1 %vm781_vm0, %v752_v48 }
 0xa65   : > { %3686 = vmatprep.mubr.msk.f32.mxu1 %vm3972_vm1, %v3971_v0 }
 0xae6   : > { %v1844_v15 = vpop.xlane.xlu1 %1843 }
 0xae7   : > { %v1846_v16 = vmul.f32 0.015625, %v1844_v15 }
 0xae9   : > { %v1847_v17 = vsub.f32 %v1839_v13, %v1846_v16 }
 0xaeb   : > { %v1848_v18 = vmul.f32 %v1847_v17, %v1847_v17 }
 0xaed   : > { %v1849_v19 = vsel %vm781_vm0, %v1848_v18, 0.0 }
 0xaee   : > { %1850 = vadd.xlane.f32.xlu1 %v1849_v19 }
 0xb37   : > { %v2042_v60 = vpop.f32.mrb[12].mxu1 }
 0xb38   : > { %v4434_v43 = vadd.f32 %v3433_v59, %v2042_v60  ;;  %v3678_v62 = vpop.f32.mrb[13].mxu1 }
 0xb3a   : > { %2223 = vrot.lane.b32.xlu1 %v4434_v43, %s4789_s5 }
 0xb7b   : > { %v1851_v50 = vpop.xlane.xlu1 %1850 }
 0xb7c   : > { %v1852_v51 = vmul.f32 0.015625, %v1851_v50 }
 0xb7e   : > { %v1853_v52 = vadd.f32 1e-12, %v1852_v51 }
 0xb80   : > { %3904 = vrsqrt.f32 %v1853_v52 }
 0xb8a   : > { %v3905_v53 = vpop.eup %3904 }
 0xb8b   : > { %v1855_v55 = vmul.f32 %v3905_v53, %v1847_v17 }
 0xb8d   : > { %v1862_v57 = vmul.f32 %v3429_v54, %v1855_v55 }
 0xb8f   : > { %v4425_v58 = vadd.f32 %v3430_v56, %v1862_v57 }
 0xb91   : > { %3658 = vmatmul.mubr.msk.f32.vlgmr.msra.gmra.mrb[14].mxu0 %vm781_vm0, %v4425_v58 }
 0xb92   : > { %3681 = vmatprep.mubr.msk.f32.mxu0 %vm3972_vm1, %v3971_v0  ;;  %3680 = vmatpush3.xpose.msk.msra.mxu0 %vm867_vm2, %v4434_v43 }
 0xb93   : > { %3689 = vmatprep.subr.mxu0 %v3971_v0 }
 0xbac   : > { %v2224_v4 = vpop.permute.xlu1 %2223 }
 0xc64   : > { %v1954_v1 = vpop.f32.mrb[14].mxu0 }
 0xc65   : > { %v4444_v2 = vadd.f32 %v3431_v63, %v1954_v1  ;;  %v3659_v3 = vpop.f32.mrb[15].mxu0 }
 0xc66   : > { %v2051_v3 = vld [vmem:[%s4743_s13 + $0x28] sm:$0xff] }
 0xc67   : > { %2221 = vrot.lane.b32.xlu0 %v4444_v2, %s4789_s5  ;;  %3682 = vmatmul.mubr.msk.f32.vlgmr.msra.gmra.mrb[16].mxu0 %vm867_vm2, %v4444_v2 }
 0xc68   : > { %3690 = vmatpush3.xpose.msk.msra.mxu0 %vm867_vm2, %v2224_v4  ;;  %3691 = vmatprep.mubr.msk.f32.mxu0 %vm3972_vm1, %v3971_v0 }
 0xc69   : > { %3799 = vmatprep.subr.bf16.mxu0 %v3978_v61 }
 0xcd9   : > { %v2222_v38 = vpop.permute.xlu0 %2221 }
 0xcda   : > { %3692 = vmatmul.mubr.msk.f32.vlgmr.msra.gmra.mrb[18].mxu0 %vm867_vm2, %v2222_v38 }
 0xcdb   : > { %3703 = vmatprep.mubr.msk.f32.mxu0 %vm3972_vm1, %v3971_v0  ;;  %3801 = vmatpush3.bf16.msra.mxu0 %v3800_v31 }
 0xcdc   : > { %3713 = vmatprep.subr.mxu0 %v3971_v0 }
 0xd3a   : > { %v2126_v5 = vpop.f32.mrb[16].mxu0 }
 0xd3b   : > { %v2130_v6 = vmul.f32 0.25, %v2126_v5  ;;  %v3683_v7 = vpop.f32.mrb[17].mxu0 }
 0xd3d   : > { %v2132_v8 = vsel %vm2131_vm4, %v2130_v6, -inf }
 0xd3e   : > { %2133 = vmax.xlane.f32.xlu0 %v2132_v8 }
 0xdad   : > { %v2295_v9 = vpop.f32.mrb[18].mxu0 }
 0xdae   : > { %v2299_v10 = vmul.f32 0.25, %v2295_v9  ;;  %v3693_v11 = vpop.f32.mrb[19].mxu0 }
 0xdb0   : > { %v2300_v12 = vsel %vm2131_vm4, %v2299_v10, -inf }
 0xdb1   : > { %2301 = vmax.xlane.f32.xlu1 %v2300_v12 }
 0xdc2   : > { %2143 = vrot.lane.b32.xlu1 %v4434_v43, %s4790_s7  ;;  %s4793_s7 = smov 32  }
 0xdc6   : > { %2536 = vrot.lane.b32.xlu1 %v4434_v43, %s4791_s28 }
 0xdca   : > { %2534 = vrot.lane.b32.xlu1 %v4444_v2, %s4791_s28  ;;  %s4794_s28 = smov 80  }
 0xdcb   : > { %v2134_v13 = vpop.xlane.xlu0 %2133 }
 0xdcc   : > { %v2135_v14 = vsub.f32 %v2130_v6, %v2134_v13 }
 0xdce   : > { %v2136_v15 = vmul.f32 1.442695, %v2135_v14 }
 0xdd0   : > { %3906 = vpow2.f32 %v2136_v15 }
 0xdda   : > { %v3907_v16 = vpop.eup %3906 }
 0xddb   : > { %v2138_v17 = vsel %vm2131_vm4, %v3907_v16, 0.0 }
 0xddc   : > { %2139 = vadd.xlane.f32.xlu0 %v2138_v17 }
 0xe3e   : > { %v2302_v18 = vpop.xlane.xlu1 %2301 }
 0xe3f   : > { %v2303_v19 = vsub.f32 %v2299_v10, %v2302_v18 }
 0xe41   : > { %v2304_v20 = vmul.f32 1.442695, %v2303_v19  ;;  %v2052_v19 = vld [vmem:[%s4743_s13 + $0x30] sm:$0xff] }
 0xe42   : > { %v2144_v21 = vpop.permute.xlu1 %2143 }
 0xe43   : > { %3908 = vpow2.f32 %v2304_v20  ;;  %3685 = vmatpush3.msk.msra.mxu1 %vm2148_vm5, %v2144_v21  ;;  %v2053_v20 = vld [vmem:[%s4743_s13 + $0x38] sm:$0xff] }
 0xe44   : > { %3694 = vmatprep.subr.mxu1 %v3971_v0  ;;  %v3809_v21 = vpack.c.bf16 %v2053_v20, %v2052_v19 }
 0xe46   : > { %v2537_v45 = vpop.permute.xlu1 %2536 }
 0xe4a   : > { %v2535_v32 = vpop.permute.xlu1 %2534 }
 0xe4d   : > { %v3909_v22 = vpop.eup %3908 }
 0xe4e   : > { %v2306_v25 = vsel %vm2131_vm4, %v3909_v22, 0.0 }
 0xe4f   : > { %2307 = vadd.xlane.f32.xlu0 %v2306_v25 }
 0xe65   : > { %2311 = vrot.lane.b32.xlu0 %v4434_v43, %s4792_s30 }
 0xe69   : > { %v2140_v23 = vpop.xlane.xlu0 %2139 }
 0xe6a   : > { %3910 = vrcp.f32 %v2140_v23 }
 0xe74   : > { %v3911_v24 = vpop.eup %3910 }
 0xe75   : > { %v2142_v26 = vmul.f32 %v3911_v24, %v3907_v16 }
 0xe77   : > { %3687 = vmatmul.mubr.msk.f32.vlgmr.msra.gmra.mrb[14].mxu1 %vm2131_vm4, %v2142_v26 }
 0xe78   : > { %3696 = vmatprep.mubr.msk.f32.mxu1 %vm3972_vm1, %v3971_v0 }
 0xedc   : > { %v2308_v33 = vpop.xlane.xlu0 %2307 }
 0xedd   : > { %3912 = vrcp.f32 %v2308_v33 }
 0xee0   : > { %v2312_v35 = vpop.permute.xlu0 %2311 }
 0xee1   : > { %3695 = vmatpush3.msk.msra.mxu1 %vm2148_vm5, %v2312_v35  ;;  %v3455_v35 = vld [vmem:[%s4744_s14] ss:$0 sm:$0xff] }
 0xee2   : > { %3802 = vmatprep.subr.bf16.mxu1 %v3978_v61 }
 0xee7   : > { %v3913_v39 = vpop.eup %3912 }
 0xee8   : > { %v2310_v41 = vmul.f32 %v3913_v39, %v3909_v22 }
 0xeea   : > { %3697 = vmatmul.mubr.msk.f32.vlgmr.msra.gmra.mrb[16].mxu1 %vm2131_vm4, %v2310_v41 }
 0xeeb   : > { %3804 = vmatpush3.bf16.msra.mxu1 %v3803_v40  ;;  %3710 = vmatprep.mubr.msk.f32.mxu1 %vm3972_vm1, %v3971_v0 }
 0xeec   : > { %3718 = vmatprep.subr.mxu1 %v3971_v0 }
 0xf4a   : > { %v2217_v42 = vpop.f32.mrb[14].mxu1 }
 0xf4b   : > { %v3688_v44 = vpop.f32.mrb[15].mxu1  ;;  %3711 = vmatmul.mubr.msk.f32.vlgmr.msra.gmra.mrb[18].mxu1 %vm867_vm2, %v2217_v42 }
 0xf4c   : > { %3720 = vmatprep.mubr.msk.f32.mxu1 %vm3972_vm1, %v3971_v0 }
 0xfbd   : > { %v2384_v46 = vpop.f32.mrb[16].mxu1 }
 0xfbe   : > { %v3698_v47 = vpop.f32.mrb[17].mxu1  ;;  %3704 = vmatmul.mubr.msk.f32.vlgmr.msra.gmra.mrb[20].mxu0 %vm867_vm2, %v2384_v46 }
 0xfbf   : > { %3714 = vmatpush3.xpose.msk.msra.mxu0 %vm867_vm2, %v2537_v45  ;;  %3715 = vmatprep.mubr.msk.f32.mxu0 %vm3972_vm1, %v3971_v0  ;;  %v3055_v47 = vld [vmem:[%s4747_s17 + $0x8] sm:$0xff] }
 0xfc0   : > { %3805 = vmatprep.subr.bf16.mxu0 %v3978_v61 }
 0xfc2   : > { %3716 = vmatmul.mubr.msk.f32.vlgmr.msra.gmra.mrb[22].mxu0 %vm867_vm2, %v2535_v32  ;;  %v3057_v32 = vld [vmem:[%s4747_s17 + $0x18] sm:$0xff] }
 0xfc3   : > { %3727 = vmatprep.mubr.msk.f32.mxu0 %vm3972_vm1, %v3971_v0 }
0x101e   : > { %v2530_v48 = vpop.f32.mrb[18].mxu1 }
0x101f   : > { %v3712_v49 = vpop.f32.mrb[19].mxu1 }
0x1020   : > { %v3056_v49 = vld [vmem:[%s4747_s17 + $0x10] sm:$0xff] }
0x1091   : > { %v2457_v50 = vpop.f32.mrb[20].mxu0 }
0x1092   : > { %v2531_v51 = vadd.f32 %v2530_v48, %v2457_v50  ;;  %v3705_v52 = vpop.f32.mrb[21].mxu0  ;;  %v3811_v48 = vpack.c.bf16 %v3057_v32, %v3055_v47  ;;  %v3200_v32 = vld [vmem:[%s4749_s19 + $0xd0] sm:$0xff] }
0x1093   : > { %v3061_v52 = vld [vmem:[%s4747_s17 + $0x38] sm:$0xff] }
0x1095   : > { %v2608_v53 = vpop.f32.mrb[22].mxu0 }
0x1096   : > { %v2612_v54 = vmul.f32 0.25, %v2608_v53  ;;  %v3717_v55 = vpop.f32.mrb[23].mxu0 }
0x1097   : > { %v3060_v55 = vld [vmem:[%s4747_s17 + $0x30] sm:$0xff] }
0x1098   : > { %v2613_v56 = vsel %vm2131_vm4, %v2612_v54, -inf }
0x1099   : > { %2614 = vmax.xlane.f32.xlu0 %v2613_v56 }
0x10af   : > { %2624 = vrot.lane.b32.xlu0 %v4434_v43, %s4793_s7  ;;  %s749_s7 = scalar_lea.vmem %s4753_s23, %s4201_s3 }
0x10b3   : > { %2775 = vrot.lane.b32.xlu0 %v4444_v2, %s4794_s28  ;;  %v2050_v2 = vld [vmem:[%s4743_s13 + $0x20] sm:$0xff] }
0x10b4   : > { %v3806_v4 = vpack.c.bf16 %v2051_v3, %v2050_v2  ;;  %v3067_v2 = vld [vmem:[%s4747_s17 + $0x68] sm:$0xff]  ;;  %v3069_v3 = vld [vmem:[%s4747_s17 + $0x78] sm:$0xff] }
0x10b6   : > { %3807 = vmatpush3.bf16.msra.mxu0 %v3806_v4  ;;  %v3066_v4 = vld [vmem:[%s4747_s17 + $0x60] sm:$0xff] }
0x10b7   : > { %3735 = vmatprep.subr.mxu0 %v3971_v0 }
0x1126   : > { %v2615_v57 = vpop.xlane.xlu0 %2614 }
0x1127   : > { %v2616_v59 = vsub.f32 %v2612_v54, %v2615_v57  ;;  %v3058_v54 = vld [vmem:[%s4747_s17 + $0x20] sm:$0xff]  ;;  %v3063_v57 = vld [vmem:[%s4747_s17 + $0x48] sm:$0xff] }
0x1128   : > { %v3817_v56 = vpack.c.bf16 %v3060_v55, %v3058_v54 }
0x1129   : > { %v2617_v60 = vmul.f32 1.442695, %v2616_v59  ;;  %v3065_v59 = vld [vmem:[%s4747_s17 + $0x58] sm:$0xff] }
0x112a   : > { %v2625_v62 = vpop.permute.xlu0 %2624 }
0x112b   : > { %3914 = vpow2.f32 %v2617_v60  ;;  %3719 = vmatpush3.msk.msra.mxu1 %vm2148_vm5, %v2625_v62  ;;  %v3819_v60 = vpack.c.bf16 %v3065_v59, %v3063_v57  ;;  %v3062_v62 = vld [vmem:[%s4747_s17 + $0x40] sm:$0xff]  ;;  %v3187_v57 = vld [vmem:[%s4749_s19 + $0x68] sm:$0xff]  ;;  %v3204_v59 = vld [vmem:[%s4749_s19 + $0xf0] sm:$0xff] }
0x112c   : > { %3730 = vmatprep.subr.mxu1 %v3971_v0 }
0x112e   : > { %v2776_v8 = vpop.permute.xlu0 %2775 }
0x1135   : > { %v3915_v63 = vpop.eup %3914 }
0x1136   : > { %v2619_v1 = vsel %vm2131_vm4, %v3915_v63, 0.0 }
0x1137   : > { %2620 = vadd.xlane.f32.xlu1 %v2619_v1 }
0x1148   : > { %2777 = vrot.lane.b32.xlu1 %v4434_v43, %s4794_s28 }
0x11c4   : > { %v2621_v38 = vpop.xlane.xlu1 %2620 }
0x11c5   : > { %3916 = vrcp.f32 %v2621_v38  ;;  %v3823_v38 = vpack.c.bf16 %v3069_v3, %v3067_v2  ;;  %v3189_v2 = vld [vmem:[%s4749_s19 + $0x78] sm:$0xff] }
0x11c8   : > { %v2778_v7 = vpop.permute.xlu1 %2777 }
0x11cf   : > { %v3917_v5 = vpop.eup %3916 }
0x11d0   : > { %v2623_v6 = vmul.f32 %v3917_v5, %v3915_v63  ;;  %v3064_v63 = vld [vmem:[%s4747_s17 + $0x50] sm:$0xff] }
0x11d1   : > { %v3821_v1 = vpack.c.bf16 %v3064_v63, %v3062_v62  ;;  %v3068_v5 = vld [vmem:[%s4747_s17 + $0x70] sm:$0xff] }
0x11d2   : > { %3721 = vmatmul.mubr.msk.f32.vlgmr.msra.gmra.mrb[20].mxu1 %vm2131_vm4, %v2623_v6  ;;  %v3825_v6 = vpack.c.bf16 %v3068_v5, %v3066_v4  ;;  %v3070_v4 = vld [vmem:[%s4748_s18] sm:$0x3] }
0x11d3   : > { %3731 = vmatpush3.xpose.msk.msra.mxu1 %vm867_vm2, %v2778_v7  ;;  %3732 = vmatprep.mubr.msk.f32.mxu1 %vm3972_vm1, %v3971_v0  ;;  %v3190_v7 = vld [vmem:[%s4749_s19 + $0x80] sm:$0xff]  ;;  %v3079_v5 = vrot.slane %v3070_v4, %v777_v34 }
0x11d4   : > { %3808 = vmatprep.subr.bf16.mxu1 %v3978_v61 }
0x11d6   : > { %3733 = vmatmul.mubr.msk.f32.vlgmr.msra.gmra.mrb[22].mxu1 %vm867_vm2, %v2776_v8  ;;  %v3191_v8 = vld [vmem:[%s4749_s19 + $0x88] sm:$0xff] }
0x11d7   : > { %3744 = vmatprep.mubr.msk.f32.mxu1 %vm3972_vm1, %v3971_v0  ;;  %3810 = vmatpush3.bf16.msra.mxu1 %v3809_v21  ;;  %v3192_v21 = vld [vmem:[%s4749_s19 + $0x90] sm:$0xff] }
0x12a5   : > { %v2697_v9 = vpop.f32.mrb[20].mxu1 }
0x12a6   : > { %v3722_v10 = vpop.f32.mrb[21].mxu1  ;;  %3728 = vmatmul.mubr.msk.f32.vlgmr.msra.gmra.mrb[24].mxu0 %vm867_vm2, %v2697_v9  ;;  %v3174_v9 = vld [vmem:[%s4749_s19] sm:$0xff] }
0x12a7   : > { %3737 = vmatprep.mubr.msk.f32.mxu0 %vm3972_vm1, %v3971_v0  ;;  %v3827_v10 = vpack.c.bf16 %v3191_v8, %v3190_v7 }
0x12a9   : > { %v2849_v11 = vpop.f32.mrb[22].mxu1  ;;  %3828 = vmatprep.subr.bf16.mxu1 %v3827_v10 }
0x12aa   : > { %v2853_v12 = vmul.f32 0.25, %v2849_v11  ;;  %v3734_v13 = vpop.f32.mrb[23].mxu1  ;;  %v3175_v11 = vld [vmem:[%s4749_s19 + $0x8] sm:$0xff] }
0x12ac   : > { %v2854_v14 = vsel %vm2131_vm4, %v2853_v12, -inf }
0x12ad   : > { %2855 = vmax.xlane.f32.xlu1 %v2854_v14 }
0x133a   : > { %v2856_v61 = vpop.xlane.xlu1 %2855 }
0x133b   : > { %v2857_v15 = vsub.f32 %v2853_v12, %v2856_v61  ;;  %v3829_v12 = vpack.c.bf16 %v3175_v11, %v3174_v9 }
0x133d   : > { %v2858_v16 = vmul.f32 1.442695, %v2857_v15 }
0x133f   : > { %3918 = vpow2.f32 %v2858_v16  ;;  %v3456_v16 = vld [vmem:[%s4745_s15] ss:$0 sm:$0xff] }
0x1349   : > { %v3919_v17 = vpop.eup %3918 }
0x134a   : > { %v2860_v18 = vsel %vm2131_vm4, %v3919_v17, 0.0 }
0x134b   : > { %2861 = vadd.xlane.f32.xlu0 %v2860_v18  ;;  %v3457_v18 = vld [vmem:[%s4746_s16] ss:$0 sm:$0xff] }
0x1361   : > { %2865 = vrot.lane.b32.xlu0 %v4434_v43, %s4795_s2 }
0x1379   : > { %v2770_v22 = vpop.f32.mrb[24].mxu0 }
0x137a   : > { %v2774_v25 = vadd.f32 %v2770_v22, %v2531_v51  ;;  %v3729_v23 = vpop.f32.mrb[25].mxu0  ;;  %v3059_v51 = vld [vmem:[%s4747_s17 + $0x28] sm:$0xff]  ;;  %v3193_v22 = vld [vmem:[%s4749_s19 + $0x98] sm:$0xff] }
0x137b   : > { %v3815_v53 = vpack.c.bf16 %v3061_v52, %v3059_v51  ;;  %v3176_v23 = vld [vmem:[%s4749_s19 + $0x10] sm:$0xff]  ;;  %v3185_v51 = vld [vmem:[%s4749_s19 + $0x58] sm:$0xff]  ;;  %v3202_v52 = vld [vmem:[%s4749_s19 + $0xe0] sm:$0xff] }
0x13d8   : > { %v2862_v24 = vpop.xlane.xlu0 %2861 }
0x13d9   : > { %3920 = vrcp.f32 %v2862_v24  ;;  %v3177_v24 = vld [vmem:[%s4749_s19 + $0x18] sm:$0xff] }
0x13dc   : > { %v2866_v26 = vpop.permute.xlu0 %2865 }
0x13dd   : > { %3736 = vmatpush3.msk.msra.mxu0 %vm2148_vm5, %v2866_v26  ;;  %v3833_v26 = vpack.c.bf16 %v3177_v24, %v3176_v23 }
0x13de   : > { %3812 = vmatprep.subr.bf16.mxu0 %v3811_v48  ;;  %v3201_v48 = vld [vmem:[%s4749_s19 + $0xd8] sm:$0xff] }
0x13e3   : > { %v3921_v29 = vpop.eup %3920 }
0x13e4   : > { %v2864_v43 = vmul.f32 %v3921_v29, %v3919_v17  ;;  %v3194_v29 = vld [vmem:[%s4749_s19 + $0xa0] sm:$0xff] }
0x13e6   : > { %3738 = vmatmul.mubr.msk.f32.vlgmr.msra.gmra.mrb[26].mxu0 %vm2131_vm4, %v2864_v43  ;;  %v3195_v43 = vld [vmem:[%s4749_s19 + $0xa8] sm:$0xff] }
0x13e7   : > { %3149 = vmatprep.mubr.f32.mxu0 %v3971_v0 }
0x14b9   : > { %v2938_v30 = vpop.f32.mrb[26].mxu0 }
0x14ba   : > { %v3739_v31 = vpop.f32.mrb[27].mxu0  ;;  %3745 = vmatmul.mubr.msk.f32.vlgmr.msra.gmra.mrb[24].mxu1 %vm867_vm2, %v2938_v30  ;;  %v3835_v30 = vpack.c.bf16 %v3195_v43, %v3194_v29 }
0x14bb   : > { %3830 = vmatpush3.bf16.msra.mxu1 %v3829_v12  ;;  %v3178_v31 = vld [vmem:[%s4749_s19 + $0x20] sm:$0xff] }
0x158d   : > { %v3011_v33 = vpop.f32.mrb[24].mxu1 }
0x158e   : > { %v3015_v36 = vadd.f32 %v3011_v33, %v2774_v25  ;;  %v3746_v37 = vpop.f32.mrb[25].mxu1  ;;  %v3831_v25 = vpack.c.bf16 %v3193_v22, %v3192_v21  ;;  %v3179_v33 = vld [vmem:[%s4749_s19 + $0x28] sm:$0xff] }
0x158f   : > { %v3197_v37 = vld [vmem:[%s4749_s19 + $0xb8] sm:$0xff] }
0x1590   : > { %v3023_v39 = vadd.f32 %v3455_v35, %v3015_v36  ;;  %3832 = vmatprep.subr.bf16.mxu1 %v3831_v25  ;;  %v3837_v35 = vpack.c.bf16 %v3179_v33, %v3178_v31  ;;  %v3196_v36 = vld [vmem:[%s4749_s19 + $0xb0] sm:$0xff] }
0x1591   : > { %3834 = vmatpush3.bf16.msra.mxu1 %v3833_v26  ;;  %v3459_v26 = vld [vmem:[%s4750_s20] ss:$0 sm:$0xff] }
0x1592   : > { %v3024_v40 = vadd.f32 %v3023_v39, %v4425_v58  ;;  %v3054_v58 = vld [vmem:[%s4747_s17] sm:$0xff]  ;;  %3836 = vmatprep.subr.bf16.mxu1 %v3835_v30  ;;  %v3839_v39 = vpack.c.bf16 %v3197_v37, %v3196_v36 }
0x1593   : > { %v3813_v50 = vpack.c.bf16 %v3056_v49, %v3054_v58  ;;  %v3847_v49 = vpack.c.bf16 %v3201_v48, %v3200_v32 }
0x1594   : > { %v3027_v41 = vsel %vm781_vm0, %v3024_v40, 0.0 }
0x1595   : > { %3028 = vadd.xlane.f32.xlu1 %v3027_v41  ;;  %3814 = vmatpush1.bf16.msra.mxu0 %v3813_v50  ;;  %v3181_v41 = vld [vmem:[%s4749_s19 + $0x38] sm:$0xff]  ;;  %v3184_v50 = vld [vmem:[%s4749_s19 + $0x50] sm:$0xff] }
0x1596   : > { %3816 = vmatprep.subr.bf16.mxu0 %v3815_v53  ;;  %3838 = vmatpush3.bf16.msra.mxu1 %v3837_v35  ;;  %v3203_v53 = vld [vmem:[%s4749_s19 + $0xe8] sm:$0xff]  ;;  %v3849_v54 = vpack.c.bf16 %v3185_v51, %v3184_v50 }
0x1597   : > { %3840 = vmatprep.subr.bf16.mxu1 %v3839_v39  ;;  %v3851_v55 = vpack.c.bf16 %v3203_v53, %v3202_v52 }
0x1599   : > { %3818 = vmatpush1.bf16.msra.mxu0 %v3817_v56  ;;  %v3186_v56 = vld [vmem:[%s4749_s19 + $0x60] sm:$0xff] }
0x159a   : > { %3820 = vmatprep.subr.bf16.mxu0 %v3819_v60  ;;  %v3205_v60 = vld [vmem:[%s4749_s19 + $0xf8] sm:$0xff]  ;;  %v3853_v62 = vpack.c.bf16 %v3187_v57, %v3186_v56 }
0x159b   : > { %v3855_v63 = vpack.c.bf16 %v3205_v60, %v3204_v59 }
0x159d   : > { %3822 = vmatpush1.bf16.msra.mxu0 %v3821_v1  ;;  %v3188_v1 = vld [vmem:[%s4749_s19 + $0x70] sm:$0xff] }
0x159e   : > { %3824 = vmatprep.subr.bf16.mxu0 %v3823_v38  ;;  %v3857_v3 = vpack.c.bf16 %v3189_v2, %v3188_v1  ;;  %v3075_v38 = vrot.slane %v3070_v4, %v773_v28 }
0x15a1   : > { %3826 = vmatpush1.bf16.msra.mxu0 %v3825_v6 }
0x1622   : > { %v3029_v42 = vpop.xlane.xlu1 %3028 }
0x1623   : > { %v3030_v44 = vmul.f32 0.015625, %v3029_v42  ;;  %v3198_v42 = vld [vmem:[%s4749_s19 + $0xc0] sm:$0xff] }
0x1625   : > { %v3031_v0 = vsub.f32 %v3024_v40, %v3030_v44  ;;  %v3180_v40 = vld [vmem:[%s4749_s19 + $0x30] sm:$0xff] }
0x1626   : > { %v3841_v44 = vpack.c.bf16 %v3181_v41, %v3180_v40 }
0x1627   : > { %v3032_v45 = vmul.f32 %v3031_v0, %v3031_v0 }
0x1628   : > { %3842 = vmatpush3.bf16.msra.mxu1 %v3841_v44 }
0x1629   : > { %v3033_v46 = vsel %vm781_vm0, %v3032_v45, 0.0  ;;  %v3182_v45 = vld [vmem:[%s4749_s19 + $0x40] sm:$0xff] }
0x162a   : > { %3034 = vadd.xlane.f32.xlu1 %v3033_v46  ;;  %v3183_v46 = vld [vmem:[%s4749_s19 + $0x48] sm:$0xff] }
0x162b   : > { %v3845_v58 = vpack.c.bf16 %v3183_v46, %v3182_v45  ;;  %v3461_v46 = vld [vmem:[#allocation2] ss:$0 sm:$0xff] }
0x16b7   : > { %v3035_v13 = vpop.xlane.xlu1 %3034 }
0x16b8   : > { %v3036_v14 = vmul.f32 0.015625, %v3035_v13 }
0x16ba   : > { %v3037_v61 = vadd.f32 1e-12, %v3036_v14 }
0x16bc   : > { %3922 = vrsqrt.f32 %v3037_v61 }
0x16c6   : > { %v3923_v15 = vpop.eup %3922 }
0x16c7   : > { %v3039_v17 = vmul.f32 %v3923_v15, %v3031_v0  ;;  %v3199_v0 = vld [vmem:[%s4749_s19 + $0xc8] sm:$0xff] }
0x16c8   : > { %v3843_v47 = vpack.c.bf16 %v3199_v0, %v3198_v42 }
0x16c9   : > { %v3046_v19 = vmul.f32 %v3456_v16, %v3039_v17 }
0x16ca   : > { %3844 = vmatprep.subr.bf16.mxu1 %v3843_v47 }
0x16cb   : > { %v4618_v20 = vadd.f32 %v3457_v18, %v3046_v19  ;;  %3846 = vmatpush3.bf16.msra.mxu1 %v3845_v58 }
0x16cc   : > { %3848 = vmatprep.subr.bf16.mxu1 %v3847_v49 }
0x16cd   : > { %3458 = vmatmul.mubr.msk.f32.vlgmr.msra.gmra.mrb[28].mxu0 %vm781_vm0, %v4618_v20 }
0x16cf   : > { %3850 = vmatpush3.bf16.msra.mxu1 %v3849_v54 }
0x16d0   : > { %3852 = vmatprep.subr.bf16.mxu1 %v3851_v55 }
0x16d3   : > { %3854 = vmatpush3.bf16.msra.mxu1 %v3853_v62 }
0x16d4   : > { %3856 = vmatprep.subr.bf16.mxu1 %v3855_v63 }
0x16d7   : > { %3858 = vmatpush3.bf16.msra.mxu1 %v3857_v3 }
0x17a0   : > { %v3151_v6 = vpop.f32.mrb[28].mxu0 }
0x17a1   : > { %v3152_v7 = vadd.f32 %v3151_v6, %v3075_v38  ;;  %v3153_v8 = vpop.f32.mrb[29].mxu0 }
0x17a2   : > { %v3154_v9 = vadd.f32 %v3153_v8, %v3079_v5 }
0x17a3   : > { %v3158_v10 = vmul.f32 0.044715, %v3152_v7  ;;  %v3156_v22 = vmul.f32 0.5, %v3152_v7 }
0x17a4   : > { %v3159_v11 = vmul.f32 0.044715, %v3154_v9  ;;  %v3157_v34 = vmul.f32 0.5, %v3154_v9 }
0x17a5   : > { %v3160_v12 = vmul.f32 %v3158_v10, %v3152_v7 }
0x17a6   : > { %v3161_v13 = vmul.f32 %v3159_v11, %v3154_v9 }
0x17a7   : > { %v3162_v14 = vmul.f32 %v3160_v12, %v3152_v7 }
0x17a8   : > { %v3163_v61 = vmul.f32 %v3161_v13, %v3154_v9 }
0x17a9   : > { %v3164_v15 = vadd.f32 %v3162_v14, %v3152_v7 }
0x17aa   : > { %v3165_v16 = vadd.f32 %v3163_v61, %v3154_v9 }
0x17ab   : > { %v3166_v17 = vmul.f32 0.7978846, %v3164_v15 }
0x17ac   : > { %v3167_v18 = vmul.f32 0.7978846, %v3165_v16 }
0x17ad   : > { %3924 = vtanh.f32 %v3166_v17 }
0x17ae   : > { %3926 = vtanh.f32 %v3167_v18 }
0x17b7   : > { %v3925_v28 = vpop.eup %3924 }
0x17b8   : > { %v3927_v19 = vpop.eup %3926  ;;  %v3170_v27 = vadd.f32 1.0, %v3925_v28 }
0x17b9   : > { %v3171_v21 = vadd.f32 1.0, %v3927_v19 }
0x17ba   : > { %v3172_v23 = vmul.f32 %v3170_v27, %v3156_v22 }
0x17bb   : > { %v3173_v25 = vmul.f32 %v3171_v21, %v3157_v34 }
0x17bd   : > { %3277 = vmatprep.mubr.f32.mxu1 %v3173_v25 }
0x17be   : > { %3278 = vmatmul.mubr.f32.vlgmr.msra.gmra.mrb[26].mxu1 %v3172_v23 }
0x1891   : > { %v3570_v24 = vpop.f32.mrb[26].mxu1 }
0x1892   : > { %v3571_v29 = vpop.f32.mrb[27].mxu1 }
0x1893   : > { %v3572_v43 = vadd.f32 %v3571_v29, %v3570_v24 }
0x1895   : > { %v3280_v30 = vadd.f32 %v3572_v43, %v3459_v26 }
0x1897   : > { %v3283_v31 = vadd.f32 %v3280_v30, %v4618_v20  ;;  %v3460_v20 = vld [vmem:[%s4751_s21] ss:$0 sm:$0xff] }
0x1899   : > { %v3286_v33 = vsel %vm781_vm0, %v3283_v31, 0.0 }
0x189a   : > { %3287 = vadd.xlane.f32.xlu1 %v3286_v33 }
0x1927   : > { %v3288_v35 = vpop.xlane.xlu1 %3287 }
0x1928   : > { %v3289_v36 = vmul.f32 0.015625, %v3288_v35 }
0x192a   : > { %v3290_v37 = vsub.f32 %v3283_v31, %v3289_v36 }
0x192c   : > { %v3291_v39 = vmul.f32 %v3290_v37, %v3290_v37 }
0x192e   : > { %v3292_v40 = vsel %vm781_vm0, %v3291_v39, 0.0 }
0x192f   : > { %3293 = vadd.xlane.f32.xlu1 %v3292_v40 }
0x19bc   : > { %v3294_v41 = vpop.xlane.xlu1 %3293 }
0x19bd   : > { %v3295_v42 = vmul.f32 0.015625, %v3294_v41 }
0x19bf   : > { %v3296_v44 = vadd.f32 1e-12, %v3295_v42 }
0x19c1   : > { %3928 = vrsqrt.f32 %v3296_v44 }
0x19cb   : > { %v3929_v0 = vpop.eup %3928 }
0x19cc   : > { %v3298_v45 = vmul.f32 %v3929_v0, %v3290_v37 }
0x19ce   : > { %v3305_v47 = vmul.f32 %v3460_v20, %v3298_v45 }
0x19d0   : > { %v3312_v32 = vadd.f32 %v3461_v46, %v3305_v47 }
0x19d2   : > { %3313 = vst.msk [vmem:[%s749_s7] sm:$0xff] %vm781_vm0, %v3312_v32 }
0x19d3 PF: > { %s34_s4 = sadd.s32 1, %s3968_s4  }
0x19d4   : > { %p31_p3 = scmp.ge.s32.totalorder %s34_s4, 4  }
0x19d6   :  { %33 = sbr.rel (!%p31_p3) target bundleno = 10 (0xa), region = 153 }
0x19dd   :  { %3333 = vsyncpa [#allocation3], 1 }
0x19de   :  { %3335 = vsyncpa [#allocation3 + $0x1], 1 }

</bundles_post_ra>
